<compile_context>
chip_gen: v5e
topology: v5e:2x2
jax: 0.10.0
libtpu: 0.0.40
codegen_flags: <defaults>
</compile_context>

<pallas_src>
import jax
import jax.numpy as jnp
from jax.experimental import pallas as pl
from jax.experimental.pallas import tpu as pltpu

HIDDEN = 35  # example hidden_size (non-multiple-of-128 on purpose)


def _round_up(x, m):
    return ((x + m - 1) // m) * m


# --------------------------------------------------------------------------- #
# Kernel
# --------------------------------------------------------------------------- #
def _decoder_kernel(z_ref, h0_ref, c0_ref,
                    wih0_ref, whh0_ref, b0_ref,
                    w1_ref, b1_ref,
                    fcw_ref, fcb_ref,
                    pred_ref, hid_ref, cell_ref):
    B = h0_ref.shape[1]
    HP = h0_ref.shape[2]          # per-gate padded width (multiple of 128)
    T = z_ref.shape[0] // B       # time-major flattened input: rows = t*B + b

    def lstm_act(gates, c):
        # PyTorch gate order i, f, g, o; each gate sits in a lane-aligned
        # 128-wide block so these slices are free vreg selects.
        i = jax.nn.sigmoid(gates[:, 0 * HP:1 * HP])
        f = jax.nn.sigmoid(gates[:, 1 * HP:2 * HP])
        g = jnp.tanh(gates[:, 2 * HP:3 * HP])
        o = jax.nn.sigmoid(gates[:, 3 * HP:4 * HP])
        c_new = f * c + i * g
        h_new = o * jnp.tanh(c_new)
        return h_new, c_new

    # ---- hoisted layer-0 input projection (+ fused bias): one batched matmul
    xg0 = jnp.dot(z_ref[...], wih0_ref[...],
                  preferred_element_type=jnp.float32) + b0_ref[...]

    b1 = b1_ref[...]

    # ---- wavefront recurrence: L0[t] then L1[t] (L0[t+1] independent of L1[t])
    h0l, c0l = h0_ref[0], c0_ref[0]     # layer-0 state, (B, HP) vregs
    h1l, c1l = h0_ref[1], c0_ref[1]     # layer-1 state
    y1 = []
    for t in range(T):
        # layer 0 step t: h @ Whh0 (operand streamed from VMEM) + precomputed xg0
        g0 = (jnp.dot(h0l, whh0_ref[...], preferred_element_type=jnp.float32)
              + xg0[t * B:(t + 1) * B, :])
        h0l, c0l = lstm_act(g0, c0l)

        # layer 1 step t: fused input+recurrent matmul, K = 2*HP = 256
        x1 = jnp.concatenate([h0l, h1l], axis=-1)          # (B, 2*HP)
        g1 = jnp.dot(x1, w1_ref[...], preferred_element_type=jnp.float32) + b1
        h1l, c1l = lstm_act(g1, c1l)
        y1.append(h1l)

    hid_ref[0] = h0l
    cell_ref[0] = c0l
    hid_ref[1] = h1l
    cell_ref[1] = c1l

    # ---- fc head: assemble the output sequence from carried values (no VMEM
    # round-trip) and do one lane-dense batched matmul.
    y1_seq = jnp.concatenate(y1, axis=0)                    # (T*B, HP), time-major
    pred_ref[...] = (jnp.dot(y1_seq, fcw_ref[...],
                             preferred_element_type=jnp.float32) + fcb_ref[...])


# --------------------------------------------------------------------------- #
# Wrapper
# --------------------------------------------------------------------------- #
def decoder_forward(z, hidden, packed_params):
    """z: (B, T, I) f32, hidden = (h0, c0) each (2, B, H) f32
       -> (prediction (B, T, I), (h_n, c_n) each (2, B, H))."""
    h0, c0 = hidden
    B, T, I = z.shape
    H = h0.shape[-1]
    HP = _round_up(H, 128)
    IP = _round_up(I, 128)
    (wih0_p, whh0_p, b0_p, w1_p, b1_p, fcw_p, fcb_p) = packed_params

    # Layout plumbing in the wrapper (free XLA ops on tiny arrays):
    # time-major flatten of z, lane-padding of the incoming hidden state.
    z2d = jnp.transpose(z, (1, 0, 2)).reshape(T * B, I).astype(jnp.float32)
    h0_p = jnp.zeros((2, B, HP), jnp.float32).at[:, :, :H].set(h0)
    c0_p = jnp.zeros((2, B, HP), jnp.float32).at[:, :, :H].set(c0)

    vmem = pl.BlockSpec(memory_space=pltpu.MemorySpace.VMEM)
    out_shape = (jax.ShapeDtypeStruct((T * B, IP), jnp.float32),  # prediction (lane-dense)
                 jax.ShapeDtypeStruct((2, B, HP), jnp.float32),   # h_n (lane-padded)
                 jax.ShapeDtypeStruct((2, B, HP), jnp.float32))   # c_n (lane-padded)

    # Gridless single invocation: B=2/T=8 per-element work is far below the
    # ~0.35us/grid-step overhead, so a v7x 2-TC batch grid is not worth it here.
    pred2d, hid_p, cell_p = pl.pallas_call(
        _decoder_kernel,
        out_shape=out_shape,
        in_specs=[vmem] * 10,
        out_specs=(vmem, vmem, vmem),
    )(z2d, h0_p, c0_p, wih0_p, whh0_p, b0_p, w1_p, b1_p, fcw_p, fcb_p)

    prediction = pred2d[:, :I].reshape(T, B, I).transpose(1, 0, 2)  # back to batch_first
    return prediction, (hid_p[:, :, :H], cell_p[:, :, :H])


# --------------------------------------------------------------------------- #
# Parameters (PyTorch-style init) + packing into the padded kernel layout
# --------------------------------------------------------------------------- #
def init_params(key, input_size, hidden_size=HIDDEN):
    H = hidden_size
    HP = _round_up(H, 128)
    IP = _round_up(input_size, 128)
    bound = 1.0 / float(H) ** 0.5
    ks = jax.random.split(key, 10)

    def u(k, shape):
        return jax.random.uniform(k, shape, jnp.float32, -bound, bound)

    # Raw params in PyTorch layout (gate order i, f, g, o).
    wih0 = u(ks[0], (4 * H, input_size)); whh0 = u(ks[1], (4 * H, H))
    bih0 = u(ks[2], (4 * H,));            bhh0 = u(ks[3], (4 * H,))
    wih1 = u(ks[4], (4 * H, H));          whh1 = u(ks[5], (4 * H, H))
    bih1 = u(ks[6], (4 * H,));            bhh1 = u(ks[7], (4 * H,))
    fc_w = u(ks[8], (input_size, H));     fc_b = u(ks[9], (input_size,))
    raw = (wih0, whh0, bih0, bhh0, wih1, whh1, bih1, bhh1, fc_w, fc_b)

    def pack_w(w):  # (4H, K) torch layout -> (K, 4*HP), gates lane-padded with zeros
        wt = w.T
        out = jnp.zeros((wt.shape[0], 4 * HP), jnp.float32)
        for g in range(4):
            out = out.at[:, g * HP:g * HP + H].set(wt[:, g * H:(g + 1) * H])
        return out

    def pack_b(bi, bh):  # fused bias, lane-padded per gate
        b = bi + bh
        out = jnp.zeros((1, 4 * HP), jnp.float32)
        for g in range(4):
            out = out.at[0, g * HP:g * HP + H].set(b[g * H:(g + 1) * H])
        return out

    def pad_rows(w, rows):  # zero rows so padded h-lanes can't leak into real lanes
        return jnp.zeros((rows, w.shape[1]), jnp.float32).at[:w.shape[0]].set(w)

    wih0_p = pack_w(wih0)                                  # (I, 4HP)
    whh0_p = pad_rows(pack_w(whh0), HP)                    # (HP, 4HP)
    b0_p = pack_b(bih0, bhh0)                              # (1, 4HP)
    # Fused layer-1 weight: concat([y0_t, h1]) @ [wih1_packed ; whh1_packed]
    w1_p = jnp.concatenate([pad_rows(pack_w(wih1), HP),
                            pad_rows(pack_w(whh1), HP)], axis=0)   # (2*HP, 4HP)
    b1_p = pack_b(bih1, bhh1)                              # (1, 4HP)
    # Lane-dense fc head: pad both contraction rows and output lanes.
    fcw_p = jnp.zeros((HP, IP), jnp.float32).at[:H, :input_size].set(fc_w.T)  # (HP, IP)
    fcb_p = jnp.zeros((1, IP), jnp.float32).at[0, :input_size].set(fc_b)      # (1, IP)

    packed = (wih0_p, whh0_p, b0_p, w1_p, b1_p, fcw_p, fcb_p)
    return packed, raw


# --------------------------------------------------------------------------- #
# Pure-JAX reference (torch semantics, eval mode)
# --------------------------------------------------------------------------- #
def decoder_reference(z, hidden, raw):
    (wih0, whh0, bih0, bhh0, wih1, whh1, bih1, bhh1, fc_w, fc_b) = raw
    h0, c0 = hidden
    B, T, _ = z.shape
    H = whh0.shape[1]
    hi = lambda a, b: jnp.dot(a, b, precision=jax.lax.Precision.HIGHEST)

    def cell(x, h, c, wih, whh, bi, bh):
        gates = hi(x, wih.T) + hi(h, whh.T) + bi + bh
        i = jax.nn.sigmoid(gates[:, 0:H]); f = jax.nn.sigmoid(gates[:, H:2 * H])
        g = jnp.tanh(gates[:, 2 * H:3 * H]); o = jax.nn.sigmoid(gates[:, 3 * H:4 * H])
        c2 = f * c + i * g
        return o * jnp.tanh(c2), c2

    h_l = [h0[0], h0[1]]
    c_l = [c0[0], c0[1]]
    outs = []
    for t in range(T):
        x = z[:, t, :]
        h_l[0], c_l[0] = cell(x, h_l[0], c_l[0], wih0, whh0, bih0, bhh0)
        h_l[1], c_l[1] = cell(h_l[0], h_l[1], c_l[1], wih1, whh1, bih1, bhh1)
        outs.append(h_l[1])
    out = jnp.stack(outs, axis=1)                        # (B, T, H)
    pred = hi(out, fc_w.T) + fc_b
    return pred, (jnp.stack(h_l), jnp.stack(c_l))


# --------------------------------------------------------------------------- #
if __name__ == "__main__":
    key = jax.random.PRNGKey(0)
    k_param, k_z, k_h, k_c = jax.random.split(key, 4)

    batch, seq, input_size, hidden_size = 2, 8, 16, HIDDEN
    packed, raw = init_params(k_param, input_size, hidden_size)

    z = jax.random.normal(k_z, (batch, seq, input_size), dtype=jnp.float32)
    h0 = jax.random.normal(k_h, (2, batch, hidden_size), dtype=jnp.float32)
    c0 = jax.random.normal(k_c, (2, batch, hidden_size), dtype=jnp.float32)

    pred, (hid, cel) = decoder_forward(z, (h0, c0), packed)
    pred, hid, cel = jax.block_until_ready((pred, hid, cel))

    assert pred.shape == (batch, seq, input_size)
    assert hid.shape == (2, batch, hidden_size) and cel.shape == (2, batch, hidden_size)
    assert bool(jnp.all(jnp.isfinite(pred)))
    assert bool(jnp.all(jnp.isfinite(hid))) and bool(jnp.all(jnp.isfinite(cel)))

    # Numerical check against a pure-JAX reference of the PyTorch forward.
    pred_r, (hid_r, cel_r) = decoder_reference(z, (h0, c0), raw)
    assert bool(jnp.allclose(pred, pred_r, atol=5e-3, rtol=5e-3))
    assert bool(jnp.allclose(hid, hid_r, atol=5e-3, rtol=5e-3))
    assert bool(jnp.allclose(cel, cel_r, atol=5e-3, rtol=5e-3))

    print("KERNEL_OK")
</pallas_src>

<mosaic_0001>
module attributes {stable_mosaic.version = 11 : i64} {
  func.func @_decoder_kernel(%arg0: memref<16x16xf32, #tpu.memory_space<vmem>>, %arg1: memref<2x2x128xf32, #tpu.memory_space<vmem>>, %arg2: memref<2x2x128xf32, #tpu.memory_space<vmem>>, %arg3: memref<16x512xf32, #tpu.memory_space<vmem>>, %arg4: memref<128x512xf32, #tpu.memory_space<vmem>>, %arg5: memref<1x512xf32, #tpu.memory_space<vmem>>, %arg6: memref<256x512xf32, #tpu.memory_space<vmem>>, %arg7: memref<1x512xf32, #tpu.memory_space<vmem>>, %arg8: memref<128x128xf32, #tpu.memory_space<vmem>>, %arg9: memref<1x128xf32, #tpu.memory_space<vmem>>, %arg10: memref<16x128xf32, #tpu.memory_space<vmem>>, %arg11: memref<2x2x128xf32, #tpu.memory_space<vmem>>, %arg12: memref<2x2x128xf32, #tpu.memory_space<vmem>>) attributes {dimension_semantics = [], scalar_prefetch = 0 : i64, scratch_operands = 0 : i64, tpu.core_type = #tpu.core_type<tc>} {
    %c0 = arith.constant 0 : index
    %c0_0 = arith.constant 0 : index
    %0 = vector.load %arg0[%c0, %c0_0] : memref<16x16xf32, #tpu.memory_space<vmem>>, vector<16x16xf32>
    %c0_1 = arith.constant 0 : index
    %c0_2 = arith.constant 0 : index
    %1 = vector.load %arg3[%c0_1, %c0_2] : memref<16x512xf32, #tpu.memory_space<vmem>>, vector<16x512xf32>
    %cst = arith.constant dense<0.000000e+00> : vector<16x512xf32>
    %2 = tpu.matmul %0, %1, %cst {dimension_numbers = #tpu.dot_dimension_numbers<[1], [0], [0], [1], [0, 0, 1, 1], [], []>} : vector<16x16xf32>, vector<16x512xf32>, vector<16x512xf32> -> vector<16x512xf32>
    %c0_3 = arith.constant 0 : index
    %c0_4 = arith.constant 0 : index
    %3 = vector.load %arg5[%c0_3, %c0_4] : memref<1x512xf32, #tpu.memory_space<vmem>>, vector<1x512xf32>
    %4 = vector.broadcast %3 : vector<1x512xf32> to vector<16x512xf32>
    %5 = arith.addf %2, %4 : vector<16x512xf32>
    %c0_5 = arith.constant 0 : index
    %c0_6 = arith.constant 0 : index
    %6 = vector.load %arg7[%c0_5, %c0_6] : memref<1x512xf32, #tpu.memory_space<vmem>>, vector<1x512xf32>
    %c0_7 = arith.constant 0 : index
    %c0_8 = arith.constant 0 : index
    %c0_9 = arith.constant 0 : index
    %7 = vector.load %arg1[%c0_7, %c0_8, %c0_9] : memref<2x2x128xf32, #tpu.memory_space<vmem>>, vector<1x2x128xf32>
    %8 = vector.shape_cast %7 : vector<1x2x128xf32> to vector<2x128xf32>
    %c0_10 = arith.constant 0 : index
    %c0_11 = arith.constant 0 : index
    %c0_12 = arith.constant 0 : index
    %9 = vector.load %arg2[%c0_10, %c0_11, %c0_12] : memref<2x2x128xf32, #tpu.memory_space<vmem>>, vector<1x2x128xf32>
    %10 = vector.shape_cast %9 : vector<1x2x128xf32> to vector<2x128xf32>
    %c1 = arith.constant 1 : index
    %c0_13 = arith.constant 0 : index
    %c0_14 = arith.constant 0 : index
    %11 = vector.load %arg1[%c1, %c0_13, %c0_14] : memref<2x2x128xf32, #tpu.memory_space<vmem>>, vector<1x2x128xf32>
    %12 = vector.shape_cast %11 : vector<1x2x128xf32> to vector<2x128xf32>
    %c1_15 = arith.constant 1 : index
    %c0_16 = arith.constant 0 : index
    %c0_17 = arith.constant 0 : index
    %13 = vector.load %arg2[%c1_15, %c0_16, %c0_17] : memref<2x2x128xf32, #tpu.memory_space<vmem>>, vector<1x2x128xf32>
    %14 = vector.shape_cast %13 : vector<1x2x128xf32> to vector<2x128xf32>
    %c0_18 = arith.constant 0 : index
    %c0_19 = arith.constant 0 : index
    %15 = vector.load %arg4[%c0_18, %c0_19] : memref<128x512xf32, #tpu.memory_space<vmem>>, vector<128x512xf32>
    %cst_20 = arith.constant dense<0.000000e+00> : vector<2x512xf32>
    %16 = tpu.matmul %8, %15, %cst_20 {dimension_numbers = #tpu.dot_dimension_numbers<[1], [0], [0], [1], [0, 0, 1, 1], [], []>} : vector<2x128xf32>, vector<128x512xf32>, vector<2x512xf32> -> vector<2x512xf32>
    %17 = vector.extract_strided_slice %5 {offsets = [0, 0], sizes = [2, 512], strides = [1, 1]} : vector<16x512xf32> to vector<2x512xf32>
    %18 = arith.addf %16, %17 : vector<2x512xf32>
    %19 = vector.extract_strided_slice %18 {offsets = [0, 0], sizes = [2, 128], strides = [1, 1]} : vector<2x512xf32> to vector<2x128xf32>
    %20 = arith.negf %19 : vector<2x128xf32>
    %21 = math.exp %20 : vector<2x128xf32>
    %cst_21 = arith.constant 1.000000e+00 : f32
    %22 = vector.broadcast %cst_21 : f32 to vector<2x128xf32>
    %23 = arith.addf %22, %21 : vector<2x128xf32>
    %24 = arith.divf %22, %23 : vector<2x128xf32>
    %25 = vector.extract_strided_slice %18 {offsets = [0, 128], sizes = [2, 128], strides = [1, 1]} : vector<2x512xf32> to vector<2x128xf32>
    %26 = arith.negf %25 : vector<2x128xf32>
    %27 = math.exp %26 : vector<2x128xf32>
    %cst_22 = arith.constant 1.000000e+00 : f32
    %28 = vector.broadcast %cst_22 : f32 to vector<2x128xf32>
    %29 = arith.addf %28, %27 : vector<2x128xf32>
    %30 = arith.divf %28, %29 : vector<2x128xf32>
    %31 = vector.extract_strided_slice %18 {offsets = [0, 256], sizes = [2, 128], strides = [1, 1]} : vector<2x512xf32> to vector<2x128xf32>
    %32 = math.tanh %31 : vector<2x128xf32>
    %33 = vector.extract_strided_slice %18 {offsets = [0, 384], sizes = [2, 128], strides = [1, 1]} : vector<2x512xf32> to vector<2x128xf32>
    %34 = arith.negf %33 : vector<2x128xf32>
    %35 = math.exp %34 : vector<2x128xf32>
    %cst_23 = arith.constant 1.000000e+00 : f32
    %36 = vector.broadcast %cst_23 : f32 to vector<2x128xf32>
    %37 = arith.addf %36, %35 : vector<2x128xf32>
    %38 = arith.divf %36, %37 : vector<2x128xf32>
    %39 = arith.mulf %30, %10 : vector<2x128xf32>
    %40 = arith.mulf %24, %32 : vector<2x128xf32>
    %41 = arith.addf %39, %40 : vector<2x128xf32>
    %42 = math.tanh %41 : vector<2x128xf32>
    %43 = arith.mulf %38, %42 : vector<2x128xf32>
    %44 = tpu.concatenate %43, %12 in 1 : vector<2x128xf32>, vector<2x128xf32> -> vector<2x256xf32>
    %c0_24 = arith.constant 0 : index
    %c0_25 = arith.constant 0 : index
    %45 = vector.load %arg6[%c0_24, %c0_25] : memref<256x512xf32, #tpu.memory_space<vmem>>, vector<256x512xf32>
    %cst_26 = arith.constant dense<0.000000e+00> : vector<2x512xf32>
    %46 = tpu.matmul %44, %45, %cst_26 {dimension_numbers = #tpu.dot_dimension_numbers<[1], [0], [0], [1], [0, 0, 1, 1], [], []>} : vector<2x256xf32>, vector<256x512xf32>, vector<2x512xf32> -> vector<2x512xf32>
    %47 = vector.broadcast %6 : vector<1x512xf32> to vector<2x512xf32>
    %48 = arith.addf %46, %47 : vector<2x512xf32>
    %49 = vector.extract_strided_slice %48 {offsets = [0, 0], sizes = [2, 128], strides = [1, 1]} : vector<2x512xf32> to vector<2x128xf32>
    %50 = arith.negf %49 : vector<2x128xf32>
    %51 = math.exp %50 : vector<2x128xf32>
    %cst_27 = arith.constant 1.000000e+00 : f32
    %52 = vector.broadcast %cst_27 : f32 to vector<2x128xf32>
    %53 = arith.addf %52, %51 : vector<2x128xf32>
    %54 = arith.divf %52, %53 : vector<2x128xf32>
    %55 = vector.extract_strided_slice %48 {offsets = [0, 128], sizes = [2, 128], strides = [1, 1]} : vector<2x512xf32> to vector<2x128xf32>
    %56 = arith.negf %55 : vector<2x128xf32>
    %57 = math.exp %56 : vector<2x128xf32>
    %cst_28 = arith.constant 1.000000e+00 : f32
    %58 = vector.broadcast %cst_28 : f32 to vector<2x128xf32>
    %59 = arith.addf %58, %57 : vector<2x128xf32>
    %60 = arith.divf %58, %59 : vector<2x128xf32>
    %61 = vector.extract_strided_slice %48 {offsets = [0, 256], sizes = [2, 128], strides = [1, 1]} : vector<2x512xf32> to vector<2x128xf32>
    %62 = math.tanh %61 : vector<2x128xf32>
    %63 = vector.extract_strided_slice %48 {offsets = [0, 384], sizes = [2, 128], strides = [1, 1]} : vector<2x512xf32> to vector<2x128xf32>
    %64 = arith.negf %63 : vector<2x128xf32>
    %65 = math.exp %64 : vector<2x128xf32>
    %cst_29 = arith.constant 1.000000e+00 : f32
    %66 = vector.broadcast %cst_29 : f32 to vector<2x128xf32>
    %67 = arith.addf %66, %65 : vector<2x128xf32>
    %68 = arith.divf %66, %67 : vector<2x128xf32>
    %69 = arith.mulf %60, %14 : vector<2x128xf32>
    %70 = arith.mulf %54, %62 : vector<2x128xf32>
    %71 = arith.addf %69, %70 : vector<2x128xf32>
    %72 = math.tanh %71 : vector<2x128xf32>
    %73 = arith.mulf %68, %72 : vector<2x128xf32>
    %c0_30 = arith.constant 0 : index
    %c0_31 = arith.constant 0 : index
    %74 = vector.load %arg4[%c0_30, %c0_31] : memref<128x512xf32, #tpu.memory_space<vmem>>, vector<128x512xf32>
    %cst_32 = arith.constant dense<0.000000e+00> : vector<2x512xf32>
    %75 = tpu.matmul %43, %74, %cst_32 {dimension_numbers = #tpu.dot_dimension_numbers<[1], [0], [0], [1], [0, 0, 1, 1], [], []>} : vector<2x128xf32>, vector<128x512xf32>, vector<2x512xf32> -> vector<2x512xf32>
    %76 = vector.extract_strided_slice %5 {offsets = [2, 0], sizes = [2, 512], strides = [1, 1]} : vector<16x512xf32> to vector<2x512xf32>
    %77 = arith.addf %75, %76 : vector<2x512xf32>
    %78 = vector.extract_strided_slice %77 {offsets = [0, 0], sizes = [2, 128], strides = [1, 1]} : vector<2x512xf32> to vector<2x128xf32>
    %79 = arith.negf %78 : vector<2x128xf32>
    %80 = math.exp %79 : vector<2x128xf32>
    %cst_33 = arith.constant 1.000000e+00 : f32
    %81 = vector.broadcast %cst_33 : f32 to vector<2x128xf32>
    %82 = arith.addf %81, %80 : vector<2x128xf32>
    %83 = arith.divf %81, %82 : vector<2x128xf32>
    %84 = vector.extract_strided_slice %77 {offsets = [0, 128], sizes = [2, 128], strides = [1, 1]} : vector<2x512xf32> to vector<2x128xf32>
    %85 = arith.negf %84 : vector<2x128xf32>
    %86 = math.exp %85 : vector<2x128xf32>
    %cst_34 = arith.constant 1.000000e+00 : f32
    %87 = vector.broadcast %cst_34 : f32 to vector<2x128xf32>
    %88 = arith.addf %87, %86 : vector<2x128xf32>
    %89 = arith.divf %87, %88 : vector<2x128xf32>
    %90 = vector.extract_strided_slice %77 {offsets = [0, 256], sizes = [2, 128], strides = [1, 1]} : vector<2x512xf32> to vector<2x128xf32>
    %91 = math.tanh %90 : vector<2x128xf32>
    %92 = vector.extract_strided_slice %77 {offsets = [0, 384], sizes = [2, 128], strides = [1, 1]} : vector<2x512xf32> to vector<2x128xf32>
    %93 = arith.negf %92 : vector<2x128xf32>
    %94 = math.exp %93 : vector<2x128xf32>
    %cst_35 = arith.constant 1.000000e+00 : f32
    %95 = vector.broadcast %cst_35 : f32 to vector<2x128xf32>
    %96 = arith.addf %95, %94 : vector<2x128xf32>
    %97 = arith.divf %95, %96 : vector<2x128xf32>
    %98 = arith.mulf %89, %41 : vector<2x128xf32>
    %99 = arith.mulf %83, %91 : vector<2x128xf32>
    %100 = arith.addf %98, %99 : vector<2x128xf32>
    %101 = math.tanh %100 : vector<2x128xf32>
    %102 = arith.mulf %97, %101 : vector<2x128xf32>
    %103 = tpu.concatenate %102, %73 in 1 : vector<2x128xf32>, vector<2x128xf32> -> vector<2x256xf32>
    %c0_36 = arith.constant 0 : index
    %c0_37 = arith.constant 0 : index
    %104 = vector.load %arg6[%c0_36, %c0_37] : memref<256x512xf32, #tpu.memory_space<vmem>>, vector<256x512xf32>
    %cst_38 = arith.constant dense<0.000000e+00> : vector<2x512xf32>
    %105 = tpu.matmul %103, %104, %cst_38 {dimension_numbers = #tpu.dot_dimension_numbers<[1], [0], [0], [1], [0, 0, 1, 1], [], []>} : vector<2x256xf32>, vector<256x512xf32>, vector<2x512xf32> -> vector<2x512xf32>
    %106 = vector.broadcast %6 : vector<1x512xf32> to vector<2x512xf32>
    %107 = arith.addf %105, %106 : vector<2x512xf32>
    %108 = vector.extract_strided_slice %107 {offsets = [0, 0], sizes = [2, 128], strides = [1, 1]} : vector<2x512xf32> to vector<2x128xf32>
    %109 = arith.negf %108 : vector<2x128xf32>
    %110 = math.exp %109 : vector<2x128xf32>
    %cst_39 = arith.constant 1.000000e+00 : f32
    %111 = vector.broadcast %cst_39 : f32 to vector<2x128xf32>
    %112 = arith.addf %111, %110 : vector<2x128xf32>
    %113 = arith.divf %111, %112 : vector<2x128xf32>
    %114 = vector.extract_strided_slice %107 {offsets = [0, 128], sizes = [2, 128], strides = [1, 1]} : vector<2x512xf32> to vector<2x128xf32>
    %115 = arith.negf %114 : vector<2x128xf32>
    %116 = math.exp %115 : vector<2x128xf32>
    %cst_40 = arith.constant 1.000000e+00 : f32
    %117 = vector.broadcast %cst_40 : f32 to vector<2x128xf32>
    %118 = arith.addf %117, %116 : vector<2x128xf32>
    %119 = arith.divf %117, %118 : vector<2x128xf32>
    %120 = vector.extract_strided_slice %107 {offsets = [0, 256], sizes = [2, 128], strides = [1, 1]} : vector<2x512xf32> to vector<2x128xf32>
    %121 = math.tanh %120 : vector<2x128xf32>
    %122 = vector.extract_strided_slice %107 {offsets = [0, 384], sizes = [2, 128], strides = [1, 1]} : vector<2x512xf32> to vector<2x128xf32>
    %123 = arith.negf %122 : vector<2x128xf32>
    %124 = math.exp %123 : vector<2x128xf32>
    %cst_41 = arith.constant 1.000000e+00 : f32
    %125 = vector.broadcast %cst_41 : f32 to vector<2x128xf32>
    %126 = arith.addf %125, %124 : vector<2x128xf32>
    %127 = arith.divf %125, %126 : vector<2x128xf32>
    %128 = arith.mulf %119, %71 : vector<2x128xf32>
    %129 = arith.mulf %113, %121 : vector<2x128xf32>
    %130 = arith.addf %128, %129 : vector<2x128xf32>
    %131 = math.tanh %130 : vector<2x128xf32>
    %132 = arith.mulf %127, %131 : vector<2x128xf32>
    %c0_42 = arith.constant 0 : index
    %c0_43 = arith.constant 0 : index
    %133 = vector.load %arg4[%c0_42, %c0_43] : memref<128x512xf32, #tpu.memory_space<vmem>>, vector<128x512xf32>
    %cst_44 = arith.constant dense<0.000000e+00> : vector<2x512xf32>
    %134 = tpu.matmul %102, %133, %cst_44 {dimension_numbers = #tpu.dot_dimension_numbers<[1], [0], [0], [1], [0, 0, 1, 1], [], []>} : vector<2x128xf32>, vector<128x512xf32>, vector<2x512xf32> -> vector<2x512xf32>
    %135 = vector.extract_strided_slice %5 {offsets = [4, 0], sizes = [2, 512], strides = [1, 1]} : vector<16x512xf32> to vector<2x512xf32>
    %136 = arith.addf %134, %135 : vector<2x512xf32>
    %137 = vector.extract_strided_slice %136 {offsets = [0, 0], sizes = [2, 128], strides = [1, 1]} : vector<2x512xf32> to vector<2x128xf32>
    %138 = arith.negf %137 : vector<2x128xf32>
    %139 = math.exp %138 : vector<2x128xf32>
    %cst_45 = arith.constant 1.000000e+00 : f32
    %140 = vector.broadcast %cst_45 : f32 to vector<2x128xf32>
    %141 = arith.addf %140, %139 : vector<2x128xf32>
    %142 = arith.divf %140, %141 : vector<2x128xf32>
    %143 = vector.extract_strided_slice %136 {offsets = [0, 128], sizes = [2, 128], strides = [1, 1]} : vector<2x512xf32> to vector<2x128xf32>
    %144 = arith.negf %143 : vector<2x128xf32>
    %145 = math.exp %144 : vector<2x128xf32>
    %cst_46 = arith.constant 1.000000e+00 : f32
    %146 = vector.broadcast %cst_46 : f32 to vector<2x128xf32>
    %147 = arith.addf %146, %145 : vector<2x128xf32>
    %148 = arith.divf %146, %147 : vector<2x128xf32>
    %149 = vector.extract_strided_slice %136 {offsets = [0, 256], sizes = [2, 128], strides = [1, 1]} : vector<2x512xf32> to vector<2x128xf32>
    %150 = math.tanh %149 : vector<2x128xf32>
    %151 = vector.extract_strided_slice %136 {offsets = [0, 384], sizes = [2, 128], strides = [1, 1]} : vector<2x512xf32> to vector<2x128xf32>
    %152 = arith.negf %151 : vector<2x128xf32>
    %153 = math.exp %152 : vector<2x128xf32>
    %cst_47 = arith.constant 1.000000e+00 : f32
    %154 = vector.broadcast %cst_47 : f32 to vector<2x128xf32>
    %155 = arith.addf %154, %153 : vector<2x128xf32>
    %156 = arith.divf %154, %155 : vector<2x128xf32>
    %157 = arith.mulf %148, %100 : vector<2x128xf32>
    %158 = arith.mulf %142, %150 : vector<2x128xf32>
    %159 = arith.addf %157, %158 : vector<2x128xf32>
    %160 = math.tanh %159 : vector<2x128xf32>
    %161 = arith.mulf %156, %160 : vector<2x128xf32>
    %162 = tpu.concatenate %161, %132 in 1 : vector<2x128xf32>, vector<2x128xf32> -> vector<2x256xf32>
    %c0_48 = arith.constant 0 : index
    %c0_49 = arith.constant 0 : index
    %163 = vector.load %arg6[%c0_48, %c0_49] : memref<256x512xf32, #tpu.memory_space<vmem>>, vector<256x512xf32>
    %cst_50 = arith.constant dense<0.000000e+00> : vector<2x512xf32>
    %164 = tpu.matmul %162, %163, %cst_50 {dimension_numbers = #tpu.dot_dimension_numbers<[1], [0], [0], [1], [0, 0, 1, 1], [], []>} : vector<2x256xf32>, vector<256x512xf32>, vector<2x512xf32> -> vector<2x512xf32>
    %165 = vector.broadcast %6 : vector<1x512xf32> to vector<2x512xf32>
    %166 = arith.addf %164, %165 : vector<2x512xf32>
    %167 = vector.extract_strided_slice %166 {offsets = [0, 0], sizes = [2, 128], strides = [1, 1]} : vector<2x512xf32> to vector<2x128xf32>
    %168 = arith.negf %167 : vector<2x128xf32>
    %169 = math.exp %168 : vector<2x128xf32>
    %cst_51 = arith.constant 1.000000e+00 : f32
    %170 = vector.broadcast %cst_51 : f32 to vector<2x128xf32>
    %171 = arith.addf %170, %169 : vector<2x128xf32>
    %172 = arith.divf %170, %171 : vector<2x128xf32>
    %173 = vector.extract_strided_slice %166 {offsets = [0, 128], sizes = [2, 128], strides = [1, 1]} : vector<2x512xf32> to vector<2x128xf32>
    %174 = arith.negf %173 : vector<2x128xf32>
    %175 = math.exp %174 : vector<2x128xf32>
    %cst_52 = arith.constant 1.000000e+00 : f32
    %176 = vector.broadcast %cst_52 : f32 to vector<2x128xf32>
    %177 = arith.addf %176, %175 : vector<2x128xf32>
    %178 = arith.divf %176, %177 : vector<2x128xf32>
    %179 = vector.extract_strided_slice %166 {offsets = [0, 256], sizes = [2, 128], strides = [1, 1]} : vector<2x512xf32> to vector<2x128xf32>
    %180 = math.tanh %179 : vector<2x128xf32>
    %181 = vector.extract_strided_slice %166 {offsets = [0, 384], sizes = [2, 128], strides = [1, 1]} : vector<2x512xf32> to vector<2x128xf32>
    %182 = arith.negf %181 : vector<2x128xf32>
    %183 = math.exp %182 : vector<2x128xf32>
    %cst_53 = arith.constant 1.000000e+00 : f32
    %184 = vector.broadcast %cst_53 : f32 to vector<2x128xf32>
    %185 = arith.addf %184, %183 : vector<2x128xf32>
    %186 = arith.divf %184, %185 : vector<2x128xf32>
    %187 = arith.mulf %178, %130 : vector<2x128xf32>
    %188 = arith.mulf %172, %180 : vector<2x128xf32>
    %189 = arith.addf %187, %188 : vector<2x128xf32>
    %190 = math.tanh %189 : vector<2x128xf32>
    %191 = arith.mulf %186, %190 : vector<2x128xf32>
    %c0_54 = arith.constant 0 : index
    %c0_55 = arith.constant 0 : index
    %192 = vector.load %arg4[%c0_54, %c0_55] : memref<128x512xf32, #tpu.memory_space<vmem>>, vector<128x512xf32>
    %cst_56 = arith.constant dense<0.000000e+00> : vector<2x512xf32>
    %193 = tpu.matmul %161, %192, %cst_56 {dimension_numbers = #tpu.dot_dimension_numbers<[1], [0], [0], [1], [0, 0, 1, 1], [], []>} : vector<2x128xf32>, vector<128x512xf32>, vector<2x512xf32> -> vector<2x512xf32>
    %194 = vector.extract_strided_slice %5 {offsets = [6, 0], sizes = [2, 512], strides = [1, 1]} : vector<16x512xf32> to vector<2x512xf32>
    %195 = arith.addf %193, %194 : vector<2x512xf32>
    %196 = vector.extract_strided_slice %195 {offsets = [0, 0], sizes = [2, 128], strides = [1, 1]} : vector<2x512xf32> to vector<2x128xf32>
    %197 = arith.negf %196 : vector<2x128xf32>
    %198 = math.exp %197 : vector<2x128xf32>
    %cst_57 = arith.constant 1.000000e+00 : f32
    %199 = vector.broadcast %cst_57 : f32 to vector<2x128xf32>
    %200 = arith.addf %199, %198 : vector<2x128xf32>
    %201 = arith.divf %199, %200 : vector<2x128xf32>
    %202 = vector.extract_strided_slice %195 {offsets = [0, 128], sizes = [2, 128], strides = [1, 1]} : vector<2x512xf32> to vector<2x128xf32>
    %203 = arith.negf %202 : vector<2x128xf32>
    %204 = math.exp %203 : vector<2x128xf32>
    %cst_58 = arith.constant 1.000000e+00 : f32
    %205 = vector.broadcast %cst_58 : f32 to vector<2x128xf32>
    %206 = arith.addf %205, %204 : vector<2x128xf32>
    %207 = arith.divf %205, %206 : vector<2x128xf32>
    %208 = vector.extract_strided_slice %195 {offsets = [0, 256], sizes = [2, 128], strides = [1, 1]} : vector<2x512xf32> to vector<2x128xf32>
    %209 = math.tanh %208 : vector<2x128xf32>
    %210 = vector.extract_strided_slice %195 {offsets = [0, 384], sizes = [2, 128], strides = [1, 1]} : vector<2x512xf32> to vector<2x128xf32>
    %211 = arith.negf %210 : vector<2x128xf32>
    %212 = math.exp %211 : vector<2x128xf32>
    %cst_59 = arith.constant 1.000000e+00 : f32
    %213 = vector.broadcast %cst_59 : f32 to vector<2x128xf32>
    %214 = arith.addf %213, %212 : vector<2x128xf32>
    %215 = arith.divf %213, %214 : vector<2x128xf32>
    %216 = arith.mulf %207, %159 : vector<2x128xf32>
    %217 = arith.mulf %201, %209 : vector<2x128xf32>
    %218 = arith.addf %216, %217 : vector<2x128xf32>
    %219 = math.tanh %218 : vector<2x128xf32>
    %220 = arith.mulf %215, %219 : vector<2x128xf32>
    %221 = tpu.concatenate %220, %191 in 1 : vector<2x128xf32>, vector<2x128xf32> -> vector<2x256xf32>
    %c0_60 = arith.constant 0 : index
    %c0_61 = arith.constant 0 : index
    %222 = vector.load %arg6[%c0_60, %c0_61] : memref<256x512xf32, #tpu.memory_space<vmem>>, vector<256x512xf32>
    %cst_62 = arith.constant dense<0.000000e+00> : vector<2x512xf32>
    %223 = tpu.matmul %221, %222, %cst_62 {dimension_numbers = #tpu.dot_dimension_numbers<[1], [0], [0], [1], [0, 0, 1, 1], [], []>} : vector<2x256xf32>, vector<256x512xf32>, vector<2x512xf32> -> vector<2x512xf32>
    %224 = vector.broadcast %6 : vector<1x512xf32> to vector<2x512xf32>
    %225 = arith.addf %223, %224 : vector<2x512xf32>
    %226 = vector.extract_strided_slice %225 {offsets = [0, 0], sizes = [2, 128], strides = [1, 1]} : vector<2x512xf32> to vector<2x128xf32>
    %227 = arith.negf %226 : vector<2x128xf32>
    %228 = math.exp %227 : vector<2x128xf32>
    %cst_63 = arith.constant 1.000000e+00 : f32
    %229 = vector.broadcast %cst_63 : f32 to vector<2x128xf32>
    %230 = arith.addf %229, %228 : vector<2x128xf32>
    %231 = arith.divf %229, %230 : vector<2x128xf32>
    %232 = vector.extract_strided_slice %225 {offsets = [0, 128], sizes = [2, 128], strides = [1, 1]} : vector<2x512xf32> to vector<2x128xf32>
    %233 = arith.negf %232 : vector<2x128xf32>
    %234 = math.exp %233 : vector<2x128xf32>
    %cst_64 = arith.constant 1.000000e+00 : f32
    %235 = vector.broadcast %cst_64 : f32 to vector<2x128xf32>
    %236 = arith.addf %235, %234 : vector<2x128xf32>
    %237 = arith.divf %235, %236 : vector<2x128xf32>
    %238 = vector.extract_strided_slice %225 {offsets = [0, 256], sizes = [2, 128], strides = [1, 1]} : vector<2x512xf32> to vector<2x128xf32>
    %239 = math.tanh %238 : vector<2x128xf32>
    %240 = vector.extract_strided_slice %225 {offsets = [0, 384], sizes = [2, 128], strides = [1, 1]} : vector<2x512xf32> to vector<2x128xf32>
    %241 = arith.negf %240 : vector<2x128xf32>
    %242 = math.exp %241 : vector<2x128xf32>
    %cst_65 = arith.constant 1.000000e+00 : f32
    %243 = vector.broadcast %cst_65 : f32 to vector<2x128xf32>
    %244 = arith.addf %243, %242 : vector<2x128xf32>
    %245 = arith.divf %243, %244 : vector<2x128xf32>
    %246 = arith.mulf %237, %189 : vector<2x128xf32>
    %247 = arith.mulf %231, %239 : vector<2x128xf32>
    %248 = arith.addf %246, %247 : vector<2x128xf32>
    %249 = math.tanh %248 : vector<2x128xf32>
    %250 = arith.mulf %245, %249 : vector<2x128xf32>
    %c0_66 = arith.constant 0 : index
    %c0_67 = arith.constant 0 : index
    %251 = vector.load %arg4[%c0_66, %c0_67] : memref<128x512xf32, #tpu.memory_space<vmem>>, vector<128x512xf32>
    %cst_68 = arith.constant dense<0.000000e+00> : vector<2x512xf32>
    %252 = tpu.matmul %220, %251, %cst_68 {dimension_numbers = #tpu.dot_dimension_numbers<[1], [0], [0], [1], [0, 0, 1, 1], [], []>} : vector<2x128xf32>, vector<128x512xf32>, vector<2x512xf32> -> vector<2x512xf32>
    %253 = vector.extract_strided_slice %5 {offsets = [8, 0], sizes = [2, 512], strides = [1, 1]} : vector<16x512xf32> to vector<2x512xf32>
    %254 = arith.addf %252, %253 : vector<2x512xf32>
    %255 = vector.extract_strided_slice %254 {offsets = [0, 0], sizes = [2, 128], strides = [1, 1]} : vector<2x512xf32> to vector<2x128xf32>
    %256 = arith.negf %255 : vector<2x128xf32>
    %257 = math.exp %256 : vector<2x128xf32>
    %cst_69 = arith.constant 1.000000e+00 : f32
    %258 = vector.broadcast %cst_69 : f32 to vector<2x128xf32>
    %259 = arith.addf %258, %257 : vector<2x128xf32>
    %260 = arith.divf %258, %259 : vector<2x128xf32>
    %261 = vector.extract_strided_slice %254 {offsets = [0, 128], sizes = [2, 128], strides = [1, 1]} : vector<2x512xf32> to vector<2x128xf32>
    %262 = arith.negf %261 : vector<2x128xf32>
    %263 = math.exp %262 : vector<2x128xf32>
    %cst_70 = arith.constant 1.000000e+00 : f32
    %264 = vector.broadcast %cst_70 : f32 to vector<2x128xf32>
    %265 = arith.addf %264, %263 : vector<2x128xf32>
    %266 = arith.divf %264, %265 : vector<2x128xf32>
    %267 = vector.extract_strided_slice %254 {offsets = [0, 256], sizes = [2, 128], strides = [1, 1]} : vector<2x512xf32> to vector<2x128xf32>
    %268 = math.tanh %267 : vector<2x128xf32>
    %269 = vector.extract_strided_slice %254 {offsets = [0, 384], sizes = [2, 128], strides = [1, 1]} : vector<2x512xf32> to vector<2x128xf32>
    %270 = arith.negf %269 : vector<2x128xf32>
    %271 = math.exp %270 : vector<2x128xf32>
    %cst_71 = arith.constant 1.000000e+00 : f32
    %272 = vector.broadcast %cst_71 : f32 to vector<2x128xf32>
    %273 = arith.addf %272, %271 : vector<2x128xf32>
    %274 = arith.divf %272, %273 : vector<2x128xf32>
    %275 = arith.mulf %266, %218 : vector<2x128xf32>
    %276 = arith.mulf %260, %268 : vector<2x128xf32>
    %277 = arith.addf %275, %276 : vector<2x128xf32>
    %278 = math.tanh %277 : vector<2x128xf32>
    %279 = arith.mulf %274, %278 : vector<2x128xf32>
    %280 = tpu.concatenate %279, %250 in 1 : vector<2x128xf32>, vector<2x128xf32> -> vector<2x256xf32>
    %c0_72 = arith.constant 0 : index
    %c0_73 = arith.constant 0 : index
    %281 = vector.load %arg6[%c0_72, %c0_73] : memref<256x512xf32, #tpu.memory_space<vmem>>, vector<256x512xf32>
    %cst_74 = arith.constant dense<0.000000e+00> : vector<2x512xf32>
    %282 = tpu.matmul %280, %281, %cst_74 {dimension_numbers = #tpu.dot_dimension_numbers<[1], [0], [0], [1], [0, 0, 1, 1], [], []>} : vector<2x256xf32>, vector<256x512xf32>, vector<2x512xf32> -> vector<2x512xf32>
    %283 = vector.broadcast %6 : vector<1x512xf32> to vector<2x512xf32>
    %284 = arith.addf %282, %283 : vector<2x512xf32>
    %285 = vector.extract_strided_slice %284 {offsets = [0, 0], sizes = [2, 128], strides = [1, 1]} : vector<2x512xf32> to vector<2x128xf32>
    %286 = arith.negf %285 : vector<2x128xf32>
    %287 = math.exp %286 : vector<2x128xf32>
    %cst_75 = arith.constant 1.000000e+00 : f32
    %288 = vector.broadcast %cst_75 : f32 to vector<2x128xf32>
    %289 = arith.addf %288, %287 : vector<2x128xf32>
    %290 = arith.divf %288, %289 : vector<2x128xf32>
    %291 = vector.extract_strided_slice %284 {offsets = [0, 128], sizes = [2, 128], strides = [1, 1]} : vector<2x512xf32> to vector<2x128xf32>
    %292 = arith.negf %291 : vector<2x128xf32>
    %293 = math.exp %292 : vector<2x128xf32>
    %cst_76 = arith.constant 1.000000e+00 : f32
    %294 = vector.broadcast %cst_76 : f32 to vector<2x128xf32>
    %295 = arith.addf %294, %293 : vector<2x128xf32>
    %296 = arith.divf %294, %295 : vector<2x128xf32>
    %297 = vector.extract_strided_slice %284 {offsets = [0, 256], sizes = [2, 128], strides = [1, 1]} : vector<2x512xf32> to vector<2x128xf32>
    %298 = math.tanh %297 : vector<2x128xf32>
    %299 = vector.extract_strided_slice %284 {offsets = [0, 384], sizes = [2, 128], strides = [1, 1]} : vector<2x512xf32> to vector<2x128xf32>
    %300 = arith.negf %299 : vector<2x128xf32>
    %301 = math.exp %300 : vector<2x128xf32>
    %cst_77 = arith.constant 1.000000e+00 : f32
    %302 = vector.broadcast %cst_77 : f32 to vector<2x128xf32>
    %303 = arith.addf %302, %301 : vector<2x128xf32>
    %304 = arith.divf %302, %303 : vector<2x128xf32>
    %305 = arith.mulf %296, %248 : vector<2x128xf32>
    %306 = arith.mulf %290, %298 : vector<2x128xf32>
    %307 = arith.addf %305, %306 : vector<2x128xf32>
    %308 = math.tanh %307 : vector<2x128xf32>
    %309 = arith.mulf %304, %308 : vector<2x128xf32>
    %c0_78 = arith.constant 0 : index
    %c0_79 = arith.constant 0 : index
    %310 = vector.load %arg4[%c0_78, %c0_79] : memref<128x512xf32, #tpu.memory_space<vmem>>, vector<128x512xf32>
    %cst_80 = arith.constant dense<0.000000e+00> : vector<2x512xf32>
    %311 = tpu.matmul %279, %310, %cst_80 {dimension_numbers = #tpu.dot_dimension_numbers<[1], [0], [0], [1], [0, 0, 1, 1], [], []>} : vector<2x128xf32>, vector<128x512xf32>, vector<2x512xf32> -> vector<2x512xf32>
    %312 = vector.extract_strided_slice %5 {offsets = [10, 0], sizes = [2, 512], strides = [1, 1]} : vector<16x512xf32> to vector<2x512xf32>
    %313 = arith.addf %311, %312 : vector<2x512xf32>
    %314 = vector.extract_strided_slice %313 {offsets = [0, 0], sizes = [2, 128], strides = [1, 1]} : vector<2x512xf32> to vector<2x128xf32>
    %315 = arith.negf %314 : vector<2x128xf32>
    %316 = math.exp %315 : vector<2x128xf32>
    %cst_81 = arith.constant 1.000000e+00 : f32
    %317 = vector.broadcast %cst_81 : f32 to vector<2x128xf32>
    %318 = arith.addf %317, %316 : vector<2x128xf32>
    %319 = arith.divf %317, %318 : vector<2x128xf32>
    %320 = vector.extract_strided_slice %313 {offsets = [0, 128], sizes = [2, 128], strides = [1, 1]} : vector<2x512xf32> to vector<2x128xf32>
    %321 = arith.negf %320 : vector<2x128xf32>
    %322 = math.exp %321 : vector<2x128xf32>
    %cst_82 = arith.constant 1.000000e+00 : f32
    %323 = vector.broadcast %cst_82 : f32 to vector<2x128xf32>
    %324 = arith.addf %323, %322 : vector<2x128xf32>
    %325 = arith.divf %323, %324 : vector<2x128xf32>
    %326 = vector.extract_strided_slice %313 {offsets = [0, 256], sizes = [2, 128], strides = [1, 1]} : vector<2x512xf32> to vector<2x128xf32>
    %327 = math.tanh %326 : vector<2x128xf32>
    %328 = vector.extract_strided_slice %313 {offsets = [0, 384], sizes = [2, 128], strides = [1, 1]} : vector<2x512xf32> to vector<2x128xf32>
    %329 = arith.negf %328 : vector<2x128xf32>
    %330 = math.exp %329 : vector<2x128xf32>
    %cst_83 = arith.constant 1.000000e+00 : f32
    %331 = vector.broadcast %cst_83 : f32 to vector<2x128xf32>
    %332 = arith.addf %331, %330 : vector<2x128xf32>
    %333 = arith.divf %331, %332 : vector<2x128xf32>
    %334 = arith.mulf %325, %277 : vector<2x128xf32>
    %335 = arith.mulf %319, %327 : vector<2x128xf32>
    %336 = arith.addf %334, %335 : vector<2x128xf32>
    %337 = math.tanh %336 : vector<2x128xf32>
    %338 = arith.mulf %333, %337 : vector<2x128xf32>
    %339 = tpu.concatenate %338, %309 in 1 : vector<2x128xf32>, vector<2x128xf32> -> vector<2x256xf32>
    %c0_84 = arith.constant 0 : index
    %c0_85 = arith.constant 0 : index
    %340 = vector.load %arg6[%c0_84, %c0_85] : memref<256x512xf32, #tpu.memory_space<vmem>>, vector<256x512xf32>
    %cst_86 = arith.constant dense<0.000000e+00> : vector<2x512xf32>
    %341 = tpu.matmul %339, %340, %cst_86 {dimension_numbers = #tpu.dot_dimension_numbers<[1], [0], [0], [1], [0, 0, 1, 1], [], []>} : vector<2x256xf32>, vector<256x512xf32>, vector<2x512xf32> -> vector<2x512xf32>
    %342 = vector.broadcast %6 : vector<1x512xf32> to vector<2x512xf32>
    %343 = arith.addf %341, %342 : vector<2x512xf32>
    %344 = vector.extract_strided_slice %343 {offsets = [0, 0], sizes = [2, 128], strides = [1, 1]} : vector<2x512xf32> to vector<2x128xf32>
    %345 = arith.negf %344 : vector<2x128xf32>
    %346 = math.exp %345 : vector<2x128xf32>
    %cst_87 = arith.constant 1.000000e+00 : f32
    %347 = vector.broadcast %cst_87 : f32 to vector<2x128xf32>
    %348 = arith.addf %347, %346 : vector<2x128xf32>
    %349 = arith.divf %347, %348 : vector<2x128xf32>
    %350 = vector.extract_strided_slice %343 {offsets = [0, 128], sizes = [2, 128], strides = [1, 1]} : vector<2x512xf32> to vector<2x128xf32>
    %351 = arith.negf %350 : vector<2x128xf32>
    %352 = math.exp %351 : vector<2x128xf32>
    %cst_88 = arith.constant 1.000000e+00 : f32
    %353 = vector.broadcast %cst_88 : f32 to vector<2x128xf32>
    %354 = arith.addf %353, %352 : vector<2x128xf32>
    %355 = arith.divf %353, %354 : vector<2x128xf32>
    %356 = vector.extract_strided_slice %343 {offsets = [0, 256], sizes = [2, 128], strides = [1, 1]} : vector<2x512xf32> to vector<2x128xf32>
    %357 = math.tanh %356 : vector<2x128xf32>
    %358 = vector.extract_strided_slice %343 {offsets = [0, 384], sizes = [2, 128], strides = [1, 1]} : vector<2x512xf32> to vector<2x128xf32>
    %359 = arith.negf %358 : vector<2x128xf32>
    %360 = math.exp %359 : vector<2x128xf32>
    %cst_89 = arith.constant 1.000000e+00 : f32
    %361 = vector.broadcast %cst_89 : f32 to vector<2x128xf32>
    %362 = arith.addf %361, %360 : vector<2x128xf32>
    %363 = arith.divf %361, %362 : vector<2x128xf32>
    %364 = arith.mulf %355, %307 : vector<2x128xf32>
    %365 = arith.mulf %349, %357 : vector<2x128xf32>
    %366 = arith.addf %364, %365 : vector<2x128xf32>
    %367 = math.tanh %366 : vector<2x128xf32>
    %368 = arith.mulf %363, %367 : vector<2x128xf32>
    %c0_90 = arith.constant 0 : index
    %c0_91 = arith.constant 0 : index
    %369 = vector.load %arg4[%c0_90, %c0_91] : memref<128x512xf32, #tpu.memory_space<vmem>>, vector<128x512xf32>
    %cst_92 = arith.constant dense<0.000000e+00> : vector<2x512xf32>
    %370 = tpu.matmul %338, %369, %cst_92 {dimension_numbers = #tpu.dot_dimension_numbers<[1], [0], [0], [1], [0, 0, 1, 1], [], []>} : vector<2x128xf32>, vector<128x512xf32>, vector<2x512xf32> -> vector<2x512xf32>
    %371 = vector.extract_strided_slice %5 {offsets = [12, 0], sizes = [2, 512], strides = [1, 1]} : vector<16x512xf32> to vector<2x512xf32>
    %372 = arith.addf %370, %371 : vector<2x512xf32>
    %373 = vector.extract_strided_slice %372 {offsets = [0, 0], sizes = [2, 128], strides = [1, 1]} : vector<2x512xf32> to vector<2x128xf32>
    %374 = arith.negf %373 : vector<2x128xf32>
    %375 = math.exp %374 : vector<2x128xf32>
    %cst_93 = arith.constant 1.000000e+00 : f32
    %376 = vector.broadcast %cst_93 : f32 to vector<2x128xf32>
    %377 = arith.addf %376, %375 : vector<2x128xf32>
    %378 = arith.divf %376, %377 : vector<2x128xf32>
    %379 = vector.extract_strided_slice %372 {offsets = [0, 128], sizes = [2, 128], strides = [1, 1]} : vector<2x512xf32> to vector<2x128xf32>
    %380 = arith.negf %379 : vector<2x128xf32>
    %381 = math.exp %380 : vector<2x128xf32>
    %cst_94 = arith.constant 1.000000e+00 : f32
    %382 = vector.broadcast %cst_94 : f32 to vector<2x128xf32>
    %383 = arith.addf %382, %381 : vector<2x128xf32>
    %384 = arith.divf %382, %383 : vector<2x128xf32>
    %385 = vector.extract_strided_slice %372 {offsets = [0, 256], sizes = [2, 128], strides = [1, 1]} : vector<2x512xf32> to vector<2x128xf32>
    %386 = math.tanh %385 : vector<2x128xf32>
    %387 = vector.extract_strided_slice %372 {offsets = [0, 384], sizes = [2, 128], strides = [1, 1]} : vector<2x512xf32> to vector<2x128xf32>
    %388 = arith.negf %387 : vector<2x128xf32>
    %389 = math.exp %388 : vector<2x128xf32>
    %cst_95 = arith.constant 1.000000e+00 : f32
    %390 = vector.broadcast %cst_95 : f32 to vector<2x128xf32>
    %391 = arith.addf %390, %389 : vector<2x128xf32>
    %392 = arith.divf %390, %391 : vector<2x128xf32>
    %393 = arith.mulf %384, %336 : vector<2x128xf32>
    %394 = arith.mulf %378, %386 : vector<2x128xf32>
    %395 = arith.addf %393, %394 : vector<2x128xf32>
    %396 = math.tanh %395 : vector<2x128xf32>
    %397 = arith.mulf %392, %396 : vector<2x128xf32>
    %398 = tpu.concatenate %397, %368 in 1 : vector<2x128xf32>, vector<2x128xf32> -> vector<2x256xf32>
    %c0_96 = arith.constant 0 : index
    %c0_97 = arith.constant 0 : index
    %399 = vector.load %arg6[%c0_96, %c0_97] : memref<256x512xf32, #tpu.memory_space<vmem>>, vector<256x512xf32>
    %cst_98 = arith.constant dense<0.000000e+00> : vector<2x512xf32>
    %400 = tpu.matmul %398, %399, %cst_98 {dimension_numbers = #tpu.dot_dimension_numbers<[1], [0], [0], [1], [0, 0, 1, 1], [], []>} : vector<2x256xf32>, vector<256x512xf32>, vector<2x512xf32> -> vector<2x512xf32>
    %401 = vector.broadcast %6 : vector<1x512xf32> to vector<2x512xf32>
    %402 = arith.addf %400, %401 : vector<2x512xf32>
    %403 = vector.extract_strided_slice %402 {offsets = [0, 0], sizes = [2, 128], strides = [1, 1]} : vector<2x512xf32> to vector<2x128xf32>
    %404 = arith.negf %403 : vector<2x128xf32>
    %405 = math.exp %404 : vector<2x128xf32>
    %cst_99 = arith.constant 1.000000e+00 : f32
    %406 = vector.broadcast %cst_99 : f32 to vector<2x128xf32>
    %407 = arith.addf %406, %405 : vector<2x128xf32>
    %408 = arith.divf %406, %407 : vector<2x128xf32>
    %409 = vector.extract_strided_slice %402 {offsets = [0, 128], sizes = [2, 128], strides = [1, 1]} : vector<2x512xf32> to vector<2x128xf32>
    %410 = arith.negf %409 : vector<2x128xf32>
    %411 = math.exp %410 : vector<2x128xf32>
    %cst_100 = arith.constant 1.000000e+00 : f32
    %412 = vector.broadcast %cst_100 : f32 to vector<2x128xf32>
    %413 = arith.addf %412, %411 : vector<2x128xf32>
    %414 = arith.divf %412, %413 : vector<2x128xf32>
    %415 = vector.extract_strided_slice %402 {offsets = [0, 256], sizes = [2, 128], strides = [1, 1]} : vector<2x512xf32> to vector<2x128xf32>
    %416 = math.tanh %415 : vector<2x128xf32>
    %417 = vector.extract_strided_slice %402 {offsets = [0, 384], sizes = [2, 128], strides = [1, 1]} : vector<2x512xf32> to vector<2x128xf32>
    %418 = arith.negf %417 : vector<2x128xf32>
    %419 = math.exp %418 : vector<2x128xf32>
    %cst_101 = arith.constant 1.000000e+00 : f32
    %420 = vector.broadcast %cst_101 : f32 to vector<2x128xf32>
    %421 = arith.addf %420, %419 : vector<2x128xf32>
    %422 = arith.divf %420, %421 : vector<2x128xf32>
    %423 = arith.mulf %414, %366 : vector<2x128xf32>
    %424 = arith.mulf %408, %416 : vector<2x128xf32>
    %425 = arith.addf %423, %424 : vector<2x128xf32>
    %426 = math.tanh %425 : vector<2x128xf32>
    %427 = arith.mulf %422, %426 : vector<2x128xf32>
    %c0_102 = arith.constant 0 : index
    %c0_103 = arith.constant 0 : index
    %428 = vector.load %arg4[%c0_102, %c0_103] : memref<128x512xf32, #tpu.memory_space<vmem>>, vector<128x512xf32>
    %cst_104 = arith.constant dense<0.000000e+00> : vector<2x512xf32>
    %429 = tpu.matmul %397, %428, %cst_104 {dimension_numbers = #tpu.dot_dimension_numbers<[1], [0], [0], [1], [0, 0, 1, 1], [], []>} : vector<2x128xf32>, vector<128x512xf32>, vector<2x512xf32> -> vector<2x512xf32>
    %430 = vector.extract_strided_slice %5 {offsets = [14, 0], sizes = [2, 512], strides = [1, 1]} : vector<16x512xf32> to vector<2x512xf32>
    %431 = arith.addf %429, %430 : vector<2x512xf32>
    %432 = vector.extract_strided_slice %431 {offsets = [0, 0], sizes = [2, 128], strides = [1, 1]} : vector<2x512xf32> to vector<2x128xf32>
    %433 = arith.negf %432 : vector<2x128xf32>
    %434 = math.exp %433 : vector<2x128xf32>
    %cst_105 = arith.constant 1.000000e+00 : f32
    %435 = vector.broadcast %cst_105 : f32 to vector<2x128xf32>
    %436 = arith.addf %435, %434 : vector<2x128xf32>
    %437 = arith.divf %435, %436 : vector<2x128xf32>
    %438 = vector.extract_strided_slice %431 {offsets = [0, 128], sizes = [2, 128], strides = [1, 1]} : vector<2x512xf32> to vector<2x128xf32>
    %439 = arith.negf %438 : vector<2x128xf32>
    %440 = math.exp %439 : vector<2x128xf32>
    %cst_106 = arith.constant 1.000000e+00 : f32
    %441 = vector.broadcast %cst_106 : f32 to vector<2x128xf32>
    %442 = arith.addf %441, %440 : vector<2x128xf32>
    %443 = arith.divf %441, %442 : vector<2x128xf32>
    %444 = vector.extract_strided_slice %431 {offsets = [0, 256], sizes = [2, 128], strides = [1, 1]} : vector<2x512xf32> to vector<2x128xf32>
    %445 = math.tanh %444 : vector<2x128xf32>
    %446 = vector.extract_strided_slice %431 {offsets = [0, 384], sizes = [2, 128], strides = [1, 1]} : vector<2x512xf32> to vector<2x128xf32>
    %447 = arith.negf %446 : vector<2x128xf32>
    %448 = math.exp %447 : vector<2x128xf32>
    %cst_107 = arith.constant 1.000000e+00 : f32
    %449 = vector.broadcast %cst_107 : f32 to vector<2x128xf32>
    %450 = arith.addf %449, %448 : vector<2x128xf32>
    %451 = arith.divf %449, %450 : vector<2x128xf32>
    %452 = arith.mulf %443, %395 : vector<2x128xf32>
    %453 = arith.mulf %437, %445 : vector<2x128xf32>
    %454 = arith.addf %452, %453 : vector<2x128xf32>
    %455 = math.tanh %454 : vector<2x128xf32>
    %456 = arith.mulf %451, %455 : vector<2x128xf32>
    %457 = tpu.concatenate %456, %427 in 1 : vector<2x128xf32>, vector<2x128xf32> -> vector<2x256xf32>
    %c0_108 = arith.constant 0 : index
    %c0_109 = arith.constant 0 : index
    %458 = vector.load %arg6[%c0_108, %c0_109] : memref<256x512xf32, #tpu.memory_space<vmem>>, vector<256x512xf32>
    %cst_110 = arith.constant dense<0.000000e+00> : vector<2x512xf32>
    %459 = tpu.matmul %457, %458, %cst_110 {dimension_numbers = #tpu.dot_dimension_numbers<[1], [0], [0], [1], [0, 0, 1, 1], [], []>} : vector<2x256xf32>, vector<256x512xf32>, vector<2x512xf32> -> vector<2x512xf32>
    %460 = vector.broadcast %6 : vector<1x512xf32> to vector<2x512xf32>
    %461 = arith.addf %459, %460 : vector<2x512xf32>
    %462 = vector.extract_strided_slice %461 {offsets = [0, 0], sizes = [2, 128], strides = [1, 1]} : vector<2x512xf32> to vector<2x128xf32>
    %463 = arith.negf %462 : vector<2x128xf32>
    %464 = math.exp %463 : vector<2x128xf32>
    %cst_111 = arith.constant 1.000000e+00 : f32
    %465 = vector.broadcast %cst_111 : f32 to vector<2x128xf32>
    %466 = arith.addf %465, %464 : vector<2x128xf32>
    %467 = arith.divf %465, %466 : vector<2x128xf32>
    %468 = vector.extract_strided_slice %461 {offsets = [0, 128], sizes = [2, 128], strides = [1, 1]} : vector<2x512xf32> to vector<2x128xf32>
    %469 = arith.negf %468 : vector<2x128xf32>
    %470 = math.exp %469 : vector<2x128xf32>
    %cst_112 = arith.constant 1.000000e+00 : f32
    %471 = vector.broadcast %cst_112 : f32 to vector<2x128xf32>
    %472 = arith.addf %471, %470 : vector<2x128xf32>
    %473 = arith.divf %471, %472 : vector<2x128xf32>
    %474 = vector.extract_strided_slice %461 {offsets = [0, 256], sizes = [2, 128], strides = [1, 1]} : vector<2x512xf32> to vector<2x128xf32>
    %475 = math.tanh %474 : vector<2x128xf32>
    %476 = vector.extract_strided_slice %461 {offsets = [0, 384], sizes = [2, 128], strides = [1, 1]} : vector<2x512xf32> to vector<2x128xf32>
    %477 = arith.negf %476 : vector<2x128xf32>
    %478 = math.exp %477 : vector<2x128xf32>
    %cst_113 = arith.constant 1.000000e+00 : f32
    %479 = vector.broadcast %cst_113 : f32 to vector<2x128xf32>
    %480 = arith.addf %479, %478 : vector<2x128xf32>
    %481 = arith.divf %479, %480 : vector<2x128xf32>
    %482 = arith.mulf %473, %425 : vector<2x128xf32>
    %483 = arith.mulf %467, %475 : vector<2x128xf32>
    %484 = arith.addf %482, %483 : vector<2x128xf32>
    %485 = math.tanh %484 : vector<2x128xf32>
    %486 = arith.mulf %481, %485 : vector<2x128xf32>
    %c0_114 = arith.constant 0 : index
    %c0_115 = arith.constant 0 : index
    %c0_116 = arith.constant 0 : index
    %487 = vector.load %arg11[%c0_114, %c0_115, %c0_116] : memref<2x2x128xf32, #tpu.memory_space<vmem>>, vector<1x2x128xf32>
    %488 = vector.shape_cast %487 : vector<1x2x128xf32> to vector<2x128xf32>
    %489 = vector.shape_cast %456 : vector<2x128xf32> to vector<1x2x128xf32>
    tpu.vector_store %arg11[%c0_114, %c0_115, %c0_116], %489 {strides = array<i32>} : memref<2x2x128xf32, #tpu.memory_space<vmem>>, vector<1x2x128xf32>,
    %c0_117 = arith.constant 0 : index
    %c0_118 = arith.constant 0 : index
    %c0_119 = arith.constant 0 : index
    %490 = vector.load %arg12[%c0_117, %c0_118, %c0_119] : memref<2x2x128xf32, #tpu.memory_space<vmem>>, vector<1x2x128xf32>
    %491 = vector.shape_cast %490 : vector<1x2x128xf32> to vector<2x128xf32>
    %492 = vector.shape_cast %454 : vector<2x128xf32> to vector<1x2x128xf32>
    tpu.vector_store %arg12[%c0_117, %c0_118, %c0_119], %492 {strides = array<i32>} : memref<2x2x128xf32, #tpu.memory_space<vmem>>, vector<1x2x128xf32>,
    %c1_120 = arith.constant 1 : index
    %c0_121 = arith.constant 0 : index
    %c0_122 = arith.constant 0 : index
    %493 = vector.load %arg11[%c1_120, %c0_121, %c0_122] : memref<2x2x128xf32, #tpu.memory_space<vmem>>, vector<1x2x128xf32>
    %494 = vector.shape_cast %493 : vector<1x2x128xf32> to vector<2x128xf32>
    %495 = vector.shape_cast %486 : vector<2x128xf32> to vector<1x2x128xf32>
    tpu.vector_store %arg11[%c1_120, %c0_121, %c0_122], %495 {strides = array<i32>} : memref<2x2x128xf32, #tpu.memory_space<vmem>>, vector<1x2x128xf32>,
    %c1_123 = arith.constant 1 : index
    %c0_124 = arith.constant 0 : index
    %c0_125 = arith.constant 0 : index
    %496 = vector.load %arg12[%c1_123, %c0_124, %c0_125] : memref<2x2x128xf32, #tpu.memory_space<vmem>>, vector<1x2x128xf32>
    %497 = vector.shape_cast %496 : vector<1x2x128xf32> to vector<2x128xf32>
    %498 = vector.shape_cast %484 : vector<2x128xf32> to vector<1x2x128xf32>
    tpu.vector_store %arg12[%c1_123, %c0_124, %c0_125], %498 {strides = array<i32>} : memref<2x2x128xf32, #tpu.memory_space<vmem>>, vector<1x2x128xf32>,
    %499 = tpu.concatenate %73, %132, %191, %250, %309, %368, %427, %486 in 0 : vector<2x128xf32>, vector<2x128xf32>, vector<2x128xf32>, vector<2x128xf32>, vector<2x128xf32>, vector<2x128xf32>, vector<2x128xf32>, vector<2x128xf32> -> vector<16x128xf32>
    %c0_126 = arith.constant 0 : index
    %c0_127 = arith.constant 0 : index
    %500 = vector.load %arg8[%c0_126, %c0_127] : memref<128x128xf32, #tpu.memory_space<vmem>>, vector<128x128xf32>
    %cst_128 = arith.constant dense<0.000000e+00> : vector<16x128xf32>
    %501 = tpu.matmul %499, %500, %cst_128 {dimension_numbers = #tpu.dot_dimension_numbers<[1], [0], [0], [1], [0, 0, 1, 1], [], []>} : vector<16x128xf32>, vector<128x128xf32>, vector<16x128xf32> -> vector<16x128xf32>
    %c0_129 = arith.constant 0 : index
    %c0_130 = arith.constant 0 : index
    %502 = vector.load %arg9[%c0_129, %c0_130] : memref<1x128xf32, #tpu.memory_space<vmem>>, vector<1x128xf32>
    %503 = vector.broadcast %502 : vector<1x128xf32> to vector<16x128xf32>
    %504 = arith.addf %501, %503 : vector<16x128xf32>
    %c0_131 = arith.constant 0 : index
    %c0_132 = arith.constant 0 : index
    %505 = vector.load %arg10[%c0_131, %c0_132] : memref<16x128xf32, #tpu.memory_space<vmem>>, vector<16x128xf32>
    tpu.vector_store %arg10[%c0_131, %c0_132], %504 {strides = array<i32>} : memref<16x128xf32, #tpu.memory_space<vmem>>, vector<16x128xf32>,
    return
  }
}

</mosaic_0001>

<bundles_post_ra>
// kernel: tpu_custom_call.1
= control target key start
LH: loop header
LB: loop body
LE: loop exit
PB: predicated region body
PF: predicated region fallthrough
CT: control target
= control target key end

     0   :  { %18 = vsyncpa [#allocation3], 0  ;;  %s8625_s0 = inlined_call_operand.hbm [shape: f32[16,16], index: 0, kind: input, shape index: {}]   ;;  %s8626_s1 = inlined_call_operand.hbm [shape: f32[2,2,128], index: 1, kind: input, shape index: {}]   ;;  %s8627_s2 = inlined_call_operand.hbm [shape: f32[2,2,128], index: 2, kind: input, shape index: {}]   ;;  %s8628_s3 = inlined_call_operand.hbm [shape: f32[16,512], index: 3, kind: input, shape index: {}]   ;;  %s8629_s4 = inlined_call_operand.hbm [shape: f32[128,512], index: 4, kind: input, shape index: {}]   ;;  %s8630_s5 = inlined_call_operand.vmem [shape: f32[1,512], index: 5, kind: input, shape index: {}]   ;;  %s8631_s6 = inlined_call_operand.hbm [shape: f32[256,512], index: 6, kind: input, shape index: {}]   ;;  %s8632_s7 = inlined_call_operand.hbm [shape: f32[1,512], index: 7, kind: input, shape index: {}]   ;;  %s8633_s8 = inlined_call_operand.hbm [shape: f32[128,128], index: 8, kind: input, shape index: {}]   ;;  %s8634_s9 = inlined_call_operand.vmem [shape: f32[1,128], index: 9, kind: input, shape index: {}]   ;;  %s8635_s10 = inlined_call_operand.hbm [shape: f32[16,128], index: 10, kind: output, shape index: {0}]   ;;  %s8636_s11 = inlined_call_operand.hbm [shape: f32[2,2,128], index: 11, kind: output, shape index: {1}]   ;;  %s8637_s12 = inlined_call_operand.hbm [shape: f32[2,2,128], index: 12, kind: output, shape index: {2}]  }
   0x1   :  { %19 = vsyncpa [#allocation6], 0 }
   0x2   :  { %20 = vsyncpa [#allocation9], 0 }
   0x3   :  { %21 = vsyncpa [#allocation12], 0 }
   0x4   :  { %22 = vsyncpa [#allocation15], 0 }
   0x5   :  { %23 = vsyncpa [#allocation4], 0  ;;  %s42_s23 = sshll.u32 %s8626_s1, 4  ;;  %s43_s23 = int_to_ptr.hbm [resolvable:$true] %s42_s23 }
   0x6   :  { %24 = vsyncpa [#allocation18], 0  ;;  %s4815_s24 = smov [#allocation5]   ;;  %s68_s28 = sshll.u32 %s8628_s3, 4  ;;  %s69_s28 = int_to_ptr.hbm [resolvable:$true] %s68_s28 }
   0x7   :  { %s44_s25 = sshll.u32 %s4815_s24, 4  ;;  %s4816_s29 = smov 32   ;;  %s45_s25 = int_to_ptr.vmem [resolvable:$true] %s44_s25 }
   0x8   :  { %s4817_s30 = smov 2   ;;  %s4818_s13 = smov [#allocation8]  }
   0x9   :  { %50 = dma.hbm_to_vmem [thread:$0]  %s43_s23, 64, %s45_s25, [#allocation6], %s4816_s29, %s4816_s29, %s4817_s30  }
   0xa   :  { %s70_s14 = sshll.u32 %s4818_s13, 4  ;;  %s96_s16 = sshll.u32 %s8631_s6, 4  ;;  %s71_s14 = int_to_ptr.vmem [resolvable:$true] %s70_s14  ;;  %s97_s16 = int_to_ptr.hbm [resolvable:$true] %s96_s16 }
   0xb   :  { %s4819_s17 = smov 512   ;;  %s4820_s3 = smov [#allocation11]  }
   0xc   :  { %76 = dma.hbm_to_vmem [thread:$0]  %s69_s28, 1024, %s71_s14, [#allocation9], %s4819_s17, %s4819_s17, %s4816_s29  }
   0xd   :  { %s98_s18 = sshll.u32 %s4820_s3, 4  ;;  %s29_s21 = sshll.u32 %s8625_s0, 4  ;;  %s99_s18 = int_to_ptr.vmem [resolvable:$true] %s98_s18  ;;  %s30_s21 = int_to_ptr.hbm [resolvable:$true] %s29_s21 }
   0xe   :  { %104 = dma.hbm_to_vmem [thread:$0]  %s97_s16, 16384, %s99_s18, [#allocation12], %s4819_s17, %s4819_s17, %s4816_s29  }
   0xf   :  { %s4821_s22 = smov [#allocation2]   ;;  %s55_s25 = sshll.u32 %s8627_s2, 4  ;;  %s56_s25 = int_to_ptr.hbm [resolvable:$true] %s55_s25 }
  0x10   :  { %s31_s6 = sshll.u32 %s4821_s22, 4  ;;  %s4822_s26 = smov 128   ;;  %s32_s6 = int_to_ptr.vmem [resolvable:$true] %s31_s6 }
  0x11   :  { %s4823_s27 = smov 8   ;;  %s4824_s0 = smov [#allocation7]  }
  0x12   :  { %37 = dma.hbm_to_vmem [thread:$0]  %s30_s21, 256, %s32_s6, [#allocation3], %s4822_s26, %s4822_s26, %s4823_s27  }
  0x13   :  { %s57_s28 = sshll.u32 %s4824_s0, 4  ;;  %s81_s1 = sshll.u32 %s8629_s4, 4  ;;  %s58_s28 = int_to_ptr.vmem [resolvable:$true] %s57_s28  ;;  %s82_s1 = int_to_ptr.hbm [resolvable:$true] %s81_s1 }
  0x14   :  { %63 = dma.hbm_to_vmem [thread:$0]  %s56_s25, 64, %s58_s28, [#allocation6], %s4816_s29, %s4816_s29, %s4817_s30  }
  0x15   :  { %s110_s16 = sshll.u32 %s8632_s7, 4  ;;  %s4825_s3 = smov [#allocation10]   ;;  %s111_s16 = int_to_ptr.hbm [resolvable:$true] %s110_s16 }
  0x16   :  { %s83_s18 = sshll.u32 %s4825_s3, 4  ;;  %s4826_s19 = smov [#allocation13]   ;;  %s84_s18 = int_to_ptr.vmem [resolvable:$true] %s83_s18 }
  0x17   :  { %89 = dma.hbm_to_vmem [thread:$0]  %s82_s1, 8192, %s84_s18, [#allocation9], %s4819_s17, %s4819_s17, %s4816_s29  }
  0x18   :  { %s112_s4 = sshll.u32 %s4826_s19, 4  ;;  %s120_s22 = sshll.u32 %s8633_s8, 4  ;;  %s113_s4 = int_to_ptr.vmem [resolvable:$true] %s112_s4  ;;  %s121_s22 = int_to_ptr.hbm [resolvable:$true] %s120_s22 }
  0x19   :  { %115 = dma.hbm_to_vmem [thread:$0]  %s111_s16, 64, %s113_s4, [#allocation12]  }
  0x1a   :  { %s4827_s6 = smov [#allocation14]  }
  0x1b   :  { %s122_s23 = sshll.u32 %s4827_s6, 4  ;;  %s123_s23 = int_to_ptr.vmem [resolvable:$true] %s122_s23 }
  0x1c   :  { %128 = dma.hbm_to_vmem [thread:$0]  %s121_s22, 2048, %s123_s23, [#allocation15], %s4822_s26, %s4822_s26, %s4823_s27  }
  0x1d   :  { %4801 = dma.done.wait [#allocation3], 256  }
  0x1e   :  { %4802 = vsyncadd [#allocation3], 4294967040 }
  0x1f   :  { %4803 = dma.done.wait [#allocation6], 128  }
  0x20   :  { %4804 = vsyncadd [#allocation6], 4294967168 }
  0x21   :  { %4805 = dma.done.wait [#allocation9], 9216  }
  0x22   :  { %4806 = vsyncadd [#allocation9], 4294958080 }
  0x23   :  { %4807 = dma.done.wait [#allocation12], 16448  }
  0x24   :  { %4808 = vsyncadd [#allocation12], 4294950848 }
  0x25   :  { %4809 = dma.done.wait [#allocation15], 2048  }
  0x26   :  { %4810 = vsyncadd [#allocation15], 4294965248  ;;  %v349_v0 = vld [vmem:[#allocation10 + $0x1e0] sm:$0xff]  ;;  %v172_v2 = vld [vmem:[#allocation8 + $0x38] sm:$0xff]  ;;  %vm183_vm0 = vcmask 130048   ;;  %s3571_s25 = sshll.u32 %s8636_s11, 4  ;;  %s3572_s25 = int_to_ptr.hbm [resolvable:$true] %s3571_s25 }
  0x27   :  { %v345_v1 = vld [vmem:[#allocation10 + $0x1c0] sm:$0xff]  ;;  %353 = vmatpush.msra.mxu1 %v349_v0  ;;  %v168_v3 = vld [vmem:[#allocation8 + $0x18] sm:$0xff]  ;;  %273 = vmatpush.msra.mxu3 %v172_v2  ;;  %v170_v8 = vld [vmem:[#allocation8 + $0x28] sm:$0xff]  ;;  %s4828_s0 = smov [#allocation17]   ;;  %s3584_s1 = sshll.u32 %s8637_s12, 4  ;;  %s3585_s1 = int_to_ptr.hbm [resolvable:$true] %s3584_s1 }
  0x28   :  { %v341_v4 = vld [vmem:[#allocation10 + $0x1a0] sm:$0xff]  ;;  %v4941_v5 = vld [vmem:[#allocation10 + $0x1f8] sm:$0xff]  ;;  %227 = vmatpush.msra.mxu2 %v170_v8  ;;  %v166_v11 = vld [vmem:[#allocation8 + $0x8] sm:$0xff]  ;;  %s3569_s28 = sshll.u32 %s4828_s0, 4  ;;  %s4829_s2 = smov [#allocation19]   ;;  %s3570_s28 = int_to_ptr.vmem [resolvable:$true] %s3569_s28 }
  0x29   :  { %354 = vmatpush.msra.mxu1 %v345_v1  ;;  %v337_v6 = vld [vmem:[#allocation10 + $0x180] sm:$0xff]  ;;  %274 = vmatpush.msra.mxu3 %v168_v3  ;;  %v4943_v7 = vld [vmem:[#allocation10 + $0x1d8] sm:$0xff]  ;;  %v171_v12 = vld [vmem:[#allocation8 + $0x30] sm:$0xff]  ;;  %s3582_s15 = sshll.u32 %s4829_s2, 4  ;;  %s4830_s11 = smov [#allocation16]   ;;  %s3583_s15 = int_to_ptr.vmem [resolvable:$true] %s3582_s15 }
  0x2a   :  { %v333_v9 = vld [vmem:[#allocation10 + $0x160] sm:$0xff]  ;;  %v4946_v10 = vld [vmem:[#allocation10 + $0x1b8] sm:$0xff]  ;;  %228 = vmatpush.msra.mxu2 %v166_v11  ;;  %v4951_v15 = vld [vmem:[#allocation2] sm:$0xff]  ;;  %s3556_s16 = sshll.u32 %s4830_s11, 4  ;;  %s3558_s19 = sshll.u32 %s8635_s10, 4  ;;  %s3557_s16 = int_to_ptr.vmem [resolvable:$true] %s3556_s16  ;;  %s3559_s19 = int_to_ptr.hbm [resolvable:$true] %s3558_s19 }
  0x2b   :  { %355 = vmatpush.msra.mxu1 %v341_v4  ;;  %413 = vmatpush.msrb.mxu3 %v4941_v5  ;;  %v329_v13 = vld [vmem:[#allocation10 + $0x140] sm:$0xff]  ;;  %v4949_v14 = vld [vmem:[#allocation10 + $0x198] sm:$0xff]  ;;  %v167_v18 = vld [vmem:[#allocation8 + $0x10] sm:$0xff] }
  0x2c   :  { %v325_v16 = vld [vmem:[#allocation10 + $0x120] sm:$0xff]  ;;  %v4954_v17 = vld [vmem:[#allocation10 + $0x178] sm:$0xff]  ;;  %250 = vmatpush.msrb.mxu2 %v171_v12  ;;  %3616 = vmatmul.msk.f32.vlgmr.msra.gmra.mxu3 %vm183_vm0, %v4951_v15  ;;  %v351_v21 = vld [vmem:[#allocation10 + $0x1f0] sm:$0xff] }
  0x2d   :  { %356 = vmatpush.msra.mxu1 %v337_v6  ;;  %414 = vmatpush.msrb.mxu3 %v4943_v7  ;;  %v321_v19 = vld [vmem:[#allocation10 + $0x100] sm:$0xff]  ;;  %v4959_v20 = vld [vmem:[#allocation10 + $0x158] sm:$0xff]  ;;  %v347_v24 = vld [vmem:[#allocation10 + $0x1d0] sm:$0xff] }
  0x2e   :  { %3612 = vmatmul.msk.f32.vlgmr.msra.gmra.mxu2 %vm183_vm0, %v4951_v15  ;;  %v317_v22 = vld [vmem:[#allocation10 + $0xe0] sm:$0xff]  ;;  %v4964_v23 = vld [vmem:[#allocation10 + $0x138] sm:$0xff]  ;;  %v4967_v25 = vld [vmem:[#allocation2 + $0x8] sm:$0xff] }
  0x2f   :  { %357 = vmatpush.msra.mxu1 %v333_v9  ;;  %415 = vmatpush.msrb.mxu3 %v4946_v10  ;;  %v169_v26 = vld [vmem:[#allocation8 + $0x20] sm:$0xff]  ;;  %v4969_v28 = vld [vmem:[#allocation10 + $0x118] sm:$0xff]  ;;  %v343_v29 = vld [vmem:[#allocation10 + $0x1b0] sm:$0xff] }
  0x30   :  { %251 = vmatpush.msrb.mxu2 %v167_v18  ;;  %v313_v27 = vld [vmem:[#allocation10 + $0xc0] sm:$0xff]  ;;  %204 = vmatpush.msra.mxu0 %v169_v26  ;;  %v4972_v32 = vld [vmem:[#allocation10 + $0xf8] sm:$0xff]  ;;  %v339_v33 = vld [vmem:[#allocation10 + $0x190] sm:$0xff] }
  0x31   :  { %358 = vmatpush.msra.mxu1 %v329_v13  ;;  %416 = vmatpush.msrb.mxu3 %v4949_v14  ;;  %v165_v30 = vld [vmem:[#allocation8] sm:$0xff]  ;;  %v4977_v35 = vld [vmem:[#allocation10 + $0xd8] sm:$0xff]  ;;  %v335_v38 = vld [vmem:[#allocation10 + $0x170] sm:$0xff] }
  0x32   :  { %393 = vmatpush.msra.mxu2 %v351_v21  ;;  %v309_v31 = vld [vmem:[#allocation10 + $0xa0] sm:$0xff]  ;;  %205 = vmatpush.msra.mxu0 %v165_v30  ;;  %v4980_v37 = vld [vmem:[#allocation10 + $0xb8] sm:$0xff]  ;;  %v331_v41 = vld [vmem:[#allocation10 + $0x150] sm:$0xff] }
  0x33   :  { %359 = vmatpush.msra.mxu1 %v325_v16  ;;  %417 = vmatpush.msrb.mxu3 %v4954_v17  ;;  %v305_v34 = vld [vmem:[#allocation10 + $0x80] sm:$0xff]  ;;  %v4985_v40 = vld [vmem:[#allocation10 + $0x98] sm:$0xff]  ;;  %v4993_v44 = vld [vmem:[#allocation10 + $0x130] sm:$0xff] }
  0x34   :  { %394 = vmatpush.msra.mxu2 %v347_v24  ;;  %3617 = vmatmul.msk.f32.gmra.mxu3 %vm183_vm0, %v4967_v25  ;;  %v301_v36 = vld [vmem:[#allocation10 + $0x60] sm:$0xff]  ;;  %v4990_v43 = vld [vmem:[#allocation10 + $0x78] sm:$0xff]  ;;  %9172 = vst [vmem:[#allocation27_spill] sm:$0xff] %v4993_v44  ;;  %v4997_v47 = vld [vmem:[#allocation10 + $0x1e8] sm:$0xff] }
  0x35   :  { %360 = vmatpush.msra.mxu1 %v321_v19  ;;  %418 = vmatpush.msrb.mxu3 %v4959_v20  ;;  %v297_v39 = vld [vmem:[#allocation10 + $0x40] sm:$0xff]  ;;  %v4995_v46 = vld [vmem:[#allocation10 + $0x58] sm:$0xff]  ;;  %v5000_v48 = vld [vmem:[#allocation10 + $0x110] sm:$0xff] }
  0x36   :  { %395 = vmatpush.msra.mxu2 %v343_v29  ;;  %3610 = vmatmul.msk.f32.vlgmr.msra.gmra.mxu0 %vm183_vm0, %v4951_v15  ;;  %v293_v42 = vld [vmem:[#allocation10 + $0x20] sm:$0xff]  ;;  %9173 = vst [vmem:[#allocation28_spill] sm:$0xff] %v5000_v48  ;;  %v5003_v49 = vld [vmem:[#allocation10 + $0x38] sm:$0xff]  ;;  %v5007_v50 = vld [vmem:[#allocation10 + $0x1c8] sm:$0xff] }
  0x37   :  { %361 = vmatpush.msra.mxu1 %v317_v22  ;;  %419 = vmatpush.msrb.mxu3 %v4964_v23  ;;  %v289_v45 = vld [vmem:[#allocation10] sm:$0xff]  ;;  %v5010_v51 = vld [vmem:[#allocation10 + $0xf0] sm:$0xff]  ;;  %v5014_v52 = vld [vmem:[#allocation10 + $0x18] sm:$0xff] }
  0x38   :  { %396 = vmatpush.msra.mxu2 %v339_v33  ;;  %9174 = vst [vmem:[#allocation29_spill] sm:$0xff] %v5010_v51  ;;  %v5016_v53 = vld [vmem:[#allocation5] sm:$0x3]  ;;  %v5018_v54 = vld [vmem:[#allocation10 + $0x1a8] sm:$0xff]  ;;  %v5025_v55 = vld [vmem:[#allocation10 + $0xd0] sm:$0xff] }
  0x39   :  { %362 = vmatpush.msra.mxu1 %v313_v27  ;;  %420 = vmatpush.msrb.mxu3 %v4969_v28  ;;  %9175 = vst [vmem:[#allocation30_spill] sm:$0xff] %v5025_v55  ;;  %v5027_v56 = vld [vmem:[#allocation11 + $0x3e8] sm:$0xff]  ;;  %v5035_v58 = vld [vmem:[#allocation10 + $0xb0] sm:$0xff]  ;;  %v5118_v27 = vld [vmem:[#allocation11 + $0x3e0] sm:$0xff] }
  0x3a   :  { %3613 = vmatmul.msk.f32.gmra.mxu2 %vm183_vm0, %v4967_v25  ;;  %v5029_v57 = vld [vmem:[#allocation10 + $0x188] sm:$0xff]  ;;  %9176 = vst [vmem:[#allocation31_spill] sm:$0xff] %v5035_v58  ;;  %v5044_v61 = vld [vmem:[#allocation10 + $0x90] sm:$0xff]  ;;  %v5122_v29 = vld [vmem:[#allocation11 + $0x3c0] sm:$0xff] }
  0x3b   :  { %363 = vmatpush.msra.mxu1 %v309_v31  ;;  %421 = vmatpush.msrb.mxu3 %v4972_v32  ;;  %v5037_v59 = vld [vmem:[#allocation11 + $0x3c8] sm:$0xff]  ;;  %9177 = vst [vmem:[#allocation32_spill] sm:$0xff] %v5044_v61  ;;  %v5053_v0 = vld [vmem:[#allocation10 + $0x70] sm:$0xff]  ;;  %v5125_v30 = vld [vmem:[#allocation11 + $0x3a0] sm:$0xff] }
  0x3c   :  { %397 = vmatpush.msra.mxu2 %v335_v38  ;;  %v5039_v60 = vld [vmem:[#allocation10 + $0x168] sm:$0xff]  ;;  %9178 = vst [vmem:[#allocation33_spill] sm:$0xff] %v5053_v0  ;;  %v5064_v3 = vld [vmem:[#allocation10 + $0x50] sm:$0xff]  ;;  %v5128_v31 = vld [vmem:[#allocation11 + $0x380] sm:$0xff] }
  0x3d   :  { %364 = vmatpush.msra.mxu1 %v305_v34  ;;  %422 = vmatpush.msrb.mxu3 %v4977_v35  ;;  %v5046_v62 = vld [vmem:[#allocation11 + $0x3a8] sm:$0xff]  ;;  %9179 = vst [vmem:[#allocation34_spill] sm:$0xff] %v5064_v3  ;;  %v5073_v8 = vld [vmem:[#allocation10 + $0x30] sm:$0xff]  ;;  %v5131_v33 = vld [vmem:[#allocation11 + $0x360] sm:$0xff] }
  0x3e   :  { %398 = vmatpush.msra.mxu2 %v331_v41  ;;  %3611 = vmatmul.msk.f32.gmra.mxu0 %vm183_vm0, %v4967_v25  ;;  %v5048_v63 = vld [vmem:[#allocation10 + $0x148] sm:$0xff]  ;;  %9180 = vst [vmem:[#allocation35_spill] sm:$0xff] %v5073_v8  ;;  %v5082_v12 = vld [vmem:[#allocation10 + $0x10] sm:$0xff]  ;;  %v5134_v34 = vld [vmem:[#allocation11 + $0x340] sm:$0xff] }
  0x3f   :  { %365 = vmatpush.msra.mxu1 %v301_v36  ;;  %423 = vmatpush.msrb.mxu3 %v4980_v37  ;;  %v5055_v1 = vld [vmem:[#allocation11 + $0x388] sm:$0xff]  ;;  %9181 = vst [vmem:[#allocation36_spill] sm:$0xff] %v5082_v12  ;;  %v5137_v36 = vld [vmem:[#allocation11 + $0x320] sm:$0xff] }
  0x40   :  { %399 = vmatpush.msra.mxu2 %v4993_v44  ;;  %v5057_v2 = vld [vmem:[#allocation10 + $0x128] sm:$0xff]  ;;  %v5140_v38 = vld [vmem:[#allocation11 + $0x300] sm:$0xff] }
  0x41   :  { %366 = vmatpush.msra.mxu1 %v297_v39  ;;  %424 = vmatpush.msrb.mxu3 %v4985_v40  ;;  %v5066_v4 = vld [vmem:[#allocation11 + $0x368] sm:$0xff]  ;;  %v5143_v39 = vld [vmem:[#allocation11 + $0x2e0] sm:$0xff] }
  0x42   :  { %400 = vmatpush.msra.mxu2 %v5000_v48  ;;  %v5068_v6 = vld [vmem:[#allocation10 + $0x108] sm:$0xff]  ;;  %v5147_v41 = vld [vmem:[#allocation11 + $0x2c0] sm:$0xff] }
  0x43   :  { %367 = vmatpush.msra.mxu1 %v293_v42  ;;  %425 = vmatpush.msrb.mxu3 %v4990_v43  ;;  %v5075_v9 = vld [vmem:[#allocation11 + $0x348] sm:$0xff]  ;;  %9182 = vst [vmem:[#allocation37_spill] sm:$0xff] %v5147_v41  ;;  %v5183_v48 = vld [vmem:[#allocation11 + $0x200] sm:$0xff] }
  0x44   :  { %3614 = vmatmul.msk.f32.vlgmr.msrb.gmra.mxu2 %vm183_vm0, %v4951_v15  ;;  %v5077_v11 = vld [vmem:[#allocation10 + $0xe8] sm:$0xff]  ;;  %9194 = vst [vmem:[#allocation49_spill] sm:$0xff] %v5183_v48 }
  0x45   :  { %368 = vmatpush.msra.mxu1 %v289_v45  ;;  %426 = vmatpush.msrb.mxu3 %v4995_v46  ;;  %v5084_v13 = vld [vmem:[#allocation11 + $0x328] sm:$0xff]  ;;  %v5151_v45 = vld [vmem:[#allocation11 + $0x2a0] sm:$0xff] }
  0x46   :  { %401 = vmatpush.msra.mxu2 %v5010_v51  ;;  %369 = vmatmul.f32.vlgmr.msra.gmra.mxu1 %v5016_v53  ;;  %v5086_v15 = vld [vmem:[#allocation10 + $0xc8] sm:$0xff]  ;;  %9184 = vst [vmem:[#allocation39_spill] sm:$0xff] %v5151_v45 }
  0x47   :  { %373 = vmatpush.msrb.mxu1 %v4997_v47  ;;  %427 = vmatpush.msrb.mxu3 %v5003_v49  ;;  %v5091_v16 = vld [vmem:[#allocation11 + $0x308] sm:$0xff] }
  0x48   :  { %402 = vmatpush.msra.mxu2 %v5025_v55  ;;  %v5093_v18 = vld [vmem:[#allocation10 + $0xa8] sm:$0xff]  ;;  %v5177_v55 = vld [vmem:[#allocation11 + $0x220] sm:$0xff] }
  0x49   :  { %374 = vmatpush.msrb.mxu1 %v5007_v50  ;;  %428 = vmatpush.msrb.mxu3 %v5014_v52  ;;  %v5099_v19 = vld [vmem:[#allocation11 + $0x2e8] sm:$0xff]  ;;  %9192 = vst [vmem:[#allocation47_spill] sm:$0xff] %v5177_v55 }
  0x4a   :  { %429 = vmatmul.f32.vlgmr.msrb.gmra.mxu3 %v5016_v53  ;;  %403 = vmatpush.msra.mxu2 %v5035_v58  ;;  %v5101_v21 = vld [vmem:[#allocation10 + $0x88] sm:$0xff] }
  0x4b   :  { %375 = vmatpush.msrb.mxu1 %v5018_v54  ;;  %693 = vmatpush.msra.mxu3 %v5027_v56  ;;  %v5105_v22 = vld [vmem:[#allocation10 + $0x68] sm:$0xff] }
  0x4c   :  { %404 = vmatpush.msra.mxu2 %v5044_v61  ;;  %v5109_v24 = vld [vmem:[#allocation10 + $0x48] sm:$0xff]  ;;  %v5171_v61 = vld [vmem:[#allocation11 + $0x240] sm:$0xff] }
  0x4d   :  { %376 = vmatpush.msrb.mxu1 %v5029_v57  ;;  %694 = vmatpush.msra.mxu3 %v5037_v59  ;;  %v5115_v26 = vld [vmem:[#allocation10 + $0x8] sm:$0xff]  ;;  %9190 = vst [vmem:[#allocation45_spill] sm:$0xff] %v5171_v61 }
  0x4e   :  { %3615 = vmatmul.msk.f32.gmra.mxu2 %vm183_vm0, %v4967_v25  ;;  %v5112_v25 = vld [vmem:[#allocation10 + $0x28] sm:$0xff] }
  0x4f   :  { %377 = vmatpush.msrb.mxu1 %v5039_v60  ;;  %695 = vmatpush.msra.mxu3 %v5046_v62  ;;  %v5149_v42 = vld [vmem:[#allocation11 + $0x2c8] sm:$0xff] }
  0x50   :  { %405 = vmatpush.msra.mxu2 %v5053_v0  ;;  %9183 = vst [vmem:[#allocation38_spill] sm:$0xff] %v5149_v42  ;;  %v5165_v0 = vld [vmem:[#allocation11 + $0x268] sm:$0xff] }
  0x51   :  { %378 = vmatpush.msrb.mxu1 %v5048_v63  ;;  %696 = vmatpush.msra.mxu3 %v5055_v1  ;;  %9189 = vst [vmem:[#allocation44_spill] sm:$0xff] %v5165_v0  ;;  %v5173_v58 = vld [vmem:[#allocation11 + $0x248] sm:$0xff] }
  0x52   :  { %406 = vmatpush.msra.mxu2 %v5064_v3  ;;  %v5163_v3 = vld [vmem:[#allocation11 + $0x260] sm:$0xff]  ;;  %9191 = vst [vmem:[#allocation46_spill] sm:$0xff] %v5173_v58  ;;  %v5179_v51 = vld [vmem:[#allocation11 + $0x228] sm:$0xff] }
  0x53   :  { %379 = vmatpush.msrb.mxu1 %v5057_v2  ;;  %697 = vmatpush.msra.mxu3 %v5066_v4  ;;  %9188 = vst [vmem:[#allocation43_spill] sm:$0xff] %v5163_v3  ;;  %v5185_v44 = vld [vmem:[#allocation11 + $0x208] sm:$0xff] }
  0x54   :  { %407 = vmatpush.msra.mxu2 %v5073_v8  ;;  %v5159_v8 = vld [vmem:[#allocation11 + $0x288] sm:$0xff]  ;;  %9193 = vst [vmem:[#allocation48_spill] sm:$0xff] %v5179_v51 }
  0x55   :  { %380 = vmatpush.msrb.mxu1 %v5068_v6  ;;  %698 = vmatpush.msra.mxu3 %v5075_v9  ;;  %9187 = vst [vmem:[#allocation42_spill] sm:$0xff] %v5159_v8 }
  0x56   :  { %408 = vmatpush.msra.mxu2 %v5082_v12  ;;  %v5157_v12 = vld [vmem:[#allocation11 + $0x280] sm:$0xff]  ;;  %9195 = vst [vmem:[#allocation50_spill] sm:$0xff] %v5185_v44 }
  0x57   :  { %381 = vmatpush.msrb.mxu1 %v5077_v11  ;;  %699 = vmatpush.msra.mxu3 %v5084_v13  ;;  %9186 = vst [vmem:[#allocation41_spill] sm:$0xff] %v5157_v12 }
  0x58   :  { %409 = vmatmul.f32.vlgmr.msra.gmra.mxu2 %v5016_v53 }
  0x59   :  { %382 = vmatpush.msrb.mxu1 %v5086_v15  ;;  %700 = vmatpush.msra.mxu3 %v5091_v16 }
  0x5b   :  { %383 = vmatpush.msrb.mxu1 %v5093_v18  ;;  %701 = vmatpush.msra.mxu3 %v5099_v19 }
  0x5d   :  { %384 = vmatpush.msrb.mxu1 %v5101_v21  ;;  %702 = vmatpush.msra.mxu3 %v5149_v42  ;;  %v5363_v42 = vld [vmem:[#allocation11 + $0x250] sm:$0xff] }
  0x5e   :  { %9253 = vst [vmem:[#allocation107_spill] sm:$0xff] %v5363_v42 }
  0x5f   :  { %385 = vmatpush.msrb.mxu1 %v5105_v22 }
  0x61   :  { %386 = vmatpush.msrb.mxu1 %v5109_v24 }
  0x63   :  { %387 = vmatpush.msrb.mxu1 %v5112_v25 }
  0x65   :  { %388 = vmatpush.msrb.mxu1 %v5115_v26 }
  0x66   :  { %389 = vmatmul.f32.vlgmr.msrb.gmra.mxu1 %v5016_v53  ;;  %v5155_v53 = vld [vmem:[#allocation11 + $0x2a8] sm:$0xff] }
  0x67   :  { %653 = vmatpush.msra.mxu1 %v5118_v27  ;;  %9185 = vst [vmem:[#allocation40_spill] sm:$0xff] %v5155_v53  ;;  %703 = vmatpush.msra.mxu3 %v5155_v53 }
  0x69   :  { %654 = vmatpush.msra.mxu1 %v5122_v29  ;;  %704 = vmatpush.msra.mxu3 %v5159_v8  ;;  %v5320_v8 = vld [vmem:[#allocation11 + $0x2b0] sm:$0xff] }
  0x6a   :  { %9239 = vst [vmem:[#allocation94_spill] sm:$0xff] %v5320_v8 }
  0x6b   :  { %655 = vmatpush.msra.mxu1 %v5125_v30  ;;  %705 = vmatpush.msra.mxu3 %v5165_v0  ;;  %v5189_v0 = vld [vmem:[#allocation11 + $0x1e0] sm:$0xff] }
  0x6c   :  { %9196 = vst [vmem:[#allocation51_spill] sm:$0xff] %v5189_v0  ;;  %633 = vmatpush.msrb.mxu0 %v5189_v0  ;;  %v5215_v0 = vld [vmem:[#allocation11 + $0x1a8] sm:$0xff] }
  0x6d   :  { %656 = vmatpush.msra.mxu1 %v5128_v31  ;;  %706 = vmatpush.msra.mxu3 %v5173_v58  ;;  %v5193_v58 = vld [vmem:[#allocation11 + $0x3f0] sm:$0xff]  ;;  %9205 = vst [vmem:[#allocation60_spill] sm:$0xff] %v5215_v0 }
  0x6e   :  { %9198 = vst [vmem:[#allocation53_spill] sm:$0xff] %v5193_v58 }
  0x6f   :  { %657 = vmatpush.msra.mxu1 %v5131_v33  ;;  %707 = vmatpush.msra.mxu3 %v5179_v51  ;;  %v5201_v51 = vld [vmem:[#allocation11 + $0x1c0] sm:$0xff] }
  0x70   :  { %9200 = vst [vmem:[#allocation55_spill] sm:$0xff] %v5201_v51  ;;  %634 = vmatpush.msrb.mxu0 %v5201_v51  ;;  %v5227_v51 = vld [vmem:[#allocation11 + $0x188] sm:$0xff] }
  0x71   :  { %658 = vmatpush.msra.mxu1 %v5134_v34  ;;  %708 = vmatpush.msra.mxu3 %v5185_v44  ;;  %v5205_v44 = vld [vmem:[#allocation11 + $0x3d0] sm:$0xff]  ;;  %9209 = vst [vmem:[#allocation64_spill] sm:$0xff] %v5227_v51 }
  0x72   :  { %9202 = vst [vmem:[#allocation57_spill] sm:$0xff] %v5205_v44 }
  0x73   :  { %659 = vmatpush.msra.mxu1 %v5137_v36 }
  0x75   :  { %660 = vmatpush.msra.mxu1 %v5140_v38 }
  0x77   :  { %661 = vmatpush.msra.mxu1 %v5143_v39 }
  0x79   :  { %662 = vmatpush.msra.mxu1 %v5147_v41  ;;  %v5390_v41 = vld [vmem:[#allocation11 + $0x210] sm:$0xff] }
  0x7a   :  { %9262 = vst [vmem:[#allocation116_spill] sm:$0xff] %v5390_v41 }
  0x7b   :  { %663 = vmatpush.msra.mxu1 %v5151_v45 }
  0x7d   :  { %664 = vmatpush.msra.mxu1 %v5157_v12  ;;  %v5324_v12 = vld [vmem:[#allocation11 + $0x2b8] sm:$0xff] }
  0x7e   :  { %9240 = vst [vmem:[#allocation95_spill] sm:$0xff] %v5324_v12 }
  0x7f   :  { %665 = vmatpush.msra.mxu1 %v5163_v3  ;;  %v5209_v3 = vld [vmem:[#allocation11 + $0x3d8] sm:$0xff] }
  0x80   :  { %9203 = vst [vmem:[#allocation58_spill] sm:$0xff] %v5209_v3 }
  0x81   :  { %666 = vmatpush.msra.mxu1 %v5171_v61  ;;  %v5191_v61 = vld [vmem:[#allocation11 + $0x1e8] sm:$0xff] }
  0x82   :  { %9197 = vst [vmem:[#allocation52_spill] sm:$0xff] %v5191_v61  ;;  %673 = vmatpush.msrb.mxu2 %v5191_v61  ;;  %v5213_v61 = vld [vmem:[#allocation11 + $0x1a0] sm:$0xff] }
  0x83   :  { %667 = vmatpush.msra.mxu1 %v5177_v55  ;;  %v5197_v55 = vld [vmem:[#allocation11 + $0x3f8] sm:$0xff]  ;;  %9204 = vst [vmem:[#allocation59_spill] sm:$0xff] %v5213_v61  ;;  %635 = vmatpush.msrb.mxu0 %v5213_v61  ;;  %v5239_v61 = vld [vmem:[#allocation11 + $0x168] sm:$0xff] }
  0x84   :  { %9199 = vst [vmem:[#allocation54_spill] sm:$0xff] %v5197_v55  ;;  %773 = vmatpush.msrb.mxu3 %v5197_v55  ;;  %v5217_v55 = vld [vmem:[#allocation11 + $0x3b0] sm:$0xff] }
  0x85   :  { %668 = vmatpush.msra.mxu1 %v5183_v48  ;;  %v5203_v48 = vld [vmem:[#allocation11 + $0x1c8] sm:$0xff]  ;;  %9206 = vst [vmem:[#allocation61_spill] sm:$0xff] %v5217_v55 }
  0x86   :  { %9201 = vst [vmem:[#allocation56_spill] sm:$0xff] %v5203_v48  ;;  %674 = vmatpush.msrb.mxu2 %v5203_v48  ;;  %774 = vmatpush.msrb.mxu3 %v5209_v3  ;;  %v5225_v48 = vld [vmem:[#allocation11 + $0x180] sm:$0xff]  ;;  %v5229_v3 = vld [vmem:[#allocation11 + $0x390] sm:$0xff] }
  0x87   :  { %733 = vmatpush.msrb.mxu1 %v5193_v58  ;;  %v5221_v58 = vld [vmem:[#allocation11 + $0x3b8] sm:$0xff]  ;;  %9208 = vst [vmem:[#allocation63_spill] sm:$0xff] %v5225_v48  ;;  %636 = vmatpush.msrb.mxu0 %v5225_v48  ;;  %v5251_v48 = vld [vmem:[#allocation11 + $0x148] sm:$0xff] }
  0x88   :  { %675 = vmatpush.msrb.mxu2 %v5215_v0  ;;  %9207 = vst [vmem:[#allocation62_spill] sm:$0xff] %v5221_v58  ;;  %775 = vmatpush.msrb.mxu3 %v5221_v58  ;;  %v5237_v0 = vld [vmem:[#allocation11 + $0x160] sm:$0xff]  ;;  %v5241_v58 = vld [vmem:[#allocation11 + $0x370] sm:$0xff] }
  0x89   :  { %734 = vmatpush.msrb.mxu1 %v5205_v44  ;;  %9210 = vst [vmem:[#allocation65_spill] sm:$0xff] %v5229_v3  ;;  %v5233_v44 = vld [vmem:[#allocation11 + $0x398] sm:$0xff]  ;;  %637 = vmatpush.msrb.mxu0 %v5237_v0 }
  0x8a   :  { %676 = vmatpush.msrb.mxu2 %v5227_v51  ;;  %9211 = vst [vmem:[#allocation66_spill] sm:$0xff] %v5233_v44  ;;  %776 = vmatpush.msrb.mxu3 %v5233_v44  ;;  %v5249_v51 = vld [vmem:[#allocation11 + $0x140] sm:$0xff]  ;;  %v5253_v44 = vld [vmem:[#allocation11 + $0x350] sm:$0xff] }
  0x8b   :  { %735 = vmatpush.msrb.mxu1 %v5217_v55  ;;  %9212 = vst [vmem:[#allocation67_spill] sm:$0xff] %v5237_v0  ;;  %v5245_v55 = vld [vmem:[#allocation11 + $0x378] sm:$0xff]  ;;  %638 = vmatpush.msrb.mxu0 %v5249_v51  ;;  %v5263_v0 = vld [vmem:[#allocation11 + $0x128] sm:$0xff] }
  0x8c   :  { %9213 = vst [vmem:[#allocation68_spill] sm:$0xff] %v5239_v61  ;;  %677 = vmatpush.msrb.mxu2 %v5239_v61  ;;  %777 = vmatpush.msrb.mxu3 %v5245_v55  ;;  %v5261_v61 = vld [vmem:[#allocation11 + $0x120] sm:$0xff] }
  0x8d   :  { %736 = vmatpush.msrb.mxu1 %v5229_v3  ;;  %9214 = vst [vmem:[#allocation69_spill] sm:$0xff] %v5241_v58  ;;  %v5257_v3 = vld [vmem:[#allocation11 + $0x358] sm:$0xff]  ;;  %639 = vmatpush.msrb.mxu0 %v5261_v61 }
  0x8e   :  { %9215 = vst [vmem:[#allocation70_spill] sm:$0xff] %v5245_v55  ;;  %678 = vmatpush.msrb.mxu2 %v5251_v48  ;;  %778 = vmatpush.msrb.mxu3 %v5257_v3  ;;  %v5265_v55 = vld [vmem:[#allocation11 + $0x330] sm:$0xff] }
  0x8f   :  { %737 = vmatpush.msrb.mxu1 %v5241_v58  ;;  %9216 = vst [vmem:[#allocation71_spill] sm:$0xff] %v5249_v51  ;;  %v5269_v58 = vld [vmem:[#allocation11 + $0x338] sm:$0xff]  ;;  %v5275_v51 = vld [vmem:[#allocation11 + $0x108] sm:$0xff] }
  0x90   :  { %9217 = vst [vmem:[#allocation72_spill] sm:$0xff] %v5251_v48  ;;  %679 = vmatpush.msrb.mxu2 %v5263_v0  ;;  %779 = vmatpush.msrb.mxu3 %v5269_v58  ;;  %v5273_v48 = vld [vmem:[#allocation11 + $0x100] sm:$0xff] }
  0x91   :  { %9218 = vst [vmem:[#allocation73_spill] sm:$0xff] %v5253_v44  ;;  %738 = vmatpush.msrb.mxu1 %v5253_v44  ;;  %640 = vmatpush.msrb.mxu0 %v5273_v48  ;;  %v5281_v44 = vld [vmem:[#allocation11 + $0x318] sm:$0xff] }
  0x92   :  { %9219 = vst [vmem:[#allocation74_spill] sm:$0xff] %v5257_v3  ;;  %v5277_v3 = vld [vmem:[#allocation11 + $0x310] sm:$0xff]  ;;  %680 = vmatpush.msrb.mxu2 %v5275_v51  ;;  %780 = vmatpush.msrb.mxu3 %v5281_v44 }
  0x93   :  { %9220 = vst [vmem:[#allocation75_spill] sm:$0xff] %v5261_v61  ;;  %739 = vmatpush.msrb.mxu1 %v5265_v55  ;;  %v5287_v61 = vld [vmem:[#allocation11 + $0xe8] sm:$0xff] }
  0x94   :  { %9221 = vst [vmem:[#allocation76_spill] sm:$0xff] %v5263_v0  ;;  %v5285_v0 = vld [vmem:[#allocation11 + $0xe0] sm:$0xff]  ;;  %681 = vmatpush.msrb.mxu2 %v5287_v61 }
  0x95   :  { %9222 = vst [vmem:[#allocation77_spill] sm:$0xff] %v5265_v55  ;;  %740 = vmatpush.msrb.mxu1 %v5277_v3  ;;  %641 = vmatpush.msrb.mxu0 %v5285_v0  ;;  %v5293_v55 = vld [vmem:[#allocation11 + $0x2f8] sm:$0xff] }
  0x96   :  { %9223 = vst [vmem:[#allocation78_spill] sm:$0xff] %v5269_v58  ;;  %v5289_v58 = vld [vmem:[#allocation11 + $0x2f0] sm:$0xff]  ;;  %781 = vmatpush.msrb.mxu3 %v5293_v55 }
  0x97   :  { %9224 = vst [vmem:[#allocation79_spill] sm:$0xff] %v5273_v48  ;;  %741 = vmatpush.msrb.mxu1 %v5289_v58  ;;  %v5299_v48 = vld [vmem:[#allocation11 + $0xc8] sm:$0xff] }
  0x98   :  { %9225 = vst [vmem:[#allocation80_spill] sm:$0xff] %v5275_v51  ;;  %v5297_v51 = vld [vmem:[#allocation11 + $0xc0] sm:$0xff]  ;;  %682 = vmatpush.msrb.mxu2 %v5299_v48 }
  0x99   :  { %9226 = vst [vmem:[#allocation81_spill] sm:$0xff] %v5277_v3  ;;  %v5306_v3 = vld [vmem:[%s8630_s5] sm:$0xf]  ;;  %642 = vmatpush.msrb.mxu0 %v5297_v51 }
  0x9a   :  { %9227 = vst [vmem:[#allocation82_spill] sm:$0xff] %v5281_v44  ;;  %v5301_v44 = vld [vmem:[#allocation11 + $0x2d0] sm:$0xff] }
  0x9b   :  { %9228 = vst [vmem:[#allocation83_spill] sm:$0xff] %v5285_v0  ;;  %742 = vmatpush.msrb.mxu1 %v5301_v44 }
  0x9c   :  { %9229 = vst [vmem:[#allocation84_spill] sm:$0xff] %v5287_v61  ;;  %v5312_v61 = vld [vmem:[#allocation11 + $0x2d8] sm:$0xff] }
  0x9d   :  { %9230 = vst [vmem:[#allocation85_spill] sm:$0xff] %v5289_v58  ;;  %782 = vmatpush.msrb.mxu3 %v5312_v61  ;;  %v5318_v58 = vld [vmem:[#allocation11 + $0xa8] sm:$0xff]  ;;  %743 = vmatpush.msrb.mxu1 %v5320_v8  ;;  %v5349_v8 = vld [vmem:[#allocation11 + $0x278] sm:$0xff] }
  0x9e   :  { %9231 = vst [vmem:[#allocation86_spill] sm:$0xff] %v5293_v55  ;;  %v5316_v55 = vld [vmem:[#allocation11 + $0xa0] sm:$0xff]  ;;  %683 = vmatpush.msrb.mxu2 %v5318_v58 }
  0x9f   :  { %9232 = vst [vmem:[#allocation87_spill] sm:$0xff] %v5297_v51  ;;  %643 = vmatpush.msrb.mxu0 %v5316_v55  ;;  %783 = vmatpush.msrb.mxu3 %v5324_v12  ;;  %v5329_v51 = vld [vmem:[#allocation11 + $0x80] sm:$0xff]  ;;  %v5345_v12 = vld [vmem:[#allocation11 + $0x270] sm:$0xff] }
  0xa0   :  { %9233 = vst [vmem:[#allocation88_spill] sm:$0xff] %v5299_v48  ;;  %v5341_v48 = vld [vmem:[#allocation11 + $0x60] sm:$0xff] }
  0xa1   :  { %9234 = vst [vmem:[#allocation89_spill] sm:$0xff] %v5301_v44  ;;  %v5333_v44 = vld [vmem:[#allocation11 + $0x290] sm:$0xff]  ;;  %644 = vmatpush.msrb.mxu0 %v5329_v51 }
  0xa2   :  { %9235 = vst [vmem:[#allocation90_spill] sm:$0xff] %v5306_v3  ;;  %744 = vmatpush.msrb.mxu1 %v5333_v44 }
  0xa3   :  { %9236 = vst [vmem:[#allocation91_spill] sm:$0xff] %v5312_v61  ;;  %v5331_v61 = vld [vmem:[#allocation11 + $0x88] sm:$0xff]  ;;  %645 = vmatpush.msrb.mxu0 %v5341_v48 }
  0xa4   :  { %9237 = vst [vmem:[#allocation92_spill] sm:$0xff] %v5316_v55  ;;  %684 = vmatpush.msrb.mxu2 %v5331_v61  ;;  %v5343_v55 = vld [vmem:[#allocation11 + $0x68] sm:$0xff]  ;;  %745 = vmatpush.msrb.mxu1 %v5345_v12 }
  0xa5   :  { %9238 = vst [vmem:[#allocation93_spill] sm:$0xff] %v5318_v58  ;;  %v5337_v58 = vld [vmem:[#allocation11 + $0x298] sm:$0xff] }
  0xa6   :  { %9241 = vst [vmem:[#allocation96_spill] sm:$0xff] %v5329_v51  ;;  %784 = vmatpush.msrb.mxu3 %v5337_v58  ;;  %685 = vmatpush.msrb.mxu2 %v5343_v55 }
  0xa7   :  { %9242 = vst [vmem:[#allocation97_spill] sm:$0xff] %v5331_v61  ;;  %v9249_v61 = vperm.slane %v5306_v3, 0  ;;  %746 = vmatpush.msrb.mxu1 %v5363_v42  ;;  %v5388_v42 = vld [vmem:[#allocation11 + $0x8] sm:$0xff] }
  0xa8   :  { %9243 = vst [vmem:[#allocation98_spill] sm:$0xff] %v5333_v44  ;;  %785 = vmatpush.msrb.mxu3 %v5349_v8  ;;  %v5361_v44 = vld [vmem:[#allocation11 + $0x48] sm:$0xff] }
  0xa9   :  { %9244 = vst [vmem:[#allocation99_spill] sm:$0xff] %v5337_v58  ;;  %v5359_v58 = vld [vmem:[#allocation11 + $0x40] sm:$0xff]  ;;  %686 = vmatpush.msrb.mxu2 %v5361_v44 }
  0xaa   :  { %9245 = vst [vmem:[#allocation100_spill] sm:$0xff] %v5341_v48  ;;  %646 = vmatpush.msrb.mxu0 %v5359_v58 }
  0xab   :  { %9246 = vst [vmem:[#allocation101_spill] sm:$0xff] %v5343_v55  ;;  %v5367_v55 = vld [vmem:[#allocation11 + $0x258] sm:$0xff] }
  0xac   :  { %9247 = vst [vmem:[#allocation102_spill] sm:$0xff] %v5345_v12  ;;  %786 = vmatpush.msrb.mxu3 %v5367_v55 }
  0xad   :  { %9248 = vst [vmem:[#allocation103_spill] sm:$0xff] %v5349_v8  ;;  %v5375_v8 = vld [vmem:[#allocation11 + $0x230] sm:$0xff] }
  0xae   :  { %9251 = vst [vmem:[#allocation105_spill] sm:$0xff] %v5359_v58  ;;  %v5381_v58 = vld [vmem:[#allocation11 + $0x238] sm:$0xff]  ;;  %747 = vmatpush.msrb.mxu1 %v5375_v8 }
  0xaf   :  { %v5308_v0 = vpop.f32.mrf.mxu3  ;;  %9252 = vst [vmem:[#allocation106_spill] sm:$0xff] %v5361_v44  ;;  %787 = vmatpush.msrb.mxu3 %v5381_v58 }
  0xb0   :  { %9254 = vst [vmem:[#allocation108_spill] sm:$0xff] %v5367_v55  ;;  %v5386_v55 = vld [vmem:[#allocation11] sm:$0xff]  ;;  %748 = vmatpush.msrb.mxu1 %v5390_v41  ;;  %v5417_v41 = vld [vmem:[#allocation11 + $0x1b8] sm:$0xff] }
  0xb1   :  { %v5351_v51 = vpop.f32.mrf.mxu2  ;;  %9257 = vst [vmem:[#allocation111_spill] sm:$0xff] %v5375_v8 }
  0xb2   :  { %9259 = vst [vmem:[#allocation113_spill] sm:$0xff] %v5381_v58 }
  0xb3   :  { %v207_v53 = vpop.f32.mrf.mxu0  ;;  %9260 = vst [vmem:[#allocation114_spill] sm:$0xff] %v5386_v55 }
  0xb4   :  { %v5355_v45 = vadd.f32 %v207_v53, %v9249_v61  ;;  %v5371_v61 = vld [vmem:[#allocation11 + $0x20] sm:$0xff]  ;;  %v5373_v53 = vld [vmem:[#allocation11 + $0x28] sm:$0xff]  ;;  %9261 = vst [vmem:[#allocation115_spill] sm:$0xff] %v5388_v42 }
  0xb5   :  { %9255 = vst [vmem:[#allocation109_spill] sm:$0xff] %v5371_v61  ;;  %647 = vmatpush.msrb.mxu0 %v5371_v61  ;;  %687 = vmatpush.msrb.mxu2 %v5373_v53  ;;  %v5398_v61 = vld [vmem:[#allocation11 + $0x1f0] sm:$0xff] }
  0xb6   :  { %9250 = vst [vmem:[#allocation104_spill] sm:$0xff] %v5355_v45 }
  0xb7   :  { %9256 = vst [vmem:[#allocation110_spill] sm:$0xff] %v5373_v53  ;;  %v5377_v12 = vpop.f32.mrf.mxu3  ;;  %648 = vmatpush.msrb.mxu0 %v5386_v55  ;;  %688 = vmatpush.msrb.mxu2 %v5388_v42  ;;  %v5396_v53 = vld [vmem:[#allocation5 + $0x2] sm:$0x3] }
  0xb8   :  { %9258 = vst [vmem:[#allocation112_spill] sm:$0xff] %v5377_v12  ;;  %v5394_v12 = vld [vmem:[#allocation11 + $0x218] sm:$0xff]  ;;  %669 = vmatmul.f32.vlgmr.msra.gmra.mxu1 %v5396_v53  ;;  %709 = vmatmul.f32.vlgmr.msra.gmra.mxu3 %v5396_v53 }
  0xb9   :  { %9263 = vst [vmem:[#allocation117_spill] sm:$0xff] %v5394_v12  ;;  %788 = vmatpush.msrb.mxu3 %v5394_v12  ;;  %v5408_v55 = vld [vmem:[#allocation11 + $0x1d8] sm:$0xff]  ;;  %713 = vmatpush.msra.mxu0 %v5398_v61  ;;  %v5415_v12 = vld [vmem:[#allocation11 + $0x1b0] sm:$0xff] }
  0xba   :  { %888 = vmatpush.msra.mxu1 %v4997_v47  ;;  %v5427_v42 = vld [vmem:[#allocation11 + $0x198] sm:$0xff] }
  0xbb   :  { %928 = vmatpush.msra.mxu3 %v4941_v5  ;;  %v9265_v5 = vperm.slane %v5306_v3, 3 }
  0xbc   :  { %889 = vmatpush.msra.mxu1 %v5007_v50  ;;  %v5440_v50 = vld [vmem:[#allocation11 + $0x178] sm:$0xff] }
  0xbd   :  { %v5419_v8 = vpop.f32.mrf.mxu2  ;;  %929 = vmatpush.msra.mxu3 %v4943_v7  ;;  %v5432_v47 = vadd.f32 %v5308_v0, %v9265_v5  ;;  %v5438_v7 = vld [vmem:[#allocation11 + $0x170] sm:$0xff]  ;;  %v5448_v0 = vld [vmem:[#allocation11 + $0x158] sm:$0xff] }
  0xbe   :  { %9264 = vst [vmem:[#allocation118_spill] sm:$0xff] %v5419_v8  ;;  %890 = vmatpush.msra.mxu1 %v5018_v54  ;;  %v5457_v5 = vld [vmem:[#allocation11 + $0x138] sm:$0xff] }
  0xbf   :  { %9266 = vst [vmem:[#allocation119_spill] sm:$0xff] %v5432_v47  ;;  %930 = vmatpush.msra.mxu3 %v4946_v10  ;;  %v5455_v10 = vld [vmem:[#allocation11 + $0x130] sm:$0xff] }
  0xc0   :  { %891 = vmatpush.msra.mxu1 %v5029_v57  ;;  %789 = vmatmul.f32.vlgmr.msrb.gmra.mxu3 %v5396_v53 }
  0xc1   :  { %931 = vmatpush.msra.mxu3 %v4949_v14  ;;  %v5463_v14 = vld [vmem:[#allocation11 + $0x110] sm:$0xff]  ;;  %749 = vmatmul.f32.vlgmr.msrb.gmra.mxu1 %v5396_v53  ;;  %v8735_v53 = vperm.slane %v5306_v3, 2 }
  0xc2   :  { %892 = vmatpush.msra.mxu1 %v5039_v60  ;;  %v8732_v60 = vperm.slane %v5306_v3, 1  ;;  %v9329_v3 = vld [vmem:[#allocation103_spill] sm:$0xff] }
  0xc3   :  { %v370_v48 = vpop.f32.mrf.mxu1  ;;  %932 = vmatpush.msra.mxu3 %v4954_v17 }
  0xc4   :  { %v371_v44 = vadd.f32 %v370_v48, %v5355_v45  ;;  %v5402_v48 = vld [vmem:[#allocation11 + $0x1f8] sm:$0xff]  ;;  %v5406_v45 = vld [vmem:[#allocation11 + $0x1d0] sm:$0xff]  ;;  %893 = vmatpush.msra.mxu1 %v5048_v63 }
  0xc5   :  { %753 = vmatpush.msra.mxu2 %v5402_v48  ;;  %714 = vmatpush.msra.mxu0 %v5406_v45  ;;  %v5478_v63 = vld [vmem:[#allocation11 + $0xf8] sm:$0xff] }
  0xc6   :  { %v3618_v58 = vmul.f32 -1.442695, %v371_v44  ;;  %v5425_v44 = vld [vmem:[#allocation11 + $0x190] sm:$0xff]  ;;  %933 = vmatpush.msra.mxu3 %v4959_v20  ;;  %894 = vmatpush.msra.mxu1 %v5057_v2 }
  0xc7   :  { %754 = vmatpush.msra.mxu2 %v5408_v55  ;;  %715 = vmatpush.msra.mxu0 %v5415_v12  ;;  %v5468_v17 = vpop.f32.mrf.mxu2  ;;  %v5476_v20 = vld [vmem:[#allocation11 + $0xf0] sm:$0xff] }
  0xc8   :  { %3683 = vpow2.f32 %v3618_v58  ;;  %v5446_v58 = vld [vmem:[#allocation11 + $0x150] sm:$0xff]  ;;  %934 = vmatpush.msra.mxu3 %v4964_v23  ;;  %895 = vmatpush.msra.mxu1 %v5068_v6  ;;  %v5491_v23 = vadd.f32 %v5351_v51, %v8732_v60  ;;  %v5500_v6 = vld [vmem:[#allocation11 + $0xb8] sm:$0xff] }
  0xc9   :  { %755 = vmatpush.msra.mxu2 %v5417_v41  ;;  %716 = vmatpush.msra.mxu0 %v5425_v44  ;;  %9267 = vst [vmem:[#allocation120_spill] sm:$0xff] %v5446_v58  ;;  %v5507_v51 = vld [vmem:[#allocation11 + $0x90] sm:$0xff] }
  0xca   :  { %935 = vmatpush.msra.mxu3 %v4969_v28  ;;  %9269 = vst [vmem:[#allocation122_spill] sm:$0xff] %v5491_v23  ;;  %896 = vmatpush.msra.mxu1 %v5077_v11  ;;  %v5498_v28 = vld [vmem:[#allocation11 + $0xb0] sm:$0xff] }
  0xcb   :  { %756 = vmatpush.msra.mxu2 %v5427_v42  ;;  %717 = vmatpush.msra.mxu0 %v5438_v7 }
  0xcc   :  { %936 = vmatpush.msra.mxu3 %v4972_v32  ;;  %897 = vmatpush.msra.mxu1 %v5086_v15  ;;  %v5521_v15 = vld [vmem:[#allocation11 + $0x78] sm:$0xff] }
  0xcd   :  { %v430_v8 = vpop.f32.mrf.mxu3  ;;  %757 = vmatpush.msra.mxu2 %v5440_v50  ;;  %718 = vmatpush.msra.mxu0 %v5446_v58 }
  0xce   :  { %v431_v54 = vadd.f32 %v430_v8, %v5432_v47  ;;  %v3684_v57 = vpop.eup %3683  ;;  %v5465_v8 = vld [vmem:[#allocation11 + $0x118] sm:$0xff]  ;;  %937 = vmatpush.msra.mxu3 %v4977_v35  ;;  %898 = vmatpush.msra.mxu1 %v5093_v18  ;;  %v5519_v35 = vld [vmem:[#allocation11 + $0x70] sm:$0xff] }
  0xcf   :  { %758 = vmatpush.msra.mxu2 %v5448_v0  ;;  %9268 = vst [vmem:[#allocation121_spill] sm:$0xff] %v5465_v8  ;;  %719 = vmatpush.msra.mxu0 %v5455_v10  ;;  %v5472_v58 = vadd.f32 1.0, %v3684_v57  ;;  %v5486_v57 = vld [vmem:[#allocation11 + $0xd8] sm:$0xff] }
  0xd0   :  { %v3620_v47 = vmul.f32 -1.442695, %v431_v54  ;;  %v5484_v54 = vld [vmem:[#allocation11 + $0xd0] sm:$0xff]  ;;  %938 = vmatpush.msra.mxu3 %v4980_v37  ;;  %899 = vmatpush.msra.mxu1 %v5101_v21  ;;  %v5531_v18 = vld [vmem:[#allocation11 + $0x58] sm:$0xff] }
  0xd1   :  { %759 = vmatpush.msra.mxu2 %v5457_v5  ;;  %720 = vmatpush.msra.mxu0 %v5463_v14  ;;  %v5529_v37 = vld [vmem:[#allocation11 + $0x50] sm:$0xff]  ;;  %v5543_v21 = vld [vmem:[#allocation11 + $0x38] sm:$0xff]  ;;  %vm442_vm1 = vweird.f32 %v5472_v58 }
  0xd2   :  { %3685 = vpow2.f32 %v3620_v47  ;;  %v5509_v47 = vld [vmem:[#allocation11 + $0x98] sm:$0xff]  ;;  %939 = vmatpush.msra.mxu3 %v4985_v40  ;;  %900 = vmatpush.msra.mxu1 %v5105_v22  ;;  %v5541_v40 = vld [vmem:[#allocation11 + $0x30] sm:$0xff] }
  0xd3   :  { %760 = vmatpush.msra.mxu2 %v5465_v8  ;;  %721 = vmatpush.msra.mxu0 %v5476_v20  ;;  %3687 = vrcp.f32 %v5472_v58  ;;  %v5552_v22 = vld [vmem:[#allocation11 + $0x18] sm:$0xff] }
  0xd4   :  { %940 = vmatpush.msra.mxu3 %v4990_v43  ;;  %901 = vmatpush.msra.mxu1 %v5109_v24 }
  0xd5   :  { %761 = vmatpush.msra.mxu2 %v5478_v63  ;;  %722 = vmatpush.msra.mxu0 %v5484_v54 }
  0xd6   :  { %941 = vmatpush.msra.mxu3 %v4995_v46  ;;  %902 = vmatpush.msra.mxu1 %v5112_v25  ;;  %v5562_v46 = vadd.f32 %v5468_v17, %v8735_v53  ;;  %v9328_v53 = vld [vmem:[#allocation56_spill] sm:$0xff] }
  0xd7   :  { %762 = vmatpush.msra.mxu2 %v5486_v57  ;;  %723 = vmatpush.msra.mxu0 %v5498_v28 }
  0xd8   :  { %v3686_v32 = vpop.eup %3685  ;;  %942 = vmatpush.msra.mxu3 %v5003_v49  ;;  %903 = vmatpush.msra.mxu1 %v5115_v26 }
  0xd9   :  { %763 = vmatpush.msra.mxu2 %v5500_v6  ;;  %724 = vmatpush.msra.mxu0 %v5507_v51  ;;  %v5537_v60 = vadd.f32 1.0, %v3686_v32  ;;  %v5550_v32 = vld [vmem:[#allocation11 + $0x10] sm:$0xff] }
  0xda   :  { %943 = vmatpush.msra.mxu3 %v5014_v52  ;;  %1031 = vmatpush.msrb.mxu1 %v5118_v27  ;;  %v446_v52 = vand.u32 2147483647, %v5472_v58  ;;  %v448_v27 = vand.u32 2147483648, %v5472_v58 }
  0xdb   :  { %764 = vmatpush.msra.mxu2 %v5509_v47  ;;  %725 = vmatpush.msra.mxu0 %v5519_v35  ;;  %vm481_vm9 = vweird.f32 %v5537_v60 }
  0xdc   :  { %1071 = vmatpush.msrb.mxu3 %v5027_v56  ;;  %1032 = vmatpush.msrb.mxu1 %v5122_v29  ;;  %vm5591_vm4 = vcmp.eq.f32.partialorder %v446_v52, 8.507059e+37 }
  0xdd   :  { %765 = vmatpush.msra.mxu2 %v5521_v15  ;;  %726 = vmatpush.msra.mxu0 %v5529_v37 }
  0xde   :  { %1072 = vmatpush.msrb.mxu3 %v5037_v59  ;;  %1033 = vmatpush.msrb.mxu1 %v5125_v30 }
  0xdf   :  { %766 = vmatpush.msra.mxu2 %v5531_v18  ;;  %727 = vmatpush.msra.mxu0 %v5541_v40 }
  0xe0   :  { %1073 = vmatpush.msrb.mxu3 %v5046_v62  ;;  %1034 = vmatpush.msrb.mxu1 %v5128_v31  ;;  %v449_v62 = vor.u32 1.1754944e-38, %v448_v27 }
  0xe1   :  { %767 = vmatpush.msra.mxu2 %v5543_v21  ;;  %728 = vmatpush.msra.mxu0 %v5550_v32 }
  0xe2   :  { %1074 = vmatpush.msrb.mxu3 %v5055_v1  ;;  %1035 = vmatpush.msrb.mxu1 %v5131_v33  ;;  %v284_v33 = vld [vmem:[#allocation7] sm:$0x3] }
  0xe3   :  { %v390_v2 = vpop.f32.mrf.mxu1  ;;  %768 = vmatpush.msra.mxu2 %v5552_v22 }
  0xe4   :  { %v391_v8 = vadd.f32 %v390_v2, %v5491_v23  ;;  %v5515_v2 = vpop.f32.mrf.mxu2  ;;  %1075 = vmatpush.msrb.mxu3 %v5066_v4  ;;  %1036 = vmatpush.msrb.mxu1 %v5134_v34 }
  0xe5   :  { %9270 = vst [vmem:[#allocation123_spill] sm:$0xff] %v5515_v2 }
  0xe6   :  { %v3619_v11 = vmul.f32 -1.442695, %v391_v8  ;;  %v5523_v8 = vpop.eup %3687  ;;  %1076 = vmatpush.msrb.mxu3 %v5075_v9  ;;  %1037 = vmatpush.msrb.mxu1 %v5137_v36 }
  0xe7   :  { %vm443_vm2 = vweird.f32 %v5523_v8 }
  0xe8   :  { %3689 = vpow2.f32 %v3619_v11  ;;  %v438_v11 = vmul.f32 %v5523_v8, %v5472_v58  ;;  %vm5585_vm3 = vmor %vm442_vm1, %vm443_vm2  ;;  %1077 = vmatpush.msrb.mxu3 %v5084_v13  ;;  %1038 = vmatpush.msrb.mxu1 %v5140_v38  ;;  %v487_v13 = vand.u32 2147483648, %v5537_v60  ;;  %v485_v38 = vand.u32 2147483647, %v5537_v60 }
  0xe9   :  { %3691 = vrcp.f32 %v5537_v60 }
  0xea   :  { %v439_v23 = vsub.f32 1.0, %v438_v11  ;;  %1078 = vmatpush.msrb.mxu3 %v5091_v16  ;;  %1039 = vmatpush.msrb.mxu1 %v5143_v39  ;;  %v9276_v16 = vld [vmem:[#allocation38_spill] sm:$0xff]  ;;  %v9278_v39 = vld [vmem:[#allocation40_spill] sm:$0xff]  ;;  %vm486_vm12 = vcmp.eq.f32.partialorder %v485_v38, 8.507059e+37 }
  0xeb   :  { %v5670_v38 = vld [vmem:[#allocation10 + $0x170] sm:$0xff] }
  0xec   :  { %v410_v24 = vpop.f32.mrf.mxu2  ;;  %v440_v49 = vmul.f32 %v5523_v8, %v439_v23  ;;  %1079 = vmatpush.msrb.mxu3 %v5099_v19  ;;  %v488_v19 = vor.u32 1.1754944e-38, %v487_v13  ;;  %v9279_v23 = vld [vmem:[#allocation41_spill] sm:$0xff] }
  0xed   :  { %v411_v25 = vadd.f32 %v410_v24, %v5562_v46  ;;  %v5662_v13 = vld [vmem:[#allocation10 + $0x190] sm:$0xff] }
  0xee   :  { %v3690_v2 = vpop.eup %3689  ;;  %v441_v29 = vadd.f32 %v5523_v8, %v440_v49  ;;  %1080 = vmatpush.msrb.mxu3 %v9276_v16  ;;  %v5674_v16 = vld [vmem:[#allocation10 + $0x140] sm:$0xff] }
  0xef   :  { %v455_v43 = vadd.f32 1.0, %v3690_v2  ;;  %v5574_v17 = vpop.eup %3691 }
  0xf0   :  { %v477_v59 = vmul.f32 %v5574_v17, %v5537_v60  ;;  %v445_v24 = vsel %vm5585_vm3, %v5523_v8, %v441_v29  ;;  %vm482_vm10 = vweird.f32 %v5574_v17  ;;  %v9277_v29 = vld [vmem:[#allocation39_spill] sm:$0xff]  ;;  %1081 = vmatpush.msrb.mxu3 %v9278_v39  ;;  %v5678_v39 = vld [vmem:[#allocation10 + $0x150] sm:$0xff] }
  0xf1   :  { %3693 = vrcp.f32 %v455_v43  ;;  %v467_v2 = vand.u32 2147483648, %v455_v43  ;;  %v465_v31 = vand.u32 2147483647, %v455_v43  ;;  %vm461_vm6 = vweird.f32 %v455_v43  ;;  %vm483_vm11 = vmor %vm481_vm9, %vm482_vm10  ;;  %v9281_v60 = vld [vmem:[#allocation43_spill] sm:$0xff] }
  0xf2   :  { %3695 = vtanh.f32 %v411_v25  ;;  %v478_v49 = vsub.f32 1.0, %v477_v59  ;;  %v450_v4 = vsel %vm5591_vm4, %v449_v62, %v445_v24  ;;  %v9283_v24 = vld [vmem:[#allocation45_spill] sm:$0xff] }
  0xf3   :  { %v468_v52 = vor.u32 1.1754944e-38, %v467_v2  ;;  %vm466_vm8 = vcmp.eq.f32.partialorder %v465_v31, 8.507059e+37  ;;  %v9282_v2 = vld [vmem:[#allocation44_spill] sm:$0xff]  ;;  %v9284_v31 = vld [vmem:[#allocation46_spill] sm:$0xff] }
  0xf4   :  { %v479_v27 = vmul.f32 %v5574_v17, %v478_v49  ;;  %v5638_v49 = vld [vmem:[#allocation10 + $0x1f0] sm:$0xff] }
  0xf7   :  { %v3694_v26 = vpop.eup %3693 }
  0xf8   :  { %v457_v56 = vmul.f32 %v3694_v26, %v455_v43  ;;  %vm462_vm5 = vweird.f32 %v3694_v26  ;;  %v3696_v25 = vpop.eup %3695 }
  0xf9   :  { %vm463_vm7 = vmor %vm461_vm6, %vm462_vm5  ;;  %v492_v43 = vmul.f32 %v3696_v25, %v450_v4  ;;  %v9285_v25 = vld [vmem:[#allocation47_spill] sm:$0xff] }
  0xfa   :  { %v458_v58 = vsub.f32 1.0, %v457_v56  ;;  %v9275_v56 = vld [vmem:[#allocation37_spill] sm:$0xff]  ;;  %v5650_v4 = vld [vmem:[#allocation10 + $0x1a0] sm:$0xff] }
  0xfb   :  { %1040 = vmatpush.msrb.mxu1 %v9275_v56  ;;  %v9290_v56 = vld [vmem:[#allocation54_spill] sm:$0xff] }
  0xfc   :  { %v459_v11 = vmul.f32 %v3694_v26, %v458_v58  ;;  %v9280_v58 = vld [vmem:[#allocation42_spill] sm:$0xff] }
  0xfd   :  { %1041 = vmatpush.msrb.mxu1 %v9277_v29  ;;  %1082 = vmatpush.msrb.mxu3 %v9280_v58  ;;  %v9291_v29 = vld [vmem:[#allocation57_spill] sm:$0xff]  ;;  %v9294_v58 = vld [vmem:[#allocation27_spill] sm:$0xff] }
  0xfe   :  { %v460_v1 = vadd.f32 %v3694_v26, %v459_v11 }
  0xff   :  { %1042 = vmatpush.msrb.mxu1 %v9279_v23  ;;  %1083 = vmatpush.msrb.mxu3 %v9282_v2  ;;  %v9293_v23 = vld [vmem:[#allocation61_spill] sm:$0xff]  ;;  %v5688_v2 = vld [vmem:[#allocation10 + $0x100] sm:$0xff] }
 0x100   :  { %v464_v8 = vsel %vm463_vm7, %v3694_v26, %v460_v1  ;;  %v480_v26 = vadd.f32 %v5574_v17, %v479_v27  ;;  %v5642_v1 = vld [vmem:[#allocation10 + $0x1c0] sm:$0xff]  ;;  %v5654_v27 = vld [vmem:[#allocation10 + $0x1b0] sm:$0xff] }
 0x101   :  { %v469_v34 = vsel %vm466_vm8, %v468_v52, %v464_v8  ;;  %1043 = vmatpush.msrb.mxu1 %v9281_v60  ;;  %1084 = vmatpush.msrb.mxu3 %v9284_v31  ;;  %v5646_v52 = vld [vmem:[#allocation10 + $0x1d0] sm:$0xff]  ;;  %v5694_v31 = vld [vmem:[#allocation10 + $0xe0] sm:$0xff] }
 0x102   :  { %v491_v9 = vmul.f32 %v469_v34, %v284_v33  ;;  %v484_v59 = vsel %vm483_vm11, %v5574_v17, %v480_v26  ;;  %v5634_v17 = vld [vmem:[#allocation10 + $0x1e0] sm:$0xff]  ;;  %v9287_v8 = vld [vmem:[#allocation49_spill] sm:$0xff]  ;;  %v9288_v34 = vld [vmem:[#allocation50_spill] sm:$0xff] }
 0x103   :  { %v489_v62 = vsel %vm486_vm12, %v488_v19, %v484_v59  ;;  %1044 = vmatpush.msrb.mxu1 %v9283_v24  ;;  %v9286_v33 = vld [vmem:[#allocation48_spill] sm:$0xff]  ;;  %v9292_v19 = vld [vmem:[#allocation58_spill] sm:$0xff] }
 0x104   :  { %v5614_v36 = vadd.f32 %v492_v43, %v491_v9  ;;  %1085 = vmatpush.msrb.mxu3 %v9286_v33  ;;  %v5658_v9 = vld [vmem:[#allocation10 + $0x180] sm:$0xff]  ;;  %v9289_v43 = vld [vmem:[#allocation53_spill] sm:$0xff]  ;;  %v9295_v60 = vld [vmem:[#allocation62_spill] sm:$0xff] }
 0x105   :  { %1045 = vmatpush.msrb.mxu1 %v9285_v25  ;;  %v5667_v26 = vld [vmem:[#allocation10 + $0x160] sm:$0xff]  ;;  %v9298_v24 = vld [vmem:[#allocation66_spill] sm:$0xff]  ;;  %v9299_v25 = vld [vmem:[#allocation69_spill] sm:$0xff] }
 0x106   :  { %3697 = vtanh.f32 %v5614_v36  ;;  %1086 = vmatpush.msrb.mxu3 %v9288_v34  ;;  %v5682_v59 = vld [vmem:[#allocation10 + $0x120] sm:$0xff]  ;;  %v9300_v33 = vld [vmem:[#allocation29_spill] sm:$0xff] }
 0x107   :  { %1046 = vmatpush.msrb.mxu1 %v9287_v8  ;;  %v9301_v8 = vld [vmem:[#allocation70_spill] sm:$0xff]  ;;  %v5700_v34 = vld [vmem:[#allocation10 + $0xc0] sm:$0xff] }
 0x10c   :  { %v3698_v30 = vpop.eup %3697 }
 0x10d   :  { %v5628_v11 = vmul.f32 %v3698_v30, %v489_v62  ;;  %v9296_v30 = vld [vmem:[#allocation65_spill] sm:$0xff]  ;;  %v9297_v62 = vld [vmem:[#allocation28_spill] sm:$0xff] }
 0x10f   :  { %649 = vmatmul.f32.vlgmr.msrb.gmra.mxu0 %v5628_v11  ;;  %689 = vmatmul.f32.vlgmr.msrb.gmra.mxu2 %v5628_v11 }
 0x110   :  { %868 = vmatpush.msrb.mxu0 %v5634_v17  ;;  %904 = vmatmul.f32.vlgmr.msra.gmra.mxu1 %v5628_v11 }
 0x111   :  { %908 = vmatpush.msrb.mxu2 %v5638_v49  ;;  %944 = vmatmul.f32.vlgmr.msra.gmra.mxu3 %v5628_v11 }
 0x112   :  { %869 = vmatpush.msrb.mxu0 %v5642_v1  ;;  %1111 = vmatpush.msra.mxu1 %v9289_v43  ;;  %v9302_v43 = vld [vmem:[#allocation73_spill] sm:$0xff] }
 0x113   :  { %909 = vmatpush.msrb.mxu2 %v5646_v52  ;;  %1151 = vmatpush.msra.mxu3 %v9290_v56  ;;  %v9303_v56 = vld [vmem:[#allocation30_spill] sm:$0xff] }
 0x114   :  { %870 = vmatpush.msrb.mxu0 %v5650_v4  ;;  %1112 = vmatpush.msra.mxu1 %v9291_v29  ;;  %v9304_v29 = vld [vmem:[#allocation74_spill] sm:$0xff] }
 0x115   :  { %910 = vmatpush.msrb.mxu2 %v5654_v27  ;;  %1152 = vmatpush.msra.mxu3 %v9292_v19  ;;  %v5706_v19 = vld [vmem:[#allocation10 + $0xa0] sm:$0xff] }
 0x116   :  { %871 = vmatpush.msrb.mxu0 %v5658_v9  ;;  %1113 = vmatpush.msra.mxu1 %v9293_v23  ;;  %v9305_v23 = vld [vmem:[#allocation77_spill] sm:$0xff] }
 0x117   :  { %911 = vmatpush.msrb.mxu2 %v5662_v13  ;;  %729 = vmatmul.f32.vlgmr.msra.gmra.mxu0 %v5628_v11 }
 0x118   :  { %769 = vmatmul.f32.vlgmr.msra.gmra.mxu2 %v5628_v11  ;;  %872 = vmatpush.msrb.mxu0 %v5667_v26 }
 0x119   :  { %912 = vmatpush.msrb.mxu2 %v5670_v38  ;;  %1153 = vmatpush.msra.mxu3 %v9295_v60  ;;  %v9307_v60 = vld [vmem:[#allocation78_spill] sm:$0xff] }
 0x11a   :  { %873 = vmatpush.msrb.mxu0 %v5674_v16  ;;  %1114 = vmatpush.msra.mxu1 %v9296_v30  ;;  %v5712_v30 = vld [vmem:[#allocation10 + $0x80] sm:$0xff] }
 0x11b   :  { %913 = vmatpush.msrb.mxu2 %v5678_v39  ;;  %1154 = vmatpush.msra.mxu3 %v9298_v24  ;;  %v9309_v24 = vld [vmem:[#allocation32_spill] sm:$0xff] }
 0x11c   :  { %874 = vmatpush.msrb.mxu0 %v5682_v59  ;;  %1115 = vmatpush.msra.mxu1 %v9299_v25  ;;  %v9310_v25 = vld [vmem:[#allocation82_spill] sm:$0xff] }
 0x11d   :  { %914 = vmatpush.msrb.mxu2 %v9294_v58  ;;  %1155 = vmatpush.msra.mxu3 %v9301_v8  ;;  %v9306_v58 = vld [vmem:[#allocation31_spill] sm:$0xff]  ;;  %v9311_v8 = vld [vmem:[#allocation85_spill] sm:$0xff] }
 0x11e   :  { %875 = vmatpush.msrb.mxu0 %v5688_v2  ;;  %1116 = vmatpush.msra.mxu1 %v9302_v43  ;;  %v9312_v43 = vld [vmem:[#allocation33_spill] sm:$0xff] }
 0x11f   :  { %915 = vmatpush.msrb.mxu2 %v9297_v62  ;;  %1156 = vmatpush.msra.mxu3 %v9304_v29  ;;  %v9308_v62 = vld [vmem:[#allocation81_spill] sm:$0xff]  ;;  %v5724_v29 = vld [vmem:[#allocation10 + $0x40] sm:$0xff] }
 0x120   :  { %876 = vmatpush.msrb.mxu0 %v5694_v31  ;;  %1117 = vmatpush.msra.mxu1 %v9305_v23  ;;  %v9314_v23 = vld [vmem:[#allocation89_spill] sm:$0xff] }
 0x121   :  { %916 = vmatpush.msrb.mxu2 %v9300_v33  ;;  %1157 = vmatpush.msra.mxu3 %v9307_v60  ;;  %v5718_v33 = vld [vmem:[#allocation10 + $0x60] sm:$0xff] }
 0x122   :  { %877 = vmatpush.msrb.mxu0 %v5700_v34  ;;  %1118 = vmatpush.msra.mxu1 %v9308_v62  ;;  %v9316_v60 = vld [vmem:[#allocation91_spill] sm:$0xff] }
 0x123   :  { %917 = vmatpush.msrb.mxu2 %v9303_v56  ;;  %1158 = vmatpush.msra.mxu3 %v9310_v25  ;;  %v9313_v56 = vld [vmem:[#allocation86_spill] sm:$0xff]  ;;  %v5730_v62 = vld [vmem:[#allocation10 + $0x20] sm:$0xff] }
 0x124   :  { %878 = vmatpush.msrb.mxu0 %v5706_v19  ;;  %1119 = vmatpush.msra.mxu1 %v9311_v8  ;;  %v9318_v25 = vld [vmem:[#allocation35_spill] sm:$0xff] }
 0x125   :  { %918 = vmatpush.msrb.mxu2 %v9306_v58  ;;  %1159 = vmatpush.msra.mxu3 %v9313_v56  ;;  %v9315_v58 = vld [vmem:[#allocation34_spill] sm:$0xff]  ;;  %v9319_v8 = vld [vmem:[#allocation95_spill] sm:$0xff] }
 0x126   :  { %879 = vmatpush.msrb.mxu0 %v5712_v30  ;;  %1120 = vmatpush.msra.mxu1 %v9314_v23  ;;  %v9321_v56 = vld [vmem:[#allocation98_spill] sm:$0xff]  ;;  %v9322_v23 = vld [vmem:[#allocation36_spill] sm:$0xff] }
 0x127   :  { %919 = vmatpush.msrb.mxu2 %v9309_v24  ;;  %1160 = vmatpush.msra.mxu3 %v9316_v60  ;;  %v9317_v24 = vld [vmem:[#allocation94_spill] sm:$0xff]  ;;  %v9324_v60 = vld [vmem:[#allocation52_spill] sm:$0xff] }
 0x128   :  { %880 = vmatpush.msrb.mxu0 %v5718_v33  ;;  %1121 = vmatpush.msra.mxu1 %v9317_v24  ;;  %v9325_v24 = vld [vmem:[#allocation99_spill] sm:$0xff] }
 0x129   :  { %920 = vmatpush.msrb.mxu2 %v9312_v43  ;;  %1161 = vmatpush.msra.mxu3 %v9319_v8  ;;  %v5736_v43 = vld [vmem:[#allocation10] sm:$0xff]  ;;  %v9327_v8 = vld [vmem:[#allocation102_spill] sm:$0xff] }
 0x12a   :  { %881 = vmatpush.msrb.mxu0 %v5724_v29  ;;  %9320 = vst [vmem:[#allocation37_spill] sm:$0xff] %v5736_v43  ;;  %1122 = vmatpush.msra.mxu1 %v9321_v56  ;;  %v9330_v56 = vld [vmem:[#allocation59_spill] sm:$0xff] }
 0x12b   :  { %921 = vmatpush.msrb.mxu2 %v9315_v58  ;;  %v9323_v58 = vld [vmem:[#allocation51_spill] sm:$0xff]  ;;  %1162 = vmatpush.msra.mxu3 %v9325_v24  ;;  %v9336_v24 = vld [vmem:[#allocation64_spill] sm:$0xff] }
 0x12c   :  { %882 = vmatpush.msrb.mxu0 %v5730_v62  ;;  %1123 = vmatpush.msra.mxu1 %v9327_v8  ;;  %v9338_v8 = vld [vmem:[#allocation67_spill] sm:$0xff] }
 0x12d   :  { %922 = vmatpush.msrb.mxu2 %v9318_v25  ;;  %v9326_v25 = vld [vmem:[#allocation55_spill] sm:$0xff]  ;;  %1163 = vmatpush.msra.mxu3 %v9329_v3  ;;  %v9340_v3 = vld [vmem:[#allocation68_spill] sm:$0xff] }
 0x12e   :  { %883 = vmatpush.msrb.mxu0 %v5736_v43  ;;  %v9332_v43 = vld [vmem:[#allocation60_spill] sm:$0xff] }
 0x12f   :  { %923 = vmatpush.msrb.mxu2 %v9322_v23  ;;  %884 = vmatmul.f32.vlgmr.msrb.gmra.mxu0 %v5628_v11  ;;  %v9331_v23 = vld [vmem:[#allocation107_spill] sm:$0xff] }
 0x130   :  { %924 = vmatmul.f32.vlgmr.msrb.gmra.mxu2 %v5628_v11  ;;  %1011 = vmatpush.msra.mxu0 %v9323_v58  ;;  %v9333_v11 = vld [vmem:[#allocation108_spill] sm:$0xff]  ;;  %v9334_v58 = vld [vmem:[#allocation63_spill] sm:$0xff] }
 0x131   :  { %1051 = vmatpush.msra.mxu2 %v9324_v60  ;;  %1124 = vmatpush.msra.mxu1 %v9331_v23  ;;  %v9335_v60 = vld [vmem:[#allocation111_spill] sm:$0xff] }
 0x132   :  { %1012 = vmatpush.msra.mxu0 %v9326_v25  ;;  %1164 = vmatpush.msra.mxu3 %v9333_v11  ;;  %v9337_v25 = vld [vmem:[#allocation113_spill] sm:$0xff]  ;;  %v9342_v23 = vld [vmem:[#allocation71_spill] sm:$0xff] }
 0x133   :  { %1052 = vmatpush.msra.mxu2 %v9328_v53  ;;  %1125 = vmatpush.msra.mxu1 %v9335_v60  ;;  %v9339_v53 = vld [vmem:[#allocation116_spill] sm:$0xff]  ;;  %v9344_v11 = vld [vmem:[#allocation75_spill] sm:$0xff] }
 0x134   :  { %1013 = vmatpush.msra.mxu0 %v9330_v56  ;;  %1165 = vmatpush.msra.mxu3 %v9337_v25  ;;  %v9341_v56 = vld [vmem:[#allocation117_spill] sm:$0xff]  ;;  %v9346_v60 = vld [vmem:[#allocation79_spill] sm:$0xff] }
 0x135   :  { %1053 = vmatpush.msra.mxu2 %v9332_v43  ;;  %1126 = vmatpush.msra.mxu1 %v9339_v53  ;;  %v9343_v43 = vld [vmem:[#allocation72_spill] sm:$0xff]  ;;  %v9348_v25 = vld [vmem:[#allocation83_spill] sm:$0xff] }
 0x136   :  { %1014 = vmatpush.msra.mxu0 %v9334_v58  ;;  %1166 = vmatpush.msra.mxu3 %v9341_v56  ;;  %v9345_v58 = vld [vmem:[#allocation76_spill] sm:$0xff]  ;;  %v9350_v53 = vld [vmem:[#allocation87_spill] sm:$0xff] }
 0x137   :  { %1054 = vmatpush.msra.mxu2 %v9336_v24  ;;  %v9347_v24 = vld [vmem:[#allocation80_spill] sm:$0xff] }
 0x138   :  { %1015 = vmatpush.msra.mxu0 %v9338_v8  ;;  %v9349_v8 = vld [vmem:[#allocation84_spill] sm:$0xff] }
 0x139   :  { %1055 = vmatpush.msra.mxu2 %v9340_v3  ;;  %v9351_v3 = vld [vmem:[#allocation88_spill] sm:$0xff] }
 0x13a   :  { %1016 = vmatpush.msra.mxu0 %v9342_v23  ;;  %v9352_v56 = vld [vmem:[#allocation92_spill] sm:$0xff]  ;;  %v9353_v23 = vld [vmem:[#allocation93_spill] sm:$0xff] }
 0x13b   :  { %1056 = vmatpush.msra.mxu2 %v9343_v43  ;;  %v9354_v43 = vld [vmem:[#allocation96_spill] sm:$0xff] }
 0x13c   :  { %1017 = vmatpush.msra.mxu0 %v9344_v11  ;;  %v9355_v11 = vld [vmem:[#allocation97_spill] sm:$0xff] }
 0x13d   :  { %1057 = vmatpush.msra.mxu2 %v9345_v58  ;;  %v9356_v58 = vld [vmem:[#allocation100_spill] sm:$0xff] }
 0x13e   :  { %1018 = vmatpush.msra.mxu0 %v9346_v60  ;;  %v9357_v60 = vld [vmem:[#allocation101_spill] sm:$0xff] }
 0x13f   :  { %1058 = vmatpush.msra.mxu2 %v9347_v24  ;;  %v9358_v24 = vld [vmem:[#allocation105_spill] sm:$0xff] }
 0x140   :  { %1019 = vmatpush.msra.mxu0 %v9348_v25  ;;  %v9359_v25 = vld [vmem:[#allocation106_spill] sm:$0xff] }
 0x141   :  { %1059 = vmatpush.msra.mxu2 %v9349_v8  ;;  %v9360_v8 = vld [vmem:[#allocation109_spill] sm:$0xff] }
 0x142   :  { %1020 = vmatpush.msra.mxu0 %v9350_v53  ;;  %v9361_v53 = vld [vmem:[#allocation110_spill] sm:$0xff] }
 0x143   :  { %1060 = vmatpush.msra.mxu2 %v9351_v3  ;;  %v9362_v3 = vld [vmem:[#allocation114_spill] sm:$0xff] }
 0x144   :  { %1021 = vmatpush.msra.mxu0 %v9352_v56  ;;  %v9363_v56 = vld [vmem:[#allocation115_spill] sm:$0xff] }
 0x145   :  { %1061 = vmatpush.msra.mxu2 %v9353_v23  ;;  %v9364_v23 = vld [vmem:[#allocation120_spill] sm:$0xff] }
 0x146   :  { %1022 = vmatpush.msra.mxu0 %v9354_v43 }
 0x147   :  { %1062 = vmatpush.msra.mxu2 %v9355_v11  ;;  %v9371_v11 = vld [vmem:[#allocation119_spill] sm:$0xff] }
 0x148   :  { %1023 = vmatpush.msra.mxu0 %v9356_v58  ;;  %v863_v58 = vrot.slane %v9371_v11, 2 }
 0x149   :  { %1063 = vmatpush.msra.mxu2 %v9357_v60 }
 0x14a   :  { %1024 = vmatpush.msra.mxu0 %v9358_v24 }
 0x14b   :  { %1064 = vmatpush.msra.mxu2 %v9359_v25 }
 0x14c   :  { %1025 = vmatpush.msra.mxu0 %v9360_v8 }
 0x14d   :  { %1065 = vmatpush.msra.mxu2 %v9361_v53 }
 0x14e   :  { %1026 = vmatpush.msra.mxu0 %v9362_v3 }
 0x14f   :  { %1066 = vmatpush.msra.mxu2 %v9363_v56 }
 0x150   :  { %1091 = vmatpush.msrb.mxu0 %v5398_v61 }
 0x151   :  { %1131 = vmatpush.msrb.mxu2 %v5402_v48  ;;  %v710_v48 = vpop.f32.mrf.mxu3 }
 0x152   :  { %1092 = vmatpush.msrb.mxu0 %v5406_v45 }
 0x153   :  { %1132 = vmatpush.msrb.mxu2 %v5408_v55  ;;  %v9365_v55 = vld [vmem:[#allocation121_spill] sm:$0xff] }
 0x154   :  { %1093 = vmatpush.msrb.mxu0 %v5415_v12  ;;  %v670_v12 = vpop.f32.mrf.mxu1 }
 0x155   :  { %1133 = vmatpush.msrb.mxu2 %v5417_v41  ;;  %v5816_v41 = vpop.f32.mrf.mxu0 }
 0x156   :  { %1094 = vmatpush.msrb.mxu0 %v5425_v44  ;;  %9366 = vst [vmem:[#allocation38_spill] sm:$0xff] %v5816_v41  ;;  %v6050_v41 = vld [vmem:[#allocation10 + $0xd0] sm:$0xff] }
 0x157   :  { %1134 = vmatpush.msrb.mxu2 %v5427_v42  ;;  %v282_v42 = vld [vmem:[#allocation13] sm:$0xf]  ;;  %9388 = vst [vmem:[#allocation57_spill] sm:$0xff] %v6050_v41 }
 0x158   :  { %1095 = vmatpush.msrb.mxu0 %v5438_v7  ;;  %v5818_v61 = vperm.slane %v282_v42, 0  ;;  %v5829_v60 = vperm.slane %v282_v42, 2 }
 0x159   :  { %1135 = vmatpush.msrb.mxu2 %v5440_v50 }
 0x15a   :  { %1096 = vmatpush.msrb.mxu0 %v9364_v23  ;;  %9367 = vst [vmem:[#allocation39_spill] sm:$0xff] %v5818_v61 }
 0x15b   :  { %1136 = vmatpush.msrb.mxu2 %v5448_v0  ;;  %v5821_v0 = vperm.slane %v282_v42, 1  ;;  %9372 = vst [vmem:[#allocation42_spill] sm:$0xff] %v5829_v60 }
 0x15c   :  { %1097 = vmatpush.msrb.mxu0 %v5455_v10  ;;  %v750_v45 = vpop.f32.mrf.mxu1 }
 0x15d   :  { %1137 = vmatpush.msrb.mxu2 %v5457_v5  ;;  %9368 = vst [vmem:[#allocation40_spill] sm:$0xff] %v5821_v0 }
 0x15e   :  { %1098 = vmatpush.msrb.mxu0 %v5463_v14 }
 0x15f   :  { %1138 = vmatpush.msrb.mxu2 %v9365_v55 }
 0x160   :  { %1099 = vmatpush.msrb.mxu0 %v5476_v20 }
 0x161   :  { %1139 = vmatpush.msrb.mxu2 %v5478_v63  ;;  %v9369_v63 = vld [vmem:[#allocation122_spill] sm:$0xff] }
 0x162   :  { %1100 = vmatpush.msrb.mxu0 %v5484_v54  ;;  %v861_v54 = vrot.slane %v9369_v63, 2 }
 0x163   :  { %1140 = vmatpush.msrb.mxu2 %v5486_v57  ;;  %v790_v57 = vpop.f32.mrf.mxu3 }
 0x164   :  { %1101 = vmatpush.msrb.mxu0 %v5498_v28 }
 0x165   :  { %1141 = vmatpush.msrb.mxu2 %v5500_v6 }
 0x166   :  { %1102 = vmatpush.msrb.mxu0 %v5507_v51 }
 0x167   :  { %1142 = vmatpush.msrb.mxu2 %v5509_v47 }
 0x168   :  { %1103 = vmatpush.msrb.mxu0 %v5519_v35  ;;  %v5825_v35 = vperm.slane %v282_v42, 3 }
 0x169   :  { %1143 = vmatpush.msrb.mxu2 %v5521_v15 }
 0x16a   :  { %1104 = vmatpush.msrb.mxu0 %v5529_v37  ;;  %9370 = vst [vmem:[#allocation41_spill] sm:$0xff] %v5825_v35 }
 0x16b   :  { %1144 = vmatpush.msrb.mxu2 %v5531_v18 }
 0x16c   :  { %1105 = vmatpush.msrb.mxu0 %v5541_v40 }
 0x16d   :  { %1145 = vmatpush.msrb.mxu2 %v5543_v21 }
 0x16e   :  { %1106 = vmatpush.msrb.mxu0 %v5550_v32 }
 0x16f   :  { %1146 = vmatpush.msrb.mxu2 %v5552_v22 }
 0x18c   :  { %v650_v44 = vpop.f32.mrf.mxu0 }
 0x18d   :  { %v651_v7 = vadd.f32 %v650_v44, %v5818_v61  ;;  %v905_v14 = vpop.f32.mrf.mxu1 }
 0x18e   :  { %v906_v6 = vadd.f32 %v905_v14, %v861_v54  ;;  %v9373_v14 = vld [vmem:[#allocation104_spill] sm:$0xff] }
 0x18f   :  { %v671_v50 = vadd.f32 %v670_v12, %v651_v7 }
 0x190   :  { %v3625_v37 = vmul.f32 -1.442695, %v906_v6 }
 0x191   :  { %v3621_v10 = vmul.f32 -1.442695, %v671_v50 }
 0x192   :  { %v690_v5 = vpop.f32.mrf.mxu2 }
 0x193   :  { %3699 = vpow2.f32 %v3621_v10  ;;  %v691_v20 = vadd.f32 %v690_v5, %v5821_v0 }
 0x194   :  { %v945_v32 = vpop.f32.mrf.mxu3  ;;  %v730_v24 = vpop.f32.mrf.mxu0 }
 0x195   :  { %v711_v28 = vadd.f32 %v710_v48, %v691_v20  ;;  %v946_v53 = vadd.f32 %v945_v32, %v863_v58  ;;  %v731_v23 = vadd.f32 %v730_v24, %v5829_v60  ;;  %v860_v20 = vrot.slane %v9373_v14, 2 }
 0x197   :  { %v3622_v51 = vmul.f32 -1.442695, %v711_v28  ;;  %v3626_v12 = vmul.f32 -1.442695, %v946_v53  ;;  %v751_v50 = vadd.f32 %v750_v45, %v731_v23 }
 0x199   :  { %v3700_v47 = vpop.eup %3699  ;;  %3701 = vpow2.f32 %v3622_v51 }
 0x19a   :  { %v796_v15 = vadd.f32 1.0, %v3700_v47 }
 0x19b   :  { %v770_v18 = vpop.f32.mrf.mxu2 }
 0x19c   :  { %3703 = vrcp.f32 %v796_v15  ;;  %v771_v40 = vadd.f32 %v770_v18, %v5825_v35  ;;  %v808_v5 = vand.u32 2147483648, %v796_v15  ;;  %vm802_vm14 = vweird.f32 %v796_v15 }
 0x19d   :  { %3705 = vpow2.f32 %v3625_v37  ;;  %v806_v28 = vand.u32 2147483647, %v796_v15 }
 0x19e   :  { %v791_v22 = vadd.f32 %v790_v57, %v771_v40  ;;  %v809_v32 = vor.u32 1.1754944e-38, %v808_v5 }
 0x19f   :  { %v3702_v21 = vpop.eup %3701  ;;  %vm807_vm2 = vcmp.eq.f32.partialorder %v806_v28, 8.507059e+37 }
 0x1a0   :  { %v815_v43 = vadd.f32 1.0, %v3702_v21  ;;  %v3623_v25 = vmul.f32 -1.442695, %v791_v22 }
 0x1a2   :  { %v3704_v8 = vpop.eup %3703  ;;  %3707 = vrcp.f32 %v815_v43  ;;  %v827_v6 = vand.u32 2147483648, %v815_v43  ;;  %v825_v47 = vand.u32 2147483647, %v815_v43  ;;  %vm821_vm1 = vweird.f32 %v815_v43 }
 0x1a3   :  { %v798_v3 = vmul.f32 %v3704_v8, %v796_v15  ;;  %v3706_v56 = vpop.eup %3705  ;;  %3709 = vpow2.f32 %v3623_v25  ;;  %vm803_vm13 = vweird.f32 %v3704_v8  ;;  %v288_v25 = vld [vmem:[#allocation7 + $0x2] sm:$0x3] }
 0x1a4   :  { %v5832_v48 = vadd.f32 1.0, %v3706_v56  ;;  %3711 = vpow2.f32 %v3626_v12  ;;  %vm5836_vm15 = vmor %vm802_vm14, %vm803_vm13  ;;  %v828_v24 = vor.u32 1.1754944e-38, %v827_v6  ;;  %vm826_vm4 = vcmp.eq.f32.partialorder %v825_v47, 8.507059e+37 }
 0x1a5   :  { %v799_v55 = vsub.f32 1.0, %v798_v3 }
 0x1a6   :  { %3713 = vrcp.f32 %v5832_v48  ;;  %vm976_vm10 = vweird.f32 %v5832_v48 }
 0x1a7   :  { %v800_v44 = vmul.f32 %v3704_v8, %v799_v55  ;;  %3715 = vtanh.f32 %v751_v50 }
 0x1a8   :  { %v3708_v7 = vpop.eup %3707 }
 0x1a9   :  { %v817_v10 = vmul.f32 %v3708_v7, %v815_v43  ;;  %v801_v42 = vadd.f32 %v3704_v8, %v800_v44  ;;  %v3710_v54 = vpop.eup %3709  ;;  %vm822_vm0 = vweird.f32 %v3708_v7 }
 0x1aa   :  { %v835_v45 = vadd.f32 1.0, %v3710_v54  ;;  %v3712_v58 = vpop.eup %3711  ;;  %vm823_vm3 = vmor %vm821_vm1, %vm822_vm0 }
 0x1ab   :  { %v818_v57 = vsub.f32 1.0, %v817_v10  ;;  %v805_v40 = vsel %vm5836_vm15, %v3704_v8, %v801_v42  ;;  %v5844_v50 = vadd.f32 1.0, %v3712_v58 }
 0x1ac   :  { %v885_v37 = vpop.f32.mrf.mxu0  ;;  %3717 = vrcp.f32 %v835_v45  ;;  %v810_v53 = vsel %vm807_vm2, %v809_v32, %v805_v40  ;;  %v5842_v3 = vpop.eup %3713  ;;  %v845_v6 = vand.u32 2147483647, %v835_v45  ;;  %vm841_vm6 = vweird.f32 %v835_v45 }
 0x1ad   :  { %v819_v18 = vmul.f32 %v3708_v7, %v818_v57  ;;  %v886_v21 = vadd.f32 %v885_v37, %v860_v20  ;;  %v3716_v23 = vpop.eup %3715  ;;  %v972_v43 = vmul.f32 %v5842_v3, %v5832_v48  ;;  %vm977_vm9 = vweird.f32 %v5842_v3 }
 0x1ae   :  { %v852_v12 = vmul.f32 %v3716_v23, %v810_v53  ;;  %vm846_vm8 = vcmp.eq.f32.partialorder %v845_v6, 8.507059e+37  ;;  %vm5877_vm11 = vmor %vm976_vm10, %vm977_vm9  ;;  %vm996_vm2 = vweird.f32 %v5844_v50 }
 0x1af   :  { %v820_v15 = vadd.f32 %v3708_v7, %v819_v18  ;;  %v3624_v22 = vmul.f32 -1.442695, %v886_v21  ;;  %v973_v57 = vsub.f32 1.0, %v972_v43 }
 0x1b1   :  { %v824_v56 = vsel %vm823_vm3, %v3708_v7, %v820_v15  ;;  %3719 = vpow2.f32 %v3624_v22  ;;  %v847_v7 = vand.u32 2147483648, %v835_v45  ;;  %v974_v18 = vmul.f32 %v5842_v3, %v973_v57 }
 0x1b2   :  { %v829_v55 = vsel %vm826_vm4, %v828_v24, %v824_v56  ;;  %v3718_v44 = vpop.eup %3717  ;;  %v862_v15 = vrot.slane %v5562_v46, 2  ;;  %v982_v56 = vand.u32 2147483648, %v5832_v48 }
 0x1b3   :  { %v851_v8 = vmul.f32 %v829_v55, %v288_v25  ;;  %v837_v42 = vmul.f32 %v3718_v44, %v835_v45  ;;  %vm842_vm5 = vweird.f32 %v3718_v44  ;;  %v848_v47 = vor.u32 1.1754944e-38, %v847_v7  ;;  %v925_v40 = vpop.f32.mrf.mxu2  ;;  %v5869_v55 = vld [vmem:[#allocation10 + $0x1e8] sm:$0xff] }
 0x1b4   :  { %vm843_vm7 = vmor %vm841_vm6, %vm842_vm5  ;;  %v926_v25 = vadd.f32 %v925_v40, %v862_v15  ;;  %v975_v53 = vadd.f32 %v5842_v3, %v974_v18 }
 0x1b5   :  { %v5848_v10 = vadd.f32 %v852_v12, %v851_v8  ;;  %v838_v20 = vsub.f32 1.0, %v837_v42  ;;  %v5872_v8 = vld [vmem:[#allocation10 + $0x1f8] sm:$0xff] }
 0x1b7   :  { %v3720_v5 = vpop.eup %3719  ;;  %3721 = vtanh.f32 %v5848_v10  ;;  %v839_v28 = vmul.f32 %v3718_v44, %v838_v20  ;;  %v5885_v20 = vld [vmem:[#allocation10 + $0x1d8] sm:$0xff] }
 0x1b8   :  { %3723 = vrcp.f32 %v5844_v50  ;;  %v5852_v54 = vadd.f32 1.0, %v3720_v5  ;;  %v5882_v5 = vld [vmem:[#allocation10 + $0x1c8] sm:$0xff] }
 0x1b9   :  { %v840_v51 = vadd.f32 %v3718_v44, %v839_v28  ;;  %v983_v28 = vor.u32 1.1754944e-38, %v982_v56 }
 0x1ba   :  { %3725 = vrcp.f32 %v5852_v54  ;;  %v963_v42 = vand.u32 2147483648, %v5852_v54  ;;  %v961_v57 = vand.u32 2147483647, %v5852_v54  ;;  %vm957_vm13 = vweird.f32 %v5852_v54 }
 0x1bb   :  { %v844_v21 = vsel %vm843_vm7, %v3718_v44, %v840_v51  ;;  %v980_v44 = vand.u32 2147483647, %v5832_v48  ;;  %3727 = vtanh.f32 %v926_v25  ;;  %v979_v48 = vsel %vm5877_vm11, %v5842_v3, %v975_v53  ;;  %v5892_v51 = vld [vmem:[#allocation10 + $0x1a8] sm:$0xff]  ;;  %v5902_v3 = vld [vmem:[#allocation10 + $0x198] sm:$0xff] }
 0x1bc   :  { %v849_v22 = vsel %vm846_vm8, %v848_v47, %v844_v21  ;;  %v5895_v47 = vld [vmem:[#allocation10 + $0x1b8] sm:$0xff]  ;;  %v964_v18 = vor.u32 1.1754944e-38, %v963_v42  ;;  %v5899_v21 = vld [vmem:[#allocation10 + $0x188] sm:$0xff]  ;;  %vm962_vm0 = vcmp.eq.f32.partialorder %v961_v57, 8.507059e+37  ;;  %v1000_v57 = vand.u32 2147483647, %v5844_v50 }
 0x1bd   :  { %v3722_v37 = vpop.eup %3721  ;;  %vm981_vm14 = vcmp.eq.f32.partialorder %v980_v44, 8.507059e+37  ;;  %v5911_v53 = vld [vmem:[#allocation10 + $0x178] sm:$0xff]  ;;  %v5925_v42 = vld [vmem:[#allocation10 + $0x128] sm:$0xff] }
 0x1be   :  { %v5856_v32 = vpop.eup %3723  ;;  %v5859_v58 = vmul.f32 %v3722_v37, %v849_v22  ;;  %v984_v40 = vsel %vm981_vm14, %v983_v28, %v979_v48  ;;  %v5935_v48 = vld [vmem:[#allocation10 + $0x108] sm:$0xff]  ;;  %v5938_v28 = vld [vmem:[#allocation10 + $0x118] sm:$0xff]  ;;  %vm1001_vm4 = vcmp.eq.f32.partialorder %v1000_v57, 8.507059e+37 }
 0x1bf   :  { %v992_v23 = vmul.f32 %v5856_v32, %v5844_v50  ;;  %v1006_v56 = vmul.f32 %v984_v40, %v5614_v36  ;;  %vm997_vm1 = vweird.f32 %v5856_v32  ;;  %v5928_v36 = vld [vmem:[#allocation10 + $0x138] sm:$0xff]  ;;  %v5948_v40 = vld [vmem:[#allocation10 + $0xc8] sm:$0xff] }
 0x1c0   :  { %9376 = vst [vmem:[#allocation43_spill] sm:$0xff] %v5859_v58  ;;  %v3726_v24 = vpop.eup %3725  ;;  %1047 = vmatmul.f32.vlgmr.msrb.gmra.mxu1 %v5859_v58  ;;  %1087 = vmatmul.f32.vlgmr.msrb.gmra.mxu3 %v5859_v58  ;;  %vm998_vm3 = vmor %vm996_vm2, %vm997_vm1  ;;  %v5975_v57 = vld [vmem:[#allocation10 + $0x78] sm:$0xff] }
 0x1c1   :  { %v953_v45 = vmul.f32 %v3726_v24, %v5852_v54  ;;  %1262 = vmatpush.msrb.mxu1 %v5869_v55  ;;  %1302 = vmatpush.msrb.mxu3 %v5872_v8  ;;  %vm958_vm12 = vweird.f32 %v3726_v24  ;;  %v993_v6 = vsub.f32 1.0, %v992_v23  ;;  %v3728_v22 = vpop.eup %3727  ;;  %v5915_v23 = vld [vmem:[#allocation10 + $0x148] sm:$0xff] }
 0x1c2   :  { %vm959_vm15 = vmor %vm957_vm13, %vm958_vm12 }
 0x1c3   :  { %v954_v12 = vsub.f32 1.0, %v953_v45  ;;  %1263 = vmatpush.msrb.mxu1 %v5882_v5  ;;  %1303 = vmatpush.msrb.mxu3 %v5885_v20  ;;  %v994_v54 = vmul.f32 %v5856_v32, %v993_v6  ;;  %v5908_v45 = vld [vmem:[#allocation10 + $0x168] sm:$0xff] }
 0x1c5   :  { %v955_v7 = vmul.f32 %v3726_v24, %v954_v12  ;;  %1264 = vmatpush.msrb.mxu1 %v5892_v51  ;;  %1304 = vmatpush.msrb.mxu3 %v5895_v47  ;;  %v5918_v12 = vld [vmem:[#allocation10 + $0x158] sm:$0xff]  ;;  %v995_v43 = vadd.f32 %v5856_v32, %v994_v54 }
 0x1c7   :  { %v956_v37 = vadd.f32 %v3726_v24, %v955_v7  ;;  %1265 = vmatpush.msrb.mxu1 %v5899_v21  ;;  %1305 = vmatpush.msrb.mxu3 %v5902_v3  ;;  %v1002_v7 = vand.u32 2147483648, %v5844_v50  ;;  %v999_v6 = vsel %vm998_vm3, %v5856_v32, %v995_v43  ;;  %v5965_v43 = vld [vmem:[#allocation10 + $0x98] sm:$0xff] }
 0x1c8   :  { %1127 = vmatmul.f32.vlgmr.msra.gmra.mxu1 %v5859_v58  ;;  %1167 = vmatmul.f32.vlgmr.msra.gmra.mxu3 %v5859_v58  ;;  %v6057_v58 = vld [vmem:[#allocation11 + $0x340] sm:$0xff] }
 0x1c9   :  { %v960_v15 = vsel %vm959_vm15, %v3726_v24, %v956_v37  ;;  %1266 = vmatpush.msrb.mxu1 %v5908_v45  ;;  %1306 = vmatpush.msrb.mxu3 %v5911_v53  ;;  %v5942_v37 = vld [vmem:[#allocation10 + $0xe8] sm:$0xff]  ;;  %v1003_v50 = vor.u32 1.1754944e-38, %v1002_v7  ;;  %9390 = vst [vmem:[#allocation61_spill] sm:$0xff] %v6057_v58 }
 0x1ca   :  { %v965_v25 = vsel %vm962_vm0, %v964_v18, %v960_v15  ;;  %v5945_v18 = vld [vmem:[#allocation10 + $0xf8] sm:$0xff]  ;;  %v5972_v7 = vld [vmem:[#allocation10 + $0x68] sm:$0xff] }
 0x1cb   :  { %v1007_v24 = vmul.f32 %v3728_v22, %v965_v25  ;;  %1267 = vmatpush.msrb.mxu1 %v5915_v23  ;;  %1307 = vmatpush.msrb.mxu3 %v5918_v12  ;;  %v5951_v15 = vld [vmem:[#allocation10 + $0xd8] sm:$0xff]  ;;  %v1004_v32 = vsel %vm1001_vm4, %v1003_v50, %v999_v6  ;;  %v5956_v25 = vld [vmem:[#allocation10 + $0xa8] sm:$0xff] }
 0x1cc   :  { %v5980_v6 = vld [vmem:[#allocation10 + $0x48] sm:$0xff]  ;;  %v5983_v50 = vld [vmem:[#allocation10 + $0x58] sm:$0xff] }
 0x1cd   :  { %v5921_v44 = vadd.f32 %v1007_v24, %v1006_v56  ;;  %1268 = vmatpush.msrb.mxu1 %v5925_v42  ;;  %1308 = vmatpush.msrb.mxu3 %v5928_v36  ;;  %v5959_v56 = vld [vmem:[#allocation10 + $0xb8] sm:$0xff]  ;;  %v5962_v24 = vld [vmem:[#allocation10 + $0x88] sm:$0xff] }
 0x1cf   :  { %3729 = vtanh.f32 %v5921_v44  ;;  %1269 = vmatpush.msrb.mxu1 %v5935_v48  ;;  %1309 = vmatpush.msrb.mxu3 %v5938_v28 }
 0x1d1   :  { %1270 = vmatpush.msrb.mxu1 %v5942_v37  ;;  %1310 = vmatpush.msrb.mxu3 %v5945_v18 }
 0x1d3   :  { %1271 = vmatpush.msrb.mxu1 %v5948_v40  ;;  %1311 = vmatpush.msrb.mxu3 %v5951_v15 }
 0x1d5   :  { %v3730_v22 = vpop.eup %3729  ;;  %1272 = vmatpush.msrb.mxu1 %v5956_v25  ;;  %1312 = vmatpush.msrb.mxu3 %v5959_v56 }
 0x1d6   :  { %v5954_v54 = vmul.f32 %v3730_v22, %v1004_v32  ;;  %v6040_v22 = vld [vmem:[#allocation10 + $0xf0] sm:$0xff]  ;;  %v6047_v32 = vld [vmem:[#allocation11 + $0x360] sm:$0xff] }
 0x1d7   :  { %1273 = vmatpush.msrb.mxu1 %v5962_v24  ;;  %1313 = vmatpush.msrb.mxu3 %v5965_v43  ;;  %9385 = vst [vmem:[#allocation50_spill] sm:$0xff] %v6040_v22 }
 0x1d8   :  { %1027 = vmatmul.f32.vlgmr.msra.gmra.mxu0 %v5954_v54  ;;  %1067 = vmatmul.f32.vlgmr.msra.gmra.mxu2 %v5954_v54  ;;  %9387 = vst [vmem:[#allocation54_spill] sm:$0xff] %v6047_v32 }
 0x1d9   :  { %1242 = vmatpush.msra.mxu0 %v5634_v17  ;;  %1282 = vmatpush.msra.mxu2 %v5638_v49  ;;  %v5988_v17 = vld [vmem:[#allocation10 + $0x28] sm:$0xff]  ;;  %v5991_v49 = vld [vmem:[#allocation10 + $0x38] sm:$0xff] }
 0x1da   :  { %1274 = vmatpush.msrb.mxu1 %v5972_v7  ;;  %1314 = vmatpush.msrb.mxu3 %v5975_v57 }
 0x1db   :  { %1243 = vmatpush.msra.mxu0 %v5642_v1  ;;  %1283 = vmatpush.msra.mxu2 %v5646_v52  ;;  %v5996_v1 = vld [vmem:[#allocation10 + $0x8] sm:$0xff]  ;;  %v5999_v52 = vld [vmem:[#allocation10 + $0x18] sm:$0xff] }
 0x1dc   :  { %1275 = vmatpush.msrb.mxu1 %v5980_v6  ;;  %1315 = vmatpush.msrb.mxu3 %v5983_v50 }
 0x1dd   :  { %1244 = vmatpush.msra.mxu0 %v5650_v4  ;;  %1284 = vmatpush.msra.mxu2 %v5654_v27  ;;  %v6009_v4 = vld [vmem:[#allocation11 + $0x3e0] sm:$0xff]  ;;  %v6013_v27 = vld [vmem:[#allocation11 + $0x3e8] sm:$0xff] }
 0x1de   :  { %1276 = vmatpush.msrb.mxu1 %v5988_v17  ;;  %1316 = vmatpush.msrb.mxu3 %v5991_v49 }
 0x1df   :  { %1245 = vmatpush.msra.mxu0 %v5658_v9  ;;  %1285 = vmatpush.msra.mxu2 %v5662_v13  ;;  %v6017_v9 = vld [vmem:[#allocation11 + $0x3c0] sm:$0xff]  ;;  %v6020_v13 = vld [vmem:[#allocation10 + $0x130] sm:$0xff] }
 0x1e0   :  { %1277 = vmatpush.msrb.mxu1 %v5996_v1  ;;  %1317 = vmatpush.msrb.mxu3 %v5999_v52  ;;  %9379 = vst [vmem:[#allocation44_spill] sm:$0xff] %v6020_v13 }
 0x1e1   :  { %1107 = vmatmul.f32.vlgmr.msrb.gmra.mxu0 %v5954_v54  ;;  %1147 = vmatmul.f32.vlgmr.msrb.gmra.mxu2 %v5954_v54 }
 0x1e2   :  { %1246 = vmatpush.msra.mxu0 %v5667_v26  ;;  %1278 = vmatmul.f32.vlgmr.msrb.gmra.mxu1 %v5954_v54  ;;  %v6023_v26 = vld [vmem:[#allocation11 + $0x3c8] sm:$0xff] }
 0x1e3   :  { %1286 = vmatpush.msra.mxu2 %v5670_v38  ;;  %1318 = vmatmul.f32.vlgmr.msrb.gmra.mxu3 %v5954_v54  ;;  %9380 = vst [vmem:[#allocation45_spill] sm:$0xff] %v6023_v26  ;;  %v6027_v38 = vld [vmem:[#allocation11 + $0x3a0] sm:$0xff] }
 0x1e4   :  { %1247 = vmatpush.msra.mxu0 %v5674_v16  ;;  %1405 = vmatpush.msra.mxu1 %v6009_v4  ;;  %9381 = vst [vmem:[#allocation46_spill] sm:$0xff] %v6027_v38  ;;  %v6030_v16 = vld [vmem:[#allocation10 + $0x110] sm:$0xff] }
 0x1e5   :  { %1287 = vmatpush.msra.mxu2 %v5678_v39  ;;  %1445 = vmatpush.msra.mxu3 %v6013_v27  ;;  %9382 = vst [vmem:[#allocation47_spill] sm:$0xff] %v6030_v16  ;;  %v6033_v39 = vld [vmem:[#allocation11 + $0x3a8] sm:$0xff] }
 0x1e6   :  { %1248 = vmatpush.msra.mxu0 %v5682_v59  ;;  %1406 = vmatpush.msra.mxu1 %v6017_v9  ;;  %9383 = vst [vmem:[#allocation48_spill] sm:$0xff] %v6033_v39  ;;  %v6037_v59 = vld [vmem:[#allocation11 + $0x380] sm:$0xff] }
 0x1e7   :  { %1288 = vmatpush.msra.mxu2 %v6020_v13  ;;  %1446 = vmatpush.msra.mxu3 %v6023_v26  ;;  %9384 = vst [vmem:[#allocation49_spill] sm:$0xff] %v6037_v59 }
 0x1e8   :  { %1249 = vmatpush.msra.mxu0 %v5688_v2  ;;  %1407 = vmatpush.msra.mxu1 %v6027_v38  ;;  %v6043_v2 = vld [vmem:[#allocation11 + $0x388] sm:$0xff] }
 0x1e9   :  { %1289 = vmatpush.msra.mxu2 %v6030_v16  ;;  %1447 = vmatpush.msra.mxu3 %v6033_v39  ;;  %9386 = vst [vmem:[#allocation53_spill] sm:$0xff] %v6043_v2 }
 0x1ea   :  { %1250 = vmatpush.msra.mxu0 %v5694_v31  ;;  %1408 = vmatpush.msra.mxu1 %v6037_v59  ;;  %v6053_v31 = vld [vmem:[#allocation11 + $0x368] sm:$0xff] }
 0x1eb   :  { %1290 = vmatpush.msra.mxu2 %v6040_v22  ;;  %1448 = vmatpush.msra.mxu3 %v6043_v2  ;;  %9389 = vst [vmem:[#allocation58_spill] sm:$0xff] %v6053_v31  ;;  %v6060_v2 = vld [vmem:[#allocation10 + $0xb0] sm:$0xff]  ;;  %v1235_v22 = vrot.slane %v9369_v63, 4 }
 0x1ec   :  { %1251 = vmatpush.msra.mxu0 %v5700_v34  ;;  %1409 = vmatpush.msra.mxu1 %v6047_v32  ;;  %9391 = vst [vmem:[#allocation27_spill] sm:$0xff] %v6060_v2  ;;  %v6063_v34 = vld [vmem:[#allocation11 + $0x348] sm:$0xff] }
 0x1ed   :  { %1291 = vmatpush.msra.mxu2 %v6050_v41  ;;  %1449 = vmatpush.msra.mxu3 %v6053_v31  ;;  %9392 = vst [vmem:[#allocation62_spill] sm:$0xff] %v6063_v34  ;;  %v6067_v41 = vld [vmem:[#allocation11 + $0x320] sm:$0xff]  ;;  %v6070_v31 = vld [vmem:[#allocation10 + $0x90] sm:$0xff] }
 0x1ee   :  { %1252 = vmatpush.msra.mxu0 %v5706_v19  ;;  %1410 = vmatpush.msra.mxu1 %v6057_v58  ;;  %9393 = vst [vmem:[#allocation65_spill] sm:$0xff] %v6067_v41  ;;  %v6073_v19 = vld [vmem:[#allocation11 + $0x328] sm:$0xff] }
 0x1ef   :  { %1292 = vmatpush.msra.mxu2 %v6060_v2  ;;  %1450 = vmatpush.msra.mxu3 %v6063_v34  ;;  %9394 = vst [vmem:[#allocation28_spill] sm:$0xff] %v6070_v31  ;;  %v6077_v2 = vld [vmem:[#allocation11 + $0x300] sm:$0xff]  ;;  %v6080_v34 = vld [vmem:[#allocation10 + $0x70] sm:$0xff] }
 0x1f0   :  { %1253 = vmatpush.msra.mxu0 %v5712_v30  ;;  %1411 = vmatpush.msra.mxu1 %v6067_v41  ;;  %9395 = vst [vmem:[#allocation66_spill] sm:$0xff] %v6073_v19  ;;  %v6083_v30 = vld [vmem:[#allocation11 + $0x308] sm:$0xff] }
 0x1f1   :  { %1293 = vmatpush.msra.mxu2 %v6070_v31  ;;  %1451 = vmatpush.msra.mxu3 %v6073_v19  ;;  %9396 = vst [vmem:[#allocation69_spill] sm:$0xff] %v6077_v2  ;;  %v6087_v31 = vld [vmem:[#allocation11 + $0x2e0] sm:$0xff]  ;;  %v6090_v19 = vld [vmem:[#allocation10 + $0x50] sm:$0xff] }
 0x1f2   :  { %1254 = vmatpush.msra.mxu0 %v5718_v33  ;;  %1412 = vmatpush.msra.mxu1 %v6077_v2  ;;  %9397 = vst [vmem:[#allocation29_spill] sm:$0xff] %v6080_v34  ;;  %v6093_v33 = vld [vmem:[#allocation11 + $0x2e8] sm:$0xff] }
 0x1f3   :  { %1294 = vmatpush.msra.mxu2 %v6080_v34  ;;  %9398 = vst [vmem:[#allocation70_spill] sm:$0xff] %v6083_v30  ;;  %1452 = vmatpush.msra.mxu3 %v6083_v30  ;;  %v6097_v34 = vld [vmem:[#allocation11 + $0x2c0] sm:$0xff]  ;;  %v6100_v30 = vld [vmem:[#allocation10 + $0x30] sm:$0xff] }
 0x1f4   :  { %1255 = vmatpush.msra.mxu0 %v5724_v29  ;;  %9399 = vst [vmem:[#allocation73_spill] sm:$0xff] %v6087_v31  ;;  %1413 = vmatpush.msra.mxu1 %v6087_v31  ;;  %v6103_v29 = vld [vmem:[#allocation11 + $0x2c8] sm:$0xff] }
 0x1f5   :  { %9400 = vst [vmem:[#allocation30_spill] sm:$0xff] %v6090_v19  ;;  %1295 = vmatpush.msra.mxu2 %v6090_v19  ;;  %1453 = vmatpush.msra.mxu3 %v6093_v33  ;;  %v9405_v31 = vld [vmem:[#allocation37_spill] sm:$0xff]  ;;  %v6107_v19 = vld [vmem:[#allocation11 + $0x2a0] sm:$0xff] }
 0x1f6   :  { %9401 = vst [vmem:[#allocation74_spill] sm:$0xff] %v6093_v33  ;;  %1256 = vmatpush.msra.mxu0 %v5730_v62  ;;  %1414 = vmatpush.msra.mxu1 %v6097_v34  ;;  %v6110_v33 = vld [vmem:[#allocation10 + $0x10] sm:$0xff]  ;;  %v6115_v62 = vld [vmem:[#allocation11 + $0x2a8] sm:$0xff] }
 0x1f7   :  { %9402 = vst [vmem:[#allocation77_spill] sm:$0xff] %v6097_v34  ;;  %1296 = vmatpush.msra.mxu2 %v6100_v30  ;;  %1454 = vmatpush.msra.mxu3 %v6103_v29 }
 0x1f8   :  { %9403 = vst [vmem:[#allocation31_spill] sm:$0xff] %v6100_v30  ;;  %1257 = vmatpush.msra.mxu0 %v9405_v31  ;;  %1415 = vmatpush.msra.mxu1 %v6107_v19  ;;  %v6118_v30 = vld [vmem:[#allocation11 + $0x280] sm:$0xff] }
 0x1f9   :  { %9404 = vst [vmem:[#allocation78_spill] sm:$0xff] %v6103_v29  ;;  %1297 = vmatpush.msra.mxu2 %v6110_v33  ;;  %1258 = vmatmul.f32.vlgmr.msra.gmra.mxu0 %v5954_v54  ;;  %v6121_v31 = vld [vmem:[#allocation11 + $0x1e0] sm:$0xff] }
 0x1fa   :  { %9406 = vst [vmem:[#allocation81_spill] sm:$0xff] %v6107_v19  ;;  %1298 = vmatmul.f32.vlgmr.msra.gmra.mxu2 %v5954_v54  ;;  %1455 = vmatpush.msra.mxu3 %v6115_v62  ;;  %v6124_v19 = vld [vmem:[#allocation11 + $0x288] sm:$0xff]  ;;  %v6130_v54 = vld [vmem:[#allocation11 + $0x260] sm:$0xff] }
 0x1fb   :  { %9407 = vst [vmem:[#allocation32_spill] sm:$0xff] %v6110_v33  ;;  %1416 = vmatpush.msra.mxu1 %v6118_v30  ;;  %1385 = vmatpush.msrb.mxu0 %v6121_v31  ;;  %v6127_v33 = vld [vmem:[#allocation11 + $0x1e8] sm:$0xff] }
 0x1fc   :  { %9408 = vst [vmem:[#allocation82_spill] sm:$0xff] %v6115_v62  ;;  %1456 = vmatpush.msra.mxu3 %v6124_v19  ;;  %1425 = vmatpush.msrb.mxu2 %v6127_v33  ;;  %v6133_v62 = vld [vmem:[#allocation11 + $0x1c0] sm:$0xff] }
 0x1fd   :  { %9409 = vst [vmem:[#allocation85_spill] sm:$0xff] %v6118_v30  ;;  %1417 = vmatpush.msra.mxu1 %v6130_v54  ;;  %1386 = vmatpush.msrb.mxu0 %v6133_v62  ;;  %v6136_v30 = vld [vmem:[#allocation11 + $0x268] sm:$0xff] }
 0x1fe   :  { %9410 = vst [vmem:[#allocation33_spill] sm:$0xff] %v6121_v31  ;;  %1457 = vmatpush.msra.mxu3 %v6136_v30  ;;  %v6139_v31 = vld [vmem:[#allocation11 + $0x1c8] sm:$0xff] }
 0x1ff   :  { %9411 = vst [vmem:[#allocation86_spill] sm:$0xff] %v6124_v19  ;;  %1426 = vmatpush.msrb.mxu2 %v6139_v31  ;;  %v6142_v19 = vld [vmem:[#allocation11 + $0x240] sm:$0xff] }
 0x200   :  { %9412 = vst [vmem:[#allocation89_spill] sm:$0xff] %v6127_v33  ;;  %1418 = vmatpush.msra.mxu1 %v6142_v19  ;;  %v6145_v33 = vld [vmem:[#allocation11 + $0x1a0] sm:$0xff] }
 0x201   :  { %9413 = vst [vmem:[#allocation34_spill] sm:$0xff] %v6130_v54  ;;  %1387 = vmatpush.msrb.mxu0 %v6145_v33  ;;  %v6148_v54 = vld [vmem:[#allocation11 + $0x248] sm:$0xff] }
 0x202   :  { %9414 = vst [vmem:[#allocation91_spill] sm:$0xff] %v6133_v62  ;;  %1458 = vmatpush.msra.mxu3 %v6148_v54  ;;  %v6151_v62 = vld [vmem:[#allocation11 + $0x1a8] sm:$0xff] }
 0x203   :  { %9415 = vst [vmem:[#allocation94_spill] sm:$0xff] %v6136_v30  ;;  %1427 = vmatpush.msrb.mxu2 %v6151_v62  ;;  %v6154_v30 = vld [vmem:[#allocation11 + $0x220] sm:$0xff] }
 0x204   :  { %9416 = vst [vmem:[#allocation35_spill] sm:$0xff] %v6139_v31  ;;  %1419 = vmatpush.msra.mxu1 %v6154_v30  ;;  %v6157_v31 = vld [vmem:[#allocation11 + $0x180] sm:$0xff] }
 0x205   :  { %9417 = vst [vmem:[#allocation95_spill] sm:$0xff] %v6142_v19  ;;  %1388 = vmatpush.msrb.mxu0 %v6157_v31  ;;  %v6160_v19 = vld [vmem:[#allocation11 + $0x228] sm:$0xff] }
 0x206   :  { %9418 = vst [vmem:[#allocation98_spill] sm:$0xff] %v6145_v33  ;;  %1459 = vmatpush.msra.mxu3 %v6160_v19  ;;  %v6163_v33 = vld [vmem:[#allocation11 + $0x188] sm:$0xff] }
 0x207   :  { %9419 = vst [vmem:[#allocation36_spill] sm:$0xff] %v6148_v54  ;;  %1428 = vmatpush.msrb.mxu2 %v6163_v33  ;;  %v6166_v54 = vld [vmem:[#allocation11 + $0x200] sm:$0xff] }
 0x208   :  { %9420 = vst [vmem:[#allocation51_spill] sm:$0xff] %v6151_v62  ;;  %1420 = vmatpush.msra.mxu1 %v6166_v54  ;;  %v6169_v62 = vld [vmem:[#allocation11 + $0x160] sm:$0xff] }
 0x209   :  { %9421 = vst [vmem:[#allocation52_spill] sm:$0xff] %v6154_v30  ;;  %1389 = vmatpush.msrb.mxu0 %v6169_v62  ;;  %v6172_v30 = vld [vmem:[#allocation11 + $0x208] sm:$0xff] }
 0x20a   :  { %9422 = vst [vmem:[#allocation99_spill] sm:$0xff] %v6157_v31  ;;  %1460 = vmatpush.msra.mxu3 %v6172_v30  ;;  %v6175_v31 = vld [vmem:[#allocation11 + $0x168] sm:$0xff] }
 0x20b   :  { %9423 = vst [vmem:[#allocation55_spill] sm:$0xff] %v6160_v19  ;;  %1429 = vmatpush.msrb.mxu2 %v6175_v31  ;;  %v6178_v19 = vld [vmem:[#allocation11 + $0x3f0] sm:$0xff] }
 0x20c   :  { %9424 = vst [vmem:[#allocation102_spill] sm:$0xff] %v6163_v33  ;;  %1485 = vmatpush.msrb.mxu1 %v6178_v19  ;;  %v6181_v33 = vld [vmem:[#allocation11 + $0x3f8] sm:$0xff] }
 0x20d   :  { %9425 = vst [vmem:[#allocation56_spill] sm:$0xff] %v6166_v54  ;;  %1525 = vmatpush.msrb.mxu3 %v6181_v33  ;;  %v6184_v54 = vld [vmem:[#allocation11 + $0x140] sm:$0xff] }
 0x20e   :  { %9426 = vst [vmem:[#allocation103_spill] sm:$0xff] %v6169_v62  ;;  %1390 = vmatpush.msrb.mxu0 %v6184_v54  ;;  %v6187_v62 = vld [vmem:[#allocation11 + $0x148] sm:$0xff] }
 0x20f   :  { %9427 = vst [vmem:[#allocation59_spill] sm:$0xff] %v6172_v30  ;;  %1430 = vmatpush.msrb.mxu2 %v6187_v62  ;;  %v6190_v30 = vld [vmem:[#allocation11 + $0x3d0] sm:$0xff] }
 0x210   :  { %9428 = vst [vmem:[#allocation107_spill] sm:$0xff] %v6175_v31  ;;  %1486 = vmatpush.msrb.mxu1 %v6190_v30  ;;  %v6193_v31 = vld [vmem:[#allocation11 + $0x3d8] sm:$0xff] }
 0x211   :  { %9429 = vst [vmem:[#allocation60_spill] sm:$0xff] %v6178_v19  ;;  %1526 = vmatpush.msrb.mxu3 %v6193_v31  ;;  %v6196_v19 = vld [vmem:[#allocation11 + $0x120] sm:$0xff] }
 0x212   :  { %9430 = vst [vmem:[#allocation108_spill] sm:$0xff] %v6181_v33  ;;  %1391 = vmatpush.msrb.mxu0 %v6196_v19  ;;  %v6199_v33 = vld [vmem:[#allocation11 + $0x128] sm:$0xff] }
 0x213   :  { %9431 = vst [vmem:[#allocation63_spill] sm:$0xff] %v6184_v54  ;;  %1431 = vmatpush.msrb.mxu2 %v6199_v33  ;;  %v6202_v54 = vld [vmem:[#allocation11 + $0x3b0] sm:$0xff] }
 0x214   :  { %9432 = vst [vmem:[#allocation111_spill] sm:$0xff] %v6187_v62  ;;  %1487 = vmatpush.msrb.mxu1 %v6202_v54  ;;  %v6205_v62 = vld [vmem:[#allocation11 + $0x3b8] sm:$0xff] }
 0x215   :  { %9433 = vst [vmem:[#allocation64_spill] sm:$0xff] %v6190_v30  ;;  %1527 = vmatpush.msrb.mxu3 %v6205_v62  ;;  %v6208_v30 = vld [vmem:[#allocation11 + $0x100] sm:$0xff] }
 0x216   :  { %9434 = vst [vmem:[#allocation113_spill] sm:$0xff] %v6193_v31  ;;  %1392 = vmatpush.msrb.mxu0 %v6208_v30  ;;  %v6211_v31 = vld [vmem:[#allocation11 + $0x108] sm:$0xff] }
 0x217   :  { %9435 = vst [vmem:[#allocation67_spill] sm:$0xff] %v6196_v19  ;;  %1432 = vmatpush.msrb.mxu2 %v6211_v31  ;;  %v6214_v19 = vld [vmem:[#allocation11 + $0x390] sm:$0xff] }
 0x218   :  { %9436 = vst [vmem:[#allocation116_spill] sm:$0xff] %v6199_v33  ;;  %1488 = vmatpush.msrb.mxu1 %v6214_v19  ;;  %v6217_v33 = vld [vmem:[#allocation11 + $0x398] sm:$0xff] }
 0x219   :  { %9437 = vst [vmem:[#allocation68_spill] sm:$0xff] %v6202_v54  ;;  %1528 = vmatpush.msrb.mxu3 %v6217_v33  ;;  %v6220_v54 = vld [vmem:[#allocation11 + $0xe0] sm:$0xff] }
 0x21a   :  { %9438 = vst [vmem:[#allocation117_spill] sm:$0xff] %v6205_v62  ;;  %1393 = vmatpush.msrb.mxu0 %v6220_v54  ;;  %v6223_v62 = vld [vmem:[#allocation11 + $0xe8] sm:$0xff] }
 0x21b   :  { %9439 = vst [vmem:[#allocation71_spill] sm:$0xff] %v6208_v30  ;;  %1433 = vmatpush.msrb.mxu2 %v6223_v62  ;;  %v6226_v30 = vld [vmem:[#allocation11 + $0x370] sm:$0xff] }
 0x21c   :  { %9440 = vst [vmem:[#allocation72_spill] sm:$0xff] %v6211_v31  ;;  %1489 = vmatpush.msrb.mxu1 %v6226_v30  ;;  %v6229_v31 = vld [vmem:[#allocation11 + $0x378] sm:$0xff] }
 0x21d   :  { %9441 = vst [vmem:[#allocation75_spill] sm:$0xff] %v6214_v19  ;;  %1529 = vmatpush.msrb.mxu3 %v6229_v31  ;;  %v6232_v19 = vld [vmem:[#allocation11 + $0xc0] sm:$0xff] }
 0x21e   :  { %9442 = vst [vmem:[#allocation76_spill] sm:$0xff] %v6217_v33  ;;  %1394 = vmatpush.msrb.mxu0 %v6232_v19  ;;  %v6235_v33 = vld [vmem:[#allocation11 + $0xc8] sm:$0xff] }
 0x21f   :  { %9443 = vst [vmem:[#allocation79_spill] sm:$0xff] %v6220_v54  ;;  %1434 = vmatpush.msrb.mxu2 %v6235_v33  ;;  %v6238_v54 = vld [vmem:[#allocation11 + $0x350] sm:$0xff] }
 0x220   :  { %9444 = vst [vmem:[#allocation80_spill] sm:$0xff] %v6223_v62  ;;  %1490 = vmatpush.msrb.mxu1 %v6238_v54  ;;  %v6241_v62 = vld [vmem:[#allocation11 + $0x358] sm:$0xff] }
 0x221   :  { %9445 = vst [vmem:[#allocation83_spill] sm:$0xff] %v6226_v30  ;;  %1530 = vmatpush.msrb.mxu3 %v6241_v62  ;;  %v6244_v30 = vld [vmem:[#allocation11 + $0xa0] sm:$0xff] }
 0x222   :  { %9446 = vst [vmem:[#allocation84_spill] sm:$0xff] %v6229_v31  ;;  %1395 = vmatpush.msrb.mxu0 %v6244_v30  ;;  %v6247_v31 = vld [vmem:[#allocation11 + $0xa8] sm:$0xff] }
 0x223   :  { %9447 = vst [vmem:[#allocation87_spill] sm:$0xff] %v6232_v19  ;;  %1435 = vmatpush.msrb.mxu2 %v6247_v31  ;;  %v6250_v19 = vld [vmem:[#allocation11 + $0x330] sm:$0xff] }
 0x224   :  { %9448 = vst [vmem:[#allocation88_spill] sm:$0xff] %v6235_v33  ;;  %1491 = vmatpush.msrb.mxu1 %v6250_v19  ;;  %v6253_v33 = vld [vmem:[#allocation11 + $0x338] sm:$0xff] }
 0x225   :  { %9449 = vst [vmem:[#allocation92_spill] sm:$0xff] %v6238_v54  ;;  %1531 = vmatpush.msrb.mxu3 %v6253_v33  ;;  %v6256_v54 = vld [vmem:[#allocation11 + $0x80] sm:$0xff] }
 0x226   :  { %9450 = vst [vmem:[#allocation93_spill] sm:$0xff] %v6241_v62  ;;  %1396 = vmatpush.msrb.mxu0 %v6256_v54  ;;  %v6259_v62 = vld [vmem:[#allocation11 + $0x88] sm:$0xff] }
 0x227   :  { %9451 = vst [vmem:[#allocation96_spill] sm:$0xff] %v6244_v30  ;;  %1436 = vmatpush.msrb.mxu2 %v6259_v62  ;;  %v6262_v30 = vld [vmem:[#allocation11 + $0x310] sm:$0xff] }
 0x228   :  { %9452 = vst [vmem:[#allocation97_spill] sm:$0xff] %v6247_v31  ;;  %1492 = vmatpush.msrb.mxu1 %v6262_v30  ;;  %v6265_v31 = vld [vmem:[#allocation11 + $0x318] sm:$0xff] }
 0x229   :  { %9453 = vst [vmem:[#allocation100_spill] sm:$0xff] %v6250_v19  ;;  %1532 = vmatpush.msrb.mxu3 %v6265_v31  ;;  %v6268_v19 = vld [vmem:[#allocation11 + $0x60] sm:$0xff] }
 0x22a   :  { %9454 = vst [vmem:[#allocation101_spill] sm:$0xff] %v6253_v33  ;;  %1397 = vmatpush.msrb.mxu0 %v6268_v19  ;;  %v6271_v33 = vld [vmem:[#allocation11 + $0x68] sm:$0xff] }
 0x22b   :  { %9455 = vst [vmem:[#allocation105_spill] sm:$0xff] %v6256_v54  ;;  %1437 = vmatpush.msrb.mxu2 %v6271_v33  ;;  %v6274_v54 = vld [vmem:[#allocation11 + $0x2f0] sm:$0xff] }
 0x22c   :  { %9456 = vst [vmem:[#allocation106_spill] sm:$0xff] %v6259_v62  ;;  %1493 = vmatpush.msrb.mxu1 %v6274_v54  ;;  %v6277_v62 = vld [vmem:[#allocation11 + $0x2f8] sm:$0xff] }
 0x22d   :  { %9457 = vst [vmem:[#allocation109_spill] sm:$0xff] %v6262_v30  ;;  %1533 = vmatpush.msrb.mxu3 %v6277_v62  ;;  %v6280_v30 = vld [vmem:[#allocation11 + $0x40] sm:$0xff] }
 0x22e   :  { %9458 = vst [vmem:[#allocation110_spill] sm:$0xff] %v6265_v31  ;;  %1398 = vmatpush.msrb.mxu0 %v6280_v30  ;;  %v6283_v31 = vld [vmem:[#allocation11 + $0x48] sm:$0xff] }
 0x22f   :  { %9459 = vst [vmem:[#allocation114_spill] sm:$0xff] %v6268_v19  ;;  %1438 = vmatpush.msrb.mxu2 %v6283_v31  ;;  %v6286_v19 = vld [vmem:[#allocation11 + $0x2d0] sm:$0xff] }
 0x230   :  { %9460 = vst [vmem:[#allocation115_spill] sm:$0xff] %v6271_v33  ;;  %1494 = vmatpush.msrb.mxu1 %v6286_v19  ;;  %v6289_v33 = vld [vmem:[#allocation11 + $0x2d8] sm:$0xff] }
 0x231   :  { %9461 = vst [vmem:[#allocation120_spill] sm:$0xff] %v6274_v54  ;;  %1534 = vmatpush.msrb.mxu3 %v6289_v33  ;;  %v6292_v54 = vld [vmem:[#allocation11 + $0x20] sm:$0xff] }
 0x232   :  { %9462 = vst [vmem:[#allocation121_spill] sm:$0xff] %v6277_v62  ;;  %1399 = vmatpush.msrb.mxu0 %v6292_v54  ;;  %v6295_v62 = vld [vmem:[#allocation11 + $0x28] sm:$0xff] }
 0x233   :  { %9463 = vst [vmem:[#allocation37_spill] sm:$0xff] %v6280_v30  ;;  %1439 = vmatpush.msrb.mxu2 %v6295_v62  ;;  %v6298_v30 = vld [vmem:[#allocation11 + $0x2b0] sm:$0xff] }
 0x234   :  { %9464 = vst [vmem:[#allocation124_spill] sm:$0xff] %v6283_v31  ;;  %1495 = vmatpush.msrb.mxu1 %v6298_v30  ;;  %v6301_v31 = vld [vmem:[#allocation11 + $0x2b8] sm:$0xff] }
 0x235   :  { %9465 = vst [vmem:[#allocation125_spill] sm:$0xff] %v6286_v19  ;;  %1535 = vmatpush.msrb.mxu3 %v6301_v31  ;;  %v6304_v19 = vld [vmem:[#allocation11] sm:$0xff] }
 0x236   :  { %9466 = vst [vmem:[#allocation126_spill] sm:$0xff] %v6289_v33  ;;  %1400 = vmatpush.msrb.mxu0 %v6304_v19  ;;  %v6307_v33 = vld [vmem:[#allocation11 + $0x8] sm:$0xff] }
 0x237   :  { %9467 = vst [vmem:[#allocation127_spill] sm:$0xff] %v6292_v54  ;;  %1440 = vmatpush.msrb.mxu2 %v6307_v33  ;;  %v6310_v54 = vld [vmem:[#allocation11 + $0x290] sm:$0xff] }
 0x238   :  { %9468 = vst [vmem:[#allocation128_spill] sm:$0xff] %v6295_v62  ;;  %1496 = vmatpush.msrb.mxu1 %v6310_v54  ;;  %v6313_v62 = vld [vmem:[#allocation11 + $0x298] sm:$0xff] }
 0x239   :  { %9469 = vst [vmem:[#allocation129_spill] sm:$0xff] %v6298_v30  ;;  %1536 = vmatpush.msrb.mxu3 %v6313_v62  ;;  %v6316_v30 = vld [vmem:[#allocation11 + $0x1f0] sm:$0xff] }
 0x23a   :  { %9470 = vst [vmem:[#allocation130_spill] sm:$0xff] %v6301_v31  ;;  %1465 = vmatpush.msra.mxu0 %v6316_v30  ;;  %v6319_v31 = vld [vmem:[#allocation11 + $0x1f8] sm:$0xff] }
 0x23b   :  { %9471 = vst [vmem:[#allocation131_spill] sm:$0xff] %v6304_v19  ;;  %1505 = vmatpush.msra.mxu2 %v6319_v31  ;;  %v6322_v19 = vld [vmem:[#allocation11 + $0x270] sm:$0xff] }
 0x23c   :  { %9472 = vst [vmem:[#allocation132_spill] sm:$0xff] %v6307_v33  ;;  %1497 = vmatpush.msrb.mxu1 %v6322_v19  ;;  %v6325_v33 = vld [vmem:[#allocation11 + $0x278] sm:$0xff] }
 0x23d   :  { %9473 = vst [vmem:[#allocation133_spill] sm:$0xff] %v6310_v54  ;;  %1537 = vmatpush.msrb.mxu3 %v6325_v33  ;;  %v6328_v54 = vld [vmem:[#allocation11 + $0x1d0] sm:$0xff] }
 0x23e   :  { %9474 = vst [vmem:[#allocation134_spill] sm:$0xff] %v6313_v62  ;;  %1466 = vmatpush.msra.mxu0 %v6328_v54  ;;  %v6331_v62 = vld [vmem:[#allocation11 + $0x1d8] sm:$0xff] }
 0x23f   :  { %9475 = vst [vmem:[#allocation135_spill] sm:$0xff] %v6316_v30  ;;  %1506 = vmatpush.msra.mxu2 %v6331_v62  ;;  %v6334_v30 = vld [vmem:[#allocation11 + $0x250] sm:$0xff] }
 0x240   :  { %9476 = vst [vmem:[#allocation136_spill] sm:$0xff] %v6319_v31  ;;  %1498 = vmatpush.msrb.mxu1 %v6334_v30  ;;  %v6337_v31 = vld [vmem:[#allocation11 + $0x258] sm:$0xff] }
 0x241   :  { %9477 = vst [vmem:[#allocation137_spill] sm:$0xff] %v6322_v19  ;;  %1538 = vmatpush.msrb.mxu3 %v6337_v31  ;;  %v6340_v19 = vld [vmem:[#allocation11 + $0x1b0] sm:$0xff] }
 0x242   :  { %9478 = vst [vmem:[#allocation138_spill] sm:$0xff] %v6325_v33  ;;  %1467 = vmatpush.msra.mxu0 %v6340_v19  ;;  %v6343_v33 = vld [vmem:[#allocation11 + $0x1b8] sm:$0xff] }
 0x243   :  { %9479 = vst [vmem:[#allocation139_spill] sm:$0xff] %v6328_v54  ;;  %1507 = vmatpush.msra.mxu2 %v6343_v33  ;;  %v6346_v54 = vld [vmem:[#allocation11 + $0x230] sm:$0xff]  ;;  %v1088_v34 = vpop.f32.mrf.mxu3 }
 0x244   :  { %9480 = vst [vmem:[#allocation140_spill] sm:$0xff] %v6331_v62  ;;  %1499 = vmatpush.msrb.mxu1 %v6346_v54  ;;  %v6349_v62 = vld [vmem:[#allocation11 + $0x238] sm:$0xff] }
 0x245   :  { %9481 = vst [vmem:[#allocation141_spill] sm:$0xff] %v6334_v30  ;;  %1539 = vmatpush.msrb.mxu3 %v6349_v62  ;;  %v6352_v30 = vld [vmem:[#allocation11 + $0x190] sm:$0xff] }
 0x246   :  { %9482 = vst [vmem:[#allocation142_spill] sm:$0xff] %v6337_v31  ;;  %1468 = vmatpush.msra.mxu0 %v6352_v30  ;;  %v6355_v31 = vld [vmem:[#allocation11 + $0x198] sm:$0xff] }
 0x247   :  { %9483 = vst [vmem:[#allocation143_spill] sm:$0xff] %v6340_v19  ;;  %1508 = vmatpush.msra.mxu2 %v6355_v31  ;;  %v6358_v19 = vld [vmem:[#allocation11 + $0x210] sm:$0xff] }
 0x248   :  { %9484 = vst [vmem:[#allocation144_spill] sm:$0xff] %v6343_v33  ;;  %1500 = vmatpush.msrb.mxu1 %v6358_v19  ;;  %v6361_v33 = vld [vmem:[#allocation11 + $0x218] sm:$0xff] }
 0x249   :  { %9485 = vst [vmem:[#allocation145_spill] sm:$0xff] %v6346_v54  ;;  %1540 = vmatpush.msrb.mxu3 %v6361_v33  ;;  %v6364_v54 = vld [vmem:[#allocation11 + $0x170] sm:$0xff] }
 0x24a   :  { %9486 = vst [vmem:[#allocation146_spill] sm:$0xff] %v6349_v62  ;;  %1469 = vmatpush.msra.mxu0 %v6364_v54  ;;  %v6367_v62 = vld [vmem:[#allocation11 + $0x178] sm:$0xff] }
 0x24b   :  { %9487 = vst [vmem:[#allocation147_spill] sm:$0xff] %v6352_v30  ;;  %1509 = vmatpush.msra.mxu2 %v6367_v62  ;;  %v6370_v30 = vld [vmem:[#allocation11 + $0x150] sm:$0xff]  ;;  %v1168_v39 = vpop.f32.mrf.mxu3 }
 0x24c   :  { %9488 = vst [vmem:[#allocation148_spill] sm:$0xff] %v6355_v31  ;;  %1470 = vmatpush.msra.mxu0 %v6370_v30  ;;  %v6373_v31 = vld [vmem:[#allocation11 + $0x158] sm:$0xff] }
 0x24d   :  { %9489 = vst [vmem:[#allocation149_spill] sm:$0xff] %v6358_v19  ;;  %1510 = vmatpush.msra.mxu2 %v6373_v31  ;;  %v6376_v19 = vld [vmem:[#allocation11 + $0x130] sm:$0xff] }
 0x24e   :  { %9490 = vst [vmem:[#allocation150_spill] sm:$0xff] %v6361_v33  ;;  %1471 = vmatpush.msra.mxu0 %v6376_v19  ;;  %v6379_v33 = vld [vmem:[#allocation11 + $0x138] sm:$0xff] }
 0x24f   :  { %9491 = vst [vmem:[#allocation151_spill] sm:$0xff] %v6364_v54  ;;  %1511 = vmatpush.msra.mxu2 %v6379_v33  ;;  %v6382_v54 = vld [vmem:[#allocation11 + $0x110] sm:$0xff] }
 0x250   :  { %9492 = vst [vmem:[#allocation152_spill] sm:$0xff] %v6367_v62  ;;  %1472 = vmatpush.msra.mxu0 %v6382_v54  ;;  %v6385_v62 = vld [vmem:[#allocation11 + $0x118] sm:$0xff] }
 0x251   :  { %9493 = vst [vmem:[#allocation153_spill] sm:$0xff] %v6370_v30  ;;  %1512 = vmatpush.msra.mxu2 %v6385_v62  ;;  %v6388_v30 = vld [vmem:[#allocation11 + $0xf0] sm:$0xff] }
 0x252   :  { %9494 = vst [vmem:[#allocation154_spill] sm:$0xff] %v6373_v31  ;;  %1473 = vmatpush.msra.mxu0 %v6388_v30  ;;  %v6391_v31 = vld [vmem:[#allocation11 + $0xf8] sm:$0xff] }
 0x253   :  { %9495 = vst [vmem:[#allocation155_spill] sm:$0xff] %v6376_v19  ;;  %1513 = vmatpush.msra.mxu2 %v6391_v31  ;;  %v6394_v19 = vld [vmem:[#allocation11 + $0xd0] sm:$0xff] }
 0x254   :  { %9496 = vst [vmem:[#allocation156_spill] sm:$0xff] %v6379_v33  ;;  %1474 = vmatpush.msra.mxu0 %v6394_v19  ;;  %v6397_v33 = vld [vmem:[#allocation11 + $0xd8] sm:$0xff] }
 0x255   :  { %9497 = vst [vmem:[#allocation157_spill] sm:$0xff] %v6382_v54  ;;  %1514 = vmatpush.msra.mxu2 %v6397_v33  ;;  %v6400_v54 = vld [vmem:[#allocation11 + $0xb0] sm:$0xff]  ;;  %v1028_v29 = vpop.f32.mrf.mxu0 }
 0x256   :  { %9498 = vst [vmem:[#allocation158_spill] sm:$0xff] %v6385_v62  ;;  %1475 = vmatpush.msra.mxu0 %v6400_v54  ;;  %v6403_v62 = vld [vmem:[#allocation11 + $0xb8] sm:$0xff] }
 0x257   :  { %9499 = vst [vmem:[#allocation159_spill] sm:$0xff] %v6388_v30  ;;  %1515 = vmatpush.msra.mxu2 %v6403_v62  ;;  %v6406_v30 = vld [vmem:[#allocation11 + $0x90] sm:$0xff] }
 0x258   :  { %9500 = vst [vmem:[#allocation160_spill] sm:$0xff] %v6391_v31  ;;  %1476 = vmatpush.msra.mxu0 %v6406_v30  ;;  %v6409_v31 = vld [vmem:[#allocation11 + $0x98] sm:$0xff] }
 0x259   :  { %9501 = vst [vmem:[#allocation161_spill] sm:$0xff] %v6394_v19  ;;  %1516 = vmatpush.msra.mxu2 %v6409_v31  ;;  %v6412_v19 = vld [vmem:[#allocation11 + $0x70] sm:$0xff] }
 0x25a   :  { %9502 = vst [vmem:[#allocation162_spill] sm:$0xff] %v6397_v33  ;;  %1477 = vmatpush.msra.mxu0 %v6412_v19  ;;  %v6415_v33 = vld [vmem:[#allocation11 + $0x78] sm:$0xff] }
 0x25b   :  { %9503 = vst [vmem:[#allocation163_spill] sm:$0xff] %v6400_v54  ;;  %1517 = vmatpush.msra.mxu2 %v6415_v33  ;;  %v6418_v54 = vld [vmem:[#allocation11 + $0x50] sm:$0xff]  ;;  %v1068_v58 = vpop.f32.mrf.mxu2 }
 0x25c   :  { %9504 = vst [vmem:[#allocation164_spill] sm:$0xff] %v6403_v62  ;;  %1478 = vmatpush.msra.mxu0 %v6418_v54  ;;  %v6421_v62 = vld [vmem:[#allocation11 + $0x58] sm:$0xff] }
 0x25d   :  { %9505 = vst [vmem:[#allocation165_spill] sm:$0xff] %v6406_v30  ;;  %1518 = vmatpush.msra.mxu2 %v6421_v62  ;;  %v6424_v30 = vld [vmem:[#allocation11 + $0x30] sm:$0xff] }
 0x25e   :  { %9506 = vst [vmem:[#allocation166_spill] sm:$0xff] %v6409_v31  ;;  %1479 = vmatpush.msra.mxu0 %v6424_v30  ;;  %v6427_v31 = vld [vmem:[#allocation11 + $0x38] sm:$0xff] }
 0x25f   :  { %9507 = vst [vmem:[#allocation167_spill] sm:$0xff] %v6412_v19  ;;  %1519 = vmatpush.msra.mxu2 %v6427_v31  ;;  %v6430_v19 = vld [vmem:[#allocation11 + $0x10] sm:$0xff] }
 0x260   :  { %9508 = vst [vmem:[#allocation168_spill] sm:$0xff] %v6415_v33  ;;  %1480 = vmatpush.msra.mxu0 %v6430_v19  ;;  %v6433_v33 = vld [vmem:[#allocation11 + $0x18] sm:$0xff] }
 0x261   :  { %9509 = vst [vmem:[#allocation169_spill] sm:$0xff] %v6418_v54  ;;  %1520 = vmatpush.msra.mxu2 %v6433_v33  ;;  %v1048_v54 = vpop.f32.mrf.mxu1 }
 0x262   :  { %9510 = vst [vmem:[#allocation170_spill] sm:$0xff] %v6421_v62  ;;  %v1029_v62 = vadd.f32 %v1028_v29, %v5818_v61 }
 0x263   :  { %9511 = vst [vmem:[#allocation171_spill] sm:$0xff] %v6424_v30 }
 0x264   :  { %9512 = vst [vmem:[#allocation172_spill] sm:$0xff] %v6427_v31  ;;  %v1049_v41 = vadd.f32 %v1048_v54, %v1029_v62  ;;  %v1069_v31 = vadd.f32 %v1068_v58, %v5821_v0  ;;  %v1148_v26 = vpop.f32.mrf.mxu2  ;;  %v1108_v54 = vpop.f32.mrf.mxu0 }
 0x265   :  { %9513 = vst [vmem:[#allocation173_spill] sm:$0xff] %v6430_v19  ;;  %v1149_v62 = vadd.f32 %v1148_v26, %v5825_v35 }
 0x266   :  { %9514 = vst [vmem:[#allocation174_spill] sm:$0xff] %v6433_v33  ;;  %v3627_v30 = vmul.f32 -1.442695, %v1049_v41  ;;  %v1089_v32 = vadd.f32 %v1088_v34, %v1069_v31  ;;  %v1319_v58 = vpop.f32.mrf.mxu3  ;;  %v1237_v31 = vrot.slane %v9371_v11, 4 }
 0x268   :  { %3731 = vpow2.f32 %v3627_v30  ;;  %v3628_v59 = vmul.f32 -1.442695, %v1089_v32  ;;  %v1169_v30 = vadd.f32 %v1168_v39, %v1149_v62 }
 0x269   :  { %v1128_v2 = vpop.f32.mrf.mxu1 }
 0x26a   :  { %3733 = vpow2.f32 %v3628_v59  ;;  %v3629_v34 = vmul.f32 -1.442695, %v1169_v30 }
 0x26e   :  { %v3732_v33 = vpop.eup %3731 }
 0x26f   :  { %v1174_v38 = vadd.f32 1.0, %v3732_v33 }
 0x270   :  { %v3734_v41 = vpop.eup %3733 }
 0x271   :  { %v1279_v19 = vpop.f32.mrf.mxu1  ;;  %3735 = vrcp.f32 %v1174_v38  ;;  %v1193_v61 = vadd.f32 1.0, %v3734_v41  ;;  %v1186_v30 = vand.u32 2147483648, %v1174_v38  ;;  %vm1180_vm6 = vweird.f32 %v1174_v38 }
 0x272   :  { %v1280_v16 = vadd.f32 %v1279_v19, %v1235_v22  ;;  %v1109_v22 = vadd.f32 %v1108_v54, %v5829_v60  ;;  %v1320_v19 = vadd.f32 %v1319_v58, %v1237_v31  ;;  %v1184_v54 = vand.u32 2147483647, %v1174_v38 }
 0x273   :  { %v1205_v58 = vand.u32 2147483648, %v1193_v61  ;;  %v1234_v31 = vrot.slane %v9373_v14, 4  ;;  %vm1199_vm9 = vweird.f32 %v1193_v61 }
 0x274   :  { %v3631_v29 = vmul.f32 -1.442695, %v1280_v16  ;;  %v1129_v63 = vadd.f32 %v1128_v2, %v1109_v22  ;;  %v3632_v35 = vmul.f32 -1.442695, %v1320_v19  ;;  %v1203_v2 = vand.u32 2147483647, %v1193_v61 }
 0x275   :  { %v1187_v19 = vor.u32 1.1754944e-38, %v1186_v30  ;;  %vm1185_vm10 = vcmp.eq.f32.partialorder %v1184_v54, 8.507059e+37 }
 0x276   :  { %3737 = vpow2.f32 %v3631_v29  ;;  %vm1204_vm12 = vcmp.eq.f32.partialorder %v1203_v2, 8.507059e+37 }
 0x277   :  { %v3736_v32 = vpop.eup %3735  ;;  %3739 = vrcp.f32 %v1193_v61 }
 0x278   :  { %v1176_v59 = vmul.f32 %v3736_v32, %v1174_v38  ;;  %3741 = vpow2.f32 %v3629_v34  ;;  %vm1181_vm5 = vweird.f32 %v3736_v32 }
 0x279   :  { %3743 = vtanh.f32 %v1129_v63  ;;  %vm6444_vm7 = vmor %vm1180_vm6, %vm1181_vm5  ;;  %v1259_v63 = vpop.f32.mrf.mxu0 }
 0x27a   :  { %v1177_v33 = vsub.f32 1.0, %v1176_v59  ;;  %3745 = vpow2.f32 %v3632_v35  ;;  %v1260_v38 = vadd.f32 %v1259_v63, %v1234_v31 }
 0x27c   :  { %v3738_v16 = vpop.eup %3737  ;;  %v1178_v26 = vmul.f32 %v3736_v32, %v1177_v33 }
 0x27d   :  { %v3740_v0 = vpop.eup %3739  ;;  %v6442_v41 = vadd.f32 1.0, %v3738_v16  ;;  %v1206_v16 = vor.u32 1.1754944e-38, %v1205_v58 }
 0x27e   :  { %v3742_v39 = vpop.eup %3741  ;;  %v1195_v62 = vmul.f32 %v3740_v0, %v1193_v61  ;;  %v1179_v29 = vadd.f32 %v3736_v32, %v1178_v26  ;;  %vm1200_vm8 = vweird.f32 %v3740_v0 }
 0x27f   :  { %v1213_v11 = vadd.f32 1.0, %v3742_v39  ;;  %v3744_v33 = vpop.eup %3743  ;;  %vm1201_vm11 = vmor %vm1199_vm9, %vm1200_vm8  ;;  %vm1350_vm2 = vweird.f32 %v6442_v41 }
 0x280   :  { %v1196_v13 = vsub.f32 1.0, %v1195_v62  ;;  %v1183_v59 = vsel %vm6444_vm7, %v3736_v32, %v1179_v29  ;;  %v3746_v39 = vpop.eup %3745 }
 0x281   :  { %3747 = vrcp.f32 %v1213_v11  ;;  %v1188_v26 = vsel %vm1185_vm10, %v1187_v19, %v1183_v59  ;;  %v6459_v31 = vadd.f32 1.0, %v3746_v39  ;;  %v1225_v2 = vand.u32 2147483648, %v1213_v11  ;;  %v1299_v39 = vpop.f32.mrf.mxu2 }
 0x282   :  { %v1197_v22 = vmul.f32 %v3740_v0, %v1196_v13  ;;  %3749 = vrcp.f32 %v6442_v41  ;;  %v3630_v13 = vmul.f32 -1.442695, %v1260_v38  ;;  %v1230_v29 = vmul.f32 %v3744_v33, %v1188_v26 }
 0x283   :  { %vm1219_vm14 = vweird.f32 %v1213_v11  ;;  %vm1370_vm10 = vweird.f32 %v6459_v31 }
 0x284   :  { %v1198_v35 = vadd.f32 %v3740_v0, %v1197_v22  ;;  %3751 = vpow2.f32 %v3630_v13  ;;  %v1223_v22 = vand.u32 2147483647, %v1213_v11 }
 0x286   :  { %v1202_v62 = vsel %vm1201_vm11, %v3740_v0, %v1198_v35  ;;  %v1226_v35 = vor.u32 1.1754944e-38, %v1225_v2  ;;  %vm1224_vm0 = vcmp.eq.f32.partialorder %v1223_v22, 8.507059e+37 }
 0x287   :  { %v3748_v14 = vpop.eup %3747  ;;  %v1207_v60 = vsel %vm1204_vm12, %v1206_v16, %v1202_v62  ;;  %v1236_v62 = vrot.slane %v5562_v46, 4 }
 0x288   :  { %v6452_v34 = vpop.eup %3749  ;;  %v1229_v32 = vmul.f32 %v1207_v60, %v5848_v10  ;;  %v1215_v30 = vmul.f32 %v3748_v14, %v1213_v11  ;;  %vm1220_vm13 = vweird.f32 %v3748_v14 }
 0x289   :  { %v1346_v58 = vmul.f32 %v6452_v34, %v6442_v41  ;;  %vm1221_vm15 = vmor %vm1219_vm14, %vm1220_vm13  ;;  %v1300_v13 = vadd.f32 %v1299_v39, %v1236_v62  ;;  %vm1351_vm1 = vweird.f32 %v6452_v34  ;;  %v9528_v39 = vld [vmem:[#allocation57_spill] sm:$0xff]  ;;  %v9529_v62 = vld [vmem:[#allocation58_spill] sm:$0xff] }
 0x28a   :  { %v6455_v61 = vadd.f32 %v1230_v29, %v1229_v32  ;;  %v1216_v54 = vsub.f32 1.0, %v1215_v30  ;;  %v3752_v59 = vpop.eup %3751  ;;  %v1356_v30 = vand.u32 2147483648, %v6442_v41  ;;  %vm6484_vm3 = vmor %vm1350_vm2, %vm1351_vm1 }
 0x28b   :  { %v1325_v10 = vadd.f32 1.0, %v3752_v59  ;;  %v1347_v63 = vsub.f32 1.0, %v1346_v58  ;;  %v9536_v58 = vld [vmem:[#allocation69_spill] sm:$0xff] }
 0x28c   :  { %3753 = vtanh.f32 %v6455_v61  ;;  %v1217_v0 = vmul.f32 %v3748_v14, %v1216_v54 }
 0x28d   :  { %3755 = vrcp.f32 %v6459_v31  ;;  %v1348_v26 = vmul.f32 %v6452_v34, %v1347_v63  ;;  %vm1331_vm5 = vweird.f32 %v1325_v10 }
 0x28e   :  { %v1218_v60 = vadd.f32 %v3748_v14, %v1217_v0  ;;  %3757 = vrcp.f32 %v1325_v10  ;;  %v1335_v0 = vand.u32 2147483647, %v1325_v10 }
 0x28f   :  { %v1349_v29 = vadd.f32 %v6452_v34, %v1348_v26  ;;  %3759 = vtanh.f32 %v1300_v13  ;;  %v9527_v26 = vld [vmem:[#allocation54_spill] sm:$0xff]  ;;  %v9531_v13 = vld [vmem:[#allocation27_spill] sm:$0xff] }
 0x290   :  { %v1222_v19 = vsel %vm1221_vm15, %v3748_v14, %v1218_v60  ;;  %vm1336_vm8 = vcmp.eq.f32.partialorder %v1335_v0, 8.507059e+37  ;;  %v6618_v0 = vld [vmem:[#allocation10 + $0x40] sm:$0xff] }
 0x291   :  { %v1227_v33 = vsel %vm1224_vm0, %v1226_v35, %v1222_v19  ;;  %v1353_v2 = vsel %vm6484_vm3, %v6452_v34, %v1349_v29  ;;  %v9523_v19 = vld [vmem:[#allocation48_spill] sm:$0xff]  ;;  %v9524_v35 = vld [vmem:[#allocation49_spill] sm:$0xff] }
 0x292   :  { %v3754_v38 = vpop.eup %3753  ;;  %v6606_v29 = vld [vmem:[#allocation10 + $0x80] sm:$0xff] }
 0x293   :  { %v6463_v16 = vmul.f32 %v3754_v38, %v1227_v33  ;;  %v6469_v11 = vpop.eup %3755  ;;  %v9526_v38 = vld [vmem:[#allocation53_spill] sm:$0xff]  ;;  %v6594_v33 = vld [vmem:[#allocation10 + $0xc0] sm:$0xff] }
 0x294   :  { %v3758_v14 = vpop.eup %3757  ;;  %v1366_v54 = vmul.f32 %v6469_v11, %v6459_v31  ;;  %vm1371_vm9 = vweird.f32 %v6469_v11 }
 0x295   :  { %1421 = vmatmul.f32.vlgmr.msra.gmra.mxu1 %v6463_v16  ;;  %1461 = vmatmul.f32.vlgmr.msra.gmra.mxu3 %v6463_v16  ;;  %v1327_v32 = vmul.f32 %v3758_v14, %v1325_v10  ;;  %vm1332_vm4 = vweird.f32 %v3758_v14  ;;  %vm1372_vm11 = vmor %vm1370_vm10, %vm1371_vm9  ;;  %vm3498_vm9 = vcmask 1041408   ;;  %vm3500_vm10 = vcmask 1043456  }
 0x296   :  { %1636 = vmatpush.msra.mxu1 %v5869_v55  ;;  %1676 = vmatpush.msra.mxu3 %v5872_v8  ;;  %v1354_v8 = vand.u32 2147483647, %v6442_v41  ;;  %v1367_v41 = vsub.f32 1.0, %v1366_v54  ;;  %vm1333_vm7 = vmor %vm1331_vm5, %vm1332_vm4  ;;  %v9534_v54 = vld [vmem:[#allocation28_spill] sm:$0xff] }
 0x297   :  { %v1328_v55 = vsub.f32 1.0, %v1327_v32  ;;  %v9532_v32 = vld [vmem:[#allocation62_spill] sm:$0xff] }
 0x298   :  { %1637 = vmatpush.msra.mxu1 %v5882_v5  ;;  %1677 = vmatpush.msra.mxu3 %v5885_v20  ;;  %v1337_v5 = vand.u32 2147483648, %v1325_v10  ;;  %vm1355_vm6 = vcmp.eq.f32.partialorder %v1354_v8, 8.507059e+37  ;;  %v6612_v8 = vld [vmem:[#allocation10 + $0x60] sm:$0xff] }
 0x299   :  { %v1329_v20 = vmul.f32 %v3758_v14, %v1328_v55  ;;  %v9535_v55 = vld [vmem:[#allocation66_spill] sm:$0xff] }
 0x29a   :  { %1638 = vmatpush.msra.mxu1 %v5892_v51  ;;  %1678 = vmatpush.msra.mxu3 %v5895_v47  ;;  %v1357_v51 = vor.u32 1.1754944e-38, %v1356_v30  ;;  %v1338_v22 = vor.u32 1.1754944e-38, %v1337_v5  ;;  %v9533_v30 = vld [vmem:[#allocation65_spill] sm:$0xff] }
 0x29b   :  { %v1330_v47 = vadd.f32 %v3758_v14, %v1329_v20  ;;  %v9537_v5 = vld [vmem:[#allocation29_spill] sm:$0xff]  ;;  %v9538_v20 = vld [vmem:[#allocation70_spill] sm:$0xff] }
 0x29c   :  { %1639 = vmatpush.msra.mxu1 %v5899_v21  ;;  %1679 = vmatpush.msra.mxu3 %v5902_v3  ;;  %v1358_v34 = vsel %vm1355_vm6, %v1357_v51, %v1353_v2  ;;  %v3760_v21 = vpop.eup %3759  ;;  %v1368_v3 = vmul.f32 %v6469_v11, %v1367_v41  ;;  %v9539_v2 = vld [vmem:[#allocation73_spill] sm:$0xff]  ;;  %v9540_v51 = vld [vmem:[#allocation30_spill] sm:$0xff] }
 0x29d   :  { %1501 = vmatmul.f32.vlgmr.msrb.gmra.mxu1 %v6463_v16  ;;  %1541 = vmatmul.f32.vlgmr.msrb.gmra.mxu3 %v6463_v16  ;;  %v1334_v59 = vsel %vm1333_vm7, %v3758_v14, %v1330_v47  ;;  %v1380_v10 = vmul.f32 %v1358_v34, %v5921_v44  ;;  %v9530_v14 = vld [vmem:[#allocation61_spill] sm:$0xff]  ;;  %v9541_v41 = vld [vmem:[#allocation74_spill] sm:$0xff]  ;;  %v6624_v47 = vld [vmem:[#allocation10 + $0x20] sm:$0xff] }
 0x29e   :  { %1640 = vmatpush.msra.mxu1 %v5908_v45  ;;  %1680 = vmatpush.msra.mxu3 %v5911_v53  ;;  %v1339_v60 = vsel %vm1336_vm8, %v1338_v22, %v1334_v59  ;;  %v1369_v53 = vadd.f32 %v6469_v11, %v1368_v3  ;;  %v9542_v22 = vld [vmem:[#allocation77_spill] sm:$0xff]  ;;  %v9543_v34 = vld [vmem:[#allocation31_spill] sm:$0xff]  ;;  %v9544_v59 = vld [vmem:[#allocation78_spill] sm:$0xff] }
 0x29f   :  { %v1381_v63 = vmul.f32 %v3760_v21, %v1339_v60  ;;  %v6630_v21 = vld [vmem:[#allocation10] sm:$0xff]  ;;  %v9545_v3 = vld [vmem:[#allocation81_spill] sm:$0xff] }
 0x2a0   :  { %1641 = vmatpush.msra.mxu1 %v5915_v23  ;;  %1681 = vmatpush.msra.mxu3 %v5918_v12  ;;  %v1376_v23 = vand.u32 2147483648, %v6459_v31  ;;  %v1374_v12 = vand.u32 2147483647, %v6459_v31  ;;  %v1373_v44 = vsel %vm1372_vm11, %v6469_v11, %v1369_v53  ;;  %v9522_v31 = vld [vmem:[#allocation47_spill] sm:$0xff]  ;;  %v9546_v60 = vld [vmem:[#allocation32_spill] sm:$0xff]  ;;  %v9549_v53 = vld [vmem:[#allocation33_spill] sm:$0xff] }
 0x2a1   :  { %v6503_v45 = vadd.f32 %v1381_v63, %v1380_v10  ;;  %v6600_v11 = vld [vmem:[#allocation10 + $0xa0] sm:$0xff]  ;;  %v9547_v10 = vld [vmem:[#allocation82_spill] sm:$0xff]  ;;  %v9548_v63 = vld [vmem:[#allocation85_spill] sm:$0xff] }
 0x2a2   :  { %1642 = vmatpush.msra.mxu1 %v5925_v42  ;;  %1682 = vmatpush.msra.mxu3 %v5928_v36  ;;  %v1377_v42 = vor.u32 1.1754944e-38, %v1376_v23  ;;  %vm1375_vm12 = vcmp.eq.f32.partialorder %v1374_v12, 8.507059e+37  ;;  %v9550_v23 = vld [vmem:[#allocation86_spill] sm:$0xff]  ;;  %v9551_v12 = vld [vmem:[#allocation89_spill] sm:$0xff] }
 0x2a3   :  { %3761 = vtanh.f32 %v6503_v45 }
 0x2a4   :  { %1643 = vmatpush.msra.mxu1 %v5935_v48  ;;  %1683 = vmatpush.msra.mxu3 %v5938_v28  ;;  %v1378_v48 = vsel %vm1375_vm12, %v1377_v42, %v1373_v44  ;;  %v9552_v44 = vld [vmem:[#allocation34_spill] sm:$0xff]  ;;  %v9553_v42 = vld [vmem:[#allocation91_spill] sm:$0xff] }
 0x2a6   :  { %1644 = vmatpush.msra.mxu1 %v5942_v37  ;;  %1684 = vmatpush.msra.mxu3 %v5945_v18  ;;  %v6528_v37 = vld [vmem:[#allocation10 + $0x1e0] sm:$0xff]  ;;  %v6531_v18 = vld [vmem:[#allocation10 + $0x1f0] sm:$0xff] }
 0x2a8   :  { %1645 = vmatpush.msra.mxu1 %v5948_v40  ;;  %1685 = vmatpush.msra.mxu3 %v5951_v15  ;;  %v6536_v40 = vld [vmem:[#allocation10 + $0x1c0] sm:$0xff]  ;;  %v6539_v15 = vld [vmem:[#allocation10 + $0x1d0] sm:$0xff] }
 0x2a9   :  { %v3762_v36 = vpop.eup %3761 }
 0x2aa   :  { %1646 = vmatpush.msra.mxu1 %v5956_v25  ;;  %1686 = vmatpush.msra.mxu3 %v5959_v56  ;;  %v6522_v28 = vmul.f32 %v3762_v36, %v1378_v48  ;;  %v6544_v25 = vld [vmem:[#allocation10 + $0x1a0] sm:$0xff]  ;;  %v6547_v56 = vld [vmem:[#allocation10 + $0x1b0] sm:$0xff] }
 0x2ab   :  { %v9554_v36 = vld [vmem:[#allocation94_spill] sm:$0xff]  ;;  %v9555_v48 = vld [vmem:[#allocation35_spill] sm:$0xff] }
 0x2ac   :  { %1647 = vmatpush.msra.mxu1 %v5962_v24  ;;  %1687 = vmatpush.msra.mxu3 %v5965_v43  ;;  %v6552_v24 = vld [vmem:[#allocation10 + $0x180] sm:$0xff]  ;;  %v6555_v43 = vld [vmem:[#allocation10 + $0x190] sm:$0xff] }
 0x2ad   :  { %1401 = vmatmul.f32.vlgmr.msrb.gmra.mxu0 %v6522_v28  ;;  %1441 = vmatmul.f32.vlgmr.msrb.gmra.mxu2 %v6522_v28 }
 0x2ae   :  { %1648 = vmatpush.msra.mxu1 %v5972_v7  ;;  %1688 = vmatpush.msra.mxu3 %v5975_v57  ;;  %v6560_v7 = vld [vmem:[#allocation10 + $0x160] sm:$0xff]  ;;  %v6564_v57 = vld [vmem:[#allocation10 + $0x170] sm:$0xff] }
 0x2af   :  { %1616 = vmatpush.msrb.mxu0 %v6528_v37  ;;  %1656 = vmatpush.msrb.mxu2 %v6531_v18 }
 0x2b0   :  { %1649 = vmatpush.msra.mxu1 %v5980_v6  ;;  %1689 = vmatpush.msra.mxu3 %v5983_v50  ;;  %v6568_v6 = vld [vmem:[#allocation10 + $0x140] sm:$0xff]  ;;  %v6572_v50 = vld [vmem:[#allocation10 + $0x150] sm:$0xff] }
 0x2b1   :  { %1617 = vmatpush.msrb.mxu0 %v6536_v40  ;;  %1657 = vmatpush.msrb.mxu2 %v6539_v15 }
 0x2b2   :  { %1650 = vmatpush.msra.mxu1 %v5988_v17  ;;  %1690 = vmatpush.msra.mxu3 %v5991_v49  ;;  %v6576_v17 = vld [vmem:[#allocation10 + $0x120] sm:$0xff] }
 0x2b3   :  { %1618 = vmatpush.msrb.mxu0 %v6544_v25  ;;  %1658 = vmatpush.msrb.mxu2 %v6547_v56  ;;  %v9519_v49 = vld [vmem:[#allocation44_spill] sm:$0xff] }
 0x2b4   :  { %1651 = vmatpush.msra.mxu1 %v5996_v1  ;;  %1691 = vmatpush.msra.mxu3 %v5999_v52  ;;  %v9520_v1 = vld [vmem:[#allocation45_spill] sm:$0xff]  ;;  %v6582_v52 = vld [vmem:[#allocation10 + $0x100] sm:$0xff] }
 0x2b5   :  { %1619 = vmatpush.msrb.mxu0 %v6552_v24  ;;  %1659 = vmatpush.msrb.mxu2 %v6555_v43 }
 0x2b6   :  { %1481 = vmatmul.f32.vlgmr.msra.gmra.mxu0 %v6522_v28  ;;  %1521 = vmatmul.f32.vlgmr.msra.gmra.mxu2 %v6522_v28 }
 0x2b7   :  { %1620 = vmatpush.msrb.mxu0 %v6560_v7  ;;  %1652 = vmatmul.f32.vlgmr.msra.gmra.mxu1 %v6522_v28 }
 0x2b8   :  { %1660 = vmatpush.msrb.mxu2 %v6564_v57  ;;  %1692 = vmatmul.f32.vlgmr.msra.gmra.mxu3 %v6522_v28 }
 0x2b9   :  { %1621 = vmatpush.msrb.mxu0 %v6568_v6  ;;  %1779 = vmatpush.msrb.mxu1 %v6009_v4  ;;  %v9521_v4 = vld [vmem:[#allocation46_spill] sm:$0xff] }
 0x2ba   :  { %1661 = vmatpush.msrb.mxu2 %v6572_v50  ;;  %1819 = vmatpush.msrb.mxu3 %v6013_v27  ;;  %v6588_v27 = vld [vmem:[#allocation10 + $0xe0] sm:$0xff] }
 0x2bb   :  { %1622 = vmatpush.msrb.mxu0 %v6576_v17  ;;  %1780 = vmatpush.msrb.mxu1 %v6017_v9  ;;  %v9525_v9 = vld [vmem:[#allocation50_spill] sm:$0xff] }
 0x2bc   :  { %1662 = vmatpush.msrb.mxu2 %v9519_v49  ;;  %1820 = vmatpush.msrb.mxu3 %v9520_v1  ;;  %v9556_v49 = vld [vmem:[#allocation95_spill] sm:$0xff]  ;;  %v9558_v1 = vld [vmem:[#allocation36_spill] sm:$0xff] }
 0x2bd   :  { %1623 = vmatpush.msrb.mxu0 %v6582_v52  ;;  %1781 = vmatpush.msrb.mxu1 %v9521_v4  ;;  %v9559_v4 = vld [vmem:[#allocation51_spill] sm:$0xff] }
 0x2be   :  { %1663 = vmatpush.msrb.mxu2 %v9522_v31  ;;  %1821 = vmatpush.msrb.mxu3 %v9523_v19  ;;  %v9560_v31 = vld [vmem:[#allocation52_spill] sm:$0xff]  ;;  %v9561_v19 = vld [vmem:[#allocation99_spill] sm:$0xff] }
 0x2bf   :  { %1624 = vmatpush.msrb.mxu0 %v6588_v27  ;;  %1782 = vmatpush.msrb.mxu1 %v9524_v35  ;;  %v9562_v35 = vld [vmem:[#allocation55_spill] sm:$0xff] }
 0x2c0   :  { %1664 = vmatpush.msrb.mxu2 %v9525_v9  ;;  %1822 = vmatpush.msrb.mxu3 %v9526_v38  ;;  %v9563_v9 = vld [vmem:[#allocation102_spill] sm:$0xff]  ;;  %v9564_v38 = vld [vmem:[#allocation56_spill] sm:$0xff] }
 0x2c1   :  { %1625 = vmatpush.msrb.mxu0 %v6594_v33  ;;  %1783 = vmatpush.msrb.mxu1 %v9527_v26  ;;  %v9565_v26 = vld [vmem:[#allocation103_spill] sm:$0xff] }
 0x2c2   :  { %1665 = vmatpush.msrb.mxu2 %v9528_v39  ;;  %1823 = vmatpush.msrb.mxu3 %v9529_v62  ;;  %v9566_v39 = vld [vmem:[#allocation59_spill] sm:$0xff] }
 0x2c3   :  { %1626 = vmatpush.msrb.mxu0 %v6600_v11  ;;  %1784 = vmatpush.msrb.mxu1 %v9530_v14  ;;  %v9567_v62 = vld [vmem:[#allocation107_spill] sm:$0xff]  ;;  %v9568_v14 = vld [vmem:[#allocation60_spill] sm:$0xff] }
 0x2c4   :  { %1666 = vmatpush.msrb.mxu2 %v9531_v13  ;;  %1824 = vmatpush.msrb.mxu3 %v9532_v32  ;;  %v9569_v13 = vld [vmem:[#allocation108_spill] sm:$0xff]  ;;  %v9570_v32 = vld [vmem:[#allocation63_spill] sm:$0xff] }
 0x2c5   :  { %1627 = vmatpush.msrb.mxu0 %v6606_v29  ;;  %1785 = vmatpush.msrb.mxu1 %v9533_v30  ;;  %v9571_v30 = vld [vmem:[#allocation111_spill] sm:$0xff] }
 0x2c6   :  { %1667 = vmatpush.msrb.mxu2 %v9534_v54  ;;  %1825 = vmatpush.msrb.mxu3 %v9535_v55  ;;  %v9572_v54 = vld [vmem:[#allocation64_spill] sm:$0xff]  ;;  %v9573_v55 = vld [vmem:[#allocation113_spill] sm:$0xff] }
 0x2c7   :  { %1628 = vmatpush.msrb.mxu0 %v6612_v8  ;;  %1786 = vmatpush.msrb.mxu1 %v9536_v58  ;;  %v9574_v58 = vld [vmem:[#allocation67_spill] sm:$0xff] }
 0x2c8   :  { %1668 = vmatpush.msrb.mxu2 %v9537_v5  ;;  %1826 = vmatpush.msrb.mxu3 %v9538_v20  ;;  %v9575_v5 = vld [vmem:[#allocation116_spill] sm:$0xff] }
 0x2c9   :  { %1629 = vmatpush.msrb.mxu0 %v6618_v0  ;;  %1787 = vmatpush.msrb.mxu1 %v9539_v2  ;;  %v9576_v20 = vld [vmem:[#allocation68_spill] sm:$0xff]  ;;  %v9577_v2 = vld [vmem:[#allocation117_spill] sm:$0xff] }
 0x2ca   :  { %1669 = vmatpush.msrb.mxu2 %v9540_v51  ;;  %1827 = vmatpush.msrb.mxu3 %v9541_v41  ;;  %v9578_v51 = vld [vmem:[#allocation71_spill] sm:$0xff]  ;;  %v9579_v41 = vld [vmem:[#allocation72_spill] sm:$0xff] }
 0x2cb   :  { %1630 = vmatpush.msrb.mxu0 %v6624_v47  ;;  %1788 = vmatpush.msrb.mxu1 %v9542_v22  ;;  %v9580_v22 = vld [vmem:[#allocation75_spill] sm:$0xff] }
 0x2cc   :  { %1670 = vmatpush.msrb.mxu2 %v9543_v34  ;;  %1828 = vmatpush.msrb.mxu3 %v9544_v59  ;;  %v9581_v34 = vld [vmem:[#allocation76_spill] sm:$0xff]  ;;  %v9582_v59 = vld [vmem:[#allocation79_spill] sm:$0xff] }
 0x2cd   :  { %1631 = vmatpush.msrb.mxu0 %v6630_v21  ;;  %1789 = vmatpush.msrb.mxu1 %v9545_v3  ;;  %v9583_v3 = vld [vmem:[#allocation80_spill] sm:$0xff] }
 0x2ce   :  { %1671 = vmatpush.msrb.mxu2 %v9546_v60  ;;  %1632 = vmatmul.f32.vlgmr.msrb.gmra.mxu0 %v6522_v28  ;;  %v9584_v60 = vld [vmem:[#allocation83_spill] sm:$0xff] }
 0x2cf   :  { %1672 = vmatmul.f32.vlgmr.msrb.gmra.mxu2 %v6522_v28  ;;  %1829 = vmatpush.msrb.mxu3 %v9547_v10  ;;  %v9557_v28 = vld [vmem:[#allocation98_spill] sm:$0xff]  ;;  %v9585_v10 = vld [vmem:[#allocation84_spill] sm:$0xff] }
 0x2d0   :  { %1790 = vmatpush.msrb.mxu1 %v9548_v63  ;;  %1759 = vmatpush.msra.mxu0 %v9549_v53  ;;  %v9586_v63 = vld [vmem:[#allocation87_spill] sm:$0xff]  ;;  %v9587_v53 = vld [vmem:[#allocation88_spill] sm:$0xff] }
 0x2d1   :  { %1830 = vmatpush.msrb.mxu3 %v9550_v23  ;;  %1799 = vmatpush.msra.mxu2 %v9551_v12  ;;  %v9588_v23 = vld [vmem:[#allocation92_spill] sm:$0xff]  ;;  %v9589_v12 = vld [vmem:[#allocation93_spill] sm:$0xff] }
 0x2d2   :  { %1791 = vmatpush.msrb.mxu1 %v9552_v44  ;;  %1760 = vmatpush.msra.mxu0 %v9553_v42  ;;  %v9590_v44 = vld [vmem:[#allocation96_spill] sm:$0xff]  ;;  %v9591_v42 = vld [vmem:[#allocation97_spill] sm:$0xff] }
 0x2d3   :  { %1831 = vmatpush.msrb.mxu3 %v9554_v36  ;;  %1800 = vmatpush.msra.mxu2 %v9555_v48  ;;  %v9592_v36 = vld [vmem:[#allocation100_spill] sm:$0xff]  ;;  %v9593_v48 = vld [vmem:[#allocation101_spill] sm:$0xff] }
 0x2d4   :  { %1792 = vmatpush.msrb.mxu1 %v9556_v49  ;;  %1761 = vmatpush.msra.mxu0 %v9557_v28  ;;  %v9594_v49 = vld [vmem:[#allocation105_spill] sm:$0xff]  ;;  %v9595_v28 = vld [vmem:[#allocation106_spill] sm:$0xff] }
 0x2d5   :  { %1832 = vmatpush.msrb.mxu3 %v9558_v1  ;;  %1801 = vmatpush.msra.mxu2 %v9559_v4  ;;  %v9596_v1 = vld [vmem:[#allocation109_spill] sm:$0xff]  ;;  %v9597_v4 = vld [vmem:[#allocation110_spill] sm:$0xff] }
 0x2d6   :  { %1793 = vmatpush.msrb.mxu1 %v9560_v31  ;;  %1762 = vmatpush.msra.mxu0 %v9561_v19  ;;  %v9598_v31 = vld [vmem:[#allocation114_spill] sm:$0xff]  ;;  %v9599_v19 = vld [vmem:[#allocation115_spill] sm:$0xff] }
 0x2d7   :  { %1833 = vmatpush.msrb.mxu3 %v9562_v35  ;;  %1802 = vmatpush.msra.mxu2 %v9563_v9  ;;  %v9600_v35 = vld [vmem:[#allocation120_spill] sm:$0xff]  ;;  %v9601_v9 = vld [vmem:[#allocation121_spill] sm:$0xff] }
 0x2d8   :  { %1794 = vmatpush.msrb.mxu1 %v9564_v38  ;;  %1763 = vmatpush.msra.mxu0 %v9565_v26  ;;  %v9602_v38 = vld [vmem:[#allocation37_spill] sm:$0xff]  ;;  %v9603_v26 = vld [vmem:[#allocation124_spill] sm:$0xff] }
 0x2d9   :  { %1834 = vmatpush.msrb.mxu3 %v9566_v39  ;;  %1803 = vmatpush.msra.mxu2 %v9567_v62  ;;  %v9604_v39 = vld [vmem:[#allocation125_spill] sm:$0xff]  ;;  %v9605_v62 = vld [vmem:[#allocation126_spill] sm:$0xff] }
 0x2da   :  { %1859 = vmatpush.msra.mxu1 %v9568_v14  ;;  %1764 = vmatpush.msra.mxu0 %v9570_v32  ;;  %v9606_v14 = vld [vmem:[#allocation127_spill] sm:$0xff]  ;;  %v9608_v32 = vld [vmem:[#allocation129_spill] sm:$0xff] }
 0x2db   :  { %1899 = vmatpush.msra.mxu3 %v9569_v13  ;;  %1804 = vmatpush.msra.mxu2 %v9571_v30  ;;  %v9607_v13 = vld [vmem:[#allocation128_spill] sm:$0xff]  ;;  %v9609_v30 = vld [vmem:[#allocation130_spill] sm:$0xff] }
 0x2dc   :  { %1860 = vmatpush.msra.mxu1 %v9572_v54  ;;  %1765 = vmatpush.msra.mxu0 %v9574_v58  ;;  %v9610_v54 = vld [vmem:[#allocation131_spill] sm:$0xff]  ;;  %v9612_v58 = vld [vmem:[#allocation133_spill] sm:$0xff] }
 0x2dd   :  { %1900 = vmatpush.msra.mxu3 %v9573_v55  ;;  %1805 = vmatpush.msra.mxu2 %v9575_v5  ;;  %v9611_v55 = vld [vmem:[#allocation132_spill] sm:$0xff]  ;;  %v9613_v5 = vld [vmem:[#allocation134_spill] sm:$0xff] }
 0x2de   :  { %1861 = vmatpush.msra.mxu1 %v9576_v20  ;;  %1766 = vmatpush.msra.mxu0 %v9578_v51  ;;  %v9614_v20 = vld [vmem:[#allocation135_spill] sm:$0xff]  ;;  %v9616_v51 = vld [vmem:[#allocation137_spill] sm:$0xff] }
 0x2df   :  { %1901 = vmatpush.msra.mxu3 %v9577_v2  ;;  %1806 = vmatpush.msra.mxu2 %v9579_v41  ;;  %v9615_v2 = vld [vmem:[#allocation136_spill] sm:$0xff]  ;;  %v9617_v41 = vld [vmem:[#allocation138_spill] sm:$0xff] }
 0x2e0   :  { %1862 = vmatpush.msra.mxu1 %v9580_v22  ;;  %1767 = vmatpush.msra.mxu0 %v9582_v59  ;;  %v9618_v22 = vld [vmem:[#allocation139_spill] sm:$0xff]  ;;  %v9620_v59 = vld [vmem:[#allocation141_spill] sm:$0xff] }
 0x2e1   :  { %1902 = vmatpush.msra.mxu3 %v9581_v34  ;;  %1807 = vmatpush.msra.mxu2 %v9583_v3  ;;  %v9619_v34 = vld [vmem:[#allocation140_spill] sm:$0xff]  ;;  %v9621_v3 = vld [vmem:[#allocation142_spill] sm:$0xff] }
 0x2e2   :  { %1863 = vmatpush.msra.mxu1 %v9584_v60  ;;  %1768 = vmatpush.msra.mxu0 %v9586_v63  ;;  %v9622_v60 = vld [vmem:[#allocation143_spill] sm:$0xff]  ;;  %v9624_v63 = vld [vmem:[#allocation145_spill] sm:$0xff] }
 0x2e3   :  { %1903 = vmatpush.msra.mxu3 %v9585_v10  ;;  %1808 = vmatpush.msra.mxu2 %v9587_v53  ;;  %v9623_v10 = vld [vmem:[#allocation144_spill] sm:$0xff]  ;;  %v9625_v53 = vld [vmem:[#allocation146_spill] sm:$0xff] }
 0x2e4   :  { %1864 = vmatpush.msra.mxu1 %v9588_v23  ;;  %1769 = vmatpush.msra.mxu0 %v9590_v44  ;;  %v9626_v23 = vld [vmem:[#allocation147_spill] sm:$0xff]  ;;  %v9628_v44 = vld [vmem:[#allocation149_spill] sm:$0xff] }
 0x2e5   :  { %1904 = vmatpush.msra.mxu3 %v9589_v12  ;;  %1809 = vmatpush.msra.mxu2 %v9591_v42  ;;  %v9627_v12 = vld [vmem:[#allocation148_spill] sm:$0xff]  ;;  %v9629_v42 = vld [vmem:[#allocation150_spill] sm:$0xff] }
 0x2e6   :  { %1865 = vmatpush.msra.mxu1 %v9592_v36  ;;  %1770 = vmatpush.msra.mxu0 %v9594_v49  ;;  %v9630_v36 = vld [vmem:[#allocation151_spill] sm:$0xff]  ;;  %v9632_v49 = vld [vmem:[#allocation153_spill] sm:$0xff] }
 0x2e7   :  { %1905 = vmatpush.msra.mxu3 %v9593_v48  ;;  %1810 = vmatpush.msra.mxu2 %v9595_v28  ;;  %v9631_v48 = vld [vmem:[#allocation152_spill] sm:$0xff]  ;;  %v9633_v28 = vld [vmem:[#allocation154_spill] sm:$0xff] }
 0x2e8   :  { %1866 = vmatpush.msra.mxu1 %v9596_v1  ;;  %1771 = vmatpush.msra.mxu0 %v9598_v31  ;;  %v9634_v1 = vld [vmem:[#allocation155_spill] sm:$0xff]  ;;  %v9636_v31 = vld [vmem:[#allocation157_spill] sm:$0xff] }
 0x2e9   :  { %1906 = vmatpush.msra.mxu3 %v9597_v4  ;;  %1811 = vmatpush.msra.mxu2 %v9599_v19  ;;  %v9635_v4 = vld [vmem:[#allocation156_spill] sm:$0xff]  ;;  %v9637_v19 = vld [vmem:[#allocation158_spill] sm:$0xff] }
 0x2ea   :  { %1867 = vmatpush.msra.mxu1 %v9600_v35  ;;  %1772 = vmatpush.msra.mxu0 %v9602_v38  ;;  %v9638_v35 = vld [vmem:[#allocation159_spill] sm:$0xff]  ;;  %v9640_v38 = vld [vmem:[#allocation161_spill] sm:$0xff] }
 0x2eb   :  { %1907 = vmatpush.msra.mxu3 %v9601_v9  ;;  %1812 = vmatpush.msra.mxu2 %v9603_v26  ;;  %v9639_v9 = vld [vmem:[#allocation160_spill] sm:$0xff]  ;;  %v9641_v26 = vld [vmem:[#allocation162_spill] sm:$0xff] }
 0x2ec   :  { %1868 = vmatpush.msra.mxu1 %v9604_v39  ;;  %1773 = vmatpush.msra.mxu0 %v9606_v14  ;;  %v9642_v39 = vld [vmem:[#allocation163_spill] sm:$0xff]  ;;  %v9644_v14 = vld [vmem:[#allocation165_spill] sm:$0xff] }
 0x2ed   :  { %1908 = vmatpush.msra.mxu3 %v9605_v62  ;;  %1813 = vmatpush.msra.mxu2 %v9607_v13  ;;  %v9643_v62 = vld [vmem:[#allocation164_spill] sm:$0xff]  ;;  %v9645_v13 = vld [vmem:[#allocation166_spill] sm:$0xff] }
 0x2ee   :  { %1869 = vmatpush.msra.mxu1 %v9608_v32  ;;  %1774 = vmatpush.msra.mxu0 %v9610_v54  ;;  %v9646_v32 = vld [vmem:[#allocation167_spill] sm:$0xff]  ;;  %v9648_v54 = vld [vmem:[#allocation169_spill] sm:$0xff] }
 0x2ef   :  { %1909 = vmatpush.msra.mxu3 %v9609_v30  ;;  %1814 = vmatpush.msra.mxu2 %v9611_v55  ;;  %v9647_v30 = vld [vmem:[#allocation168_spill] sm:$0xff]  ;;  %v9649_v55 = vld [vmem:[#allocation170_spill] sm:$0xff] }
 0x2f0   :  { %1870 = vmatpush.msra.mxu1 %v9612_v58  ;;  %1839 = vmatpush.msrb.mxu0 %v9614_v20  ;;  %v9650_v58 = vld [vmem:[#allocation171_spill] sm:$0xff]  ;;  %v9652_v20 = vld [vmem:[#allocation173_spill] sm:$0xff] }
 0x2f1   :  { %1910 = vmatpush.msra.mxu3 %v9613_v5  ;;  %1879 = vmatpush.msrb.mxu2 %v9615_v2  ;;  %v9651_v5 = vld [vmem:[#allocation172_spill] sm:$0xff]  ;;  %v9653_v2 = vld [vmem:[#allocation174_spill] sm:$0xff] }
 0x2f2   :  { %1871 = vmatpush.msra.mxu1 %v9616_v51  ;;  %1840 = vmatpush.msrb.mxu0 %v9618_v22 }
 0x2f3   :  { %1911 = vmatpush.msra.mxu3 %v9617_v41  ;;  %1880 = vmatpush.msrb.mxu2 %v9619_v34  ;;  %v9654_v34 = vld [vmem:[#allocation39_spill] sm:$0xff] }
 0x2f4   :  { %1872 = vmatpush.msra.mxu1 %v9620_v59  ;;  %1841 = vmatpush.msrb.mxu0 %v9622_v60 }
 0x2f5   :  { %1912 = vmatpush.msra.mxu3 %v9621_v3  ;;  %1881 = vmatpush.msrb.mxu2 %v9623_v10 }
 0x2f6   :  { %1873 = vmatpush.msra.mxu1 %v9624_v63  ;;  %1842 = vmatpush.msrb.mxu0 %v9626_v23 }
 0x2f7   :  { %1913 = vmatpush.msra.mxu3 %v9625_v53  ;;  %1882 = vmatpush.msrb.mxu2 %v9627_v12  ;;  %v9655_v53 = vld [vmem:[#allocation40_spill] sm:$0xff] }
 0x2f8   :  { %1874 = vmatpush.msra.mxu1 %v9628_v44  ;;  %1843 = vmatpush.msrb.mxu0 %v9630_v36 }
 0x2f9   :  { %1914 = vmatpush.msra.mxu3 %v9629_v42  ;;  %1883 = vmatpush.msrb.mxu2 %v9631_v48  ;;  %v9656_v42 = vld [vmem:[#allocation122_spill] sm:$0xff] }
 0x2fa   :  { %1844 = vmatpush.msrb.mxu0 %v9632_v49  ;;  %v1609_v36 = vrot.slane %v9656_v42, 6 }
 0x2fb   :  { %1884 = vmatpush.msrb.mxu2 %v9633_v28 }
 0x2fc   :  { %1845 = vmatpush.msrb.mxu0 %v9634_v1 }
 0x2fd   :  { %1885 = vmatpush.msrb.mxu2 %v9635_v4 }
 0x2fe   :  { %1846 = vmatpush.msrb.mxu0 %v9636_v31 }
 0x2ff   :  { %1886 = vmatpush.msrb.mxu2 %v9637_v19  ;;  %v9657_v19 = vld [vmem:[#allocation41_spill] sm:$0xff] }
 0x300   :  { %1847 = vmatpush.msrb.mxu0 %v9638_v35 }
 0x301   :  { %1887 = vmatpush.msrb.mxu2 %v9639_v9 }
 0x302   :  { %1848 = vmatpush.msrb.mxu0 %v9640_v38 }
 0x303   :  { %1888 = vmatpush.msrb.mxu2 %v9641_v26 }
 0x304   :  { %1849 = vmatpush.msrb.mxu0 %v9642_v39 }
 0x305   :  { %1889 = vmatpush.msrb.mxu2 %v9643_v62 }
 0x306   :  { %1850 = vmatpush.msrb.mxu0 %v9644_v14 }
 0x307   :  { %1890 = vmatpush.msrb.mxu2 %v9645_v13 }
 0x308   :  { %1851 = vmatpush.msrb.mxu0 %v9646_v32 }
 0x309   :  { %1891 = vmatpush.msrb.mxu2 %v9647_v30  ;;  %v9658_v30 = vld [vmem:[#allocation119_spill] sm:$0xff] }
 0x30a   :  { %1852 = vmatpush.msrb.mxu0 %v9648_v54  ;;  %v1611_v54 = vrot.slane %v9658_v30, 6 }
 0x30b   :  { %1892 = vmatpush.msrb.mxu2 %v9649_v55 }
 0x30c   :  { %1853 = vmatpush.msrb.mxu0 %v9650_v58  ;;  %v9659_v58 = vld [vmem:[#allocation42_spill] sm:$0xff] }
 0x30d   :  { %1893 = vmatpush.msrb.mxu2 %v9651_v5 }
 0x30e   :  { %1854 = vmatpush.msrb.mxu0 %v9652_v20 }
 0x30f   :  { %1894 = vmatpush.msrb.mxu2 %v9653_v2 }
 0x312   :  { %v1422_v51 = vpop.f32.mrf.mxu1 }
 0x318   :  { %v1462_v3 = vpop.f32.mrf.mxu3 }
 0x31a   :  { %v1502_v22 = vpop.f32.mrf.mxu1 }
 0x320   :  { %v1542_v1 = vpop.f32.mrf.mxu3 }
 0x32a   :  { %v1402_v41 = vpop.f32.mrf.mxu0 }
 0x32b   :  { %v1403_v59 = vadd.f32 %v1402_v41, %v9654_v34 }
 0x32d   :  { %v1423_v60 = vadd.f32 %v1422_v51, %v1403_v59 }
 0x32f   :  { %v3633_v10 = vmul.f32 -1.442695, %v1423_v60 }
 0x330   :  { %v1442_v63 = vpop.f32.mrf.mxu2 }
 0x331   :  { %3763 = vpow2.f32 %v3633_v10  ;;  %v1443_v23 = vadd.f32 %v1442_v63, %v9655_v53 }
 0x333   :  { %v1463_v12 = vadd.f32 %v1462_v3, %v1443_v23  ;;  %v1482_v14 = vpop.f32.mrf.mxu0 }
 0x334   :  { %v1653_v44 = vpop.f32.mrf.mxu1  ;;  %v1483_v5 = vadd.f32 %v1482_v14, %v9659_v58 }
 0x335   :  { %v3634_v48 = vmul.f32 -1.442695, %v1463_v12  ;;  %v1654_v49 = vadd.f32 %v1653_v44, %v1609_v36 }
 0x336   :  { %v1503_v59 = vadd.f32 %v1502_v22, %v1483_v5 }
 0x337   :  { %v3764_v28 = vpop.eup %3763  ;;  %3765 = vpow2.f32 %v3634_v48  ;;  %v3637_v9 = vmul.f32 -1.442695, %v1654_v49 }
 0x338   :  { %v1548_v4 = vadd.f32 1.0, %v3764_v28 }
 0x339   :  { %v1522_v31 = vpop.f32.mrf.mxu2 }
 0x33a   :  { %v1523_v35 = vadd.f32 %v1522_v31, %v9657_v19  ;;  %3767 = vrcp.f32 %v1548_v4  ;;  %v1560_v42 = vand.u32 2147483648, %v1548_v4  ;;  %vm1554_vm14 = vweird.f32 %v1548_v4 }
 0x33b   :  { %3769 = vpow2.f32 %v3637_v9  ;;  %v1693_v13 = vpop.f32.mrf.mxu3  ;;  %v1558_v48 = vand.u32 2147483647, %v1548_v4 }
 0x33c   :  { %v1543_v38 = vadd.f32 %v1542_v1, %v1523_v35  ;;  %v1694_v20 = vadd.f32 %v1693_v13, %v1611_v54  ;;  %v9662_v1 = vld [vmem:[#allocation104_spill] sm:$0xff] }
 0x33d   :  { %v3766_v26 = vpop.eup %3765  ;;  %v1608_v31 = vrot.slane %v9662_v1, 6  ;;  %vm1559_vm2 = vcmp.eq.f32.partialorder %v1558_v48, 8.507059e+37 }
 0x33e   :  { %v3635_v39 = vmul.f32 -1.442695, %v1543_v38  ;;  %v1567_v62 = vadd.f32 1.0, %v3766_v26  ;;  %v3638_v63 = vmul.f32 -1.442695, %v1694_v20  ;;  %v1561_v26 = vor.u32 1.1754944e-38, %v1560_v42 }
 0x340   :  { %3771 = vpow2.f32 %v3635_v39  ;;  %v3768_v32 = vpop.eup %3767  ;;  %v1579_v49 = vand.u32 2147483648, %v1567_v62  ;;  %v1577_v22 = vand.u32 2147483647, %v1567_v62  ;;  %vm1573_vm1 = vweird.f32 %v1567_v62 }
 0x341   :  { %3773 = vrcp.f32 %v1567_v62  ;;  %v1550_v55 = vmul.f32 %v3768_v32, %v1548_v4  ;;  %v3770_v51 = vpop.eup %3769  ;;  %vm1555_vm13 = vweird.f32 %v3768_v32 }
 0x342   :  { %v6750_v44 = vadd.f32 1.0, %v3770_v51  ;;  %vm6752_vm15 = vmor %vm1554_vm14, %vm1555_vm13  ;;  %v1580_v13 = vor.u32 1.1754944e-38, %v1579_v49  ;;  %vm1578_vm4 = vcmp.eq.f32.partialorder %v1577_v22, 8.507059e+37 }
 0x343   :  { %v1551_v2 = vsub.f32 1.0, %v1550_v55 }
 0x344   :  { %vm1724_vm12 = vweird.f32 %v6750_v44 }
 0x345   :  { %v1552_v3 = vmul.f32 %v3768_v32, %v1551_v2 }
 0x346   :  { %v3772_v41 = vpop.eup %3771 }
 0x347   :  { %v3774_v60 = vpop.eup %3773  ;;  %v1587_v10 = vadd.f32 1.0, %v3772_v41  ;;  %v1553_v12 = vadd.f32 %v3768_v32, %v1552_v3 }
 0x348   :  { %v1569_v23 = vmul.f32 %v3774_v60, %v1567_v62  ;;  %vm1574_vm0 = vweird.f32 %v3774_v60 }
 0x349   :  { %3775 = vrcp.f32 %v1587_v10  ;;  %v1557_v38 = vsel %vm6752_vm15, %v3768_v32, %v1553_v12  ;;  %vm1575_vm3 = vmor %vm1573_vm1, %vm1574_vm0  ;;  %vm1593_vm6 = vweird.f32 %v1587_v10  ;;  %v1597_v48 = vand.u32 2147483647, %v1587_v10 }
 0x34a   :  { %v1570_v36 = vsub.f32 1.0, %v1569_v23  ;;  %3777 = vtanh.f32 %v1503_v59  ;;  %v1562_v30 = vsel %vm1559_vm2, %v1561_v26, %v1557_v38 }
 0x34b   :  { %3779 = vpow2.f32 %v3638_v63  ;;  %v1633_v35 = vpop.f32.mrf.mxu0  ;;  %vm1598_vm8 = vcmp.eq.f32.partialorder %v1597_v48, 8.507059e+37 }
 0x34c   :  { %v1571_v9 = vmul.f32 %v3774_v60, %v1570_v36  ;;  %3781 = vrcp.f32 %v6750_v44  ;;  %v1634_v4 = vadd.f32 %v1633_v35, %v1608_v31  ;;  %v3481_v35 = vrot.slane %v6463_v16, 6  ;;  %v6782_v16 = vld [vmem:[#allocation10 + $0x1f8] sm:$0xff] }
 0x34e   :  { %v1572_v39 = vadd.f32 %v3774_v60, %v1571_v9  ;;  %v3636_v54 = vmul.f32 -1.442695, %v1634_v4 }
 0x34f   :  { %v3776_v14 = vpop.eup %3775 }
 0x350   :  { %v3778_v55 = vpop.eup %3777  ;;  %v1576_v5 = vsel %vm1575_vm3, %v3774_v60, %v1572_v39  ;;  %v1589_v20 = vmul.f32 %v3776_v14, %v1587_v10  ;;  %3783 = vpow2.f32 %v3636_v54  ;;  %vm1594_vm5 = vweird.f32 %v3776_v14  ;;  %v9663_v54 = vld [vmem:[#allocation43_spill] sm:$0xff] }
 0x351   :  { %v3780_v2 = vpop.eup %3779  ;;  %v1581_v51 = vsel %vm1578_vm4, %v1580_v13, %v1576_v5  ;;  %v1604_v59 = vmul.f32 %v3778_v55, %v1562_v30  ;;  %v1599_v60 = vand.u32 2147483648, %v1587_v10  ;;  %vm1595_vm7 = vmor %vm1593_vm6, %vm1594_vm5  ;;  %v1610_v10 = vrot.slane %v5562_v46, 6  ;;  %v6779_v30 = vld [vmem:[#allocation10 + $0x1e8] sm:$0xff] }
 0x352   :  { %v6760_v32 = vpop.eup %3781  ;;  %v1603_v41 = vmul.f32 %v1581_v51, %v6455_v61  ;;  %v1590_v62 = vsub.f32 1.0, %v1589_v20  ;;  %v6767_v12 = vadd.f32 1.0, %v3780_v2  ;;  %v1673_v38 = vpop.f32.mrf.mxu2  ;;  %v3499_v55 = vsel %vm3498_vm9, %v9663_v54, %v3481_v35 }
 0x353   :  { %v1720_v23 = vmul.f32 %v6760_v32, %v6750_v44  ;;  %v1600_v22 = vor.u32 1.1754944e-38, %v1599_v60  ;;  %v1674_v13 = vadd.f32 %v1673_v38, %v1610_v10  ;;  %vm1725_vm11 = vweird.f32 %v6760_v32  ;;  %v6829_v10 = vld [vmem:[#allocation10 + $0x178] sm:$0xff] }
 0x354   :  { %v6763_v3 = vadd.f32 %v1604_v59, %v1603_v41  ;;  %v1591_v63 = vmul.f32 %v3776_v14, %v1590_v62  ;;  %v1730_v2 = vand.u32 2147483648, %v6750_v44  ;;  %v6796_v41 = vld [vmem:[#allocation10 + $0x1c8] sm:$0xff]  ;;  %v6799_v59 = vld [vmem:[#allocation10 + $0x1d8] sm:$0xff]  ;;  %vm6804_vm13 = vmor %vm1724_vm12, %vm1725_vm11  ;;  %vm1744_vm4 = vweird.f32 %v6767_v12 }
 0x355   :  { %v1721_v61 = vsub.f32 1.0, %v1720_v23  ;;  %v1750_v23 = vand.u32 2147483648, %v6767_v12 }
 0x356   :  { %3785 = vtanh.f32 %v6763_v3  ;;  %v1592_v42 = vadd.f32 %v3776_v14, %v1591_v63  ;;  %v3784_v36 = vpop.eup %3783  ;;  %v1728_v63 = vand.u32 2147483647, %v6750_v44 }
 0x357   :  { %v6770_v49 = vadd.f32 1.0, %v3784_v36  ;;  %3787 = vrcp.f32 %v6767_v12  ;;  %v1722_v9 = vmul.f32 %v6760_v32, %v1721_v61  ;;  %v6812_v36 = vld [vmem:[#allocation10 + $0x1b8] sm:$0xff] }
 0x358   :  { %v1596_v28 = vsel %vm1595_vm7, %v3776_v14, %v1592_v42  ;;  %v6809_v42 = vld [vmem:[#allocation10 + $0x1a8] sm:$0xff]  ;;  %vm1729_vm0 = vcmp.eq.f32.partialorder %v1728_v63, 8.507059e+37 }
 0x359   :  { %3789 = vrcp.f32 %v6770_v49  ;;  %v1601_v31 = vsel %vm1598_vm8, %v1600_v22, %v1596_v28  ;;  %v1723_v5 = vadd.f32 %v6760_v32, %v1722_v9  ;;  %v1711_v60 = vand.u32 2147483648, %v6770_v49  ;;  %v6850_v63 = vld [vmem:[#allocation10 + $0x108] sm:$0xff] }
 0x35a   :  { %3791 = vtanh.f32 %v1674_v13  ;;  %v1709_v61 = vand.u32 2147483647, %v6770_v49  ;;  %v1731_v28 = vor.u32 1.1754944e-38, %v1730_v2  ;;  %vm1705_vm15 = vweird.f32 %v6770_v49  ;;  %v6840_v2 = vld [vmem:[#allocation10 + $0x128] sm:$0xff] }
 0x35b   :  { %v1727_v44 = vsel %vm6804_vm13, %v6760_v32, %v1723_v5  ;;  %v1712_v9 = vor.u32 1.1754944e-38, %v1711_v60  ;;  %v6826_v32 = vld [vmem:[#allocation10 + $0x168] sm:$0xff]  ;;  %v1748_v60 = vand.u32 2147483647, %v6767_v12 }
 0x35c   :  { %v3786_v1 = vpop.eup %3785  ;;  %v1732_v38 = vsel %vm1729_vm0, %v1731_v28, %v1727_v44  ;;  %vm1710_vm2 = vcmp.eq.f32.partialorder %v1709_v61, 8.507059e+37  ;;  %v6863_v61 = vld [vmem:[#allocation10 + $0xf8] sm:$0xff]  ;;  %v6867_v28 = vld [vmem:[#allocation10 + $0xc8] sm:$0xff] }
 0x35d   :  { %v1607_v26 = vmul.f32 %v3786_v1, %v1601_v31  ;;  %v6777_v4 = vpop.eup %3787  ;;  %v6819_v1 = vld [vmem:[#allocation10 + $0x188] sm:$0xff]  ;;  %v6822_v31 = vld [vmem:[#allocation10 + $0x198] sm:$0xff]  ;;  %vm1749_vm6 = vcmp.eq.f32.partialorder %v1748_v60, 8.507059e+37  ;;  %v6966_v60 = vld [vmem:[#allocation11 + $0x360] sm:$0xff] }
 0x35e   :  { %v1740_v51 = vmul.f32 %v6777_v4, %v6767_v12  ;;  %vm1745_vm3 = vweird.f32 %v6777_v4  ;;  %v1751_v12 = vor.u32 1.1754944e-38, %v1750_v23  ;;  %v6959_v23 = vld [vmem:[#allocation10 + $0xf0] sm:$0xff]  ;;  %9674 = vst [vmem:[#allocation54_spill] sm:$0xff] %v6966_v60 }
 0x35f   :  { %1795 = vmatmul.f32.vlgmr.msrb.gmra.mxu1 %v1607_v26  ;;  %1835 = vmatmul.f32.vlgmr.msrb.gmra.mxu3 %v1607_v26  ;;  %v3484_v39 = vrot.slane %v1607_v26, 4  ;;  %v3790_v14 = vpop.eup %3789  ;;  %vm1746_vm5 = vmor %vm1744_vm4, %vm1745_vm3  ;;  %9672 = vst [vmem:[#allocation50_spill] sm:$0xff] %v6959_v23 }
 0x360   :  { %2002 = vmatpush.msrb.mxu1 %v6779_v30  ;;  %2042 = vmatpush.msrb.mxu3 %v6782_v16  ;;  %v1701_v46 = vmul.f32 %v3790_v14, %v6770_v49  ;;  %vm1706_vm14 = vweird.f32 %v3790_v14  ;;  %v1741_v22 = vsub.f32 1.0, %v1740_v51  ;;  %v3792_v13 = vpop.eup %3791 }
 0x361   :  { %v6791_v20 = vsel %vm3500_vm10, %v3499_v55, %v3484_v39  ;;  %vm1707_vm1 = vmor %vm1705_vm15, %vm1706_vm14  ;;  %v6833_v55 = vld [vmem:[#allocation10 + $0x148] sm:$0xff] }
 0x362   :  { %2003 = vmatpush.msrb.mxu1 %v6796_v41  ;;  %2043 = vmatpush.msrb.mxu3 %v6799_v59  ;;  %v1702_v62 = vsub.f32 1.0, %v1701_v46  ;;  %v1742_v54 = vmul.f32 %v6777_v4, %v1741_v22  ;;  %v1754_v46 = vmul.f32 %v1732_v38, %v6503_v45  ;;  %v6853_v45 = vld [vmem:[#allocation10 + $0x118] sm:$0xff] }
 0x363   :  { %v6870_v22 = vld [vmem:[#allocation10 + $0xd8] sm:$0xff] }
 0x364   :  { %2004 = vmatpush.msrb.mxu1 %v6809_v42  ;;  %2044 = vmatpush.msrb.mxu3 %v6812_v36  ;;  %v1703_v48 = vmul.f32 %v3790_v14, %v1702_v62  ;;  %v1743_v62 = vadd.f32 %v6777_v4, %v1742_v54  ;;  %v6884_v54 = vld [vmem:[#allocation10 + $0x98] sm:$0xff] }
 0x366   :  { %2005 = vmatpush.msrb.mxu1 %v6819_v1  ;;  %2045 = vmatpush.msrb.mxu3 %v6822_v31  ;;  %v1704_v35 = vadd.f32 %v3790_v14, %v1703_v48  ;;  %v6860_v48 = vld [vmem:[#allocation10 + $0xe8] sm:$0xff]  ;;  %v1747_v44 = vsel %vm1746_vm5, %v6777_v4, %v1743_v62  ;;  %v6902_v62 = vld [vmem:[#allocation10 + $0x58] sm:$0xff]  ;;  %vm3502_vm5 = vcmask 1045504  }
 0x367   :  { %1875 = vmatmul.f32.vlgmr.msra.gmra.mxu1 %v1607_v26  ;;  %1915 = vmatmul.f32.vlgmr.msra.gmra.mxu3 %v1607_v26  ;;  %v6836_v26 = vld [vmem:[#allocation10 + $0x158] sm:$0xff]  ;;  %v1752_v4 = vsel %vm1749_vm6, %v1751_v12, %v1747_v44  ;;  %v6969_v44 = vld [vmem:[#allocation10 + $0xd0] sm:$0xff]  ;;  %v6976_v12 = vld [vmem:[#allocation11 + $0x340] sm:$0xff] }
 0x368   :  { %2006 = vmatpush.msrb.mxu1 %v6826_v32  ;;  %2046 = vmatpush.msrb.mxu3 %v6829_v10  ;;  %v1708_v39 = vsel %vm1707_vm1, %v3790_v14, %v1704_v35  ;;  %v6843_v14 = vld [vmem:[#allocation10 + $0x138] sm:$0xff]  ;;  %v6873_v35 = vld [vmem:[#allocation10 + $0xa8] sm:$0xff]  ;;  %9675 = vst [vmem:[#allocation57_spill] sm:$0xff] %v6969_v44 }
 0x369   :  { %v1713_v49 = vsel %vm1710_vm2, %v1712_v9, %v1708_v39  ;;  %v6876_v9 = vld [vmem:[#allocation10 + $0xb8] sm:$0xff]  ;;  %9677 = vst [vmem:[#allocation61_spill] sm:$0xff] %v6976_v12 }
 0x36a   :  { %2007 = vmatpush.msrb.mxu1 %v6833_v55  ;;  %2047 = vmatpush.msrb.mxu3 %v6836_v26  ;;  %v1755_v5 = vmul.f32 %v3792_v13, %v1713_v49  ;;  %v6881_v13 = vld [vmem:[#allocation10 + $0x88] sm:$0xff] }
 0x36b   :  { %v6891_v49 = vld [vmem:[#allocation10 + $0x68] sm:$0xff] }
 0x36c   :  { %2008 = vmatpush.msrb.mxu1 %v6840_v2  ;;  %2048 = vmatpush.msrb.mxu3 %v6843_v14  ;;  %v6846_v51 = vadd.f32 %v1755_v5, %v1754_v46  ;;  %v6894_v46 = vld [vmem:[#allocation10 + $0x78] sm:$0xff]  ;;  %v6899_v5 = vld [vmem:[#allocation10 + $0x48] sm:$0xff] }
 0x36e   :  { %2009 = vmatpush.msrb.mxu1 %v6850_v63  ;;  %2049 = vmatpush.msrb.mxu3 %v6853_v45  ;;  %3793 = vtanh.f32 %v6846_v51 }
 0x370   :  { %2010 = vmatpush.msrb.mxu1 %v6860_v48  ;;  %2050 = vmatpush.msrb.mxu3 %v6863_v61 }
 0x372   :  { %2011 = vmatpush.msrb.mxu1 %v6867_v28  ;;  %2051 = vmatpush.msrb.mxu3 %v6870_v22 }
 0x374   :  { %2012 = vmatpush.msrb.mxu1 %v6873_v35  ;;  %2052 = vmatpush.msrb.mxu3 %v6876_v9  ;;  %v3794_v38 = vpop.eup %3793 }
 0x375   :  { %v6879_v39 = vmul.f32 %v3794_v38, %v1752_v4  ;;  %v6979_v38 = vld [vmem:[#allocation10 + $0xb0] sm:$0xff]  ;;  %v6986_v4 = vld [vmem:[#allocation11 + $0x320] sm:$0xff] }
 0x376   :  { %2013 = vmatpush.msrb.mxu1 %v6881_v13  ;;  %2053 = vmatpush.msrb.mxu3 %v6884_v54  ;;  %9678 = vst [vmem:[#allocation27_spill] sm:$0xff] %v6979_v38 }
 0x377   :  { %1775 = vmatmul.f32.vlgmr.msra.gmra.mxu0 %v6879_v39  ;;  %1815 = vmatmul.f32.vlgmr.msra.gmra.mxu2 %v6879_v39  ;;  %9680 = vst [vmem:[#allocation65_spill] sm:$0xff] %v6986_v4 }
 0x378   :  { %1982 = vmatpush.msra.mxu0 %v6528_v37  ;;  %2022 = vmatpush.msra.mxu2 %v6531_v18  ;;  %v6907_v37 = vld [vmem:[#allocation10 + $0x28] sm:$0xff]  ;;  %v6910_v18 = vld [vmem:[#allocation10 + $0x38] sm:$0xff] }
 0x379   :  { %2014 = vmatpush.msrb.mxu1 %v6891_v49  ;;  %2054 = vmatpush.msrb.mxu3 %v6894_v46 }
 0x37a   :  { %1983 = vmatpush.msra.mxu0 %v6536_v40  ;;  %2023 = vmatpush.msra.mxu2 %v6539_v15  ;;  %v6915_v40 = vld [vmem:[#allocation10 + $0x8] sm:$0xff]  ;;  %v6918_v15 = vld [vmem:[#allocation10 + $0x18] sm:$0xff] }
 0x37b   :  { %2015 = vmatpush.msrb.mxu1 %v6899_v5  ;;  %2055 = vmatpush.msrb.mxu3 %v6902_v62 }
 0x37c   :  { %1984 = vmatpush.msra.mxu0 %v6544_v25  ;;  %2024 = vmatpush.msra.mxu2 %v6547_v56  ;;  %v6928_v25 = vld [vmem:[#allocation11 + $0x3e0] sm:$0xff]  ;;  %v6932_v56 = vld [vmem:[#allocation11 + $0x3e8] sm:$0xff] }
 0x37d   :  { %2016 = vmatpush.msrb.mxu1 %v6907_v37  ;;  %2056 = vmatpush.msrb.mxu3 %v6910_v18 }
 0x37e   :  { %1985 = vmatpush.msra.mxu0 %v6552_v24  ;;  %2025 = vmatpush.msra.mxu2 %v6555_v43  ;;  %v6936_v24 = vld [vmem:[#allocation11 + $0x3c0] sm:$0xff]  ;;  %v6939_v43 = vld [vmem:[#allocation10 + $0x130] sm:$0xff] }
 0x37f   :  { %2017 = vmatpush.msrb.mxu1 %v6915_v40  ;;  %2057 = vmatpush.msrb.mxu3 %v6918_v15  ;;  %9666 = vst [vmem:[#allocation44_spill] sm:$0xff] %v6939_v43 }
 0x380   :  { %1855 = vmatmul.f32.vlgmr.msrb.gmra.mxu0 %v6879_v39  ;;  %1895 = vmatmul.f32.vlgmr.msrb.gmra.mxu2 %v6879_v39 }
 0x381   :  { %1986 = vmatpush.msra.mxu0 %v6560_v7  ;;  %2018 = vmatmul.f32.vlgmr.msrb.gmra.mxu1 %v6879_v39  ;;  %v6942_v7 = vld [vmem:[#allocation11 + $0x3c8] sm:$0xff] }
 0x382   :  { %2026 = vmatpush.msra.mxu2 %v6564_v57  ;;  %2058 = vmatmul.f32.vlgmr.msrb.gmra.mxu3 %v6879_v39  ;;  %9667 = vst [vmem:[#allocation45_spill] sm:$0xff] %v6942_v7  ;;  %v6946_v57 = vld [vmem:[#allocation11 + $0x3a0] sm:$0xff] }
 0x383   :  { %1987 = vmatpush.msra.mxu0 %v6568_v6  ;;  %2145 = vmatpush.msra.mxu1 %v6928_v25  ;;  %9668 = vst [vmem:[#allocation46_spill] sm:$0xff] %v6946_v57  ;;  %v6949_v6 = vld [vmem:[#allocation10 + $0x110] sm:$0xff] }
 0x384   :  { %2027 = vmatpush.msra.mxu2 %v6572_v50  ;;  %2185 = vmatpush.msra.mxu3 %v6932_v56  ;;  %9669 = vst [vmem:[#allocation47_spill] sm:$0xff] %v6949_v6  ;;  %v6952_v50 = vld [vmem:[#allocation11 + $0x3a8] sm:$0xff] }
 0x385   :  { %1988 = vmatpush.msra.mxu0 %v6576_v17  ;;  %2146 = vmatpush.msra.mxu1 %v6936_v24  ;;  %9670 = vst [vmem:[#allocation48_spill] sm:$0xff] %v6952_v50  ;;  %v6956_v17 = vld [vmem:[#allocation11 + $0x380] sm:$0xff] }
 0x386   :  { %2028 = vmatpush.msra.mxu2 %v6939_v43  ;;  %2186 = vmatpush.msra.mxu3 %v6942_v7  ;;  %9671 = vst [vmem:[#allocation49_spill] sm:$0xff] %v6956_v17 }
 0x387   :  { %1989 = vmatpush.msra.mxu0 %v6582_v52  ;;  %2147 = vmatpush.msra.mxu1 %v6946_v57  ;;  %v6962_v52 = vld [vmem:[#allocation11 + $0x388] sm:$0xff] }
 0x388   :  { %2029 = vmatpush.msra.mxu2 %v6949_v6  ;;  %2187 = vmatpush.msra.mxu3 %v6952_v50  ;;  %9673 = vst [vmem:[#allocation53_spill] sm:$0xff] %v6962_v52 }
 0x389   :  { %1990 = vmatpush.msra.mxu0 %v6588_v27  ;;  %2148 = vmatpush.msra.mxu1 %v6956_v17  ;;  %v6972_v27 = vld [vmem:[#allocation11 + $0x368] sm:$0xff] }
 0x38a   :  { %2030 = vmatpush.msra.mxu2 %v6959_v23  ;;  %2188 = vmatpush.msra.mxu3 %v6962_v52  ;;  %9676 = vst [vmem:[#allocation58_spill] sm:$0xff] %v6972_v27 }
 0x38b   :  { %1991 = vmatpush.msra.mxu0 %v6594_v33  ;;  %2149 = vmatpush.msra.mxu1 %v6966_v60  ;;  %v6982_v33 = vld [vmem:[#allocation11 + $0x348] sm:$0xff] }
 0x38c   :  { %2031 = vmatpush.msra.mxu2 %v6969_v44  ;;  %2189 = vmatpush.msra.mxu3 %v6972_v27  ;;  %9679 = vst [vmem:[#allocation62_spill] sm:$0xff] %v6982_v33  ;;  %v6989_v27 = vld [vmem:[#allocation10 + $0x90] sm:$0xff] }
 0x38d   :  { %1992 = vmatpush.msra.mxu0 %v6600_v11  ;;  %2150 = vmatpush.msra.mxu1 %v6976_v12  ;;  %9681 = vst [vmem:[#allocation28_spill] sm:$0xff] %v6989_v27  ;;  %v6992_v11 = vld [vmem:[#allocation11 + $0x328] sm:$0xff]  ;;  %v9801_v44 = vld [vmem:[#allocation90_spill] sm:$0xff] }
 0x38e   :  { %2032 = vmatpush.msra.mxu2 %v6979_v38  ;;  %2190 = vmatpush.msra.mxu3 %v6982_v33  ;;  %9682 = vst [vmem:[#allocation66_spill] sm:$0xff] %v6992_v11  ;;  %v6996_v38 = vld [vmem:[#allocation11 + $0x300] sm:$0xff]  ;;  %v6999_v33 = vld [vmem:[#allocation10 + $0x70] sm:$0xff]  ;;  %v9802_v60 = vperm.slane %v9801_v44, 1 }
 0x38f   :  { %1993 = vmatpush.msra.mxu0 %v6606_v29  ;;  %2151 = vmatpush.msra.mxu1 %v6986_v4  ;;  %9683 = vst [vmem:[#allocation69_spill] sm:$0xff] %v6996_v38  ;;  %v7002_v29 = vld [vmem:[#allocation11 + $0x308] sm:$0xff] }
 0x390   :  { %2033 = vmatpush.msra.mxu2 %v6989_v27  ;;  %2191 = vmatpush.msra.mxu3 %v6992_v11  ;;  %9684 = vst [vmem:[#allocation29_spill] sm:$0xff] %v6999_v33  ;;  %v7006_v27 = vld [vmem:[#allocation11 + $0x2e0] sm:$0xff]  ;;  %v7009_v11 = vld [vmem:[#allocation10 + $0x50] sm:$0xff] }
 0x391   :  { %1994 = vmatpush.msra.mxu0 %v6612_v8  ;;  %2152 = vmatpush.msra.mxu1 %v6996_v38  ;;  %9685 = vst [vmem:[#allocation70_spill] sm:$0xff] %v7002_v29  ;;  %v7012_v8 = vld [vmem:[#allocation11 + $0x2e8] sm:$0xff] }
 0x392   :  { %2034 = vmatpush.msra.mxu2 %v6999_v33  ;;  %2192 = vmatpush.msra.mxu3 %v7002_v29  ;;  %9686 = vst [vmem:[#allocation73_spill] sm:$0xff] %v7006_v27  ;;  %v7016_v33 = vld [vmem:[#allocation11 + $0x2c0] sm:$0xff]  ;;  %v7019_v29 = vld [vmem:[#allocation10 + $0x30] sm:$0xff] }
 0x393   :  { %1995 = vmatpush.msra.mxu0 %v6618_v0  ;;  %2153 = vmatpush.msra.mxu1 %v7006_v27  ;;  %9687 = vst [vmem:[#allocation30_spill] sm:$0xff] %v7009_v11  ;;  %v7022_v0 = vld [vmem:[#allocation11 + $0x2c8] sm:$0xff] }
 0x394   :  { %2035 = vmatpush.msra.mxu2 %v7009_v11  ;;  %9688 = vst [vmem:[#allocation74_spill] sm:$0xff] %v7012_v8  ;;  %2193 = vmatpush.msra.mxu3 %v7012_v8  ;;  %v7026_v11 = vld [vmem:[#allocation11 + $0x2a0] sm:$0xff]  ;;  %v7029_v8 = vld [vmem:[#allocation10 + $0x10] sm:$0xff] }
 0x395   :  { %1996 = vmatpush.msra.mxu0 %v6624_v47  ;;  %9689 = vst [vmem:[#allocation77_spill] sm:$0xff] %v7016_v33  ;;  %2154 = vmatpush.msra.mxu1 %v7016_v33  ;;  %v7034_v47 = vld [vmem:[#allocation11 + $0x2a8] sm:$0xff] }
 0x396   :  { %9690 = vst [vmem:[#allocation31_spill] sm:$0xff] %v7019_v29  ;;  %2036 = vmatpush.msra.mxu2 %v7019_v29  ;;  %2194 = vmatpush.msra.mxu3 %v7022_v0  ;;  %v7037_v29 = vld [vmem:[#allocation11 + $0x280] sm:$0xff] }
 0x397   :  { %9691 = vst [vmem:[#allocation78_spill] sm:$0xff] %v7022_v0  ;;  %1997 = vmatpush.msra.mxu0 %v6630_v21  ;;  %2155 = vmatpush.msra.mxu1 %v7026_v11  ;;  %v7040_v21 = vld [vmem:[#allocation11 + $0x1e0] sm:$0xff] }
 0x398   :  { %9692 = vst [vmem:[#allocation81_spill] sm:$0xff] %v7026_v11  ;;  %2037 = vmatpush.msra.mxu2 %v7029_v8  ;;  %1998 = vmatmul.f32.vlgmr.msra.gmra.mxu0 %v6879_v39  ;;  %v7043_v11 = vld [vmem:[#allocation11 + $0x288] sm:$0xff] }
 0x399   :  { %9693 = vst [vmem:[#allocation32_spill] sm:$0xff] %v7029_v8  ;;  %2038 = vmatmul.f32.vlgmr.msra.gmra.mxu2 %v6879_v39  ;;  %2195 = vmatpush.msra.mxu3 %v7034_v47  ;;  %v7046_v8 = vld [vmem:[#allocation11 + $0x1e8] sm:$0xff]  ;;  %v7049_v39 = vld [vmem:[#allocation11 + $0x260] sm:$0xff] }
 0x39a   :  { %9694 = vst [vmem:[#allocation82_spill] sm:$0xff] %v7034_v47  ;;  %2156 = vmatpush.msra.mxu1 %v7037_v29  ;;  %2125 = vmatpush.msrb.mxu0 %v7040_v21  ;;  %v7052_v47 = vld [vmem:[#allocation11 + $0x1c0] sm:$0xff] }
 0x39b   :  { %9695 = vst [vmem:[#allocation85_spill] sm:$0xff] %v7037_v29  ;;  %2196 = vmatpush.msra.mxu3 %v7043_v11  ;;  %2165 = vmatpush.msrb.mxu2 %v7046_v8  ;;  %v7055_v29 = vld [vmem:[#allocation11 + $0x268] sm:$0xff] }
 0x39c   :  { %9696 = vst [vmem:[#allocation33_spill] sm:$0xff] %v7040_v21  ;;  %2157 = vmatpush.msra.mxu1 %v7049_v39  ;;  %2126 = vmatpush.msrb.mxu0 %v7052_v47  ;;  %v7058_v21 = vld [vmem:[#allocation11 + $0x1c8] sm:$0xff] }
 0x39d   :  { %9697 = vst [vmem:[#allocation86_spill] sm:$0xff] %v7043_v11  ;;  %2197 = vmatpush.msra.mxu3 %v7055_v29  ;;  %2166 = vmatpush.msrb.mxu2 %v7058_v21  ;;  %v7061_v11 = vld [vmem:[#allocation11 + $0x240] sm:$0xff] }
 0x39e   :  { %9698 = vst [vmem:[#allocation89_spill] sm:$0xff] %v7046_v8  ;;  %2158 = vmatpush.msra.mxu1 %v7061_v11  ;;  %v7064_v8 = vld [vmem:[#allocation11 + $0x1a0] sm:$0xff] }
 0x39f   :  { %9699 = vst [vmem:[#allocation34_spill] sm:$0xff] %v7049_v39  ;;  %2127 = vmatpush.msrb.mxu0 %v7064_v8  ;;  %v7067_v39 = vld [vmem:[#allocation11 + $0x248] sm:$0xff] }
 0x3a0   :  { %9700 = vst [vmem:[#allocation91_spill] sm:$0xff] %v7052_v47  ;;  %2198 = vmatpush.msra.mxu3 %v7067_v39  ;;  %v7070_v47 = vld [vmem:[#allocation11 + $0x1a8] sm:$0xff] }
 0x3a1   :  { %9701 = vst [vmem:[#allocation94_spill] sm:$0xff] %v7055_v29  ;;  %2167 = vmatpush.msrb.mxu2 %v7070_v47  ;;  %v7073_v29 = vld [vmem:[#allocation11 + $0x220] sm:$0xff] }
 0x3a2   :  { %9702 = vst [vmem:[#allocation35_spill] sm:$0xff] %v7058_v21  ;;  %2159 = vmatpush.msra.mxu1 %v7073_v29  ;;  %v7076_v21 = vld [vmem:[#allocation11 + $0x180] sm:$0xff] }
 0x3a3   :  { %9703 = vst [vmem:[#allocation95_spill] sm:$0xff] %v7061_v11  ;;  %2128 = vmatpush.msrb.mxu0 %v7076_v21  ;;  %v7079_v11 = vld [vmem:[#allocation11 + $0x228] sm:$0xff] }
 0x3a4   :  { %9704 = vst [vmem:[#allocation98_spill] sm:$0xff] %v7064_v8  ;;  %2199 = vmatpush.msra.mxu3 %v7079_v11  ;;  %v7082_v8 = vld [vmem:[#allocation11 + $0x188] sm:$0xff] }
 0x3a5   :  { %9705 = vst [vmem:[#allocation36_spill] sm:$0xff] %v7067_v39  ;;  %2168 = vmatpush.msrb.mxu2 %v7082_v8  ;;  %v7085_v39 = vld [vmem:[#allocation11 + $0x200] sm:$0xff] }
 0x3a6   :  { %9706 = vst [vmem:[#allocation51_spill] sm:$0xff] %v7070_v47  ;;  %2160 = vmatpush.msra.mxu1 %v7085_v39  ;;  %v7088_v47 = vld [vmem:[#allocation11 + $0x160] sm:$0xff] }
 0x3a7   :  { %9707 = vst [vmem:[#allocation52_spill] sm:$0xff] %v7073_v29  ;;  %2129 = vmatpush.msrb.mxu0 %v7088_v47  ;;  %v7091_v29 = vld [vmem:[#allocation11 + $0x208] sm:$0xff] }
 0x3a8   :  { %9708 = vst [vmem:[#allocation99_spill] sm:$0xff] %v7076_v21  ;;  %2200 = vmatpush.msra.mxu3 %v7091_v29  ;;  %v7094_v21 = vld [vmem:[#allocation11 + $0x168] sm:$0xff] }
 0x3a9   :  { %9709 = vst [vmem:[#allocation55_spill] sm:$0xff] %v7079_v11  ;;  %2169 = vmatpush.msrb.mxu2 %v7094_v21  ;;  %v7097_v11 = vld [vmem:[#allocation11 + $0x3f0] sm:$0xff] }
 0x3aa   :  { %9710 = vst [vmem:[#allocation102_spill] sm:$0xff] %v7082_v8  ;;  %2225 = vmatpush.msrb.mxu1 %v7097_v11  ;;  %v7100_v8 = vld [vmem:[#allocation11 + $0x3f8] sm:$0xff] }
 0x3ab   :  { %9711 = vst [vmem:[#allocation56_spill] sm:$0xff] %v7085_v39  ;;  %2265 = vmatpush.msrb.mxu3 %v7100_v8  ;;  %v7103_v39 = vld [vmem:[#allocation11 + $0x140] sm:$0xff] }
 0x3ac   :  { %9712 = vst [vmem:[#allocation103_spill] sm:$0xff] %v7088_v47  ;;  %2130 = vmatpush.msrb.mxu0 %v7103_v39  ;;  %v7106_v47 = vld [vmem:[#allocation11 + $0x148] sm:$0xff] }
 0x3ad   :  { %9713 = vst [vmem:[#allocation59_spill] sm:$0xff] %v7091_v29  ;;  %2170 = vmatpush.msrb.mxu2 %v7106_v47  ;;  %v7109_v29 = vld [vmem:[#allocation11 + $0x3d0] sm:$0xff] }
 0x3ae   :  { %9714 = vst [vmem:[#allocation107_spill] sm:$0xff] %v7094_v21  ;;  %2226 = vmatpush.msrb.mxu1 %v7109_v29  ;;  %v7112_v21 = vld [vmem:[#allocation11 + $0x3d8] sm:$0xff] }
 0x3af   :  { %9715 = vst [vmem:[#allocation60_spill] sm:$0xff] %v7097_v11  ;;  %2266 = vmatpush.msrb.mxu3 %v7112_v21  ;;  %v7115_v11 = vld [vmem:[#allocation11 + $0x120] sm:$0xff] }
 0x3b0   :  { %9716 = vst [vmem:[#allocation108_spill] sm:$0xff] %v7100_v8  ;;  %2131 = vmatpush.msrb.mxu0 %v7115_v11  ;;  %v7118_v8 = vld [vmem:[#allocation11 + $0x128] sm:$0xff] }
 0x3b1   :  { %9717 = vst [vmem:[#allocation63_spill] sm:$0xff] %v7103_v39  ;;  %2171 = vmatpush.msrb.mxu2 %v7118_v8  ;;  %v7121_v39 = vld [vmem:[#allocation11 + $0x3b0] sm:$0xff] }
 0x3b2   :  { %9718 = vst [vmem:[#allocation111_spill] sm:$0xff] %v7106_v47  ;;  %2227 = vmatpush.msrb.mxu1 %v7121_v39  ;;  %v7124_v47 = vld [vmem:[#allocation11 + $0x3b8] sm:$0xff] }
 0x3b3   :  { %9719 = vst [vmem:[#allocation64_spill] sm:$0xff] %v7109_v29  ;;  %2267 = vmatpush.msrb.mxu3 %v7124_v47  ;;  %v7127_v29 = vld [vmem:[#allocation11 + $0x100] sm:$0xff] }
 0x3b4   :  { %9720 = vst [vmem:[#allocation113_spill] sm:$0xff] %v7112_v21  ;;  %2132 = vmatpush.msrb.mxu0 %v7127_v29  ;;  %v7130_v21 = vld [vmem:[#allocation11 + $0x108] sm:$0xff] }
 0x3b5   :  { %9721 = vst [vmem:[#allocation67_spill] sm:$0xff] %v7115_v11  ;;  %2172 = vmatpush.msrb.mxu2 %v7130_v21  ;;  %v7133_v11 = vld [vmem:[#allocation11 + $0x390] sm:$0xff] }
 0x3b6   :  { %9722 = vst [vmem:[#allocation116_spill] sm:$0xff] %v7118_v8  ;;  %2228 = vmatpush.msrb.mxu1 %v7133_v11  ;;  %v7136_v8 = vld [vmem:[#allocation11 + $0x398] sm:$0xff] }
 0x3b7   :  { %9723 = vst [vmem:[#allocation68_spill] sm:$0xff] %v7121_v39  ;;  %2268 = vmatpush.msrb.mxu3 %v7136_v8  ;;  %v7139_v39 = vld [vmem:[#allocation11 + $0xe0] sm:$0xff] }
 0x3b8   :  { %9724 = vst [vmem:[#allocation117_spill] sm:$0xff] %v7124_v47  ;;  %2133 = vmatpush.msrb.mxu0 %v7139_v39  ;;  %v7142_v47 = vld [vmem:[#allocation11 + $0xe8] sm:$0xff] }
 0x3b9   :  { %9725 = vst [vmem:[#allocation71_spill] sm:$0xff] %v7127_v29  ;;  %2173 = vmatpush.msrb.mxu2 %v7142_v47  ;;  %v7145_v29 = vld [vmem:[#allocation11 + $0x370] sm:$0xff] }
 0x3ba   :  { %9726 = vst [vmem:[#allocation72_spill] sm:$0xff] %v7130_v21  ;;  %2229 = vmatpush.msrb.mxu1 %v7145_v29  ;;  %v7148_v21 = vld [vmem:[#allocation11 + $0x378] sm:$0xff] }
 0x3bb   :  { %9727 = vst [vmem:[#allocation75_spill] sm:$0xff] %v7133_v11  ;;  %2269 = vmatpush.msrb.mxu3 %v7148_v21  ;;  %v7151_v11 = vld [vmem:[#allocation11 + $0xc0] sm:$0xff] }
 0x3bc   :  { %9728 = vst [vmem:[#allocation76_spill] sm:$0xff] %v7136_v8  ;;  %2134 = vmatpush.msrb.mxu0 %v7151_v11  ;;  %v7154_v8 = vld [vmem:[#allocation11 + $0xc8] sm:$0xff] }
 0x3bd   :  { %9729 = vst [vmem:[#allocation79_spill] sm:$0xff] %v7139_v39  ;;  %2174 = vmatpush.msrb.mxu2 %v7154_v8  ;;  %v7157_v39 = vld [vmem:[#allocation11 + $0x350] sm:$0xff] }
 0x3be   :  { %9730 = vst [vmem:[#allocation80_spill] sm:$0xff] %v7142_v47  ;;  %2230 = vmatpush.msrb.mxu1 %v7157_v39  ;;  %v7160_v47 = vld [vmem:[#allocation11 + $0x358] sm:$0xff] }
 0x3bf   :  { %9731 = vst [vmem:[#allocation83_spill] sm:$0xff] %v7145_v29  ;;  %2270 = vmatpush.msrb.mxu3 %v7160_v47  ;;  %v7163_v29 = vld [vmem:[#allocation11 + $0xa0] sm:$0xff] }
 0x3c0   :  { %9732 = vst [vmem:[#allocation84_spill] sm:$0xff] %v7148_v21  ;;  %2135 = vmatpush.msrb.mxu0 %v7163_v29  ;;  %v7166_v21 = vld [vmem:[#allocation11 + $0xa8] sm:$0xff] }
 0x3c1   :  { %9733 = vst [vmem:[#allocation87_spill] sm:$0xff] %v7151_v11  ;;  %2175 = vmatpush.msrb.mxu2 %v7166_v21  ;;  %v7169_v11 = vld [vmem:[#allocation11 + $0x330] sm:$0xff] }
 0x3c2   :  { %9734 = vst [vmem:[#allocation88_spill] sm:$0xff] %v7154_v8  ;;  %2231 = vmatpush.msrb.mxu1 %v7169_v11  ;;  %v7172_v8 = vld [vmem:[#allocation11 + $0x338] sm:$0xff] }
 0x3c3   :  { %9735 = vst [vmem:[#allocation92_spill] sm:$0xff] %v7157_v39  ;;  %2271 = vmatpush.msrb.mxu3 %v7172_v8  ;;  %v7175_v39 = vld [vmem:[#allocation11 + $0x80] sm:$0xff] }
 0x3c4   :  { %9736 = vst [vmem:[#allocation93_spill] sm:$0xff] %v7160_v47  ;;  %2136 = vmatpush.msrb.mxu0 %v7175_v39  ;;  %v7178_v47 = vld [vmem:[#allocation11 + $0x88] sm:$0xff] }
 0x3c5   :  { %9737 = vst [vmem:[#allocation96_spill] sm:$0xff] %v7163_v29  ;;  %2176 = vmatpush.msrb.mxu2 %v7178_v47  ;;  %v7181_v29 = vld [vmem:[#allocation11 + $0x310] sm:$0xff] }
 0x3c6   :  { %9738 = vst [vmem:[#allocation97_spill] sm:$0xff] %v7166_v21  ;;  %2232 = vmatpush.msrb.mxu1 %v7181_v29  ;;  %v7184_v21 = vld [vmem:[#allocation11 + $0x318] sm:$0xff] }
 0x3c7   :  { %9739 = vst [vmem:[#allocation100_spill] sm:$0xff] %v7169_v11  ;;  %2272 = vmatpush.msrb.mxu3 %v7184_v21  ;;  %v7187_v11 = vld [vmem:[#allocation11 + $0x60] sm:$0xff] }
 0x3c8   :  { %9740 = vst [vmem:[#allocation101_spill] sm:$0xff] %v7172_v8  ;;  %2137 = vmatpush.msrb.mxu0 %v7187_v11  ;;  %v7190_v8 = vld [vmem:[#allocation11 + $0x68] sm:$0xff] }
 0x3c9   :  { %9741 = vst [vmem:[#allocation105_spill] sm:$0xff] %v7175_v39  ;;  %2177 = vmatpush.msrb.mxu2 %v7190_v8  ;;  %v7193_v39 = vld [vmem:[#allocation11 + $0x2f0] sm:$0xff] }
 0x3ca   :  { %9742 = vst [vmem:[#allocation106_spill] sm:$0xff] %v7178_v47  ;;  %2233 = vmatpush.msrb.mxu1 %v7193_v39  ;;  %v7196_v47 = vld [vmem:[#allocation11 + $0x2f8] sm:$0xff] }
 0x3cb   :  { %9743 = vst [vmem:[#allocation109_spill] sm:$0xff] %v7181_v29  ;;  %2273 = vmatpush.msrb.mxu3 %v7196_v47  ;;  %v7199_v29 = vld [vmem:[#allocation11 + $0x40] sm:$0xff] }
 0x3cc   :  { %9744 = vst [vmem:[#allocation110_spill] sm:$0xff] %v7184_v21  ;;  %2138 = vmatpush.msrb.mxu0 %v7199_v29  ;;  %v7202_v21 = vld [vmem:[#allocation11 + $0x48] sm:$0xff] }
 0x3cd   :  { %9745 = vst [vmem:[#allocation114_spill] sm:$0xff] %v7187_v11  ;;  %2178 = vmatpush.msrb.mxu2 %v7202_v21  ;;  %v7205_v11 = vld [vmem:[#allocation11 + $0x2d0] sm:$0xff] }
 0x3ce   :  { %9746 = vst [vmem:[#allocation115_spill] sm:$0xff] %v7190_v8  ;;  %2234 = vmatpush.msrb.mxu1 %v7205_v11  ;;  %v7208_v8 = vld [vmem:[#allocation11 + $0x2d8] sm:$0xff] }
 0x3cf   :  { %9747 = vst [vmem:[#allocation120_spill] sm:$0xff] %v7193_v39  ;;  %2274 = vmatpush.msrb.mxu3 %v7208_v8  ;;  %v7211_v39 = vld [vmem:[#allocation11 + $0x20] sm:$0xff] }
 0x3d0   :  { %9748 = vst [vmem:[#allocation121_spill] sm:$0xff] %v7196_v47  ;;  %2139 = vmatpush.msrb.mxu0 %v7211_v39  ;;  %v7214_v47 = vld [vmem:[#allocation11 + $0x28] sm:$0xff] }
 0x3d1   :  { %9749 = vst [vmem:[#allocation37_spill] sm:$0xff] %v7199_v29  ;;  %2179 = vmatpush.msrb.mxu2 %v7214_v47  ;;  %v7217_v29 = vld [vmem:[#allocation11 + $0x2b0] sm:$0xff] }
 0x3d2   :  { %9750 = vst [vmem:[#allocation124_spill] sm:$0xff] %v7202_v21  ;;  %2235 = vmatpush.msrb.mxu1 %v7217_v29  ;;  %v7220_v21 = vld [vmem:[#allocation11 + $0x2b8] sm:$0xff] }
 0x3d3   :  { %9751 = vst [vmem:[#allocation125_spill] sm:$0xff] %v7205_v11  ;;  %2275 = vmatpush.msrb.mxu3 %v7220_v21  ;;  %v7223_v11 = vld [vmem:[#allocation11] sm:$0xff] }
 0x3d4   :  { %9752 = vst [vmem:[#allocation126_spill] sm:$0xff] %v7208_v8  ;;  %2140 = vmatpush.msrb.mxu0 %v7223_v11  ;;  %v7226_v8 = vld [vmem:[#allocation11 + $0x8] sm:$0xff] }
 0x3d5   :  { %9753 = vst [vmem:[#allocation127_spill] sm:$0xff] %v7211_v39  ;;  %2180 = vmatpush.msrb.mxu2 %v7226_v8  ;;  %v7229_v39 = vld [vmem:[#allocation11 + $0x290] sm:$0xff] }
 0x3d6   :  { %9754 = vst [vmem:[#allocation128_spill] sm:$0xff] %v7214_v47  ;;  %2236 = vmatpush.msrb.mxu1 %v7229_v39  ;;  %v7232_v47 = vld [vmem:[#allocation11 + $0x298] sm:$0xff] }
 0x3d7   :  { %9755 = vst [vmem:[#allocation129_spill] sm:$0xff] %v7217_v29  ;;  %2276 = vmatpush.msrb.mxu3 %v7232_v47  ;;  %v7235_v29 = vld [vmem:[#allocation11 + $0x1f0] sm:$0xff] }
 0x3d8   :  { %9756 = vst [vmem:[#allocation130_spill] sm:$0xff] %v7220_v21  ;;  %2205 = vmatpush.msra.mxu0 %v7235_v29  ;;  %v7238_v21 = vld [vmem:[#allocation11 + $0x1f8] sm:$0xff] }
 0x3d9   :  { %9757 = vst [vmem:[#allocation131_spill] sm:$0xff] %v7223_v11  ;;  %2245 = vmatpush.msra.mxu2 %v7238_v21  ;;  %v7241_v11 = vld [vmem:[#allocation11 + $0x270] sm:$0xff] }
 0x3da   :  { %9758 = vst [vmem:[#allocation132_spill] sm:$0xff] %v7226_v8  ;;  %2237 = vmatpush.msrb.mxu1 %v7241_v11  ;;  %v7244_v8 = vld [vmem:[#allocation11 + $0x278] sm:$0xff] }
 0x3db   :  { %9759 = vst [vmem:[#allocation133_spill] sm:$0xff] %v7229_v39  ;;  %2277 = vmatpush.msrb.mxu3 %v7244_v8  ;;  %v7247_v39 = vld [vmem:[#allocation11 + $0x1d0] sm:$0xff] }
 0x3dc   :  { %9760 = vst [vmem:[#allocation134_spill] sm:$0xff] %v7232_v47  ;;  %2206 = vmatpush.msra.mxu0 %v7247_v39  ;;  %v7250_v47 = vld [vmem:[#allocation11 + $0x1d8] sm:$0xff] }
 0x3dd   :  { %9761 = vst [vmem:[#allocation135_spill] sm:$0xff] %v7235_v29  ;;  %2246 = vmatpush.msra.mxu2 %v7250_v47  ;;  %v7253_v29 = vld [vmem:[#allocation11 + $0x250] sm:$0xff] }
 0x3de   :  { %9762 = vst [vmem:[#allocation136_spill] sm:$0xff] %v7238_v21  ;;  %2238 = vmatpush.msrb.mxu1 %v7253_v29  ;;  %v7256_v21 = vld [vmem:[#allocation11 + $0x258] sm:$0xff] }
 0x3df   :  { %9763 = vst [vmem:[#allocation137_spill] sm:$0xff] %v7241_v11  ;;  %2278 = vmatpush.msrb.mxu3 %v7256_v21  ;;  %v7259_v11 = vld [vmem:[#allocation11 + $0x1b0] sm:$0xff] }
 0x3e0   :  { %9764 = vst [vmem:[#allocation138_spill] sm:$0xff] %v7244_v8  ;;  %2207 = vmatpush.msra.mxu0 %v7259_v11  ;;  %v7262_v8 = vld [vmem:[#allocation11 + $0x1b8] sm:$0xff] }
 0x3e1   :  { %9765 = vst [vmem:[#allocation139_spill] sm:$0xff] %v7247_v39  ;;  %2247 = vmatpush.msra.mxu2 %v7262_v8  ;;  %v7265_v39 = vld [vmem:[#allocation11 + $0x230] sm:$0xff] }
 0x3e2   :  { %9766 = vst [vmem:[#allocation140_spill] sm:$0xff] %v7250_v47  ;;  %2239 = vmatpush.msrb.mxu1 %v7265_v39  ;;  %v7268_v47 = vld [vmem:[#allocation11 + $0x238] sm:$0xff]  ;;  %v1836_v33 = vpop.f32.mrf.mxu3 }
 0x3e3   :  { %9767 = vst [vmem:[#allocation141_spill] sm:$0xff] %v7253_v29  ;;  %2279 = vmatpush.msrb.mxu3 %v7268_v47  ;;  %v7271_v29 = vld [vmem:[#allocation11 + $0x190] sm:$0xff] }
 0x3e4   :  { %9768 = vst [vmem:[#allocation142_spill] sm:$0xff] %v7256_v21  ;;  %2208 = vmatpush.msra.mxu0 %v7271_v29  ;;  %v7274_v21 = vld [vmem:[#allocation11 + $0x198] sm:$0xff] }
 0x3e5   :  { %9769 = vst [vmem:[#allocation143_spill] sm:$0xff] %v7259_v11  ;;  %2248 = vmatpush.msra.mxu2 %v7274_v21  ;;  %v7277_v11 = vld [vmem:[#allocation11 + $0x210] sm:$0xff] }
 0x3e6   :  { %9770 = vst [vmem:[#allocation144_spill] sm:$0xff] %v7262_v8  ;;  %2240 = vmatpush.msrb.mxu1 %v7277_v11  ;;  %v7280_v8 = vld [vmem:[#allocation11 + $0x218] sm:$0xff] }
 0x3e7   :  { %9771 = vst [vmem:[#allocation145_spill] sm:$0xff] %v7265_v39  ;;  %2280 = vmatpush.msrb.mxu3 %v7280_v8  ;;  %v7283_v39 = vld [vmem:[#allocation11 + $0x170] sm:$0xff] }
 0x3e8   :  { %9772 = vst [vmem:[#allocation146_spill] sm:$0xff] %v7268_v47  ;;  %2209 = vmatpush.msra.mxu0 %v7283_v39  ;;  %v7286_v47 = vld [vmem:[#allocation11 + $0x178] sm:$0xff] }
 0x3e9   :  { %9773 = vst [vmem:[#allocation147_spill] sm:$0xff] %v7271_v29  ;;  %2249 = vmatpush.msra.mxu2 %v7286_v47  ;;  %v7289_v29 = vld [vmem:[#allocation11 + $0x150] sm:$0xff] }
 0x3ea   :  { %9774 = vst [vmem:[#allocation148_spill] sm:$0xff] %v7274_v21  ;;  %2210 = vmatpush.msra.mxu0 %v7289_v29  ;;  %v7292_v21 = vld [vmem:[#allocation11 + $0x158] sm:$0xff]  ;;  %v1916_v17 = vpop.f32.mrf.mxu3 }
 0x3eb   :  { %9775 = vst [vmem:[#allocation149_spill] sm:$0xff] %v7277_v11  ;;  %2250 = vmatpush.msra.mxu2 %v7292_v21  ;;  %v7295_v11 = vld [vmem:[#allocation11 + $0x130] sm:$0xff] }
 0x3ec   :  { %9776 = vst [vmem:[#allocation150_spill] sm:$0xff] %v7280_v8  ;;  %2211 = vmatpush.msra.mxu0 %v7295_v11  ;;  %v7298_v8 = vld [vmem:[#allocation11 + $0x138] sm:$0xff] }
 0x3ed   :  { %9777 = vst [vmem:[#allocation151_spill] sm:$0xff] %v7283_v39  ;;  %2251 = vmatpush.msra.mxu2 %v7298_v8  ;;  %v7301_v39 = vld [vmem:[#allocation11 + $0x110] sm:$0xff] }
 0x3ee   :  { %9778 = vst [vmem:[#allocation152_spill] sm:$0xff] %v7286_v47  ;;  %2212 = vmatpush.msra.mxu0 %v7301_v39  ;;  %v7304_v47 = vld [vmem:[#allocation11 + $0x118] sm:$0xff] }
 0x3ef   :  { %9779 = vst [vmem:[#allocation153_spill] sm:$0xff] %v7289_v29  ;;  %2252 = vmatpush.msra.mxu2 %v7304_v47  ;;  %v7307_v29 = vld [vmem:[#allocation11 + $0xf0] sm:$0xff] }
 0x3f0   :  { %9780 = vst [vmem:[#allocation154_spill] sm:$0xff] %v7292_v21  ;;  %2213 = vmatpush.msra.mxu0 %v7307_v29  ;;  %v7310_v21 = vld [vmem:[#allocation11 + $0xf8] sm:$0xff] }
 0x3f1   :  { %9781 = vst [vmem:[#allocation155_spill] sm:$0xff] %v7295_v11  ;;  %2253 = vmatpush.msra.mxu2 %v7310_v21  ;;  %v7313_v11 = vld [vmem:[#allocation11 + $0xd0] sm:$0xff] }
 0x3f2   :  { %9782 = vst [vmem:[#allocation156_spill] sm:$0xff] %v7298_v8  ;;  %2214 = vmatpush.msra.mxu0 %v7313_v11  ;;  %v7316_v8 = vld [vmem:[#allocation11 + $0xd8] sm:$0xff] }
 0x3f3   :  { %9783 = vst [vmem:[#allocation157_spill] sm:$0xff] %v7301_v39  ;;  %2254 = vmatpush.msra.mxu2 %v7316_v8  ;;  %v7319_v39 = vld [vmem:[#allocation11 + $0xb0] sm:$0xff] }
 0x3f4   :  { %9784 = vst [vmem:[#allocation158_spill] sm:$0xff] %v7304_v47  ;;  %2215 = vmatpush.msra.mxu0 %v7319_v39  ;;  %v7322_v47 = vld [vmem:[#allocation11 + $0xb8] sm:$0xff]  ;;  %v1776_v0 = vpop.f32.mrf.mxu0 }
 0x3f5   :  { %9785 = vst [vmem:[#allocation159_spill] sm:$0xff] %v7307_v29  ;;  %2255 = vmatpush.msra.mxu2 %v7322_v47  ;;  %v7325_v29 = vld [vmem:[#allocation11 + $0x90] sm:$0xff] }
 0x3f6   :  { %9786 = vst [vmem:[#allocation160_spill] sm:$0xff] %v7310_v21  ;;  %2216 = vmatpush.msra.mxu0 %v7325_v29  ;;  %v7328_v21 = vld [vmem:[#allocation11 + $0x98] sm:$0xff] }
 0x3f7   :  { %9787 = vst [vmem:[#allocation161_spill] sm:$0xff] %v7313_v11  ;;  %2256 = vmatpush.msra.mxu2 %v7328_v21  ;;  %v7331_v11 = vld [vmem:[#allocation11 + $0x70] sm:$0xff] }
 0x3f8   :  { %9788 = vst [vmem:[#allocation162_spill] sm:$0xff] %v7316_v8  ;;  %2217 = vmatpush.msra.mxu0 %v7331_v11  ;;  %v7334_v8 = vld [vmem:[#allocation11 + $0x78] sm:$0xff] }
 0x3f9   :  { %9789 = vst [vmem:[#allocation163_spill] sm:$0xff] %v7319_v39  ;;  %2257 = vmatpush.msra.mxu2 %v7334_v8  ;;  %v7337_v39 = vld [vmem:[#allocation11 + $0x50] sm:$0xff] }
 0x3fa   :  { %9790 = vst [vmem:[#allocation164_spill] sm:$0xff] %v7322_v47  ;;  %2218 = vmatpush.msra.mxu0 %v7337_v39  ;;  %v7340_v47 = vld [vmem:[#allocation11 + $0x58] sm:$0xff]  ;;  %v1816_v4 = vpop.f32.mrf.mxu2 }
 0x3fb   :  { %9791 = vst [vmem:[#allocation165_spill] sm:$0xff] %v7325_v29  ;;  %2258 = vmatpush.msra.mxu2 %v7340_v47  ;;  %v7343_v29 = vld [vmem:[#allocation11 + $0x30] sm:$0xff] }
 0x3fc   :  { %9792 = vst [vmem:[#allocation166_spill] sm:$0xff] %v7328_v21  ;;  %2219 = vmatpush.msra.mxu0 %v7343_v29  ;;  %v7346_v21 = vld [vmem:[#allocation11 + $0x38] sm:$0xff] }
 0x3fd   :  { %9793 = vst [vmem:[#allocation167_spill] sm:$0xff] %v7331_v11  ;;  %2259 = vmatpush.msra.mxu2 %v7346_v21  ;;  %v7349_v11 = vld [vmem:[#allocation11 + $0x10] sm:$0xff] }
 0x3fe   :  { %9794 = vst [vmem:[#allocation168_spill] sm:$0xff] %v7334_v8  ;;  %2220 = vmatpush.msra.mxu0 %v7349_v11  ;;  %v7352_v8 = vld [vmem:[#allocation11 + $0x18] sm:$0xff] }
 0x3ff   :  { %9795 = vst [vmem:[#allocation169_spill] sm:$0xff] %v7337_v39  ;;  %2260 = vmatpush.msra.mxu2 %v7352_v8  ;;  %v1796_v39 = vpop.f32.mrf.mxu1 }
 0x400   :  { %9796 = vst [vmem:[#allocation170_spill] sm:$0xff] %v7340_v47  ;;  %v1777_v47 = vadd.f32 %v1776_v0, %v9654_v34 }
 0x401   :  { %9797 = vst [vmem:[#allocation171_spill] sm:$0xff] %v7343_v29 }
 0x402   :  { %9798 = vst [vmem:[#allocation172_spill] sm:$0xff] %v7346_v21  ;;  %v1797_v38 = vadd.f32 %v1796_v39, %v1777_v47  ;;  %v1817_v21 = vadd.f32 %v1816_v4, %v9655_v53 }
 0x403   :  { %9799 = vst [vmem:[#allocation173_spill] sm:$0xff] %v7349_v11  ;;  %v9803_v11 = vld [vmem:[#allocation118_spill] sm:$0xff]  ;;  %v1896_v47 = vpop.f32.mrf.mxu2 }
 0x404   :  { %9800 = vst [vmem:[#allocation174_spill] sm:$0xff] %v7352_v8  ;;  %v3639_v29 = vmul.f32 -1.442695, %v1797_v38  ;;  %v1837_v12 = vadd.f32 %v1836_v33, %v1817_v21  ;;  %v7360_v52 = vadd.f32 %v9803_v11, %v9802_v60  ;;  %v1856_v33 = vpop.f32.mrf.mxu0  ;;  %v9805_v11 = vperm.slane %v9801_v44, 3 }
 0x405   :  { %v2059_v60 = vpop.f32.mrf.mxu3 }
 0x406   :  { %3795 = vpow2.f32 %v3639_v29  ;;  %9804 = vst [vmem:[#allocation122_spill] sm:$0xff] %v7360_v52  ;;  %v3640_v8 = vmul.f32 -1.442695, %v1837_v12  ;;  %v1897_v29 = vadd.f32 %v1896_v47, %v9657_v19  ;;  %v9806_v12 = vld [vmem:[#allocation112_spill] sm:$0xff] }
 0x407   :  { %v1876_v27 = vpop.f32.mrf.mxu1  ;;  %v7367_v53 = vadd.f32 %v9806_v12, %v9805_v11 }
 0x408   :  { %3797 = vpow2.f32 %v3640_v8  ;;  %v1917_v21 = vadd.f32 %v1916_v17, %v1897_v29  ;;  %v1857_v8 = vadd.f32 %v1856_v33, %v9659_v58 }
 0x409   :  { %9807 = vst [vmem:[#allocation119_spill] sm:$0xff] %v7367_v53 }
 0x40a   :  { %v1877_v17 = vadd.f32 %v1876_v27, %v1857_v8 }
 0x40c   :  { %v3796_v0 = vpop.eup %3795 }
 0x40d   :  { %v1922_v34 = vadd.f32 1.0, %v3796_v0 }
 0x40e   :  { %v3798_v4 = vpop.eup %3797 }
 0x40f   :  { %v2019_v23 = vpop.f32.mrf.mxu1  ;;  %3799 = vrcp.f32 %v1922_v34  ;;  %v1941_v39 = vadd.f32 1.0, %v3798_v4  ;;  %vm1928_vm8 = vweird.f32 %v1922_v34 }
 0x410   :  { %v2020_v50 = vadd.f32 %v2019_v23, %v7360_v52  ;;  %v3641_v23 = vmul.f32 -1.442695, %v1917_v21  ;;  %v1934_v21 = vand.u32 2147483648, %v1922_v34 }
 0x411   :  { %v1953_v8 = vand.u32 2147483648, %v1941_v39  ;;  %vm1947_vm13 = vweird.f32 %v1941_v39 }
 0x412   :  { %v3643_v38 = vmul.f32 -1.442695, %v2020_v50  ;;  %v2060_v50 = vadd.f32 %v2059_v60, %v7367_v53  ;;  %v9808_v60 = vperm.slane %v9801_v44, 0 }
 0x414   :  { %3801 = vpow2.f32 %v3643_v38  ;;  %v3644_v38 = vmul.f32 -1.442695, %v2060_v50 }
 0x415   :  { %v3800_v52 = vpop.eup %3799  ;;  %3803 = vrcp.f32 %v1941_v39 }
 0x416   :  { %v1924_v0 = vmul.f32 %v3800_v52, %v1922_v34  ;;  %3805 = vpow2.f32 %v3641_v23  ;;  %vm1929_vm7 = vweird.f32 %v3800_v52  ;;  %v1932_v23 = vand.u32 2147483647, %v1922_v34  ;;  %v1999_v34 = vpop.f32.mrf.mxu0 }
 0x417   :  { %3807 = vtanh.f32 %v1877_v17  ;;  %vm7378_vm11 = vmor %vm1928_vm8, %vm1929_vm7 }
 0x418   :  { %v1925_v47 = vsub.f32 1.0, %v1924_v0  ;;  %3809 = vpow2.f32 %v3644_v38  ;;  %v9809_v0 = vld [vmem:[#allocation38_spill] sm:$0xff]  ;;  %vm1933_vm14 = vcmp.eq.f32.partialorder %v1932_v23, 8.507059e+37 }
 0x419   :  { %v7376_v27 = vadd.f32 %v9809_v0, %v9808_v60  ;;  %v1954_v60 = vor.u32 1.1754944e-38, %v1953_v8 }
 0x41a   :  { %v3802_v19 = vpop.eup %3801  ;;  %v1926_v29 = vmul.f32 %v3800_v52, %v1925_v47  ;;  %v1951_v47 = vand.u32 2147483647, %v1941_v39 }
 0x41b   :  { %v3804_v4 = vpop.eup %3803  ;;  %v7371_v11 = vadd.f32 1.0, %v3802_v19  ;;  %9810 = vst [vmem:[#allocation104_spill] sm:$0xff] %v7376_v27 }
 0x41c   :  { %v3806_v6 = vpop.eup %3805  ;;  %v1943_v57 = vmul.f32 %v3804_v4, %v1941_v39  ;;  %v1927_v7 = vadd.f32 %v3800_v52, %v1926_v29  ;;  %vm1948_vm12 = vweird.f32 %v3804_v4  ;;  %v2000_v29 = vadd.f32 %v1999_v34, %v7376_v27 }
 0x41d   :  { %v1961_v12 = vadd.f32 1.0, %v3806_v6  ;;  %v1935_v6 = vor.u32 1.1754944e-38, %v1934_v21  ;;  %v3808_v38 = vpop.eup %3807  ;;  %vm1949_vm15 = vmor %vm1947_vm13, %vm1948_vm12  ;;  %vm1952_vm0 = vcmp.eq.f32.partialorder %v1951_v47, 8.507059e+37  ;;  %vm2090_vm7 = vweird.f32 %v7371_v11 }
 0x41e   :  { %v1944_v33 = vsub.f32 1.0, %v1943_v57  ;;  %v1931_v57 = vsel %vm7378_vm11, %v3800_v52, %v1927_v7  ;;  %v3810_v58 = vpop.eup %3809 }
 0x41f   :  { %3811 = vrcp.f32 %v1961_v12  ;;  %v1936_v0 = vsel %vm1933_vm14, %v1935_v6, %v1931_v57  ;;  %v7393_v57 = vadd.f32 1.0, %v3810_v58  ;;  %v1973_v47 = vand.u32 2147483648, %v1961_v12 }
 0x420   :  { %v1945_v19 = vmul.f32 %v3804_v4, %v1944_v33  ;;  %3813 = vrcp.f32 %v7371_v11  ;;  %v3642_v33 = vmul.f32 -1.442695, %v2000_v29  ;;  %v1978_v21 = vmul.f32 %v3808_v38, %v1936_v0 }
 0x421   :  { %vm1967_vm2 = vweird.f32 %v1961_v12  ;;  %v1974_v38 = vor.u32 1.1754944e-38, %v1973_v47 }
 0x422   :  { %v1946_v17 = vadd.f32 %v3804_v4, %v1945_v19  ;;  %3815 = vpow2.f32 %v3642_v33 }
 0x424   :  { %v1950_v53 = vsel %vm1949_vm15, %v3804_v4, %v1946_v17 }
 0x425   :  { %v3812_v43 = vpop.eup %3811  ;;  %v1955_v50 = vsel %vm1952_vm0, %v1954_v60, %v1950_v53  ;;  %v1971_v53 = vand.u32 2147483647, %v1961_v12 }
 0x426   :  { %v7386_v7 = vpop.eup %3813  ;;  %v1977_v52 = vmul.f32 %v1955_v50, %v6763_v3  ;;  %v1963_v39 = vmul.f32 %v3812_v43, %v1961_v12  ;;  %vm1968_vm1 = vweird.f32 %v3812_v43  ;;  %v2039_v50 = vpop.f32.mrf.mxu2  ;;  %v9814_v12 = vld [vmem:[#allocation123_spill] sm:$0xff] }
 0x427   :  { %v2086_v8 = vmul.f32 %v7386_v7, %v7371_v11  ;;  %vm1969_vm3 = vmor %vm1967_vm2, %vm1968_vm1  ;;  %vm1972_vm4 = vcmp.eq.f32.partialorder %v1971_v53, 8.507059e+37  ;;  %vm2091_vm6 = vweird.f32 %v7386_v7  ;;  %vm2110_vm1 = vweird.f32 %v7393_v57 }
 0x428   :  { %v7389_v23 = vadd.f32 %v1978_v21, %v1977_v52  ;;  %v1964_v19 = vsub.f32 1.0, %v1963_v39  ;;  %v3816_v34 = vpop.eup %3815  ;;  %v9813_v52 = vperm.slane %v9801_v44, 2  ;;  %vm7423_vm8 = vmor %vm2090_vm7, %vm2091_vm6 }
 0x429   :  { %v2065_v6 = vadd.f32 1.0, %v3816_v34  ;;  %v2087_v17 = vsub.f32 1.0, %v2086_v8  ;;  %v7549_v34 = vld [vmem:[#allocation10 + $0x60] sm:$0xff] }
 0x42a   :  { %3817 = vtanh.f32 %v7389_v23  ;;  %v1965_v4 = vmul.f32 %v3812_v43, %v1964_v19  ;;  %v7401_v21 = vadd.f32 %v9814_v12, %v9813_v52  ;;  %v7531_v52 = vld [vmem:[#allocation10 + $0xc0] sm:$0xff]  ;;  %v9826_v12 = vld [vmem:[#allocation54_spill] sm:$0xff] }
 0x42b   :  { %3819 = vrcp.f32 %v7393_v57  ;;  %v2088_v33 = vmul.f32 %v7386_v7, %v2087_v17  ;;  %vm2071_vm12 = vweird.f32 %v2065_v6 }
 0x42c   :  { %v1966_v3 = vadd.f32 %v3812_v43, %v1965_v4  ;;  %3821 = vrcp.f32 %v2065_v6  ;;  %v2040_v8 = vadd.f32 %v2039_v50, %v7401_v21  ;;  %v9825_v50 = vld [vmem:[#allocation53_spill] sm:$0xff] }
 0x42d   :  { %v2089_v47 = vadd.f32 %v7386_v7, %v2088_v33  ;;  %v9823_v33 = vld [vmem:[#allocation49_spill] sm:$0xff] }
 0x42e   :  { %v1970_v29 = vsel %vm1969_vm3, %v3812_v43, %v1966_v3  ;;  %3823 = vtanh.f32 %v2040_v8  ;;  %v2075_v3 = vand.u32 2147483647, %v2065_v6  ;;  %v9829_v8 = vld [vmem:[#allocation61_spill] sm:$0xff] }
 0x42f   :  { %v1975_v60 = vsel %vm1972_vm4, %v1974_v38, %v1970_v29  ;;  %v2093_v17 = vsel %vm7423_vm8, %v7386_v7, %v2089_v47  ;;  %v9831_v47 = vld [vmem:[#allocation62_spill] sm:$0xff] }
 0x430   :  { %v3818_v58 = vpop.eup %3817  ;;  %vm2076_vm15 = vcmp.eq.f32.partialorder %v2075_v3, 8.507059e+37  ;;  %v9837_v3 = vld [vmem:[#allocation70_spill] sm:$0xff] }
 0x431   :  { %v1981_v0 = vmul.f32 %v3818_v58, %v1975_v60  ;;  %v7403_v19 = vpop.eup %3819 }
 0x432   :  { %v3822_v43 = vpop.eup %3821  ;;  %vm2111_vm0 = vweird.f32 %v7403_v19 }
 0x433   :  { %2161 = vmatmul.f32.vlgmr.msra.gmra.mxu1 %v1981_v0  ;;  %2201 = vmatmul.f32.vlgmr.msra.gmra.mxu3 %v1981_v0  ;;  %v3487_v39 = vrot.slane %v1981_v0, 2  ;;  %v2067_v44 = vmul.f32 %v3822_v43, %v2065_v6  ;;  %vm2072_vm11 = vweird.f32 %v3822_v43  ;;  %vm2112_vm2 = vmor %vm2110_vm1, %vm2111_vm0 }
 0x434   :  { %2380 = vmatpush.msra.mxu1 %v6779_v30  ;;  %2420 = vmatpush.msra.mxu3 %v6782_v16  ;;  %v2096_v30 = vand.u32 2147483648, %v7371_v11  ;;  %v2106_v16 = vmul.f32 %v7403_v19, %v7393_v57  ;;  %vm2073_vm14 = vmor %vm2071_vm12, %vm2072_vm11 }
 0x435   :  { %v7410_v4 = vsel %vm3502_vm5, %v6791_v20, %v3487_v39  ;;  %v2068_v53 = vsub.f32 1.0, %v2067_v44  ;;  %v2094_v20 = vand.u32 2147483647, %v7371_v11  ;;  %v9827_v39 = vld [vmem:[#allocation57_spill] sm:$0xff]  ;;  %v9830_v44 = vld [vmem:[#allocation27_spill] sm:$0xff] }
 0x436   :  { %9815 = vst [vmem:[#allocation43_spill] sm:$0xff] %v7410_v4  ;;  %2381 = vmatpush.msra.mxu1 %v6796_v41  ;;  %2421 = vmatpush.msra.mxu3 %v6799_v59  ;;  %v2077_v41 = vand.u32 2147483648, %v2065_v6  ;;  %v2107_v11 = vsub.f32 1.0, %v2106_v16  ;;  %v9832_v16 = vld [vmem:[#allocation65_spill] sm:$0xff]  ;;  %v7821_v4 = vld [vmem:[#allocation10 + $0x98] sm:$0xff] }
 0x437   :  { %v2069_v59 = vmul.f32 %v3822_v43, %v2068_v53  ;;  %vm2095_vm13 = vcmp.eq.f32.partialorder %v2094_v20, 8.507059e+37  ;;  %v9833_v53 = vld [vmem:[#allocation28_spill] sm:$0xff]  ;;  %v9834_v20 = vld [vmem:[#allocation66_spill] sm:$0xff] }
 0x438   :  { %2382 = vmatpush.msra.mxu1 %v6809_v42  ;;  %2422 = vmatpush.msra.mxu3 %v6812_v36  ;;  %v2097_v42 = vor.u32 1.1754944e-38, %v2096_v30  ;;  %v2078_v29 = vor.u32 1.1754944e-38, %v2077_v41  ;;  %v7543_v30 = vld [vmem:[#allocation10 + $0x80] sm:$0xff]  ;;  %v9835_v41 = vld [vmem:[#allocation69_spill] sm:$0xff] }
 0x439   :  { %v2070_v36 = vadd.f32 %v3822_v43, %v2069_v59  ;;  %v9836_v59 = vld [vmem:[#allocation29_spill] sm:$0xff] }
 0x43a   :  { %2383 = vmatpush.msra.mxu1 %v6819_v1  ;;  %2423 = vmatpush.msra.mxu3 %v6822_v31  ;;  %v2098_v38 = vsel %vm2095_vm13, %v2097_v42, %v2093_v17  ;;  %v3824_v1 = vpop.eup %3823  ;;  %v2108_v31 = vmul.f32 %v7403_v19, %v2107_v11  ;;  %v7555_v17 = vld [vmem:[#allocation10 + $0x40] sm:$0xff]  ;;  %v9838_v42 = vld [vmem:[#allocation73_spill] sm:$0xff]  ;;  %v9839_v11 = vld [vmem:[#allocation30_spill] sm:$0xff] }
 0x43b   :  { %2241 = vmatmul.f32.vlgmr.msrb.gmra.mxu1 %v1981_v0  ;;  %2281 = vmatmul.f32.vlgmr.msrb.gmra.mxu3 %v1981_v0  ;;  %v2074_v58 = vsel %vm2073_vm14, %v3822_v43, %v2070_v36  ;;  %v2120_v6 = vmul.f32 %v2098_v38, %v6846_v51  ;;  %v9822_v0 = vld [vmem:[#allocation48_spill] sm:$0xff]  ;;  %v9840_v36 = vld [vmem:[#allocation74_spill] sm:$0xff]  ;;  %v9841_v38 = vld [vmem:[#allocation77_spill] sm:$0xff] }
 0x43c   :  { %2384 = vmatpush.msra.mxu1 %v6826_v32  ;;  %2424 = vmatpush.msra.mxu3 %v6829_v10  ;;  %v2079_v7 = vsel %vm2076_vm15, %v2078_v29, %v2074_v58  ;;  %v2109_v10 = vadd.f32 %v7403_v19, %v2108_v31  ;;  %v7537_v43 = vld [vmem:[#allocation10 + $0xa0] sm:$0xff] }
 0x43d   :  { %v2121_v60 = vmul.f32 %v3824_v1, %v2079_v7  ;;  %v7561_v29 = vld [vmem:[#allocation10 + $0x20] sm:$0xff]  ;;  %v9843_v1 = vld [vmem:[#allocation78_spill] sm:$0xff]  ;;  %v9844_v7 = vld [vmem:[#allocation81_spill] sm:$0xff] }
 0x43e   :  { %2385 = vmatpush.msra.mxu1 %v6833_v55  ;;  %2425 = vmatpush.msra.mxu3 %v6836_v26  ;;  %v2116_v55 = vand.u32 2147483648, %v7393_v57  ;;  %v2114_v26 = vand.u32 2147483647, %v7393_v57  ;;  %v9821_v57 = vld [vmem:[#allocation47_spill] sm:$0xff] }
 0x43f   :  { %v7440_v32 = vadd.f32 %v2121_v60, %v2120_v6  ;;  %v9842_v58 = vld [vmem:[#allocation31_spill] sm:$0xff]  ;;  %v9845_v6 = vld [vmem:[#allocation32_spill] sm:$0xff]  ;;  %v9846_v60 = vld [vmem:[#allocation82_spill] sm:$0xff] }
 0x440   :  { %2386 = vmatpush.msra.mxu1 %v6840_v2  ;;  %2426 = vmatpush.msra.mxu3 %v6843_v14  ;;  %v2113_v2 = vsel %vm2112_vm2, %v7403_v19, %v2109_v10  ;;  %v2117_v14 = vor.u32 1.1754944e-38, %v2116_v55  ;;  %vm2115_vm3 = vcmp.eq.f32.partialorder %v2114_v26, 8.507059e+37  ;;  %v9828_v19 = vld [vmem:[#allocation58_spill] sm:$0xff]  ;;  %v7567_v31 = vld [vmem:[#allocation10] sm:$0xff]  ;;  %v9847_v10 = vld [vmem:[#allocation85_spill] sm:$0xff] }
 0x441   :  { %3825 = vtanh.f32 %v7440_v32  ;;  %v9848_v55 = vld [vmem:[#allocation33_spill] sm:$0xff]  ;;  %v9849_v26 = vld [vmem:[#allocation86_spill] sm:$0xff] }
 0x442   :  { %2387 = vmatpush.msra.mxu1 %v6850_v63  ;;  %2427 = vmatpush.msra.mxu3 %v6853_v45  ;;  %v2118_v63 = vsel %vm2115_vm3, %v2117_v14, %v2113_v2  ;;  %v9850_v2 = vld [vmem:[#allocation89_spill] sm:$0xff]  ;;  %v9851_v14 = vld [vmem:[#allocation34_spill] sm:$0xff] }
 0x444   :  { %2388 = vmatpush.msra.mxu1 %v6860_v48  ;;  %2428 = vmatpush.msra.mxu3 %v6863_v61  ;;  %v7465_v48 = vld [vmem:[#allocation10 + $0x1e0] sm:$0xff]  ;;  %v7468_v61 = vld [vmem:[#allocation10 + $0x1f0] sm:$0xff] }
 0x446   :  { %2389 = vmatpush.msra.mxu1 %v6867_v28  ;;  %2429 = vmatpush.msra.mxu3 %v6870_v22  ;;  %v7473_v28 = vld [vmem:[#allocation10 + $0x1c0] sm:$0xff]  ;;  %v7476_v22 = vld [vmem:[#allocation10 + $0x1d0] sm:$0xff] }
 0x447   :  { %v3826_v51 = vpop.eup %3825 }
 0x448   :  { %2390 = vmatpush.msra.mxu1 %v6873_v35  ;;  %2430 = vmatpush.msra.mxu3 %v6876_v9  ;;  %v7459_v45 = vmul.f32 %v3826_v51, %v2118_v63  ;;  %v7481_v35 = vld [vmem:[#allocation10 + $0x1a0] sm:$0xff]  ;;  %v7484_v9 = vld [vmem:[#allocation10 + $0x1b0] sm:$0xff] }
 0x449   :  { %v9852_v51 = vld [vmem:[#allocation91_spill] sm:$0xff]  ;;  %v9853_v63 = vld [vmem:[#allocation94_spill] sm:$0xff] }
 0x44a   :  { %2391 = vmatpush.msra.mxu1 %v6881_v13  ;;  %2431 = vmatpush.msra.mxu3 %v6884_v54  ;;  %v7489_v13 = vld [vmem:[#allocation10 + $0x180] sm:$0xff]  ;;  %v7492_v54 = vld [vmem:[#allocation10 + $0x190] sm:$0xff] }
 0x44b   :  { %2141 = vmatmul.f32.vlgmr.msrb.gmra.mxu0 %v7459_v45  ;;  %2181 = vmatmul.f32.vlgmr.msrb.gmra.mxu2 %v7459_v45 }
 0x44c   :  { %2392 = vmatpush.msra.mxu1 %v6891_v49  ;;  %2432 = vmatpush.msra.mxu3 %v6894_v46  ;;  %v7497_v49 = vld [vmem:[#allocation10 + $0x160] sm:$0xff]  ;;  %v7501_v46 = vld [vmem:[#allocation10 + $0x170] sm:$0xff] }
 0x44d   :  { %2360 = vmatpush.msrb.mxu0 %v7465_v48  ;;  %2400 = vmatpush.msrb.mxu2 %v7468_v61 }
 0x44e   :  { %2393 = vmatpush.msra.mxu1 %v6899_v5  ;;  %2433 = vmatpush.msra.mxu3 %v6902_v62  ;;  %v7505_v5 = vld [vmem:[#allocation10 + $0x140] sm:$0xff]  ;;  %v7509_v62 = vld [vmem:[#allocation10 + $0x150] sm:$0xff] }
 0x44f   :  { %2361 = vmatpush.msrb.mxu0 %v7473_v28  ;;  %2401 = vmatpush.msrb.mxu2 %v7476_v22 }
 0x450   :  { %2394 = vmatpush.msra.mxu1 %v6907_v37  ;;  %2434 = vmatpush.msra.mxu3 %v6910_v18  ;;  %v7513_v37 = vld [vmem:[#allocation10 + $0x120] sm:$0xff] }
 0x451   :  { %2362 = vmatpush.msrb.mxu0 %v7481_v35  ;;  %2402 = vmatpush.msrb.mxu2 %v7484_v9  ;;  %v9818_v18 = vld [vmem:[#allocation44_spill] sm:$0xff] }
 0x452   :  { %2395 = vmatpush.msra.mxu1 %v6915_v40  ;;  %2435 = vmatpush.msra.mxu3 %v6918_v15  ;;  %v9819_v40 = vld [vmem:[#allocation45_spill] sm:$0xff]  ;;  %v7519_v15 = vld [vmem:[#allocation10 + $0x100] sm:$0xff] }
 0x453   :  { %2363 = vmatpush.msrb.mxu0 %v7489_v13  ;;  %2403 = vmatpush.msrb.mxu2 %v7492_v54 }
 0x454   :  { %2221 = vmatmul.f32.vlgmr.msra.gmra.mxu0 %v7459_v45  ;;  %2261 = vmatmul.f32.vlgmr.msra.gmra.mxu2 %v7459_v45 }
 0x455   :  { %2364 = vmatpush.msrb.mxu0 %v7497_v49  ;;  %2396 = vmatmul.f32.vlgmr.msra.gmra.mxu1 %v7459_v45 }
 0x456   :  { %2404 = vmatpush.msrb.mxu2 %v7501_v46  ;;  %2436 = vmatmul.f32.vlgmr.msra.gmra.mxu3 %v7459_v45 }
 0x457   :  { %2365 = vmatpush.msrb.mxu0 %v7505_v5  ;;  %2523 = vmatpush.msrb.mxu1 %v6928_v25  ;;  %v9820_v25 = vld [vmem:[#allocation46_spill] sm:$0xff] }
 0x458   :  { %2405 = vmatpush.msrb.mxu2 %v7509_v62  ;;  %2563 = vmatpush.msrb.mxu3 %v6932_v56  ;;  %v7525_v56 = vld [vmem:[#allocation10 + $0xe0] sm:$0xff] }
 0x459   :  { %2366 = vmatpush.msrb.mxu0 %v7513_v37  ;;  %2524 = vmatpush.msrb.mxu1 %v6936_v24  ;;  %v9824_v24 = vld [vmem:[#allocation50_spill] sm:$0xff] }
 0x45a   :  { %2406 = vmatpush.msrb.mxu2 %v9818_v18  ;;  %2564 = vmatpush.msrb.mxu3 %v9819_v40  ;;  %v9854_v18 = vld [vmem:[#allocation35_spill] sm:$0xff] }
 0x45b   :  { %2367 = vmatpush.msrb.mxu0 %v7519_v15  ;;  %2525 = vmatpush.msrb.mxu1 %v9820_v25  ;;  %v9855_v40 = vld [vmem:[#allocation95_spill] sm:$0xff]  ;;  %v9857_v25 = vld [vmem:[#allocation36_spill] sm:$0xff] }
 0x45c   :  { %2407 = vmatpush.msrb.mxu2 %v9821_v57  ;;  %2565 = vmatpush.msrb.mxu3 %v9822_v0  ;;  %v9858_v57 = vld [vmem:[#allocation51_spill] sm:$0xff]  ;;  %v9859_v0 = vld [vmem:[#allocation52_spill] sm:$0xff] }
 0x45d   :  { %2368 = vmatpush.msrb.mxu0 %v7525_v56  ;;  %2526 = vmatpush.msrb.mxu1 %v9823_v33  ;;  %v9860_v33 = vld [vmem:[#allocation99_spill] sm:$0xff] }
 0x45e   :  { %2408 = vmatpush.msrb.mxu2 %v9824_v24  ;;  %2566 = vmatpush.msrb.mxu3 %v9825_v50  ;;  %v9861_v24 = vld [vmem:[#allocation55_spill] sm:$0xff]  ;;  %v9862_v50 = vld [vmem:[#allocation102_spill] sm:$0xff] }
 0x45f   :  { %2369 = vmatpush.msrb.mxu0 %v7531_v52  ;;  %2527 = vmatpush.msrb.mxu1 %v9826_v12  ;;  %v9863_v12 = vld [vmem:[#allocation56_spill] sm:$0xff] }
 0x460   :  { %2409 = vmatpush.msrb.mxu2 %v9827_v39  ;;  %2567 = vmatpush.msrb.mxu3 %v9828_v19  ;;  %v9864_v39 = vld [vmem:[#allocation103_spill] sm:$0xff] }
 0x461   :  { %2370 = vmatpush.msrb.mxu0 %v7537_v43  ;;  %2528 = vmatpush.msrb.mxu1 %v9829_v8  ;;  %v9865_v19 = vld [vmem:[#allocation59_spill] sm:$0xff] }
 0x462   :  { %2410 = vmatpush.msrb.mxu2 %v9830_v44  ;;  %2568 = vmatpush.msrb.mxu3 %v9831_v47  ;;  %v9866_v8 = vld [vmem:[#allocation107_spill] sm:$0xff]  ;;  %v9867_v44 = vld [vmem:[#allocation60_spill] sm:$0xff] }
 0x463   :  { %2371 = vmatpush.msrb.mxu0 %v7543_v30  ;;  %2529 = vmatpush.msrb.mxu1 %v9832_v16  ;;  %v9868_v47 = vld [vmem:[#allocation108_spill] sm:$0xff]  ;;  %v9869_v16 = vld [vmem:[#allocation63_spill] sm:$0xff] }
 0x464   :  { %2411 = vmatpush.msrb.mxu2 %v9833_v53  ;;  %2569 = vmatpush.msrb.mxu3 %v9834_v20  ;;  %v9870_v53 = vld [vmem:[#allocation111_spill] sm:$0xff]  ;;  %v9871_v20 = vld [vmem:[#allocation64_spill] sm:$0xff] }
 0x465   :  { %2372 = vmatpush.msrb.mxu0 %v7549_v34  ;;  %2530 = vmatpush.msrb.mxu1 %v9835_v41  ;;  %v9872_v41 = vld [vmem:[#allocation113_spill] sm:$0xff] }
 0x466   :  { %2412 = vmatpush.msrb.mxu2 %v9836_v59  ;;  %2570 = vmatpush.msrb.mxu3 %v9837_v3  ;;  %v9873_v59 = vld [vmem:[#allocation67_spill] sm:$0xff]  ;;  %v9874_v3 = vld [vmem:[#allocation116_spill] sm:$0xff] }
 0x467   :  { %2373 = vmatpush.msrb.mxu0 %v7555_v17  ;;  %2531 = vmatpush.msrb.mxu1 %v9838_v42  ;;  %v9875_v42 = vld [vmem:[#allocation68_spill] sm:$0xff] }
 0x468   :  { %2413 = vmatpush.msrb.mxu2 %v9839_v11  ;;  %2571 = vmatpush.msrb.mxu3 %v9840_v36  ;;  %v9876_v11 = vld [vmem:[#allocation117_spill] sm:$0xff]  ;;  %v9877_v36 = vld [vmem:[#allocation71_spill] sm:$0xff] }
 0x469   :  { %2374 = vmatpush.msrb.mxu0 %v7561_v29  ;;  %2532 = vmatpush.msrb.mxu1 %v9841_v38  ;;  %v9878_v38 = vld [vmem:[#allocation72_spill] sm:$0xff] }
 0x46a   :  { %2414 = vmatpush.msrb.mxu2 %v9842_v58  ;;  %2572 = vmatpush.msrb.mxu3 %v9843_v1  ;;  %v9879_v58 = vld [vmem:[#allocation75_spill] sm:$0xff]  ;;  %v9880_v1 = vld [vmem:[#allocation76_spill] sm:$0xff] }
 0x46b   :  { %2375 = vmatpush.msrb.mxu0 %v7567_v31  ;;  %2533 = vmatpush.msrb.mxu1 %v9844_v7  ;;  %v9881_v7 = vld [vmem:[#allocation79_spill] sm:$0xff] }
 0x46c   :  { %2415 = vmatpush.msrb.mxu2 %v9845_v6  ;;  %2376 = vmatmul.f32.vlgmr.msrb.gmra.mxu0 %v7459_v45  ;;  %v9882_v6 = vld [vmem:[#allocation80_spill] sm:$0xff] }
 0x46d   :  { %2416 = vmatmul.f32.vlgmr.msrb.gmra.mxu2 %v7459_v45  ;;  %2573 = vmatpush.msrb.mxu3 %v9846_v60  ;;  %v9856_v45 = vld [vmem:[#allocation98_spill] sm:$0xff]  ;;  %v9883_v60 = vld [vmem:[#allocation83_spill] sm:$0xff] }
 0x46e   :  { %2534 = vmatpush.msrb.mxu1 %v9847_v10  ;;  %2503 = vmatpush.msra.mxu0 %v9848_v55  ;;  %v9884_v10 = vld [vmem:[#allocation84_spill] sm:$0xff]  ;;  %v9885_v55 = vld [vmem:[#allocation87_spill] sm:$0xff] }
 0x46f   :  { %2574 = vmatpush.msrb.mxu3 %v9849_v26  ;;  %2543 = vmatpush.msra.mxu2 %v9850_v2  ;;  %v9886_v26 = vld [vmem:[#allocation88_spill] sm:$0xff] }
 0x470   :  { %2535 = vmatpush.msrb.mxu1 %v9851_v14  ;;  %2504 = vmatpush.msra.mxu0 %v9852_v51  ;;  %v9887_v2 = vld [vmem:[#allocation92_spill] sm:$0xff]  ;;  %v9888_v14 = vld [vmem:[#allocation93_spill] sm:$0xff] }
 0x471   :  { %2575 = vmatpush.msrb.mxu3 %v9853_v63  ;;  %2544 = vmatpush.msra.mxu2 %v9854_v18  ;;  %v9889_v51 = vld [vmem:[#allocation96_spill] sm:$0xff]  ;;  %v9890_v63 = vld [vmem:[#allocation97_spill] sm:$0xff] }
 0x472   :  { %2536 = vmatpush.msrb.mxu1 %v9855_v40  ;;  %2505 = vmatpush.msra.mxu0 %v9856_v45  ;;  %v9891_v18 = vld [vmem:[#allocation100_spill] sm:$0xff]  ;;  %v9892_v40 = vld [vmem:[#allocation101_spill] sm:$0xff] }
 0x473   :  { %2576 = vmatpush.msrb.mxu3 %v9857_v25  ;;  %2545 = vmatpush.msra.mxu2 %v9858_v57  ;;  %v9893_v45 = vld [vmem:[#allocation105_spill] sm:$0xff]  ;;  %v9894_v25 = vld [vmem:[#allocation106_spill] sm:$0xff] }
 0x474   :  { %2537 = vmatpush.msrb.mxu1 %v9859_v0  ;;  %2506 = vmatpush.msra.mxu0 %v9860_v33  ;;  %v9895_v57 = vld [vmem:[#allocation109_spill] sm:$0xff]  ;;  %v9896_v0 = vld [vmem:[#allocation110_spill] sm:$0xff] }
 0x475   :  { %2577 = vmatpush.msrb.mxu3 %v9861_v24  ;;  %2546 = vmatpush.msra.mxu2 %v9862_v50  ;;  %v9897_v33 = vld [vmem:[#allocation114_spill] sm:$0xff]  ;;  %v9898_v24 = vld [vmem:[#allocation115_spill] sm:$0xff]  ;;  %v9899_v50 = vld [vmem:[#allocation120_spill] sm:$0xff] }
 0x476   :  { %2538 = vmatpush.msrb.mxu1 %v9863_v12  ;;  %2507 = vmatpush.msra.mxu0 %v9864_v39  ;;  %v9900_v12 = vld [vmem:[#allocation121_spill] sm:$0xff] }
 0x477   :  { %2578 = vmatpush.msrb.mxu3 %v9865_v19  ;;  %2547 = vmatpush.msra.mxu2 %v9866_v8  ;;  %v9901_v39 = vld [vmem:[#allocation37_spill] sm:$0xff]  ;;  %v9902_v19 = vld [vmem:[#allocation124_spill] sm:$0xff] }
 0x478   :  { %2603 = vmatpush.msra.mxu1 %v9867_v44  ;;  %2508 = vmatpush.msra.mxu0 %v9869_v16  ;;  %v9903_v8 = vld [vmem:[#allocation125_spill] sm:$0xff]  ;;  %v9904_v44 = vld [vmem:[#allocation126_spill] sm:$0xff]  ;;  %v9906_v16 = vld [vmem:[#allocation128_spill] sm:$0xff] }
 0x479   :  { %2643 = vmatpush.msra.mxu3 %v9868_v47  ;;  %2548 = vmatpush.msra.mxu2 %v9870_v53  ;;  %v9905_v47 = vld [vmem:[#allocation127_spill] sm:$0xff]  ;;  %v9907_v53 = vld [vmem:[#allocation129_spill] sm:$0xff] }
 0x47a   :  { %2604 = vmatpush.msra.mxu1 %v9871_v20  ;;  %2509 = vmatpush.msra.mxu0 %v9873_v59  ;;  %v9908_v20 = vld [vmem:[#allocation130_spill] sm:$0xff]  ;;  %v9910_v59 = vld [vmem:[#allocation132_spill] sm:$0xff] }
 0x47b   :  { %2644 = vmatpush.msra.mxu3 %v9872_v41  ;;  %2549 = vmatpush.msra.mxu2 %v9874_v3  ;;  %v9909_v41 = vld [vmem:[#allocation131_spill] sm:$0xff]  ;;  %v9911_v3 = vld [vmem:[#allocation133_spill] sm:$0xff] }
 0x47c   :  { %2605 = vmatpush.msra.mxu1 %v9875_v42  ;;  %2510 = vmatpush.msra.mxu0 %v9877_v36  ;;  %v9912_v42 = vld [vmem:[#allocation134_spill] sm:$0xff]  ;;  %v9914_v36 = vld [vmem:[#allocation136_spill] sm:$0xff] }
 0x47d   :  { %2645 = vmatpush.msra.mxu3 %v9876_v11  ;;  %2550 = vmatpush.msra.mxu2 %v9878_v38  ;;  %v9913_v11 = vld [vmem:[#allocation135_spill] sm:$0xff]  ;;  %v9915_v38 = vld [vmem:[#allocation137_spill] sm:$0xff] }
 0x47e   :  { %2606 = vmatpush.msra.mxu1 %v9879_v58  ;;  %2511 = vmatpush.msra.mxu0 %v9881_v7  ;;  %v9916_v58 = vld [vmem:[#allocation138_spill] sm:$0xff]  ;;  %v9918_v7 = vld [vmem:[#allocation140_spill] sm:$0xff] }
 0x47f   :  { %2646 = vmatpush.msra.mxu3 %v9880_v1  ;;  %2551 = vmatpush.msra.mxu2 %v9882_v6  ;;  %v9917_v1 = vld [vmem:[#allocation139_spill] sm:$0xff]  ;;  %v9919_v6 = vld [vmem:[#allocation141_spill] sm:$0xff] }
 0x480   :  { %2607 = vmatpush.msra.mxu1 %v9883_v60  ;;  %2512 = vmatpush.msra.mxu0 %v9885_v55  ;;  %v9920_v60 = vld [vmem:[#allocation142_spill] sm:$0xff]  ;;  %v9922_v55 = vld [vmem:[#allocation144_spill] sm:$0xff] }
 0x481   :  { %2647 = vmatpush.msra.mxu3 %v9884_v10  ;;  %2552 = vmatpush.msra.mxu2 %v9886_v26  ;;  %v9921_v10 = vld [vmem:[#allocation143_spill] sm:$0xff]  ;;  %v9923_v26 = vld [vmem:[#allocation145_spill] sm:$0xff] }
 0x482   :  { %2608 = vmatpush.msra.mxu1 %v9887_v2  ;;  %2513 = vmatpush.msra.mxu0 %v9889_v51  ;;  %v9924_v2 = vld [vmem:[#allocation146_spill] sm:$0xff]  ;;  %v9926_v51 = vld [vmem:[#allocation148_spill] sm:$0xff] }
 0x483   :  { %2648 = vmatpush.msra.mxu3 %v9888_v14  ;;  %2553 = vmatpush.msra.mxu2 %v9890_v63  ;;  %v9925_v14 = vld [vmem:[#allocation147_spill] sm:$0xff]  ;;  %v9927_v63 = vld [vmem:[#allocation149_spill] sm:$0xff] }
 0x484   :  { %2609 = vmatpush.msra.mxu1 %v9891_v18  ;;  %2514 = vmatpush.msra.mxu0 %v9893_v45  ;;  %v9928_v18 = vld [vmem:[#allocation150_spill] sm:$0xff]  ;;  %v9930_v45 = vld [vmem:[#allocation152_spill] sm:$0xff] }
 0x485   :  { %2649 = vmatpush.msra.mxu3 %v9892_v40  ;;  %2554 = vmatpush.msra.mxu2 %v9894_v25  ;;  %v9929_v40 = vld [vmem:[#allocation151_spill] sm:$0xff]  ;;  %v9931_v25 = vld [vmem:[#allocation153_spill] sm:$0xff] }
 0x486   :  { %2610 = vmatpush.msra.mxu1 %v9895_v57  ;;  %2515 = vmatpush.msra.mxu0 %v9897_v33  ;;  %v9932_v57 = vld [vmem:[#allocation154_spill] sm:$0xff]  ;;  %v9934_v33 = vld [vmem:[#allocation156_spill] sm:$0xff] }
 0x487   :  { %2650 = vmatpush.msra.mxu3 %v9896_v0  ;;  %2555 = vmatpush.msra.mxu2 %v9898_v24  ;;  %v9933_v0 = vld [vmem:[#allocation155_spill] sm:$0xff]  ;;  %v9935_v24 = vld [vmem:[#allocation157_spill] sm:$0xff] }
 0x488   :  { %2611 = vmatpush.msra.mxu1 %v9899_v50  ;;  %2516 = vmatpush.msra.mxu0 %v9901_v39  ;;  %v9936_v50 = vld [vmem:[#allocation158_spill] sm:$0xff]  ;;  %v9938_v39 = vld [vmem:[#allocation160_spill] sm:$0xff] }
 0x489   :  { %2651 = vmatpush.msra.mxu3 %v9900_v12  ;;  %2556 = vmatpush.msra.mxu2 %v9902_v19  ;;  %v9937_v12 = vld [vmem:[#allocation159_spill] sm:$0xff]  ;;  %v9939_v19 = vld [vmem:[#allocation161_spill] sm:$0xff] }
 0x48a   :  { %2612 = vmatpush.msra.mxu1 %v9903_v8  ;;  %2517 = vmatpush.msra.mxu0 %v9905_v47  ;;  %v9940_v8 = vld [vmem:[#allocation162_spill] sm:$0xff]  ;;  %v9942_v47 = vld [vmem:[#allocation164_spill] sm:$0xff] }
 0x48b   :  { %2652 = vmatpush.msra.mxu3 %v9904_v44  ;;  %2557 = vmatpush.msra.mxu2 %v9906_v16  ;;  %v9941_v44 = vld [vmem:[#allocation163_spill] sm:$0xff]  ;;  %v9943_v16 = vld [vmem:[#allocation165_spill] sm:$0xff] }
 0x48c   :  { %2613 = vmatpush.msra.mxu1 %v9907_v53  ;;  %2518 = vmatpush.msra.mxu0 %v9909_v41  ;;  %v9944_v53 = vld [vmem:[#allocation166_spill] sm:$0xff]  ;;  %v9946_v41 = vld [vmem:[#allocation168_spill] sm:$0xff] }
 0x48d   :  { %2653 = vmatpush.msra.mxu3 %v9908_v20  ;;  %2558 = vmatpush.msra.mxu2 %v9910_v59  ;;  %v9945_v20 = vld [vmem:[#allocation167_spill] sm:$0xff]  ;;  %v9947_v59 = vld [vmem:[#allocation169_spill] sm:$0xff] }
 0x48e   :  { %2614 = vmatpush.msra.mxu1 %v9911_v3  ;;  %2583 = vmatpush.msrb.mxu0 %v9913_v11  ;;  %v9948_v3 = vld [vmem:[#allocation170_spill] sm:$0xff]  ;;  %v9950_v11 = vld [vmem:[#allocation172_spill] sm:$0xff] }
 0x48f   :  { %2654 = vmatpush.msra.mxu3 %v9912_v42  ;;  %2623 = vmatpush.msrb.mxu2 %v9914_v36  ;;  %v9949_v42 = vld [vmem:[#allocation171_spill] sm:$0xff]  ;;  %v9951_v36 = vld [vmem:[#allocation173_spill] sm:$0xff] }
 0x490   :  { %2615 = vmatpush.msra.mxu1 %v9915_v38  ;;  %2584 = vmatpush.msrb.mxu0 %v9917_v1  ;;  %v9952_v38 = vld [vmem:[#allocation174_spill] sm:$0xff] }
 0x491   :  { %2655 = vmatpush.msra.mxu3 %v9916_v58  ;;  %2624 = vmatpush.msrb.mxu2 %v9918_v7 }
 0x492   :  { %2616 = vmatpush.msra.mxu1 %v9919_v6  ;;  %2585 = vmatpush.msrb.mxu0 %v9921_v10  ;;  %v9953_v6 = vld [vmem:[#allocation39_spill] sm:$0xff] }
 0x493   :  { %2656 = vmatpush.msra.mxu3 %v9920_v60  ;;  %2625 = vmatpush.msrb.mxu2 %v9922_v55 }
 0x494   :  { %2617 = vmatpush.msra.mxu1 %v9923_v26  ;;  %2586 = vmatpush.msrb.mxu0 %v9925_v14  ;;  %v9954_v14 = vld [vmem:[#allocation40_spill] sm:$0xff] }
 0x495   :  { %2657 = vmatpush.msra.mxu3 %v9924_v2  ;;  %2626 = vmatpush.msrb.mxu2 %v9926_v51 }
 0x496   :  { %2618 = vmatpush.msra.mxu1 %v9927_v63  ;;  %2587 = vmatpush.msrb.mxu0 %v9929_v40  ;;  %v9955_v40 = vld [vmem:[#allocation122_spill] sm:$0xff] }
 0x497   :  { %2658 = vmatpush.msra.mxu3 %v9928_v18  ;;  %2627 = vmatpush.msrb.mxu2 %v9930_v45  ;;  %v2353_v45 = vrot.slane %v9955_v40, 2 }
 0x498   :  { %2588 = vmatpush.msrb.mxu0 %v9931_v25 }
 0x499   :  { %2628 = vmatpush.msrb.mxu2 %v9932_v57 }
 0x49a   :  { %2589 = vmatpush.msrb.mxu0 %v9933_v0 }
 0x49b   :  { %2629 = vmatpush.msrb.mxu2 %v9934_v33 }
 0x49c   :  { %2590 = vmatpush.msrb.mxu0 %v9935_v24 }
 0x49d   :  { %2630 = vmatpush.msrb.mxu2 %v9936_v50 }
 0x49e   :  { %2591 = vmatpush.msrb.mxu0 %v9937_v12  ;;  %v9956_v12 = vld [vmem:[#allocation41_spill] sm:$0xff] }
 0x49f   :  { %2631 = vmatpush.msrb.mxu2 %v9938_v39 }
 0x4a0   :  { %2592 = vmatpush.msrb.mxu0 %v9939_v19 }
 0x4a1   :  { %2632 = vmatpush.msrb.mxu2 %v9940_v8 }
 0x4a2   :  { %2593 = vmatpush.msrb.mxu0 %v9941_v44 }
 0x4a3   :  { %2633 = vmatpush.msrb.mxu2 %v9942_v47 }
 0x4a4   :  { %2594 = vmatpush.msrb.mxu0 %v9943_v16 }
 0x4a5   :  { %2634 = vmatpush.msrb.mxu2 %v9944_v53 }
 0x4a6   :  { %2595 = vmatpush.msrb.mxu0 %v9945_v20 }
 0x4a7   :  { %2635 = vmatpush.msrb.mxu2 %v9946_v41 }
 0x4a8   :  { %2596 = vmatpush.msrb.mxu0 %v9947_v59  ;;  %v9957_v59 = vld [vmem:[#allocation119_spill] sm:$0xff] }
 0x4a9   :  { %2636 = vmatpush.msrb.mxu2 %v9948_v3  ;;  %v2355_v3 = vrot.slane %v9957_v59, 2 }
 0x4aa   :  { %2597 = vmatpush.msrb.mxu0 %v9949_v42 }
 0x4ab   :  { %2637 = vmatpush.msrb.mxu2 %v9950_v11  ;;  %v9958_v11 = vld [vmem:[#allocation42_spill] sm:$0xff] }
 0x4ac   :  { %2598 = vmatpush.msrb.mxu0 %v9951_v36 }
 0x4ad   :  { %2638 = vmatpush.msrb.mxu2 %v9952_v38 }
 0x4b0   :  { %v2162_v58 = vpop.f32.mrf.mxu1 }
 0x4b6   :  { %v2202_v10 = vpop.f32.mrf.mxu3 }
 0x4b8   :  { %v2242_v7 = vpop.f32.mrf.mxu1 }
 0x4be   :  { %v2282_v33 = vpop.f32.mrf.mxu3 }
 0x4c8   :  { %v2142_v1 = vpop.f32.mrf.mxu0 }
 0x4c9   :  { %v2143_v60 = vadd.f32 %v2142_v1, %v9953_v6 }
 0x4cb   :  { %v2163_v55 = vadd.f32 %v2162_v58, %v2143_v60 }
 0x4cd   :  { %v3645_v26 = vmul.f32 -1.442695, %v2163_v55 }
 0x4ce   :  { %v2182_v2 = vpop.f32.mrf.mxu2 }
 0x4cf   :  { %3827 = vpow2.f32 %v3645_v26  ;;  %v2183_v51 = vadd.f32 %v2182_v2, %v9954_v14 }
 0x4d1   :  { %v2203_v63 = vadd.f32 %v2202_v10, %v2183_v51  ;;  %v2222_v53 = vpop.f32.mrf.mxu0 }
 0x4d2   :  { %v2397_v18 = vpop.f32.mrf.mxu1  ;;  %v2223_v36 = vadd.f32 %v2222_v53, %v9958_v11 }
 0x4d3   :  { %v3646_v25 = vmul.f32 -1.442695, %v2203_v63  ;;  %v2398_v57 = vadd.f32 %v2397_v18, %v2353_v45 }
 0x4d4   :  { %v2243_v10 = vadd.f32 %v2242_v7, %v2223_v36 }
 0x4d5   :  { %v3828_v0 = vpop.eup %3827  ;;  %3829 = vpow2.f32 %v3646_v25  ;;  %v3649_v19 = vmul.f32 -1.442695, %v2398_v57 }
 0x4d6   :  { %v2288_v24 = vadd.f32 1.0, %v3828_v0 }
 0x4d7   :  { %v2262_v50 = vpop.f32.mrf.mxu2 }
 0x4d8   :  { %v2263_v39 = vadd.f32 %v2262_v50, %v9956_v12  ;;  %3831 = vrcp.f32 %v2288_v24  ;;  %v2300_v25 = vand.u32 2147483648, %v2288_v24  ;;  %vm2294_vm6 = vweird.f32 %v2288_v24 }
 0x4d9   :  { %3833 = vpow2.f32 %v3649_v19  ;;  %v2437_v20 = vpop.f32.mrf.mxu3  ;;  %v2298_v0 = vand.u32 2147483647, %v2288_v24 }
 0x4da   :  { %v2283_v8 = vadd.f32 %v2282_v33, %v2263_v39  ;;  %v2438_v38 = vadd.f32 %v2437_v20, %v2355_v3  ;;  %v2352_v39 = vrot.slane %v7376_v27, 2 }
 0x4db   :  { %v3830_v44 = vpop.eup %3829  ;;  %vm2299_vm12 = vcmp.eq.f32.partialorder %v2298_v0, 8.507059e+37 }
 0x4dc   :  { %v3647_v47 = vmul.f32 -1.442695, %v2283_v8  ;;  %v2307_v16 = vadd.f32 1.0, %v3830_v44  ;;  %v3650_v51 = vmul.f32 -1.442695, %v2438_v38 }
 0x4de   :  { %3835 = vpow2.f32 %v3647_v47  ;;  %v3832_v41 = vpop.eup %3831  ;;  %v2319_v33 = vand.u32 2147483648, %v2307_v16  ;;  %v2317_v7 = vand.u32 2147483647, %v2307_v16  ;;  %v2301_v47 = vor.u32 1.1754944e-38, %v2300_v25 }
 0x4df   :  { %3837 = vrcp.f32 %v2307_v16  ;;  %v2290_v42 = vmul.f32 %v3832_v41, %v2288_v24  ;;  %v3834_v1 = vpop.eup %3833  ;;  %vm2295_vm4 = vweird.f32 %v3832_v41  ;;  %vm2313_vm11 = vweird.f32 %v2307_v16 }
 0x4e0   :  { %v7687_v45 = vadd.f32 1.0, %v3834_v1  ;;  %vm7689_vm7 = vmor %vm2294_vm6, %vm2295_vm4  ;;  %v2320_v3 = vor.u32 1.1754944e-38, %v2319_v33  ;;  %vm2318_vm14 = vcmp.eq.f32.partialorder %v2317_v7, 8.507059e+37 }
 0x4e1   :  { %v2291_v58 = vsub.f32 1.0, %v2290_v42 }
 0x4e2   :  { %vm2468_vm4 = vweird.f32 %v7687_v45 }
 0x4e3   :  { %v2292_v55 = vmul.f32 %v3832_v41, %v2291_v58 }
 0x4e4   :  { %v3836_v60 = vpop.eup %3835 }
 0x4e5   :  { %v3838_v26 = vpop.eup %3837  ;;  %v2327_v2 = vadd.f32 1.0, %v3836_v60  ;;  %v2293_v18 = vadd.f32 %v3832_v41, %v2292_v55 }
 0x4e6   :  { %v2309_v63 = vmul.f32 %v3838_v26, %v2307_v16  ;;  %vm2314_vm8 = vweird.f32 %v3838_v26 }
 0x4e7   :  { %3839 = vrcp.f32 %v2327_v2  ;;  %v2297_v44 = vsel %vm7689_vm7, %v3832_v41, %v2293_v18  ;;  %vm2315_vm13 = vmor %vm2313_vm11, %vm2314_vm8  ;;  %vm2333_vm0 = vweird.f32 %v2327_v2  ;;  %v2337_v50 = vand.u32 2147483647, %v2327_v2 }
 0x4e8   :  { %v2310_v57 = vsub.f32 1.0, %v2309_v63  ;;  %3841 = vtanh.f32 %v2243_v10  ;;  %v2302_v42 = vsel %vm2299_vm12, %v2301_v47, %v2297_v44 }
 0x4e9   :  { %3843 = vpow2.f32 %v3650_v51  ;;  %v2377_v19 = vpop.f32.mrf.mxu0  ;;  %vm2338_vm2 = vcmp.eq.f32.partialorder %v2337_v50, 8.507059e+37 }
 0x4ea   :  { %v2311_v8 = vmul.f32 %v3838_v26, %v2310_v57  ;;  %3845 = vrcp.f32 %v7687_v45  ;;  %v2378_v24 = vadd.f32 %v2377_v19, %v2352_v39 }
 0x4ec   :  { %v2312_v53 = vadd.f32 %v3838_v26, %v2311_v8  ;;  %v3648_v36 = vmul.f32 -1.442695, %v2378_v24 }
 0x4ed   :  { %v3840_v20 = vpop.eup %3839 }
 0x4ee   :  { %v3842_v38 = vpop.eup %3841  ;;  %v2316_v58 = vsel %vm2315_vm13, %v3838_v26, %v2312_v53  ;;  %v2329_v1 = vmul.f32 %v3840_v20, %v2327_v2  ;;  %3847 = vpow2.f32 %v3648_v36  ;;  %vm2334_vm15 = vweird.f32 %v3840_v20  ;;  %v7719_v36 = vld [vmem:[#allocation10 + $0x1e8] sm:$0xff] }
 0x4ef   :  { %v3844_v60 = vpop.eup %3843  ;;  %v2321_v10 = vsel %vm2318_vm14, %v2320_v3, %v2316_v58  ;;  %v2344_v51 = vmul.f32 %v3842_v38, %v2302_v42  ;;  %v2339_v26 = vand.u32 2147483648, %v2327_v2  ;;  %vm2335_vm1 = vmor %vm2333_vm0, %vm2334_vm15  ;;  %v2354_v2 = vrot.slane %v7401_v21, 2  ;;  %v7722_v38 = vld [vmem:[#allocation10 + $0x1f8] sm:$0xff] }
 0x4f0   :  { %v7697_v41 = vpop.eup %3845  ;;  %v2343_v55 = vmul.f32 %v2321_v10, %v7389_v23  ;;  %v2330_v16 = vsub.f32 1.0, %v2329_v1  ;;  %v7704_v57 = vadd.f32 1.0, %v3844_v60  ;;  %v2417_v24 = vpop.f32.mrf.mxu2  ;;  %v2474_v60 = vand.u32 2147483648, %v7687_v45 }
 0x4f1   :  { %v2464_v25 = vmul.f32 %v7697_v41, %v7687_v45  ;;  %v2340_v19 = vor.u32 1.1754944e-38, %v2339_v26  ;;  %v2418_v42 = vadd.f32 %v2417_v24, %v2354_v2  ;;  %vm2469_vm3 = vweird.f32 %v7697_v41  ;;  %v7763_v2 = vld [vmem:[#allocation10 + $0x168] sm:$0xff] }
 0x4f2   :  { %v7700_v63 = vadd.f32 %v2344_v51, %v2343_v55  ;;  %v2331_v18 = vmul.f32 %v3840_v20, %v2330_v16  ;;  %v7731_v55 = vld [vmem:[#allocation10 + $0x1c8] sm:$0xff]  ;;  %v7734_v51 = vld [vmem:[#allocation10 + $0x1d8] sm:$0xff]  ;;  %vm7739_vm6 = vmor %vm2468_vm4, %vm2469_vm3  ;;  %vm2488_vm15 = vweird.f32 %v7704_v57 }
 0x4f3   :  { %v2465_v23 = vsub.f32 1.0, %v2464_v25 }
 0x4f4   :  { %3849 = vtanh.f32 %v7700_v63  ;;  %v2332_v0 = vadd.f32 %v3840_v20, %v2331_v18  ;;  %v3848_v33 = vpop.eup %3847  ;;  %v2472_v18 = vand.u32 2147483647, %v7687_v45 }
 0x4f5   :  { %v7707_v7 = vadd.f32 1.0, %v3848_v33  ;;  %3851 = vrcp.f32 %v7704_v57  ;;  %v2466_v47 = vmul.f32 %v7697_v41, %v2465_v23  ;;  %v7747_v33 = vld [vmem:[#allocation10 + $0x1b8] sm:$0xff] }
 0x4f6   :  { %v2336_v39 = vsel %vm2335_vm1, %v3840_v20, %v2332_v0  ;;  %v7744_v0 = vld [vmem:[#allocation10 + $0x1a8] sm:$0xff]  ;;  %vm2473_vm11 = vcmp.eq.f32.partialorder %v2472_v18, 8.507059e+37 }
 0x4f7   :  { %3853 = vrcp.f32 %v7707_v7  ;;  %v2341_v44 = vsel %vm2338_vm2, %v2340_v19, %v2336_v39  ;;  %v2467_v1 = vadd.f32 %v7697_v41, %v2466_v47  ;;  %v2455_v26 = vand.u32 2147483648, %v7707_v7 }
 0x4f8   :  { %3855 = vtanh.f32 %v2418_v42  ;;  %v2453_v23 = vand.u32 2147483647, %v7707_v7  ;;  %v2475_v39 = vor.u32 1.1754944e-38, %v2474_v60  ;;  %vm2449_vm8 = vweird.f32 %v7707_v7  ;;  %v7766_v42 = vld [vmem:[#allocation10 + $0x178] sm:$0xff] }
 0x4f9   :  { %v2471_v45 = vsel %vm7739_vm6, %v7697_v41, %v2467_v1  ;;  %v2456_v41 = vor.u32 1.1754944e-38, %v2455_v26  ;;  %v7777_v26 = vld [vmem:[#allocation10 + $0x128] sm:$0xff] }
 0x4fa   :  { %v3850_v8 = vpop.eup %3849  ;;  %v2476_v24 = vsel %vm2473_vm11, %v2475_v39, %v2471_v45  ;;  %vm2454_vm13 = vcmp.eq.f32.partialorder %v2453_v23, 8.507059e+37  ;;  %v7787_v45 = vld [vmem:[#allocation10 + $0x108] sm:$0xff]  ;;  %v2494_v39 = vand.u32 2147483648, %v7704_v57 }
 0x4fb   :  { %v7712_v53 = vmul.f32 %v3850_v8, %v2341_v44  ;;  %v7715_v3 = vpop.eup %3851  ;;  %v7754_v8 = vld [vmem:[#allocation10 + $0x188] sm:$0xff]  ;;  %v7757_v44 = vld [vmem:[#allocation10 + $0x198] sm:$0xff]  ;;  %v2498_v18 = vmul.f32 %v2476_v24, %v7440_v32 }
 0x4fc   :  { %v2484_v10 = vmul.f32 %v7715_v3, %v7704_v57  ;;  %vm2489_vm14 = vweird.f32 %v7715_v3  ;;  %v7790_v32 = vld [vmem:[#allocation10 + $0x118] sm:$0xff] }
 0x4fd   :  { %9961 = vst [vmem:[#allocation90_spill] sm:$0xff] %v7712_v53  ;;  %2539 = vmatmul.f32.vlgmr.msrb.gmra.mxu1 %v7712_v53  ;;  %2579 = vmatmul.f32.vlgmr.msrb.gmra.mxu3 %v7712_v53  ;;  %v3854_v20 = vpop.eup %3853  ;;  %vm2490_vm0 = vmor %vm2488_vm15, %vm2489_vm14 }
 0x4fe   :  { %2754 = vmatpush.msrb.mxu1 %v7719_v36  ;;  %2794 = vmatpush.msrb.mxu3 %v7722_v38  ;;  %v2445_v58 = vmul.f32 %v3854_v20, %v7707_v7  ;;  %vm2450_vm7 = vweird.f32 %v3854_v20  ;;  %v2485_v19 = vsub.f32 1.0, %v2484_v10  ;;  %v3856_v1 = vpop.eup %3855  ;;  %v7770_v10 = vld [vmem:[#allocation10 + $0x148] sm:$0xff] }
 0x4ff   :  { %vm2451_vm12 = vmor %vm2449_vm8, %vm2450_vm7 }
 0x500   :  { %2755 = vmatpush.msrb.mxu1 %v7731_v55  ;;  %2795 = vmatpush.msrb.mxu3 %v7734_v51  ;;  %v2446_v16 = vsub.f32 1.0, %v2445_v58  ;;  %v2486_v7 = vmul.f32 %v7715_v3, %v2485_v19  ;;  %v2492_v19 = vand.u32 2147483647, %v7704_v57  ;;  %v2495_v57 = vor.u32 1.1754944e-38, %v2494_v39  ;;  %v7828_v39 = vld [vmem:[#allocation10 + $0x68] sm:$0xff] }
 0x502   :  { %2756 = vmatpush.msrb.mxu1 %v7744_v0  ;;  %2796 = vmatpush.msrb.mxu3 %v7747_v33  ;;  %v2447_v50 = vmul.f32 %v3854_v20, %v2446_v16  ;;  %v7773_v16 = vld [vmem:[#allocation10 + $0x158] sm:$0xff]  ;;  %v2487_v23 = vadd.f32 %v7715_v3, %v2486_v7  ;;  %vm2493_vm1 = vcmp.eq.f32.partialorder %v2492_v19, 8.507059e+37  ;;  %v7810_v7 = vld [vmem:[#allocation10 + $0xa8] sm:$0xff] }
 0x503   :  { %v7831_v19 = vld [vmem:[#allocation10 + $0x78] sm:$0xff] }
 0x504   :  { %2757 = vmatpush.msrb.mxu1 %v7754_v8  ;;  %2797 = vmatpush.msrb.mxu3 %v7757_v44  ;;  %v2448_v47 = vadd.f32 %v3854_v20, %v2447_v50  ;;  %v2491_v24 = vsel %vm2490_vm0, %v7715_v3, %v2487_v23  ;;  %v7818_v23 = vld [vmem:[#allocation10 + $0x88] sm:$0xff] }
 0x505   :  { %2619 = vmatmul.f32.vlgmr.msra.gmra.mxu1 %v7712_v53  ;;  %2659 = vmatmul.f32.vlgmr.msra.gmra.mxu3 %v7712_v53  ;;  %v2496_v3 = vsel %vm2493_vm1, %v2495_v57, %v2491_v24  ;;  %v7836_v24 = vld [vmem:[#allocation10 + $0x48] sm:$0xff]  ;;  %v7839_v57 = vld [vmem:[#allocation10 + $0x58] sm:$0xff]  ;;  %v7906_v53 = vld [vmem:[#allocation10 + $0xd0] sm:$0xff] }
 0x506   :  { %2758 = vmatpush.msrb.mxu1 %v7763_v2  ;;  %2798 = vmatpush.msrb.mxu3 %v7766_v42  ;;  %v2452_v58 = vsel %vm2451_vm12, %v3854_v20, %v2448_v47  ;;  %v7780_v20 = vld [vmem:[#allocation10 + $0x138] sm:$0xff]  ;;  %v7797_v47 = vld [vmem:[#allocation10 + $0xe8] sm:$0xff]  ;;  %9973 = vst [vmem:[#allocation49_spill] sm:$0xff] %v7906_v53 }
 0x507   :  { %v2457_v60 = vsel %vm2454_vm13, %v2456_v41, %v2452_v58  ;;  %v7800_v41 = vld [vmem:[#allocation10 + $0xf8] sm:$0xff]  ;;  %v7804_v58 = vld [vmem:[#allocation10 + $0xc8] sm:$0xff] }
 0x508   :  { %2759 = vmatpush.msrb.mxu1 %v7770_v10  ;;  %2799 = vmatpush.msrb.mxu3 %v7773_v16  ;;  %v2499_v25 = vmul.f32 %v3856_v1, %v2457_v60  ;;  %v7807_v1 = vld [vmem:[#allocation10 + $0xd8] sm:$0xff] }
 0x509   :  { %v7813_v60 = vld [vmem:[#allocation10 + $0xb8] sm:$0xff] }
 0x50a   :  { %2760 = vmatpush.msrb.mxu1 %v7777_v26  ;;  %2800 = vmatpush.msrb.mxu3 %v7780_v20  ;;  %v7783_v50 = vadd.f32 %v2499_v25, %v2498_v18 }
 0x50c   :  { %2761 = vmatpush.msrb.mxu1 %v7787_v45  ;;  %2801 = vmatpush.msrb.mxu3 %v7790_v32  ;;  %3857 = vtanh.f32 %v7783_v50 }
 0x50e   :  { %2762 = vmatpush.msrb.mxu1 %v7797_v47  ;;  %2802 = vmatpush.msrb.mxu3 %v7800_v41 }
 0x510   :  { %2763 = vmatpush.msrb.mxu1 %v7804_v58  ;;  %2803 = vmatpush.msrb.mxu3 %v7807_v1 }
 0x512   :  { %2764 = vmatpush.msrb.mxu1 %v7810_v7  ;;  %2804 = vmatpush.msrb.mxu3 %v7813_v60  ;;  %v3858_v18 = vpop.eup %3857 }
 0x513   :  { %v7816_v25 = vmul.f32 %v3858_v18, %v2496_v3  ;;  %v7896_v18 = vld [vmem:[#allocation10 + $0xf0] sm:$0xff]  ;;  %v7903_v3 = vld [vmem:[#allocation11 + $0x360] sm:$0xff] }
 0x514   :  { %2765 = vmatpush.msrb.mxu1 %v7818_v23  ;;  %2805 = vmatpush.msrb.mxu3 %v7821_v4  ;;  %9970 = vst [vmem:[#allocation46_spill] sm:$0xff] %v7896_v18 }
 0x515   :  { %2519 = vmatmul.f32.vlgmr.msra.gmra.mxu0 %v7816_v25  ;;  %2559 = vmatmul.f32.vlgmr.msra.gmra.mxu2 %v7816_v25  ;;  %9972 = vst [vmem:[#allocation48_spill] sm:$0xff] %v7903_v3 }
 0x516   :  { %2734 = vmatpush.msra.mxu0 %v7465_v48  ;;  %2774 = vmatpush.msra.mxu2 %v7468_v61  ;;  %v7844_v48 = vld [vmem:[#allocation10 + $0x28] sm:$0xff]  ;;  %v7847_v61 = vld [vmem:[#allocation10 + $0x38] sm:$0xff] }
 0x517   :  { %2766 = vmatpush.msrb.mxu1 %v7828_v39  ;;  %2806 = vmatpush.msrb.mxu3 %v7831_v19 }
 0x518   :  { %2735 = vmatpush.msra.mxu0 %v7473_v28  ;;  %2775 = vmatpush.msra.mxu2 %v7476_v22  ;;  %v7852_v28 = vld [vmem:[#allocation10 + $0x8] sm:$0xff]  ;;  %v7855_v22 = vld [vmem:[#allocation10 + $0x18] sm:$0xff] }
 0x519   :  { %2767 = vmatpush.msrb.mxu1 %v7836_v24  ;;  %2807 = vmatpush.msrb.mxu3 %v7839_v57 }
 0x51a   :  { %2736 = vmatpush.msra.mxu0 %v7481_v35  ;;  %2776 = vmatpush.msra.mxu2 %v7484_v9  ;;  %v7865_v35 = vld [vmem:[#allocation11 + $0x3e0] sm:$0xff]  ;;  %v7869_v9 = vld [vmem:[#allocation11 + $0x3e8] sm:$0xff] }
 0x51b   :  { %2768 = vmatpush.msrb.mxu1 %v7844_v48  ;;  %2808 = vmatpush.msrb.mxu3 %v7847_v61 }
 0x51c   :  { %2737 = vmatpush.msra.mxu0 %v7489_v13  ;;  %2777 = vmatpush.msra.mxu2 %v7492_v54  ;;  %v7873_v13 = vld [vmem:[#allocation11 + $0x3c0] sm:$0xff]  ;;  %v7876_v54 = vld [vmem:[#allocation10 + $0x130] sm:$0xff] }
 0x51d   :  { %2769 = vmatpush.msrb.mxu1 %v7852_v28  ;;  %2809 = vmatpush.msrb.mxu3 %v7855_v22  ;;  %9964 = vst [vmem:[#allocation118_spill] sm:$0xff] %v7876_v54 }
 0x51e   :  { %2599 = vmatmul.f32.vlgmr.msrb.gmra.mxu0 %v7816_v25  ;;  %2639 = vmatmul.f32.vlgmr.msrb.gmra.mxu2 %v7816_v25 }
 0x51f   :  { %2738 = vmatpush.msra.mxu0 %v7497_v49  ;;  %2770 = vmatmul.f32.vlgmr.msrb.gmra.mxu1 %v7816_v25  ;;  %v7879_v49 = vld [vmem:[#allocation11 + $0x3c8] sm:$0xff] }
 0x520   :  { %2778 = vmatpush.msra.mxu2 %v7501_v46  ;;  %2810 = vmatmul.f32.vlgmr.msrb.gmra.mxu3 %v7816_v25  ;;  %9965 = vst [vmem:[#allocation112_spill] sm:$0xff] %v7879_v49  ;;  %v7883_v46 = vld [vmem:[#allocation11 + $0x3a0] sm:$0xff] }
 0x521   :  { %2739 = vmatpush.msra.mxu0 %v7505_v5  ;;  %2897 = vmatpush.msra.mxu1 %v7865_v35  ;;  %9966 = vst [vmem:[#allocation38_spill] sm:$0xff] %v7883_v46  ;;  %v7886_v5 = vld [vmem:[#allocation10 + $0x110] sm:$0xff] }
 0x522   :  { %2779 = vmatpush.msra.mxu2 %v7509_v62  ;;  %2937 = vmatpush.msra.mxu3 %v7869_v9  ;;  %9967 = vst [vmem:[#allocation123_spill] sm:$0xff] %v7886_v5  ;;  %v7889_v62 = vld [vmem:[#allocation11 + $0x3a8] sm:$0xff] }
 0x523   :  { %2740 = vmatpush.msra.mxu0 %v7513_v37  ;;  %2898 = vmatpush.msra.mxu1 %v7873_v13  ;;  %9968 = vst [vmem:[#allocation44_spill] sm:$0xff] %v7889_v62  ;;  %v7893_v37 = vld [vmem:[#allocation11 + $0x380] sm:$0xff] }
 0x524   :  { %2780 = vmatpush.msra.mxu2 %v7876_v54  ;;  %2938 = vmatpush.msra.mxu3 %v7879_v49  ;;  %9969 = vst [vmem:[#allocation45_spill] sm:$0xff] %v7893_v37 }
 0x525   :  { %2741 = vmatpush.msra.mxu0 %v7519_v15  ;;  %2899 = vmatpush.msra.mxu1 %v7883_v46  ;;  %v7899_v15 = vld [vmem:[#allocation11 + $0x388] sm:$0xff] }
 0x526   :  { %2781 = vmatpush.msra.mxu2 %v7886_v5  ;;  %2939 = vmatpush.msra.mxu3 %v7889_v62  ;;  %9971 = vst [vmem:[#allocation47_spill] sm:$0xff] %v7899_v15 }
 0x527   :  { %2742 = vmatpush.msra.mxu0 %v7525_v56  ;;  %2900 = vmatpush.msra.mxu1 %v7893_v37  ;;  %v7909_v56 = vld [vmem:[#allocation11 + $0x368] sm:$0xff] }
 0x528   :  { %2782 = vmatpush.msra.mxu2 %v7896_v18  ;;  %2940 = vmatpush.msra.mxu3 %v7899_v15  ;;  %9974 = vst [vmem:[#allocation50_spill] sm:$0xff] %v7909_v56  ;;  %v7913_v18 = vld [vmem:[#allocation11 + $0x340] sm:$0xff]  ;;  %v7916_v15 = vld [vmem:[#allocation10 + $0xb0] sm:$0xff] }
 0x529   :  { %2743 = vmatpush.msra.mxu0 %v7531_v52  ;;  %2901 = vmatpush.msra.mxu1 %v7903_v3  ;;  %9975 = vst [vmem:[#allocation53_spill] sm:$0xff] %v7913_v18  ;;  %v7919_v52 = vld [vmem:[#allocation11 + $0x348] sm:$0xff]  ;;  %v2727_v3 = vrot.slane %v9955_v40, 4 }
 0x52a   :  { %2783 = vmatpush.msra.mxu2 %v7906_v53  ;;  %2941 = vmatpush.msra.mxu3 %v7909_v56  ;;  %9976 = vst [vmem:[#allocation54_spill] sm:$0xff] %v7916_v15  ;;  %v7923_v53 = vld [vmem:[#allocation11 + $0x320] sm:$0xff]  ;;  %v7926_v56 = vld [vmem:[#allocation10 + $0x90] sm:$0xff] }
 0x52b   :  { %2744 = vmatpush.msra.mxu0 %v7537_v43  ;;  %2902 = vmatpush.msra.mxu1 %v7913_v18  ;;  %9977 = vst [vmem:[#allocation57_spill] sm:$0xff] %v7919_v52  ;;  %v7929_v43 = vld [vmem:[#allocation11 + $0x328] sm:$0xff] }
 0x52c   :  { %2784 = vmatpush.msra.mxu2 %v7916_v15  ;;  %2942 = vmatpush.msra.mxu3 %v7919_v52  ;;  %9978 = vst [vmem:[#allocation58_spill] sm:$0xff] %v7923_v53  ;;  %v7933_v15 = vld [vmem:[#allocation11 + $0x300] sm:$0xff]  ;;  %v7936_v52 = vld [vmem:[#allocation10 + $0x70] sm:$0xff] }
 0x52d   :  { %2745 = vmatpush.msra.mxu0 %v7543_v30  ;;  %2903 = vmatpush.msra.mxu1 %v7923_v53  ;;  %9979 = vst [vmem:[#allocation61_spill] sm:$0xff] %v7926_v56  ;;  %v7939_v30 = vld [vmem:[#allocation11 + $0x308] sm:$0xff] }
 0x52e   :  { %2785 = vmatpush.msra.mxu2 %v7926_v56  ;;  %9980 = vst [vmem:[#allocation27_spill] sm:$0xff] %v7929_v43  ;;  %2943 = vmatpush.msra.mxu3 %v7929_v43  ;;  %v7943_v56 = vld [vmem:[#allocation11 + $0x2e0] sm:$0xff]  ;;  %v7946_v43 = vld [vmem:[#allocation10 + $0x50] sm:$0xff] }
 0x52f   :  { %2746 = vmatpush.msra.mxu0 %v7549_v34  ;;  %9981 = vst [vmem:[#allocation62_spill] sm:$0xff] %v7933_v15  ;;  %2904 = vmatpush.msra.mxu1 %v7933_v15  ;;  %v7949_v34 = vld [vmem:[#allocation11 + $0x2e8] sm:$0xff] }
 0x530   :  { %9982 = vst [vmem:[#allocation65_spill] sm:$0xff] %v7936_v52  ;;  %2786 = vmatpush.msra.mxu2 %v7936_v52  ;;  %2944 = vmatpush.msra.mxu3 %v7939_v30  ;;  %v7953_v52 = vld [vmem:[#allocation11 + $0x2c0] sm:$0xff] }
 0x531   :  { %9983 = vst [vmem:[#allocation28_spill] sm:$0xff] %v7939_v30  ;;  %2747 = vmatpush.msra.mxu0 %v7555_v17  ;;  %2905 = vmatpush.msra.mxu1 %v7943_v56  ;;  %v7956_v30 = vld [vmem:[#allocation10 + $0x30] sm:$0xff]  ;;  %v7959_v17 = vld [vmem:[#allocation11 + $0x2c8] sm:$0xff] }
 0x532   :  { %9984 = vst [vmem:[#allocation66_spill] sm:$0xff] %v7943_v56  ;;  %2787 = vmatpush.msra.mxu2 %v7946_v43  ;;  %2945 = vmatpush.msra.mxu3 %v7949_v34 }
 0x533   :  { %9985 = vst [vmem:[#allocation69_spill] sm:$0xff] %v7946_v43  ;;  %2748 = vmatpush.msra.mxu0 %v7561_v29  ;;  %2906 = vmatpush.msra.mxu1 %v7953_v52  ;;  %v7963_v43 = vld [vmem:[#allocation11 + $0x2a0] sm:$0xff]  ;;  %v7971_v29 = vld [vmem:[#allocation11 + $0x2a8] sm:$0xff] }
 0x534   :  { %9986 = vst [vmem:[#allocation29_spill] sm:$0xff] %v7949_v34  ;;  %2788 = vmatpush.msra.mxu2 %v7956_v30  ;;  %2946 = vmatpush.msra.mxu3 %v7959_v17  ;;  %v7966_v34 = vld [vmem:[#allocation10 + $0x10] sm:$0xff] }
 0x535   :  { %9987 = vst [vmem:[#allocation70_spill] sm:$0xff] %v7953_v52  ;;  %2749 = vmatpush.msra.mxu0 %v7567_v31  ;;  %2907 = vmatpush.msra.mxu1 %v7963_v43  ;;  %v7977_v31 = vld [vmem:[#allocation11 + $0x1e0] sm:$0xff] }
 0x536   :  { %9988 = vst [vmem:[#allocation73_spill] sm:$0xff] %v7956_v30  ;;  %2789 = vmatpush.msra.mxu2 %v7966_v34  ;;  %2750 = vmatmul.f32.vlgmr.msra.gmra.mxu0 %v7816_v25  ;;  %v7974_v30 = vld [vmem:[#allocation11 + $0x280] sm:$0xff] }
 0x537   :  { %9989 = vst [vmem:[#allocation30_spill] sm:$0xff] %v7959_v17  ;;  %2790 = vmatmul.f32.vlgmr.msra.gmra.mxu2 %v7816_v25  ;;  %2947 = vmatpush.msra.mxu3 %v7971_v29  ;;  %v7986_v25 = vld [vmem:[#allocation11 + $0x260] sm:$0xff] }
 0x538   :  { %9990 = vst [vmem:[#allocation74_spill] sm:$0xff] %v7963_v43  ;;  %2908 = vmatpush.msra.mxu1 %v7974_v30  ;;  %2877 = vmatpush.msrb.mxu0 %v7977_v31  ;;  %v7980_v43 = vld [vmem:[#allocation11 + $0x288] sm:$0xff] }
 0x539   :  { %9991 = vst [vmem:[#allocation77_spill] sm:$0xff] %v7966_v34  ;;  %2948 = vmatpush.msra.mxu3 %v7980_v43  ;;  %v7983_v34 = vld [vmem:[#allocation11 + $0x1e8] sm:$0xff] }
 0x53a   :  { %9992 = vst [vmem:[#allocation31_spill] sm:$0xff] %v7971_v29  ;;  %2917 = vmatpush.msrb.mxu2 %v7983_v34  ;;  %2909 = vmatpush.msra.mxu1 %v7986_v25  ;;  %v7989_v29 = vld [vmem:[#allocation11 + $0x1c0] sm:$0xff] }
 0x53b   :  { %9993 = vst [vmem:[#allocation78_spill] sm:$0xff] %v7974_v30  ;;  %2878 = vmatpush.msrb.mxu0 %v7989_v29  ;;  %v7992_v30 = vld [vmem:[#allocation11 + $0x268] sm:$0xff] }
 0x53c   :  { %9994 = vst [vmem:[#allocation81_spill] sm:$0xff] %v7977_v31  ;;  %2949 = vmatpush.msra.mxu3 %v7992_v30  ;;  %v7995_v31 = vld [vmem:[#allocation11 + $0x1c8] sm:$0xff] }
 0x53d   :  { %9995 = vst [vmem:[#allocation32_spill] sm:$0xff] %v7980_v43  ;;  %2918 = vmatpush.msrb.mxu2 %v7995_v31  ;;  %v7998_v43 = vld [vmem:[#allocation11 + $0x240] sm:$0xff] }
 0x53e   :  { %9996 = vst [vmem:[#allocation82_spill] sm:$0xff] %v7983_v34  ;;  %2910 = vmatpush.msra.mxu1 %v7998_v43  ;;  %v8001_v34 = vld [vmem:[#allocation11 + $0x1a0] sm:$0xff] }
 0x53f   :  { %9997 = vst [vmem:[#allocation85_spill] sm:$0xff] %v7986_v25  ;;  %2879 = vmatpush.msrb.mxu0 %v8001_v34  ;;  %v8004_v25 = vld [vmem:[#allocation11 + $0x248] sm:$0xff] }
 0x540   :  { %9998 = vst [vmem:[#allocation33_spill] sm:$0xff] %v7989_v29  ;;  %2950 = vmatpush.msra.mxu3 %v8004_v25  ;;  %v8007_v29 = vld [vmem:[#allocation11 + $0x1a8] sm:$0xff] }
 0x541   :  { %9999 = vst [vmem:[#allocation86_spill] sm:$0xff] %v7992_v30  ;;  %2919 = vmatpush.msrb.mxu2 %v8007_v29  ;;  %v8010_v30 = vld [vmem:[#allocation11 + $0x220] sm:$0xff] }
 0x542   :  { %10000 = vst [vmem:[#allocation89_spill] sm:$0xff] %v7995_v31  ;;  %2911 = vmatpush.msra.mxu1 %v8010_v30  ;;  %v8013_v31 = vld [vmem:[#allocation11 + $0x180] sm:$0xff] }
 0x543   :  { %10001 = vst [vmem:[#allocation34_spill] sm:$0xff] %v7998_v43  ;;  %2880 = vmatpush.msrb.mxu0 %v8013_v31  ;;  %v8016_v43 = vld [vmem:[#allocation11 + $0x228] sm:$0xff] }
 0x544   :  { %10002 = vst [vmem:[#allocation91_spill] sm:$0xff] %v8001_v34  ;;  %2951 = vmatpush.msra.mxu3 %v8016_v43  ;;  %v8019_v34 = vld [vmem:[#allocation11 + $0x188] sm:$0xff] }
 0x545   :  { %10003 = vst [vmem:[#allocation94_spill] sm:$0xff] %v8004_v25  ;;  %2920 = vmatpush.msrb.mxu2 %v8019_v34  ;;  %v8022_v25 = vld [vmem:[#allocation11 + $0x200] sm:$0xff] }
 0x546   :  { %10004 = vst [vmem:[#allocation35_spill] sm:$0xff] %v8007_v29  ;;  %2912 = vmatpush.msra.mxu1 %v8022_v25  ;;  %v8025_v29 = vld [vmem:[#allocation11 + $0x160] sm:$0xff] }
 0x547   :  { %10005 = vst [vmem:[#allocation95_spill] sm:$0xff] %v8010_v30  ;;  %2881 = vmatpush.msrb.mxu0 %v8025_v29  ;;  %v8028_v30 = vld [vmem:[#allocation11 + $0x208] sm:$0xff] }
 0x548   :  { %10006 = vst [vmem:[#allocation98_spill] sm:$0xff] %v8013_v31  ;;  %2952 = vmatpush.msra.mxu3 %v8028_v30  ;;  %v8031_v31 = vld [vmem:[#allocation11 + $0x168] sm:$0xff] }
 0x549   :  { %10007 = vst [vmem:[#allocation36_spill] sm:$0xff] %v8016_v43  ;;  %2921 = vmatpush.msrb.mxu2 %v8031_v31  ;;  %v8034_v43 = vld [vmem:[#allocation11 + $0x3f0] sm:$0xff] }
 0x54a   :  { %10008 = vst [vmem:[#allocation51_spill] sm:$0xff] %v8019_v34  ;;  %2977 = vmatpush.msrb.mxu1 %v8034_v43  ;;  %v8037_v34 = vld [vmem:[#allocation11 + $0x3f8] sm:$0xff] }
 0x54b   :  { %10009 = vst [vmem:[#allocation52_spill] sm:$0xff] %v8022_v25  ;;  %3017 = vmatpush.msrb.mxu3 %v8037_v34  ;;  %v8040_v25 = vld [vmem:[#allocation11 + $0x140] sm:$0xff] }
 0x54c   :  { %10010 = vst [vmem:[#allocation99_spill] sm:$0xff] %v8025_v29  ;;  %2882 = vmatpush.msrb.mxu0 %v8040_v25  ;;  %v8043_v29 = vld [vmem:[#allocation11 + $0x148] sm:$0xff] }
 0x54d   :  { %10011 = vst [vmem:[#allocation55_spill] sm:$0xff] %v8028_v30  ;;  %2922 = vmatpush.msrb.mxu2 %v8043_v29  ;;  %v8046_v30 = vld [vmem:[#allocation11 + $0x3d0] sm:$0xff] }
 0x54e   :  { %10012 = vst [vmem:[#allocation102_spill] sm:$0xff] %v8031_v31  ;;  %2978 = vmatpush.msrb.mxu1 %v8046_v30  ;;  %v8049_v31 = vld [vmem:[#allocation11 + $0x3d8] sm:$0xff] }
 0x54f   :  { %10013 = vst [vmem:[#allocation56_spill] sm:$0xff] %v8034_v43  ;;  %3018 = vmatpush.msrb.mxu3 %v8049_v31  ;;  %v8052_v43 = vld [vmem:[#allocation11 + $0x120] sm:$0xff] }
 0x550   :  { %10014 = vst [vmem:[#allocation103_spill] sm:$0xff] %v8037_v34  ;;  %2883 = vmatpush.msrb.mxu0 %v8052_v43  ;;  %v8055_v34 = vld [vmem:[#allocation11 + $0x128] sm:$0xff] }
 0x551   :  { %10015 = vst [vmem:[#allocation59_spill] sm:$0xff] %v8040_v25  ;;  %2923 = vmatpush.msrb.mxu2 %v8055_v34  ;;  %v8058_v25 = vld [vmem:[#allocation11 + $0x3b0] sm:$0xff] }
 0x552   :  { %10016 = vst [vmem:[#allocation107_spill] sm:$0xff] %v8043_v29  ;;  %2979 = vmatpush.msrb.mxu1 %v8058_v25  ;;  %v8061_v29 = vld [vmem:[#allocation11 + $0x3b8] sm:$0xff] }
 0x553   :  { %10017 = vst [vmem:[#allocation60_spill] sm:$0xff] %v8046_v30  ;;  %3019 = vmatpush.msrb.mxu3 %v8061_v29  ;;  %v8064_v30 = vld [vmem:[#allocation11 + $0x100] sm:$0xff] }
 0x554   :  { %10018 = vst [vmem:[#allocation108_spill] sm:$0xff] %v8049_v31  ;;  %2884 = vmatpush.msrb.mxu0 %v8064_v30  ;;  %v8067_v31 = vld [vmem:[#allocation11 + $0x108] sm:$0xff] }
 0x555   :  { %10019 = vst [vmem:[#allocation63_spill] sm:$0xff] %v8052_v43  ;;  %2924 = vmatpush.msrb.mxu2 %v8067_v31  ;;  %v8070_v43 = vld [vmem:[#allocation11 + $0x390] sm:$0xff] }
 0x556   :  { %10020 = vst [vmem:[#allocation111_spill] sm:$0xff] %v8055_v34  ;;  %2980 = vmatpush.msrb.mxu1 %v8070_v43  ;;  %v8073_v34 = vld [vmem:[#allocation11 + $0x398] sm:$0xff] }
 0x557   :  { %10021 = vst [vmem:[#allocation64_spill] sm:$0xff] %v8058_v25  ;;  %3020 = vmatpush.msrb.mxu3 %v8073_v34  ;;  %v8076_v25 = vld [vmem:[#allocation11 + $0xe0] sm:$0xff] }
 0x558   :  { %10022 = vst [vmem:[#allocation113_spill] sm:$0xff] %v8061_v29  ;;  %2885 = vmatpush.msrb.mxu0 %v8076_v25  ;;  %v8079_v29 = vld [vmem:[#allocation11 + $0xe8] sm:$0xff] }
 0x559   :  { %10023 = vst [vmem:[#allocation67_spill] sm:$0xff] %v8064_v30  ;;  %2925 = vmatpush.msrb.mxu2 %v8079_v29  ;;  %v8082_v30 = vld [vmem:[#allocation11 + $0x370] sm:$0xff] }
 0x55a   :  { %10024 = vst [vmem:[#allocation116_spill] sm:$0xff] %v8067_v31  ;;  %2981 = vmatpush.msrb.mxu1 %v8082_v30  ;;  %v8085_v31 = vld [vmem:[#allocation11 + $0x378] sm:$0xff] }
 0x55b   :  { %10025 = vst [vmem:[#allocation68_spill] sm:$0xff] %v8070_v43  ;;  %3021 = vmatpush.msrb.mxu3 %v8085_v31  ;;  %v8088_v43 = vld [vmem:[#allocation11 + $0xc0] sm:$0xff] }
 0x55c   :  { %10026 = vst [vmem:[#allocation117_spill] sm:$0xff] %v8073_v34  ;;  %2886 = vmatpush.msrb.mxu0 %v8088_v43  ;;  %v8091_v34 = vld [vmem:[#allocation11 + $0xc8] sm:$0xff] }
 0x55d   :  { %10027 = vst [vmem:[#allocation71_spill] sm:$0xff] %v8076_v25  ;;  %2926 = vmatpush.msrb.mxu2 %v8091_v34  ;;  %v8094_v25 = vld [vmem:[#allocation11 + $0x350] sm:$0xff] }
 0x55e   :  { %10028 = vst [vmem:[#allocation72_spill] sm:$0xff] %v8079_v29  ;;  %2982 = vmatpush.msrb.mxu1 %v8094_v25  ;;  %v8097_v29 = vld [vmem:[#allocation11 + $0x358] sm:$0xff] }
 0x55f   :  { %10029 = vst [vmem:[#allocation75_spill] sm:$0xff] %v8082_v30  ;;  %3022 = vmatpush.msrb.mxu3 %v8097_v29  ;;  %v8100_v30 = vld [vmem:[#allocation11 + $0xa0] sm:$0xff] }
 0x560   :  { %10030 = vst [vmem:[#allocation76_spill] sm:$0xff] %v8085_v31  ;;  %2887 = vmatpush.msrb.mxu0 %v8100_v30  ;;  %v8103_v31 = vld [vmem:[#allocation11 + $0xa8] sm:$0xff] }
 0x561   :  { %10031 = vst [vmem:[#allocation79_spill] sm:$0xff] %v8088_v43  ;;  %2927 = vmatpush.msrb.mxu2 %v8103_v31  ;;  %v8106_v43 = vld [vmem:[#allocation11 + $0x330] sm:$0xff] }
 0x562   :  { %10032 = vst [vmem:[#allocation80_spill] sm:$0xff] %v8091_v34  ;;  %2983 = vmatpush.msrb.mxu1 %v8106_v43  ;;  %v8109_v34 = vld [vmem:[#allocation11 + $0x338] sm:$0xff] }
 0x563   :  { %10033 = vst [vmem:[#allocation83_spill] sm:$0xff] %v8094_v25  ;;  %3023 = vmatpush.msrb.mxu3 %v8109_v34  ;;  %v8112_v25 = vld [vmem:[#allocation11 + $0x80] sm:$0xff] }
 0x564   :  { %10034 = vst [vmem:[#allocation84_spill] sm:$0xff] %v8097_v29  ;;  %2888 = vmatpush.msrb.mxu0 %v8112_v25  ;;  %v8115_v29 = vld [vmem:[#allocation11 + $0x88] sm:$0xff] }
 0x565   :  { %10035 = vst [vmem:[#allocation87_spill] sm:$0xff] %v8100_v30  ;;  %2928 = vmatpush.msrb.mxu2 %v8115_v29  ;;  %v8118_v30 = vld [vmem:[#allocation11 + $0x310] sm:$0xff] }
 0x566   :  { %10036 = vst [vmem:[#allocation88_spill] sm:$0xff] %v8103_v31  ;;  %2984 = vmatpush.msrb.mxu1 %v8118_v30  ;;  %v8121_v31 = vld [vmem:[#allocation11 + $0x318] sm:$0xff] }
 0x567   :  { %10037 = vst [vmem:[#allocation92_spill] sm:$0xff] %v8106_v43  ;;  %3024 = vmatpush.msrb.mxu3 %v8121_v31  ;;  %v8124_v43 = vld [vmem:[#allocation11 + $0x60] sm:$0xff] }
 0x568   :  { %10038 = vst [vmem:[#allocation93_spill] sm:$0xff] %v8109_v34  ;;  %2889 = vmatpush.msrb.mxu0 %v8124_v43  ;;  %v8127_v34 = vld [vmem:[#allocation11 + $0x68] sm:$0xff] }
 0x569   :  { %10039 = vst [vmem:[#allocation96_spill] sm:$0xff] %v8112_v25  ;;  %2929 = vmatpush.msrb.mxu2 %v8127_v34  ;;  %v8130_v25 = vld [vmem:[#allocation11 + $0x2f0] sm:$0xff] }
 0x56a   :  { %10040 = vst [vmem:[#allocation97_spill] sm:$0xff] %v8115_v29  ;;  %2985 = vmatpush.msrb.mxu1 %v8130_v25  ;;  %v8133_v29 = vld [vmem:[#allocation11 + $0x2f8] sm:$0xff] }
 0x56b   :  { %10041 = vst [vmem:[#allocation100_spill] sm:$0xff] %v8118_v30  ;;  %3025 = vmatpush.msrb.mxu3 %v8133_v29  ;;  %v8136_v30 = vld [vmem:[#allocation11 + $0x40] sm:$0xff] }
 0x56c   :  { %10042 = vst [vmem:[#allocation101_spill] sm:$0xff] %v8121_v31  ;;  %2890 = vmatpush.msrb.mxu0 %v8136_v30  ;;  %v8139_v31 = vld [vmem:[#allocation11 + $0x48] sm:$0xff] }
 0x56d   :  { %10043 = vst [vmem:[#allocation105_spill] sm:$0xff] %v8124_v43  ;;  %2930 = vmatpush.msrb.mxu2 %v8139_v31  ;;  %v8142_v43 = vld [vmem:[#allocation11 + $0x2d0] sm:$0xff] }
 0x56e   :  { %10044 = vst [vmem:[#allocation106_spill] sm:$0xff] %v8127_v34  ;;  %2986 = vmatpush.msrb.mxu1 %v8142_v43  ;;  %v8145_v34 = vld [vmem:[#allocation11 + $0x2d8] sm:$0xff] }
 0x56f   :  { %10045 = vst [vmem:[#allocation109_spill] sm:$0xff] %v8130_v25  ;;  %3026 = vmatpush.msrb.mxu3 %v8145_v34  ;;  %v8148_v25 = vld [vmem:[#allocation11 + $0x20] sm:$0xff] }
 0x570   :  { %10046 = vst [vmem:[#allocation110_spill] sm:$0xff] %v8133_v29  ;;  %2891 = vmatpush.msrb.mxu0 %v8148_v25  ;;  %v8151_v29 = vld [vmem:[#allocation11 + $0x28] sm:$0xff] }
 0x571   :  { %10047 = vst [vmem:[#allocation114_spill] sm:$0xff] %v8136_v30  ;;  %2931 = vmatpush.msrb.mxu2 %v8151_v29  ;;  %v8154_v30 = vld [vmem:[#allocation11 + $0x2b0] sm:$0xff] }
 0x572   :  { %10048 = vst [vmem:[#allocation115_spill] sm:$0xff] %v8139_v31  ;;  %2987 = vmatpush.msrb.mxu1 %v8154_v30  ;;  %v8157_v31 = vld [vmem:[#allocation11 + $0x2b8] sm:$0xff] }
 0x573   :  { %10049 = vst [vmem:[#allocation120_spill] sm:$0xff] %v8142_v43  ;;  %3027 = vmatpush.msrb.mxu3 %v8157_v31  ;;  %v8160_v43 = vld [vmem:[#allocation11] sm:$0xff] }
 0x574   :  { %10050 = vst [vmem:[#allocation121_spill] sm:$0xff] %v8145_v34  ;;  %2892 = vmatpush.msrb.mxu0 %v8160_v43  ;;  %v8163_v34 = vld [vmem:[#allocation11 + $0x8] sm:$0xff] }
 0x575   :  { %10051 = vst [vmem:[#allocation37_spill] sm:$0xff] %v8148_v25  ;;  %2932 = vmatpush.msrb.mxu2 %v8163_v34  ;;  %v8166_v25 = vld [vmem:[#allocation11 + $0x290] sm:$0xff] }
 0x576   :  { %10052 = vst [vmem:[#allocation124_spill] sm:$0xff] %v8151_v29  ;;  %2988 = vmatpush.msrb.mxu1 %v8166_v25  ;;  %v8169_v29 = vld [vmem:[#allocation11 + $0x298] sm:$0xff] }
 0x577   :  { %10053 = vst [vmem:[#allocation125_spill] sm:$0xff] %v8154_v30  ;;  %3028 = vmatpush.msrb.mxu3 %v8169_v29  ;;  %v8172_v30 = vld [vmem:[#allocation11 + $0x1f0] sm:$0xff] }
 0x578   :  { %10054 = vst [vmem:[#allocation126_spill] sm:$0xff] %v8157_v31  ;;  %2957 = vmatpush.msra.mxu0 %v8172_v30  ;;  %v8175_v31 = vld [vmem:[#allocation11 + $0x1f8] sm:$0xff] }
 0x579   :  { %10055 = vst [vmem:[#allocation127_spill] sm:$0xff] %v8160_v43  ;;  %2997 = vmatpush.msra.mxu2 %v8175_v31  ;;  %v8178_v43 = vld [vmem:[#allocation11 + $0x270] sm:$0xff] }
 0x57a   :  { %10056 = vst [vmem:[#allocation128_spill] sm:$0xff] %v8163_v34  ;;  %2989 = vmatpush.msrb.mxu1 %v8178_v43  ;;  %v8181_v34 = vld [vmem:[#allocation11 + $0x278] sm:$0xff] }
 0x57b   :  { %10057 = vst [vmem:[#allocation129_spill] sm:$0xff] %v8166_v25  ;;  %3029 = vmatpush.msrb.mxu3 %v8181_v34  ;;  %v8184_v25 = vld [vmem:[#allocation11 + $0x1d0] sm:$0xff] }
 0x57c   :  { %10058 = vst [vmem:[#allocation130_spill] sm:$0xff] %v8169_v29  ;;  %2958 = vmatpush.msra.mxu0 %v8184_v25  ;;  %v8187_v29 = vld [vmem:[#allocation11 + $0x1d8] sm:$0xff] }
 0x57d   :  { %10059 = vst [vmem:[#allocation131_spill] sm:$0xff] %v8172_v30  ;;  %2998 = vmatpush.msra.mxu2 %v8187_v29  ;;  %v8190_v30 = vld [vmem:[#allocation11 + $0x250] sm:$0xff] }
 0x57e   :  { %10060 = vst [vmem:[#allocation132_spill] sm:$0xff] %v8175_v31  ;;  %2990 = vmatpush.msrb.mxu1 %v8190_v30  ;;  %v8193_v31 = vld [vmem:[#allocation11 + $0x258] sm:$0xff] }
 0x57f   :  { %10061 = vst [vmem:[#allocation133_spill] sm:$0xff] %v8178_v43  ;;  %3030 = vmatpush.msrb.mxu3 %v8193_v31  ;;  %v8196_v43 = vld [vmem:[#allocation11 + $0x1b0] sm:$0xff] }
 0x580   :  { %10062 = vst [vmem:[#allocation134_spill] sm:$0xff] %v8181_v34  ;;  %2959 = vmatpush.msra.mxu0 %v8196_v43  ;;  %v8199_v34 = vld [vmem:[#allocation11 + $0x1b8] sm:$0xff]  ;;  %v2580_v52 = vpop.f32.mrf.mxu3 }
 0x581   :  { %10063 = vst [vmem:[#allocation135_spill] sm:$0xff] %v8184_v25  ;;  %2999 = vmatpush.msra.mxu2 %v8199_v34  ;;  %v8202_v25 = vld [vmem:[#allocation11 + $0x230] sm:$0xff] }
 0x582   :  { %10064 = vst [vmem:[#allocation136_spill] sm:$0xff] %v8187_v29  ;;  %2991 = vmatpush.msrb.mxu1 %v8202_v25  ;;  %v8205_v29 = vld [vmem:[#allocation11 + $0x238] sm:$0xff] }
 0x583   :  { %10065 = vst [vmem:[#allocation137_spill] sm:$0xff] %v8190_v30  ;;  %3031 = vmatpush.msrb.mxu3 %v8205_v29  ;;  %v8208_v30 = vld [vmem:[#allocation11 + $0x190] sm:$0xff] }
 0x584   :  { %10066 = vst [vmem:[#allocation138_spill] sm:$0xff] %v8193_v31  ;;  %2960 = vmatpush.msra.mxu0 %v8208_v30  ;;  %v8211_v31 = vld [vmem:[#allocation11 + $0x198] sm:$0xff] }
 0x585   :  { %10067 = vst [vmem:[#allocation139_spill] sm:$0xff] %v8196_v43  ;;  %3000 = vmatpush.msra.mxu2 %v8211_v31  ;;  %v8214_v43 = vld [vmem:[#allocation11 + $0x210] sm:$0xff] }
 0x586   :  { %10068 = vst [vmem:[#allocation140_spill] sm:$0xff] %v8199_v34  ;;  %2992 = vmatpush.msrb.mxu1 %v8214_v43  ;;  %v8217_v34 = vld [vmem:[#allocation11 + $0x218] sm:$0xff] }
 0x587   :  { %10069 = vst [vmem:[#allocation141_spill] sm:$0xff] %v8202_v25  ;;  %3032 = vmatpush.msrb.mxu3 %v8217_v34  ;;  %v8220_v25 = vld [vmem:[#allocation11 + $0x170] sm:$0xff] }
 0x588   :  { %10070 = vst [vmem:[#allocation142_spill] sm:$0xff] %v8205_v29  ;;  %2961 = vmatpush.msra.mxu0 %v8220_v25  ;;  %v8223_v29 = vld [vmem:[#allocation11 + $0x178] sm:$0xff]  ;;  %v2660_v62 = vpop.f32.mrf.mxu3 }
 0x589   :  { %10071 = vst [vmem:[#allocation143_spill] sm:$0xff] %v8208_v30  ;;  %3001 = vmatpush.msra.mxu2 %v8223_v29  ;;  %v8226_v30 = vld [vmem:[#allocation11 + $0x150] sm:$0xff] }
 0x58a   :  { %10072 = vst [vmem:[#allocation144_spill] sm:$0xff] %v8211_v31  ;;  %2962 = vmatpush.msra.mxu0 %v8226_v30  ;;  %v8229_v31 = vld [vmem:[#allocation11 + $0x158] sm:$0xff] }
 0x58b   :  { %10073 = vst [vmem:[#allocation145_spill] sm:$0xff] %v8214_v43  ;;  %3002 = vmatpush.msra.mxu2 %v8229_v31  ;;  %v8232_v43 = vld [vmem:[#allocation11 + $0x130] sm:$0xff] }
 0x58c   :  { %10074 = vst [vmem:[#allocation146_spill] sm:$0xff] %v8217_v34  ;;  %2963 = vmatpush.msra.mxu0 %v8232_v43  ;;  %v8235_v34 = vld [vmem:[#allocation11 + $0x138] sm:$0xff] }
 0x58d   :  { %10075 = vst [vmem:[#allocation147_spill] sm:$0xff] %v8220_v25  ;;  %3003 = vmatpush.msra.mxu2 %v8235_v34  ;;  %v8238_v25 = vld [vmem:[#allocation11 + $0x110] sm:$0xff] }
 0x58e   :  { %10076 = vst [vmem:[#allocation148_spill] sm:$0xff] %v8223_v29  ;;  %2964 = vmatpush.msra.mxu0 %v8238_v25  ;;  %v8241_v29 = vld [vmem:[#allocation11 + $0x118] sm:$0xff] }
 0x58f   :  { %10077 = vst [vmem:[#allocation149_spill] sm:$0xff] %v8226_v30  ;;  %3004 = vmatpush.msra.mxu2 %v8241_v29  ;;  %v8244_v30 = vld [vmem:[#allocation11 + $0xf0] sm:$0xff] }
 0x590   :  { %10078 = vst [vmem:[#allocation150_spill] sm:$0xff] %v8229_v31  ;;  %2965 = vmatpush.msra.mxu0 %v8244_v30  ;;  %v8247_v31 = vld [vmem:[#allocation11 + $0xf8] sm:$0xff] }
 0x591   :  { %10079 = vst [vmem:[#allocation151_spill] sm:$0xff] %v8232_v43  ;;  %3005 = vmatpush.msra.mxu2 %v8247_v31  ;;  %v8250_v43 = vld [vmem:[#allocation11 + $0xd0] sm:$0xff] }
 0x592   :  { %10080 = vst [vmem:[#allocation152_spill] sm:$0xff] %v8235_v34  ;;  %2966 = vmatpush.msra.mxu0 %v8250_v43  ;;  %v8253_v34 = vld [vmem:[#allocation11 + $0xd8] sm:$0xff]  ;;  %v2520_v17 = vpop.f32.mrf.mxu0 }
 0x593   :  { %10081 = vst [vmem:[#allocation153_spill] sm:$0xff] %v8238_v25  ;;  %3006 = vmatpush.msra.mxu2 %v8253_v34  ;;  %v8256_v25 = vld [vmem:[#allocation11 + $0xb0] sm:$0xff] }
 0x594   :  { %10082 = vst [vmem:[#allocation154_spill] sm:$0xff] %v8241_v29  ;;  %2967 = vmatpush.msra.mxu0 %v8256_v25  ;;  %v8259_v29 = vld [vmem:[#allocation11 + $0xb8] sm:$0xff] }
 0x595   :  { %10083 = vst [vmem:[#allocation155_spill] sm:$0xff] %v8244_v30  ;;  %3007 = vmatpush.msra.mxu2 %v8259_v29  ;;  %v8262_v30 = vld [vmem:[#allocation11 + $0x90] sm:$0xff] }
 0x596   :  { %10084 = vst [vmem:[#allocation156_spill] sm:$0xff] %v8247_v31  ;;  %2968 = vmatpush.msra.mxu0 %v8262_v30  ;;  %v8265_v31 = vld [vmem:[#allocation11 + $0x98] sm:$0xff] }
 0x597   :  { %10085 = vst [vmem:[#allocation157_spill] sm:$0xff] %v8250_v43  ;;  %3008 = vmatpush.msra.mxu2 %v8265_v31  ;;  %v8268_v43 = vld [vmem:[#allocation11 + $0x70] sm:$0xff] }
 0x598   :  { %10086 = vst [vmem:[#allocation158_spill] sm:$0xff] %v8253_v34  ;;  %2969 = vmatpush.msra.mxu0 %v8268_v43  ;;  %v8271_v34 = vld [vmem:[#allocation11 + $0x78] sm:$0xff]  ;;  %v2560_v53 = vpop.f32.mrf.mxu2 }
 0x599   :  { %10087 = vst [vmem:[#allocation159_spill] sm:$0xff] %v8256_v25  ;;  %3009 = vmatpush.msra.mxu2 %v8271_v34  ;;  %v8274_v25 = vld [vmem:[#allocation11 + $0x50] sm:$0xff] }
 0x59a   :  { %10088 = vst [vmem:[#allocation160_spill] sm:$0xff] %v8259_v29  ;;  %2970 = vmatpush.msra.mxu0 %v8274_v25  ;;  %v8277_v29 = vld [vmem:[#allocation11 + $0x58] sm:$0xff] }
 0x59b   :  { %10089 = vst [vmem:[#allocation161_spill] sm:$0xff] %v8262_v30  ;;  %3010 = vmatpush.msra.mxu2 %v8277_v29  ;;  %v8280_v30 = vld [vmem:[#allocation11 + $0x30] sm:$0xff] }
 0x59c   :  { %10090 = vst [vmem:[#allocation162_spill] sm:$0xff] %v8265_v31  ;;  %2971 = vmatpush.msra.mxu0 %v8280_v30  ;;  %v8283_v31 = vld [vmem:[#allocation11 + $0x38] sm:$0xff] }
 0x59d   :  { %10091 = vst [vmem:[#allocation163_spill] sm:$0xff] %v8268_v43  ;;  %3011 = vmatpush.msra.mxu2 %v8283_v31  ;;  %v8286_v43 = vld [vmem:[#allocation11 + $0x10] sm:$0xff] }
 0x59e   :  { %10092 = vst [vmem:[#allocation164_spill] sm:$0xff] %v8271_v34  ;;  %2972 = vmatpush.msra.mxu0 %v8286_v43  ;;  %v8289_v34 = vld [vmem:[#allocation11 + $0x18] sm:$0xff] }
 0x59f   :  { %10093 = vst [vmem:[#allocation165_spill] sm:$0xff] %v8274_v25  ;;  %3012 = vmatpush.msra.mxu2 %v8289_v34  ;;  %v2540_v25 = vpop.f32.mrf.mxu1 }
 0x5a0   :  { %10094 = vst [vmem:[#allocation166_spill] sm:$0xff] %v8277_v29  ;;  %v2521_v29 = vadd.f32 %v2520_v17, %v9953_v6 }
 0x5a1   :  { %10095 = vst [vmem:[#allocation167_spill] sm:$0xff] %v8280_v30  ;;  %v2640_v49 = vpop.f32.mrf.mxu2 }
 0x5a2   :  { %10096 = vst [vmem:[#allocation168_spill] sm:$0xff] %v8283_v31  ;;  %v2541_v15 = vadd.f32 %v2540_v25, %v2521_v29  ;;  %v2561_v31 = vadd.f32 %v2560_v53, %v9954_v14  ;;  %v2641_v29 = vadd.f32 %v2640_v49, %v9956_v12  ;;  %v2600_v25 = vpop.f32.mrf.mxu0 }
 0x5a3   :  { %10097 = vst [vmem:[#allocation169_spill] sm:$0xff] %v8286_v43  ;;  %v2811_v53 = vpop.f32.mrf.mxu3 }
 0x5a4   :  { %10098 = vst [vmem:[#allocation170_spill] sm:$0xff] %v8289_v34  ;;  %v3651_v30 = vmul.f32 -1.442695, %v2541_v15  ;;  %v2581_v18 = vadd.f32 %v2580_v52, %v2561_v31  ;;  %v2729_v31 = vrot.slane %v9957_v59, 4 }
 0x5a6   :  { %3859 = vpow2.f32 %v3651_v30  ;;  %v3652_v37 = vmul.f32 -1.442695, %v2581_v18  ;;  %v2661_v30 = vadd.f32 %v2660_v62, %v2641_v29 }
 0x5a7   :  { %v2620_v56 = vpop.f32.mrf.mxu1 }
 0x5a8   :  { %3861 = vpow2.f32 %v3652_v37  ;;  %v3653_v52 = vmul.f32 -1.442695, %v2661_v30 }
 0x5ac   :  { %v3860_v34 = vpop.eup %3859 }
 0x5ad   :  { %v2666_v46 = vadd.f32 1.0, %v3860_v34 }
 0x5ae   :  { %v3862_v15 = vpop.eup %3861 }
 0x5af   :  { %v2771_v43 = vpop.f32.mrf.mxu1  ;;  %3863 = vrcp.f32 %v2666_v46  ;;  %v2685_v6 = vadd.f32 1.0, %v3862_v15  ;;  %v2678_v30 = vand.u32 2147483648, %v2666_v46  ;;  %vm2672_vm3 = vweird.f32 %v2666_v46 }
 0x5b0   :  { %v2772_v5 = vadd.f32 %v2771_v43, %v2727_v3  ;;  %v2601_v3 = vadd.f32 %v2600_v25, %v9958_v11  ;;  %v2812_v43 = vadd.f32 %v2811_v53, %v2729_v31  ;;  %v2676_v25 = vand.u32 2147483647, %v2666_v46 }
 0x5b1   :  { %v2697_v53 = vand.u32 2147483648, %v2685_v6  ;;  %v2726_v31 = vrot.slane %v7376_v27, 4  ;;  %vm2691_vm7 = vweird.f32 %v2685_v6 }
 0x5b2   :  { %v3655_v17 = vmul.f32 -1.442695, %v2772_v5  ;;  %v2621_v40 = vadd.f32 %v2620_v56, %v2601_v3  ;;  %v3656_v12 = vmul.f32 -1.442695, %v2812_v43  ;;  %v2695_v56 = vand.u32 2147483647, %v2685_v6 }
 0x5b3   :  { %v2679_v43 = vor.u32 1.1754944e-38, %v2678_v30  ;;  %vm2677_vm8 = vcmp.eq.f32.partialorder %v2676_v25, 8.507059e+37 }
 0x5b4   :  { %3865 = vpow2.f32 %v3655_v17  ;;  %vm2696_vm12 = vcmp.eq.f32.partialorder %v2695_v56, 8.507059e+37 }
 0x5b5   :  { %v3864_v18 = vpop.eup %3863  ;;  %3867 = vrcp.f32 %v2685_v6 }
 0x5b6   :  { %v2668_v37 = vmul.f32 %v3864_v18, %v2666_v46  ;;  %3869 = vpow2.f32 %v3653_v52  ;;  %vm2673_vm2 = vweird.f32 %v3864_v18 }
 0x5b7   :  { %3871 = vtanh.f32 %v2621_v40  ;;  %vm8300_vm4 = vmor %vm2672_vm3, %vm2673_vm2  ;;  %v2751_v40 = vpop.f32.mrf.mxu0 }
 0x5b8   :  { %v2669_v34 = vsub.f32 1.0, %v2668_v37  ;;  %3873 = vpow2.f32 %v3656_v12  ;;  %v2752_v46 = vadd.f32 %v2751_v40, %v2726_v31 }
 0x5ba   :  { %v3866_v5 = vpop.eup %3865  ;;  %v2670_v49 = vmul.f32 %v3864_v18, %v2669_v34 }
 0x5bb   :  { %v3868_v14 = vpop.eup %3867  ;;  %v8298_v15 = vadd.f32 1.0, %v3866_v5  ;;  %v2698_v5 = vor.u32 1.1754944e-38, %v2697_v53 }
 0x5bc   :  { %v3870_v62 = vpop.eup %3869  ;;  %v2687_v29 = vmul.f32 %v3868_v14, %v2685_v6  ;;  %v2671_v17 = vadd.f32 %v3864_v18, %v2670_v49  ;;  %vm2692_vm6 = vweird.f32 %v3868_v14 }
 0x5bd   :  { %v2705_v59 = vadd.f32 1.0, %v3870_v62  ;;  %v3872_v34 = vpop.eup %3871  ;;  %vm2693_vm11 = vmor %vm2691_vm7, %vm2692_vm6  ;;  %vm2842_vm2 = vweird.f32 %v8298_v15 }
 0x5be   :  { %v2688_v54 = vsub.f32 1.0, %v2687_v29  ;;  %v2675_v37 = vsel %vm8300_vm4, %v3864_v18, %v2671_v17  ;;  %v3874_v62 = vpop.eup %3873 }
 0x5bf   :  { %3875 = vrcp.f32 %v2705_v59  ;;  %v2680_v49 = vsel %vm2677_vm8, %v2679_v43, %v2675_v37  ;;  %v8315_v31 = vadd.f32 1.0, %v3874_v62  ;;  %v2717_v56 = vand.u32 2147483648, %v2705_v59  ;;  %v2791_v62 = vpop.f32.mrf.mxu2 }
 0x5c0   :  { %v2689_v3 = vmul.f32 %v3868_v14, %v2688_v54  ;;  %3877 = vrcp.f32 %v8298_v15  ;;  %v3654_v54 = vmul.f32 -1.442695, %v2752_v46  ;;  %v2722_v17 = vmul.f32 %v3872_v34, %v2680_v49 }
 0x5c1   :  { %vm2711_vm14 = vweird.f32 %v2705_v59 }
 0x5c2   :  { %v2690_v12 = vadd.f32 %v3868_v14, %v2689_v3  ;;  %3879 = vpow2.f32 %v3654_v54  ;;  %v2715_v3 = vand.u32 2147483647, %v2705_v59 }
 0x5c4   :  { %v2694_v29 = vsel %vm2693_vm11, %v3868_v14, %v2690_v12  ;;  %v2718_v12 = vor.u32 1.1754944e-38, %v2717_v56  ;;  %vm2716_vm0 = vcmp.eq.f32.partialorder %v2715_v3, 8.507059e+37 }
 0x5c5   :  { %v3876_v27 = vpop.eup %3875  ;;  %v2699_v11 = vsel %vm2696_vm12, %v2698_v5, %v2694_v29  ;;  %v2728_v29 = vrot.slane %v7401_v21, 4 }
 0x5c6   :  { %v8308_v52 = vpop.eup %3877  ;;  %v2721_v18 = vmul.f32 %v2699_v11, %v7700_v63  ;;  %v2707_v30 = vmul.f32 %v3876_v27, %v2705_v59  ;;  %vm2712_vm13 = vweird.f32 %v3876_v27 }
 0x5c7   :  { %v2838_v53 = vmul.f32 %v8308_v52, %v8298_v15  ;;  %vm2713_vm15 = vmor %vm2711_vm14, %vm2712_vm13  ;;  %v2792_v54 = vadd.f32 %v2791_v62, %v2728_v29  ;;  %vm2843_vm1 = vweird.f32 %v8308_v52  ;;  %vm2862_vm13 = vweird.f32 %v8315_v31  ;;  %v10112_v62 = vld [vmem:[#allocation49_spill] sm:$0xff]  ;;  %v10113_v29 = vld [vmem:[#allocation50_spill] sm:$0xff] }
 0x5c8   :  { %v8311_v6 = vadd.f32 %v2722_v17, %v2721_v18  ;;  %v2708_v25 = vsub.f32 1.0, %v2707_v30  ;;  %v3880_v37 = vpop.eup %3879  ;;  %v2848_v30 = vand.u32 2147483648, %v8298_v15  ;;  %vm8340_vm3 = vmor %vm2842_vm2, %vm2843_vm1 }
 0x5c9   :  { %v2817_v63 = vadd.f32 1.0, %v3880_v37  ;;  %v2839_v40 = vsub.f32 1.0, %v2838_v53  ;;  %v10120_v53 = vld [vmem:[#allocation62_spill] sm:$0xff] }
 0x5ca   :  { %3881 = vtanh.f32 %v8311_v6  ;;  %v2709_v14 = vmul.f32 %v3876_v27, %v2708_v25 }
 0x5cb   :  { %3883 = vrcp.f32 %v8315_v31  ;;  %v2840_v49 = vmul.f32 %v8308_v52, %v2839_v40  ;;  %vm2823_vm6 = vweird.f32 %v2817_v63 }
 0x5cc   :  { %v2710_v11 = vadd.f32 %v3876_v27, %v2709_v14  ;;  %3885 = vrcp.f32 %v2817_v63  ;;  %v2827_v14 = vand.u32 2147483647, %v2817_v63 }
 0x5cd   :  { %v2841_v17 = vadd.f32 %v8308_v52, %v2840_v49  ;;  %3887 = vtanh.f32 %v2792_v54  ;;  %v10111_v49 = vld [vmem:[#allocation48_spill] sm:$0xff]  ;;  %v10115_v54 = vld [vmem:[#allocation54_spill] sm:$0xff] }
 0x5ce   :  { %v2714_v43 = vsel %vm2713_vm15, %v3876_v27, %v2710_v11  ;;  %vm2828_vm11 = vcmp.eq.f32.partialorder %v2827_v14, 8.507059e+37  ;;  %v4534_v14 = vld [vmem:[#allocation10 + $0x40] sm:$0xff] }
 0x5cf   :  { %v2719_v34 = vsel %vm2716_vm0, %v2718_v12, %v2714_v43  ;;  %v2845_v56 = vsel %vm8340_vm3, %v8308_v52, %v2841_v17  ;;  %v10106_v43 = vld [vmem:[#allocation123_spill] sm:$0xff]  ;;  %v10107_v12 = vld [vmem:[#allocation44_spill] sm:$0xff] }
 0x5d0   :  { %v3882_v46 = vpop.eup %3881  ;;  %v4532_v17 = vld [vmem:[#allocation10 + $0x80] sm:$0xff] }
 0x5d1   :  { %v8319_v5 = vmul.f32 %v3882_v46, %v2719_v34  ;;  %v8325_v59 = vpop.eup %3883  ;;  %v10108_v46 = vld [vmem:[#allocation45_spill] sm:$0xff]  ;;  %v10110_v34 = vld [vmem:[#allocation47_spill] sm:$0xff] }
 0x5d2   :  { %v3886_v27 = vpop.eup %3885  ;;  %v2858_v25 = vmul.f32 %v8325_v59, %v8315_v31  ;;  %vm2863_vm12 = vweird.f32 %v8325_v59 }
 0x5d3   :  { %2913 = vmatmul.f32.vlgmr.msra.gmra.mxu1 %v8319_v5  ;;  %2953 = vmatmul.f32.vlgmr.msra.gmra.mxu3 %v8319_v5  ;;  %v2819_v18 = vmul.f32 %v3886_v27, %v2817_v63  ;;  %vm2824_vm4 = vweird.f32 %v3886_v27  ;;  %vm2864_vm14 = vmor %vm2862_vm13, %vm2863_vm12 }
 0x5d4   :  { %3128 = vmatpush.msra.mxu1 %v7719_v36  ;;  %3168 = vmatpush.msra.mxu3 %v7722_v38  ;;  %v2846_v38 = vand.u32 2147483647, %v8298_v15  ;;  %v2859_v15 = vsub.f32 1.0, %v2858_v25  ;;  %vm2825_vm8 = vmor %vm2823_vm6, %vm2824_vm4  ;;  %v10118_v25 = vld [vmem:[#allocation61_spill] sm:$0xff] }
 0x5d5   :  { %v2820_v36 = vsub.f32 1.0, %v2819_v18  ;;  %v10116_v18 = vld [vmem:[#allocation57_spill] sm:$0xff] }
 0x5d6   :  { %3129 = vmatpush.msra.mxu1 %v7731_v55  ;;  %3169 = vmatpush.msra.mxu3 %v7734_v51  ;;  %v2829_v55 = vand.u32 2147483648, %v2817_v63  ;;  %vm2847_vm7 = vcmp.eq.f32.partialorder %v2846_v38, 8.507059e+37  ;;  %v4533_v38 = vld [vmem:[#allocation10 + $0x60] sm:$0xff] }
 0x5d7   :  { %v2821_v51 = vmul.f32 %v3886_v27, %v2820_v36  ;;  %v10119_v36 = vld [vmem:[#allocation27_spill] sm:$0xff] }
 0x5d8   :  { %3130 = vmatpush.msra.mxu1 %v7744_v0  ;;  %3170 = vmatpush.msra.mxu3 %v7747_v33  ;;  %v2849_v0 = vor.u32 1.1754944e-38, %v2848_v30  ;;  %v2830_v3 = vor.u32 1.1754944e-38, %v2829_v55  ;;  %v10117_v30 = vld [vmem:[#allocation58_spill] sm:$0xff]  ;;  %v10121_v55 = vld [vmem:[#allocation65_spill] sm:$0xff] }
 0x5d9   :  { %v2822_v33 = vadd.f32 %v3886_v27, %v2821_v51  ;;  %v10122_v51 = vld [vmem:[#allocation28_spill] sm:$0xff] }
 0x5da   :  { %3131 = vmatpush.msra.mxu1 %v7754_v8  ;;  %3171 = vmatpush.msra.mxu3 %v7757_v44  ;;  %v2850_v52 = vsel %vm2847_vm7, %v2849_v0, %v2845_v56  ;;  %v3888_v8 = vpop.eup %3887  ;;  %v2860_v44 = vmul.f32 %v8325_v59, %v2859_v15  ;;  %v10123_v56 = vld [vmem:[#allocation66_spill] sm:$0xff]  ;;  %v10124_v0 = vld [vmem:[#allocation69_spill] sm:$0xff] }
 0x5db   :  { %2993 = vmatmul.f32.vlgmr.msrb.gmra.mxu1 %v8319_v5  ;;  %3033 = vmatmul.f32.vlgmr.msrb.gmra.mxu3 %v8319_v5  ;;  %v2826_v37 = vsel %vm2825_vm8, %v3886_v27, %v2822_v33  ;;  %v2872_v63 = vmul.f32 %v2850_v52, %v7783_v50  ;;  %v10114_v27 = vld [vmem:[#allocation53_spill] sm:$0xff]  ;;  %v4535_v33 = vld [vmem:[#allocation10 + $0x20] sm:$0xff] }
 0x5dc   :  { %3132 = vmatpush.msra.mxu1 %v7763_v2  ;;  %3172 = vmatpush.msra.mxu3 %v7766_v42  ;;  %v2831_v11 = vsel %vm2828_vm11, %v2830_v3, %v2826_v37  ;;  %v2861_v42 = vadd.f32 %v8325_v59, %v2860_v44  ;;  %v10125_v15 = vld [vmem:[#allocation29_spill] sm:$0xff]  ;;  %v10126_v3 = vld [vmem:[#allocation70_spill] sm:$0xff] }
 0x5dd   :  { %v2873_v40 = vmul.f32 %v3888_v8, %v2831_v11  ;;  %v10127_v52 = vld [vmem:[#allocation73_spill] sm:$0xff]  ;;  %v10128_v37 = vld [vmem:[#allocation30_spill] sm:$0xff]  ;;  %v4536_v8 = vld [vmem:[#allocation10] sm:$0xff] }
 0x5de   :  { %3133 = vmatpush.msra.mxu1 %v7770_v10  ;;  %3173 = vmatpush.msra.mxu3 %v7773_v16  ;;  %v2868_v10 = vand.u32 2147483648, %v8315_v31  ;;  %v2866_v16 = vand.u32 2147483647, %v8315_v31  ;;  %v10105_v31 = vld [vmem:[#allocation38_spill] sm:$0xff]  ;;  %v10130_v11 = vld [vmem:[#allocation77_spill] sm:$0xff] }
 0x5df   :  { %v8359_v2 = vadd.f32 %v2873_v40, %v2872_v63  ;;  %v10129_v44 = vld [vmem:[#allocation74_spill] sm:$0xff]  ;;  %v10131_v63 = vld [vmem:[#allocation81_spill] sm:$0xff]  ;;  %v10132_v40 = vld [vmem:[#allocation31_spill] sm:$0xff] }
 0x5e0   :  { %3134 = vmatpush.msra.mxu1 %v7777_v26  ;;  %3174 = vmatpush.msra.mxu3 %v7780_v20  ;;  %v2865_v26 = vsel %vm2864_vm14, %v8325_v59, %v2861_v42  ;;  %v2869_v20 = vor.u32 1.1754944e-38, %v2868_v10  ;;  %vm2867_vm15 = vcmp.eq.f32.partialorder %v2866_v16, 8.507059e+37  ;;  %v4531_v59 = vld [vmem:[#allocation10 + $0xa0] sm:$0xff]  ;;  %v10133_v42 = vld [vmem:[#allocation78_spill] sm:$0xff]  ;;  %v10134_v10 = vld [vmem:[#allocation33_spill] sm:$0xff] }
 0x5e1   :  { %3889 = vtanh.f32 %v8359_v2  ;;  %v10135_v16 = vld [vmem:[#allocation82_spill] sm:$0xff] }
 0x5e2   :  { %3135 = vmatpush.msra.mxu1 %v7787_v45  ;;  %3175 = vmatpush.msra.mxu3 %v7790_v32  ;;  %v2870_v45 = vsel %vm2867_vm15, %v2869_v20, %v2865_v26  ;;  %v10136_v26 = vld [vmem:[#allocation32_spill] sm:$0xff]  ;;  %v10137_v20 = vld [vmem:[#allocation85_spill] sm:$0xff] }
 0x5e4   :  { %3136 = vmatpush.msra.mxu1 %v7797_v47  ;;  %3176 = vmatpush.msra.mxu3 %v7800_v41  ;;  %v4515_v47 = vld [vmem:[#allocation10 + $0x1e0] sm:$0xff]  ;;  %v4516_v41 = vld [vmem:[#allocation10 + $0x1f0] sm:$0xff] }
 0x5e6   :  { %3137 = vmatpush.msra.mxu1 %v7804_v58  ;;  %3177 = vmatpush.msra.mxu3 %v7807_v1  ;;  %v4517_v58 = vld [vmem:[#allocation10 + $0x1c0] sm:$0xff] }
 0x5e7   :  { %v3890_v50 = vpop.eup %3889  ;;  %v4519_v1 = vld [vmem:[#allocation10 + $0x1a0] sm:$0xff] }
 0x5e8   :  { %3138 = vmatpush.msra.mxu1 %v7810_v7  ;;  %3178 = vmatpush.msra.mxu3 %v7813_v60  ;;  %v8378_v32 = vmul.f32 %v3890_v50, %v2870_v45  ;;  %v4520_v7 = vld [vmem:[#allocation10 + $0x1b0] sm:$0xff]  ;;  %v4521_v60 = vld [vmem:[#allocation10 + $0x180] sm:$0xff] }
 0x5e9   :  { %v10138_v50 = vld [vmem:[#allocation91_spill] sm:$0xff]  ;;  %v10139_v45 = vld [vmem:[#allocation89_spill] sm:$0xff] }
 0x5ea   :  { %3139 = vmatpush.msra.mxu1 %v7818_v23  ;;  %3179 = vmatpush.msra.mxu3 %v7821_v4  ;;  %v4518_v4 = vld [vmem:[#allocation10 + $0x1d0] sm:$0xff] }
 0x5eb   :  { %2893 = vmatmul.f32.vlgmr.msrb.gmra.mxu0 %v8378_v32  ;;  %2933 = vmatmul.f32.vlgmr.msrb.gmra.mxu2 %v8378_v32  ;;  %v4522_v23 = vld [vmem:[#allocation10 + $0x190] sm:$0xff] }
 0x5ec   :  { %3140 = vmatpush.msra.mxu1 %v7828_v39  ;;  %3180 = vmatpush.msra.mxu3 %v7831_v19  ;;  %v4523_v39 = vld [vmem:[#allocation10 + $0x160] sm:$0xff]  ;;  %v4524_v19 = vld [vmem:[#allocation10 + $0x170] sm:$0xff] }
 0x5ed   :  { %3108 = vmatpush.msrb.mxu0 %v4515_v47  ;;  %3148 = vmatpush.msrb.mxu2 %v4516_v41  ;;  %v10140_v47 = vld [vmem:[#allocation86_spill] sm:$0xff] }
 0x5ee   :  { %3141 = vmatpush.msra.mxu1 %v7836_v24  ;;  %3181 = vmatpush.msra.mxu3 %v7839_v57  ;;  %v4525_v24 = vld [vmem:[#allocation10 + $0x140] sm:$0xff]  ;;  %v4526_v57 = vld [vmem:[#allocation10 + $0x150] sm:$0xff] }
 0x5ef   :  { %3109 = vmatpush.msrb.mxu0 %v4517_v58  ;;  %3149 = vmatpush.msrb.mxu2 %v4518_v4  ;;  %v10142_v41 = vld [vmem:[#allocation98_spill] sm:$0xff]  ;;  %v10143_v58 = vld [vmem:[#allocation35_spill] sm:$0xff] }
 0x5f0   :  { %3142 = vmatpush.msra.mxu1 %v7844_v48  ;;  %3182 = vmatpush.msra.mxu3 %v7847_v61  ;;  %v4527_v48 = vld [vmem:[#allocation10 + $0x120] sm:$0xff]  ;;  %v10103_v61 = vld [vmem:[#allocation118_spill] sm:$0xff] }
 0x5f1   :  { %3110 = vmatpush.msrb.mxu0 %v4519_v1  ;;  %3150 = vmatpush.msrb.mxu2 %v4520_v7  ;;  %v10144_v4 = vld [vmem:[#allocation94_spill] sm:$0xff]  ;;  %v10145_v1 = vld [vmem:[#allocation95_spill] sm:$0xff] }
 0x5f2   :  { %3143 = vmatpush.msra.mxu1 %v7852_v28  ;;  %3183 = vmatpush.msra.mxu3 %v7855_v22  ;;  %v10104_v28 = vld [vmem:[#allocation112_spill] sm:$0xff]  ;;  %v10146_v7 = vld [vmem:[#allocation99_spill] sm:$0xff] }
 0x5f3   :  { %3111 = vmatpush.msrb.mxu0 %v4521_v60  ;;  %3151 = vmatpush.msrb.mxu2 %v4522_v23  ;;  %v4528_v22 = vld [vmem:[#allocation10 + $0x100] sm:$0xff] }
 0x5f4   :  { %2973 = vmatmul.f32.vlgmr.msra.gmra.mxu0 %v8378_v32  ;;  %3013 = vmatmul.f32.vlgmr.msra.gmra.mxu2 %v8378_v32  ;;  %v10147_v60 = vld [vmem:[#allocation51_spill] sm:$0xff]  ;;  %v10148_v23 = vld [vmem:[#allocation36_spill] sm:$0xff] }
 0x5f5   :  { %3112 = vmatpush.msrb.mxu0 %v4523_v39  ;;  %3144 = vmatmul.f32.vlgmr.msra.gmra.mxu1 %v8378_v32  ;;  %v10149_v39 = vld [vmem:[#allocation52_spill] sm:$0xff] }
 0x5f6   :  { %3152 = vmatpush.msrb.mxu2 %v4524_v19  ;;  %3184 = vmatmul.f32.vlgmr.msra.gmra.mxu3 %v8378_v32  ;;  %v10150_v19 = vld [vmem:[#allocation59_spill] sm:$0xff] }
 0x5f7   :  { %3113 = vmatpush.msrb.mxu0 %v4525_v24  ;;  %3271 = vmatpush.msrb.mxu1 %v7865_v35  ;;  %v4529_v35 = vld [vmem:[#allocation10 + $0xe0] sm:$0xff]  ;;  %v10151_v24 = vld [vmem:[#allocation102_spill] sm:$0xff] }
 0x5f8   :  { %3153 = vmatpush.msrb.mxu2 %v4526_v57  ;;  %3311 = vmatpush.msrb.mxu3 %v7869_v9  ;;  %v10109_v9 = vld [vmem:[#allocation46_spill] sm:$0xff]  ;;  %v10152_v57 = vld [vmem:[#allocation55_spill] sm:$0xff] }
 0x5f9   :  { %3114 = vmatpush.msrb.mxu0 %v4527_v48  ;;  %3272 = vmatpush.msrb.mxu1 %v7873_v13  ;;  %v4530_v13 = vld [vmem:[#allocation10 + $0xc0] sm:$0xff] }
 0x5fa   :  { %3154 = vmatpush.msrb.mxu2 %v10103_v61  ;;  %3312 = vmatpush.msrb.mxu3 %v10104_v28  ;;  %v10153_v48 = vld [vmem:[#allocation56_spill] sm:$0xff]  ;;  %v10154_v61 = vld [vmem:[#allocation63_spill] sm:$0xff] }
 0x5fb   :  { %3115 = vmatpush.msrb.mxu0 %v4528_v22  ;;  %3273 = vmatpush.msrb.mxu1 %v10105_v31  ;;  %v10155_v28 = vld [vmem:[#allocation103_spill] sm:$0xff]  ;;  %v10157_v31 = vld [vmem:[#allocation60_spill] sm:$0xff] }
 0x5fc   :  { %3155 = vmatpush.msrb.mxu2 %v10106_v43  ;;  %3313 = vmatpush.msrb.mxu3 %v10107_v12  ;;  %v10156_v22 = vld [vmem:[#allocation107_spill] sm:$0xff]  ;;  %v10159_v12 = vld [vmem:[#allocation108_spill] sm:$0xff] }
 0x5fd   :  { %3116 = vmatpush.msrb.mxu0 %v4529_v35  ;;  %3274 = vmatpush.msrb.mxu1 %v10108_v46  ;;  %v10158_v43 = vld [vmem:[#allocation67_spill] sm:$0xff]  ;;  %v10161_v46 = vld [vmem:[#allocation64_spill] sm:$0xff] }
 0x5fe   :  { %3156 = vmatpush.msrb.mxu2 %v10109_v9  ;;  %3314 = vmatpush.msrb.mxu3 %v10110_v34  ;;  %v10160_v35 = vld [vmem:[#allocation111_spill] sm:$0xff]  ;;  %v10163_v34 = vld [vmem:[#allocation113_spill] sm:$0xff] }
 0x5ff   :  { %3117 = vmatpush.msrb.mxu0 %v4530_v13  ;;  %3275 = vmatpush.msrb.mxu1 %v10111_v49  ;;  %v10162_v9 = vld [vmem:[#allocation71_spill] sm:$0xff]  ;;  %v10164_v13 = vld [vmem:[#allocation116_spill] sm:$0xff] }
 0x600   :  { %3157 = vmatpush.msrb.mxu2 %v10112_v62  ;;  %3315 = vmatpush.msrb.mxu3 %v10113_v29  ;;  %v10165_v49 = vld [vmem:[#allocation68_spill] sm:$0xff]  ;;  %v10166_v62 = vld [vmem:[#allocation79_spill] sm:$0xff]  ;;  %v10167_v29 = vld [vmem:[#allocation117_spill] sm:$0xff] }
 0x601   :  { %3118 = vmatpush.msrb.mxu0 %v4531_v59  ;;  %3276 = vmatpush.msrb.mxu1 %v10114_v27  ;;  %v10168_v59 = vld [vmem:[#allocation72_spill] sm:$0xff]  ;;  %v10169_v27 = vld [vmem:[#allocation75_spill] sm:$0xff] }
 0x602   :  { %3158 = vmatpush.msrb.mxu2 %v10115_v54  ;;  %3316 = vmatpush.msrb.mxu3 %v10116_v18  ;;  %v10170_v54 = vld [vmem:[#allocation87_spill] sm:$0xff]  ;;  %v10171_v18 = vld [vmem:[#allocation76_spill] sm:$0xff] }
 0x603   :  { %3119 = vmatpush.msrb.mxu0 %v4532_v17  ;;  %3277 = vmatpush.msrb.mxu1 %v10117_v30  ;;  %v10172_v17 = vld [vmem:[#allocation80_spill] sm:$0xff]  ;;  %v10173_v30 = vld [vmem:[#allocation83_spill] sm:$0xff] }
 0x604   :  { %3159 = vmatpush.msrb.mxu2 %v10118_v25  ;;  %3317 = vmatpush.msrb.mxu3 %v10119_v36  ;;  %v10174_v25 = vld [vmem:[#allocation96_spill] sm:$0xff] }
 0x605   :  { %3120 = vmatpush.msrb.mxu0 %v4533_v38  ;;  %3278 = vmatpush.msrb.mxu1 %v10120_v53  ;;  %v10175_v36 = vld [vmem:[#allocation84_spill] sm:$0xff] }
 0x606   :  { %3160 = vmatpush.msrb.mxu2 %v10121_v55  ;;  %3318 = vmatpush.msrb.mxu3 %v10122_v51  ;;  %v10176_v38 = vld [vmem:[#allocation88_spill] sm:$0xff]  ;;  %v10178_v55 = vld [vmem:[#allocation105_spill] sm:$0xff] }
 0x607   :  { %3121 = vmatpush.msrb.mxu0 %v4534_v14  ;;  %3279 = vmatpush.msrb.mxu1 %v10123_v56  ;;  %v10177_v53 = vld [vmem:[#allocation92_spill] sm:$0xff]  ;;  %v10179_v51 = vld [vmem:[#allocation93_spill] sm:$0xff] }
 0x608   :  { %3161 = vmatpush.msrb.mxu2 %v10124_v0  ;;  %3319 = vmatpush.msrb.mxu3 %v10125_v15  ;;  %v10180_v14 = vld [vmem:[#allocation97_spill] sm:$0xff]  ;;  %v10181_v56 = vld [vmem:[#allocation100_spill] sm:$0xff]  ;;  %v10182_v0 = vld [vmem:[#allocation114_spill] sm:$0xff] }
 0x609   :  { %3122 = vmatpush.msrb.mxu0 %v4535_v33  ;;  %3280 = vmatpush.msrb.mxu1 %v10126_v3  ;;  %v10183_v15 = vld [vmem:[#allocation101_spill] sm:$0xff]  ;;  %v10184_v33 = vld [vmem:[#allocation106_spill] sm:$0xff] }
 0x60a   :  { %3162 = vmatpush.msrb.mxu2 %v10127_v52  ;;  %3320 = vmatpush.msrb.mxu3 %v10128_v37  ;;  %v10185_v3 = vld [vmem:[#allocation109_spill] sm:$0xff]  ;;  %v10187_v37 = vld [vmem:[#allocation110_spill] sm:$0xff] }
 0x60b   :  { %3123 = vmatpush.msrb.mxu0 %v4536_v8  ;;  %3281 = vmatpush.msrb.mxu1 %v10129_v44  ;;  %v10186_v52 = vld [vmem:[#allocation37_spill] sm:$0xff]  ;;  %v10188_v8 = vld [vmem:[#allocation115_spill] sm:$0xff]  ;;  %v10189_v44 = vld [vmem:[#allocation120_spill] sm:$0xff] }
 0x60c   :  { %3163 = vmatpush.msrb.mxu2 %v10130_v11  ;;  %3124 = vmatmul.f32.vlgmr.msrb.gmra.mxu0 %v8378_v32  ;;  %v10190_v11 = vld [vmem:[#allocation127_spill] sm:$0xff] }
 0x60d   :  { %3164 = vmatmul.f32.vlgmr.msrb.gmra.mxu2 %v8378_v32  ;;  %3251 = vmatpush.msra.mxu0 %v10131_v63  ;;  %v10141_v32 = vld [vmem:[#allocation34_spill] sm:$0xff]  ;;  %v10191_v63 = vld [vmem:[#allocation121_spill] sm:$0xff] }
 0x60e   :  { %3321 = vmatpush.msrb.mxu3 %v10132_v40  ;;  %3282 = vmatpush.msrb.mxu1 %v10133_v42  ;;  %v10192_v40 = vld [vmem:[#allocation131_spill] sm:$0xff]  ;;  %v10193_v42 = vld [vmem:[#allocation124_spill] sm:$0xff] }
 0x60f   :  { %3252 = vmatpush.msra.mxu0 %v10134_v10  ;;  %3291 = vmatpush.msra.mxu2 %v10135_v16  ;;  %v10194_v10 = vld [vmem:[#allocation125_spill] sm:$0xff]  ;;  %v10195_v16 = vld [vmem:[#allocation126_spill] sm:$0xff] }
 0x610   :  { %3322 = vmatpush.msrb.mxu3 %v10136_v26  ;;  %3283 = vmatpush.msrb.mxu1 %v10137_v20  ;;  %v10196_v26 = vld [vmem:[#allocation135_spill] sm:$0xff]  ;;  %v10197_v20 = vld [vmem:[#allocation128_spill] sm:$0xff] }
 0x611   :  { %3253 = vmatpush.msra.mxu0 %v10138_v50  ;;  %3292 = vmatpush.msra.mxu2 %v10139_v45  ;;  %v10198_v50 = vld [vmem:[#allocation129_spill] sm:$0xff]  ;;  %v10199_v45 = vld [vmem:[#allocation130_spill] sm:$0xff] }
 0x612   :  { %3323 = vmatpush.msrb.mxu3 %v10140_v47  ;;  %3284 = vmatpush.msrb.mxu1 %v10141_v32  ;;  %v10200_v47 = vld [vmem:[#allocation139_spill] sm:$0xff]  ;;  %v10201_v32 = vld [vmem:[#allocation132_spill] sm:$0xff] }
 0x613   :  { %3254 = vmatpush.msra.mxu0 %v10142_v41  ;;  %3293 = vmatpush.msra.mxu2 %v10143_v58  ;;  %v10202_v41 = vld [vmem:[#allocation133_spill] sm:$0xff]  ;;  %v10203_v58 = vld [vmem:[#allocation134_spill] sm:$0xff] }
 0x614   :  { %3324 = vmatpush.msrb.mxu3 %v10144_v4  ;;  %3285 = vmatpush.msrb.mxu1 %v10145_v1  ;;  %v10204_v4 = vld [vmem:[#allocation143_spill] sm:$0xff]  ;;  %v10205_v1 = vld [vmem:[#allocation136_spill] sm:$0xff] }
 0x615   :  { %3255 = vmatpush.msra.mxu0 %v10146_v7  ;;  %3294 = vmatpush.msra.mxu2 %v10147_v60  ;;  %v10206_v7 = vld [vmem:[#allocation137_spill] sm:$0xff]  ;;  %v10207_v60 = vld [vmem:[#allocation138_spill] sm:$0xff] }
 0x616   :  { %3325 = vmatpush.msrb.mxu3 %v10148_v23  ;;  %3286 = vmatpush.msrb.mxu1 %v10149_v39  ;;  %v10208_v23 = vld [vmem:[#allocation147_spill] sm:$0xff]  ;;  %v10209_v39 = vld [vmem:[#allocation140_spill] sm:$0xff] }
 0x617   :  { %3256 = vmatpush.msra.mxu0 %v10150_v19  ;;  %3295 = vmatpush.msra.mxu2 %v10151_v24  ;;  %v10210_v19 = vld [vmem:[#allocation141_spill] sm:$0xff]  ;;  %v10211_v24 = vld [vmem:[#allocation142_spill] sm:$0xff] }
 0x618   :  { %3326 = vmatpush.msrb.mxu3 %v10152_v57  ;;  %3351 = vmatpush.msra.mxu1 %v10153_v48  ;;  %v10212_v57 = vld [vmem:[#allocation149_spill] sm:$0xff]  ;;  %v10213_v48 = vld [vmem:[#allocation144_spill] sm:$0xff] }
 0x619   :  { %3257 = vmatpush.msra.mxu0 %v10154_v61  ;;  %3296 = vmatpush.msra.mxu2 %v10156_v22  ;;  %v10214_v61 = vld [vmem:[#allocation145_spill] sm:$0xff]  ;;  %v10216_v22 = vld [vmem:[#allocation151_spill] sm:$0xff] }
 0x61a   :  { %3391 = vmatpush.msra.mxu3 %v10155_v28  ;;  %3352 = vmatpush.msra.mxu1 %v10157_v31  ;;  %v10215_v28 = vld [vmem:[#allocation146_spill] sm:$0xff]  ;;  %v10217_v31 = vld [vmem:[#allocation148_spill] sm:$0xff] }
 0x61b   :  { %3258 = vmatpush.msra.mxu0 %v10158_v43  ;;  %3297 = vmatpush.msra.mxu2 %v10160_v35  ;;  %v10218_v43 = vld [vmem:[#allocation153_spill] sm:$0xff]  ;;  %v10220_v35 = vld [vmem:[#allocation155_spill] sm:$0xff] }
 0x61c   :  { %3392 = vmatpush.msra.mxu3 %v10159_v12  ;;  %3353 = vmatpush.msra.mxu1 %v10161_v46  ;;  %v10219_v12 = vld [vmem:[#allocation150_spill] sm:$0xff]  ;;  %v10221_v46 = vld [vmem:[#allocation152_spill] sm:$0xff] }
 0x61d   :  { %3259 = vmatpush.msra.mxu0 %v10162_v9  ;;  %3298 = vmatpush.msra.mxu2 %v10164_v13  ;;  %v10222_v9 = vld [vmem:[#allocation157_spill] sm:$0xff]  ;;  %v10224_v13 = vld [vmem:[#allocation159_spill] sm:$0xff] }
 0x61e   :  { %3393 = vmatpush.msra.mxu3 %v10163_v34  ;;  %3354 = vmatpush.msra.mxu1 %v10165_v49  ;;  %v10223_v34 = vld [vmem:[#allocation154_spill] sm:$0xff]  ;;  %v10225_v49 = vld [vmem:[#allocation156_spill] sm:$0xff] }
 0x61f   :  { %3260 = vmatpush.msra.mxu0 %v10166_v62  ;;  %3299 = vmatpush.msra.mxu2 %v10168_v59  ;;  %v10226_v62 = vld [vmem:[#allocation161_spill] sm:$0xff]  ;;  %v10228_v59 = vld [vmem:[#allocation163_spill] sm:$0xff] }
 0x620   :  { %3394 = vmatpush.msra.mxu3 %v10167_v29  ;;  %3355 = vmatpush.msra.mxu1 %v10169_v27  ;;  %v10227_v29 = vld [vmem:[#allocation158_spill] sm:$0xff]  ;;  %v10229_v27 = vld [vmem:[#allocation160_spill] sm:$0xff] }
 0x621   :  { %3261 = vmatpush.msra.mxu0 %v10170_v54  ;;  %3300 = vmatpush.msra.mxu2 %v10172_v17  ;;  %v10230_v54 = vld [vmem:[#allocation165_spill] sm:$0xff]  ;;  %v10232_v17 = vld [vmem:[#allocation167_spill] sm:$0xff] }
 0x622   :  { %3395 = vmatpush.msra.mxu3 %v10171_v18  ;;  %3356 = vmatpush.msra.mxu1 %v10173_v30  ;;  %v10231_v18 = vld [vmem:[#allocation162_spill] sm:$0xff]  ;;  %v10233_v30 = vld [vmem:[#allocation164_spill] sm:$0xff] }
 0x623   :  { %3262 = vmatpush.msra.mxu0 %v10174_v25  ;;  %3301 = vmatpush.msra.mxu2 %v10176_v38  ;;  %v10234_v25 = vld [vmem:[#allocation169_spill] sm:$0xff]  ;;  %v10236_v38 = vld [vmem:[#allocation168_spill] sm:$0xff] }
 0x624   :  { %3396 = vmatpush.msra.mxu3 %v10175_v36  ;;  %3357 = vmatpush.msra.mxu1 %v10177_v53  ;;  %v10235_v36 = vld [vmem:[#allocation166_spill] sm:$0xff] }
 0x625   :  { %3263 = vmatpush.msra.mxu0 %v10178_v55  ;;  %3302 = vmatpush.msra.mxu2 %v10180_v14  ;;  %v10237_v53 = vld [vmem:[#allocation170_spill] sm:$0xff] }
 0x626   :  { %3397 = vmatpush.msra.mxu3 %v10179_v51  ;;  %3358 = vmatpush.msra.mxu1 %v10181_v56  ;;  %v10238_v56 = vld [vmem:[#allocation39_spill] sm:$0xff] }
 0x627   :  { %3264 = vmatpush.msra.mxu0 %v10182_v0  ;;  %3303 = vmatpush.msra.mxu2 %v10184_v33 }
 0x628   :  { %3398 = vmatpush.msra.mxu3 %v10183_v15  ;;  %3359 = vmatpush.msra.mxu1 %v10185_v3 }
 0x629   :  { %3265 = vmatpush.msra.mxu0 %v10186_v52  ;;  %3304 = vmatpush.msra.mxu2 %v10188_v8 }
 0x62a   :  { %3399 = vmatpush.msra.mxu3 %v10187_v37  ;;  %3360 = vmatpush.msra.mxu1 %v10189_v44  ;;  %v10239_v37 = vld [vmem:[#allocation40_spill] sm:$0xff] }
 0x62b   :  { %3266 = vmatpush.msra.mxu0 %v10190_v11  ;;  %3305 = vmatpush.msra.mxu2 %v10193_v42 }
 0x62c   :  { %3400 = vmatpush.msra.mxu3 %v10191_v63  ;;  %3361 = vmatpush.msra.mxu1 %v10194_v10  ;;  %v10240_v63 = vld [vmem:[#allocation122_spill] sm:$0xff] }
 0x62d   :  { %3331 = vmatpush.msrb.mxu0 %v10192_v40  ;;  %3306 = vmatpush.msra.mxu2 %v10197_v20  ;;  %v3101_v40 = vrot.slane %v10240_v63, 6 }
 0x62e   :  { %3401 = vmatpush.msra.mxu3 %v10195_v16  ;;  %3362 = vmatpush.msra.mxu1 %v10198_v50 }
 0x62f   :  { %3332 = vmatpush.msrb.mxu0 %v10196_v26  ;;  %3371 = vmatpush.msrb.mxu2 %v10201_v32 }
 0x630   :  { %3402 = vmatpush.msra.mxu3 %v10199_v45  ;;  %3363 = vmatpush.msra.mxu1 %v10202_v41  ;;  %v10241_v45 = vld [vmem:[#allocation41_spill] sm:$0xff] }
 0x631   :  { %3333 = vmatpush.msrb.mxu0 %v10200_v47  ;;  %3372 = vmatpush.msrb.mxu2 %v10205_v1 }
 0x632   :  { %3403 = vmatpush.msra.mxu3 %v10203_v58  ;;  %3364 = vmatpush.msra.mxu1 %v10206_v7 }
 0x633   :  { %3334 = vmatpush.msrb.mxu0 %v10204_v4  ;;  %3373 = vmatpush.msrb.mxu2 %v10209_v39  ;;  %v10242_v39 = vld [vmem:[#allocation119_spill] sm:$0xff] }
 0x634   :  { %3404 = vmatpush.msra.mxu3 %v10207_v60  ;;  %3365 = vmatpush.msra.mxu1 %v10210_v19  ;;  %v3103_v19 = vrot.slane %v10242_v39, 6  ;;  %v3490_v39 = vrot.slane %v8319_v5, 6 }
 0x635   :  { %3335 = vmatpush.msrb.mxu0 %v10208_v23  ;;  %3374 = vmatpush.msrb.mxu2 %v10213_v48 }
 0x636   :  { %3405 = vmatpush.msra.mxu3 %v10211_v24  ;;  %3366 = vmatpush.msra.mxu1 %v10214_v61 }
 0x637   :  { %3336 = vmatpush.msrb.mxu0 %v10212_v57  ;;  %3375 = vmatpush.msrb.mxu2 %v10217_v31  ;;  %v10243_v57 = vld [vmem:[#allocation42_spill] sm:$0xff] }
 0x638   :  { %3406 = vmatpush.msra.mxu3 %v10215_v28 }
 0x639   :  { %3337 = vmatpush.msrb.mxu0 %v10216_v22  ;;  %3376 = vmatpush.msrb.mxu2 %v10219_v12 }
 0x63b   :  { %3338 = vmatpush.msrb.mxu0 %v10218_v43  ;;  %3377 = vmatpush.msrb.mxu2 %v10221_v46 }
 0x63d   :  { %3339 = vmatpush.msrb.mxu0 %v10220_v35  ;;  %3378 = vmatpush.msrb.mxu2 %v10223_v34 }
 0x63f   :  { %3340 = vmatpush.msrb.mxu0 %v10222_v9  ;;  %3379 = vmatpush.msrb.mxu2 %v10225_v49 }
 0x641   :  { %3341 = vmatpush.msrb.mxu0 %v10224_v13  ;;  %3380 = vmatpush.msrb.mxu2 %v10227_v29 }
 0x643   :  { %3342 = vmatpush.msrb.mxu0 %v10226_v62  ;;  %3381 = vmatpush.msrb.mxu2 %v10229_v27 }
 0x645   :  { %3343 = vmatpush.msrb.mxu0 %v10228_v59  ;;  %3382 = vmatpush.msrb.mxu2 %v10231_v18 }
 0x647   :  { %3344 = vmatpush.msrb.mxu0 %v10230_v54  ;;  %3383 = vmatpush.msrb.mxu2 %v10233_v30 }
 0x649   :  { %3345 = vmatpush.msrb.mxu0 %v10232_v17  ;;  %3384 = vmatpush.msrb.mxu2 %v10235_v36  ;;  %v10246_v17 = vld [vmem:[#allocation104_spill] sm:$0xff] }
 0x64a   :  { %v3100_v30 = vrot.slane %v10246_v17, 6 }
 0x64b   :  { %3346 = vmatpush.msrb.mxu0 %v10234_v25  ;;  %3385 = vmatpush.msrb.mxu2 %v10236_v38 }
 0x64d   :  { %3386 = vmatpush.msrb.mxu2 %v10237_v53 }
 0x650   :  { %v2914_v55 = vpop.f32.mrf.mxu1 }
 0x656   :  { %v2954_v15 = vpop.f32.mrf.mxu3 }
 0x658   :  { %v2994_v14 = vpop.f32.mrf.mxu1 }
 0x65e   :  { %v3034_v26 = vpop.f32.mrf.mxu3 }
 0x668   :  { %v2894_v51 = vpop.f32.mrf.mxu0 }
 0x669   :  { %v2895_v0 = vadd.f32 %v2894_v51, %v10238_v56 }
 0x66b   :  { %v2915_v33 = vadd.f32 %v2914_v55, %v2895_v0 }
 0x66d   :  { %v3657_v3 = vmul.f32 -1.442695, %v2915_v33 }
 0x66e   :  { %v2934_v52 = vpop.f32.mrf.mxu2 }
 0x66f   :  { %3891 = vpow2.f32 %v3657_v3  ;;  %v2935_v8 = vadd.f32 %v2934_v52, %v10239_v37 }
 0x671   :  { %v2955_v44 = vadd.f32 %v2954_v15, %v2935_v8  ;;  %v2974_v7 = vpop.f32.mrf.mxu0 }
 0x672   :  { %v3145_v11 = vpop.f32.mrf.mxu1  ;;  %v2975_v48 = vadd.f32 %v2974_v7, %v10243_v57 }
 0x673   :  { %v3658_v42 = vmul.f32 -1.442695, %v2955_v44  ;;  %v3146_v10 = vadd.f32 %v3145_v11, %v3101_v40 }
 0x674   :  { %v2995_v43 = vadd.f32 %v2994_v14, %v2975_v48 }
 0x675   :  { %v3892_v16 = vpop.eup %3891  ;;  %3893 = vpow2.f32 %v3658_v42  ;;  %v3661_v32 = vmul.f32 -1.442695, %v3146_v10 }
 0x676   :  { %v3040_v20 = vadd.f32 1.0, %v3892_v16 }
 0x677   :  { %v3014_v50 = vpop.f32.mrf.mxu2 }
 0x678   :  { %v3015_v47 = vadd.f32 %v3014_v50, %v10241_v45  ;;  %3895 = vrcp.f32 %v3040_v20  ;;  %v3052_v62 = vand.u32 2147483648, %v3040_v20  ;;  %vm3046_vm1 = vweird.f32 %v3040_v20 }
 0x679   :  { %3897 = vpow2.f32 %v3661_v32  ;;  %v3185_v60 = vpop.f32.mrf.mxu3  ;;  %v3050_v59 = vand.u32 2147483647, %v3040_v20 }
 0x67a   :  { %v3035_v41 = vadd.f32 %v3034_v26, %v3015_v47  ;;  %v3186_v61 = vadd.f32 %v3185_v60, %v3103_v19  ;;  %v3053_v53 = vor.u32 1.1754944e-38, %v3052_v62 }
 0x67b   :  { %v3894_v58 = vpop.eup %3893  ;;  %vm3051_vm6 = vcmp.eq.f32.partialorder %v3050_v59, 8.507059e+37 }
 0x67c   :  { %v3659_v4 = vmul.f32 -1.442695, %v3035_v41  ;;  %v3059_v1 = vadd.f32 1.0, %v3894_v58  ;;  %v3662_v9 = vmul.f32 -1.442695, %v3186_v61  ;;  %v3102_v61 = vrot.slane %v7401_v21, 6 }
 0x67e   :  { %3899 = vpow2.f32 %v3659_v4  ;;  %v3896_v23 = vpop.eup %3895  ;;  %v3071_v27 = vand.u32 2147483648, %v3059_v1  ;;  %v3069_v18 = vand.u32 2147483647, %v3059_v1  ;;  %vm3065_vm4 = vweird.f32 %v3059_v1 }
 0x67f   :  { %3901 = vrcp.f32 %v3059_v1  ;;  %v3042_v24 = vmul.f32 %v3896_v23, %v3040_v20  ;;  %v3898_v22 = vpop.eup %3897  ;;  %vm3047_vm0 = vweird.f32 %v3896_v23 }
 0x680   :  { %v8540_v49 = vadd.f32 1.0, %v3898_v22  ;;  %vm8542_vm2 = vmor %vm3046_vm1, %vm3047_vm0  ;;  %v3072_v0 = vor.u32 1.1754944e-38, %v3071_v27  ;;  %vm3070_vm8 = vcmp.eq.f32.partialorder %v3069_v18, 8.507059e+37 }
 0x681   :  { %v3043_v28 = vsub.f32 1.0, %v3042_v24 }
 0x682   :  { %vm3216_vm0 = vweird.f32 %v8540_v49  ;;  %v3220_v62 = vand.u32 2147483647, %v8540_v49 }
 0x683   :  { %v3044_v12 = vmul.f32 %v3896_v23, %v3043_v28 }
 0x684   :  { %v3900_v31 = vpop.eup %3899 }
 0x685   :  { %v3902_v35 = vpop.eup %3901  ;;  %v3079_v46 = vadd.f32 1.0, %v3900_v31  ;;  %v3045_v13 = vadd.f32 %v3896_v23, %v3044_v12  ;;  %v10247_v12 = vld [vmem:[#allocation90_spill] sm:$0xff] }
 0x686   :  { %v3061_v34 = vmul.f32 %v3902_v35, %v3059_v1  ;;  %vm3066_vm3 = vweird.f32 %v3902_v35 }
 0x687   :  { %3903 = vrcp.f32 %v3079_v46  ;;  %v3049_v38 = vsel %vm8542_vm2, %v3896_v23, %v3045_v13  ;;  %vm3067_vm7 = vmor %vm3065_vm4, %vm3066_vm3  ;;  %v3091_v47 = vand.u32 2147483648, %v3079_v46  ;;  %vm3085_vm12 = vweird.f32 %v3079_v46 }
 0x688   :  { %v3062_v29 = vsub.f32 1.0, %v3061_v34  ;;  %3905 = vtanh.f32 %v2995_v43  ;;  %v3054_v15 = vsel %vm3051_vm6, %v3053_v53, %v3049_v38  ;;  %v3089_v58 = vand.u32 2147483647, %v3079_v46 }
 0x689   :  { %3907 = vpow2.f32 %v3662_v9  ;;  %v3125_v25 = vpop.f32.mrf.mxu0  ;;  %v3092_v7 = vor.u32 1.1754944e-38, %v3091_v47  ;;  %v3222_v34 = vand.u32 2147483648, %v8540_v49  ;;  %vm3221_vm2 = vcmp.eq.f32.partialorder %v3220_v62, 8.507059e+37  ;;  %v3516_v47 = vld [vmem:[#allocation14 + $0x48] sm:$0xff] }
 0x68a   :  { %v3063_v36 = vmul.f32 %v3902_v35, %v3062_v29  ;;  %3909 = vrcp.f32 %v8540_v49  ;;  %v3126_v55 = vadd.f32 %v3125_v25, %v3100_v30  ;;  %vm3090_vm14 = vcmp.eq.f32.partialorder %v3089_v58, 8.507059e+37  ;;  %v3513_v58 = vld [vmem:[#allocation14 + $0x30] sm:$0xff] }
 0x68b   :  { %v3223_v17 = vor.u32 1.1754944e-38, %v3222_v34 }
 0x68c   :  { %v3064_v51 = vadd.f32 %v3902_v35, %v3063_v36  ;;  %v3660_v33 = vmul.f32 -1.442695, %v3126_v55 }
 0x68d   :  { %v3904_v14 = vpop.eup %3903 }
 0x68e   :  { %v3906_v3 = vpop.eup %3905  ;;  %v3068_v52 = vsel %vm3067_vm7, %v3902_v35, %v3064_v51  ;;  %v3081_v8 = vmul.f32 %v3904_v14, %v3079_v46  ;;  %3911 = vpow2.f32 %v3660_v33  ;;  %vm3086_vm11 = vweird.f32 %v3904_v14 }
 0x68f   :  { %v3908_v44 = vpop.eup %3907  ;;  %v3073_v11 = vsel %vm3070_vm8, %v3072_v0, %v3068_v52  ;;  %v3096_v42 = vmul.f32 %v3906_v3, %v3054_v15  ;;  %vm3087_vm13 = vmor %vm3085_vm12, %vm3086_vm11  ;;  %v3504_v35 = vsel %vm3498_vm9, %v10247_v12, %v3490_v39  ;;  %v10250_v39 = vld [vmem:[#allocation43_spill] sm:$0xff] }
 0x690   :  { %v8550_v63 = vpop.eup %3909  ;;  %v3095_v40 = vmul.f32 %v3073_v11, %v8311_v6  ;;  %v3082_v10 = vsub.f32 1.0, %v3081_v8  ;;  %v8557_v50 = vadd.f32 1.0, %v3908_v44  ;;  %v3165_v24 = vpop.f32.mrf.mxu2 }
 0x691   :  { %v3212_v20 = vmul.f32 %v8550_v63, %v8540_v49  ;;  %v3166_v43 = vadd.f32 %v3165_v24, %v3102_v61  ;;  %vm3217_vm15 = vweird.f32 %v8550_v63 }
 0x692   :  { %v8553_v16 = vadd.f32 %v3096_v42, %v3095_v40  ;;  %v3083_v26 = vmul.f32 %v3904_v14, %v3082_v10  ;;  %vm8575_vm1 = vmor %vm3216_vm0, %vm3217_vm15  ;;  %v3242_v3 = vand.u32 2147483648, %v8557_v50  ;;  %vm3236_vm7 = vweird.f32 %v8557_v50  ;;  %v3521_v42 = vld [vmem:[#allocation14 + $0x70] sm:$0xff]  ;;  %v3520_v10 = vld [vmem:[#allocation14 + $0x68] sm:$0xff] }
 0x693   :  { %v3213_v6 = vsub.f32 1.0, %v3212_v20  ;;  %v3240_v52 = vand.u32 2147483647, %v8557_v50  ;;  %v3518_v20 = vld [vmem:[#allocation14 + $0x58] sm:$0xff] }
 0x694   :  { %3913 = vtanh.f32 %v8553_v16  ;;  %v3084_v32 = vadd.f32 %v3904_v14, %v3083_v26  ;;  %v3912_v41 = vpop.eup %3911  ;;  %v3243_v44 = vor.u32 1.1754944e-38, %v3242_v3  ;;  %v3519_v26 = vld [vmem:[#allocation14 + $0x60] sm:$0xff] }
 0x695   :  { %v3191_v4 = vadd.f32 1.0, %v3912_v41  ;;  %3915 = vrcp.f32 %v8557_v50  ;;  %v3214_v19 = vmul.f32 %v8550_v63, %v3213_v6  ;;  %vm3241_vm11 = vcmp.eq.f32.partialorder %v3240_v52, 8.507059e+37  ;;  %v3514_v41 = vld [vmem:[#allocation14 + $0x38] sm:$0xff]  ;;  %v3511_v6 = vld [vmem:[#allocation14 + $0x20] sm:$0xff] }
 0x696   :  { %v3088_v1 = vsel %vm3087_vm13, %v3904_v14, %v3084_v32  ;;  %v3515_v32 = vld [vmem:[#allocation14 + $0x40] sm:$0xff] }
 0x697   :  { %3917 = vrcp.f32 %v3191_v4  ;;  %v3093_v23 = vsel %vm3090_vm14, %v3092_v7, %v3088_v1  ;;  %v3215_v5 = vadd.f32 %v8550_v63, %v3214_v19  ;;  %v3203_v59 = vand.u32 2147483648, %v3191_v4  ;;  %v3510_v1 = vld [vmem:[#allocation14 + $0x18] sm:$0xff]  ;;  %v3509_v7 = vld [vmem:[#allocation14 + $0x10] sm:$0xff] }
 0x698   :  { %3919 = vtanh.f32 %v3166_v43  ;;  %v3201_v54 = vand.u32 2147483647, %v3191_v4 }
 0x699   :  { %v3219_v18 = vsel %vm8575_vm1, %v8550_v63, %v3215_v5  ;;  %v3204_v49 = vor.u32 1.1754944e-38, %v3203_v59 }
 0x69a   :  { %v3914_v60 = vpop.eup %3913  ;;  %v3224_v36 = vsel %vm3221_vm2, %v3223_v17, %v3219_v18  ;;  %vm3202_vm4 = vcmp.eq.f32.partialorder %v3201_v54, 8.507059e+37 }
 0x69b   :  { %v3099_v48 = vmul.f32 %v3914_v60, %v3093_v23  ;;  %v3916_v28 = vpop.eup %3915  ;;  %v3246_v14 = vmul.f32 %v3224_v36, %v8359_v2  ;;  %v3522_v2 = vld [vmem:[#allocation14 + $0x78] sm:$0xff]  ;;  %v3508_v60 = vld [vmem:[#allocation14 + $0x8] sm:$0xff]  ;;  %v3507_v23 = vld [vmem:[#allocation14] sm:$0xff] }
 0x69c   :  { %v3232_v21 = vmul.f32 %v3916_v28, %v8557_v50  ;;  %vm3237_vm6 = vweird.f32 %v3916_v28  ;;  %v3517_v50 = vld [vmem:[#allocation14 + $0x50] sm:$0xff] }
 0x69d   :  { %3287 = vmatmul.f32.vlgmr.msrb.gmra.mxu1 %v3099_v48  ;;  %3327 = vmatmul.f32.vlgmr.msrb.gmra.mxu3 %v3099_v48  ;;  %v3493_v22 = vrot.slane %v3099_v48, 4  ;;  %v3918_v31 = vpop.eup %3917  ;;  %vm3238_vm8 = vmor %vm3236_vm7, %vm3237_vm6 }
 0x69e   :  { %v3193_v46 = vmul.f32 %v3918_v31, %v3191_v4  ;;  %vm3198_vm9 = vweird.f32 %v3918_v31  ;;  %v3233_v30 = vsub.f32 1.0, %v3232_v21  ;;  %v3920_v53 = vpop.eup %3919 }
 0x69f   :  { %v8569_v9 = vsel %vm3500_vm10, %v3504_v35, %v3493_v22  ;;  %vm3197_vm10 = vweird.f32 %v3191_v4  ;;  %v3512_v4 = vld [vmem:[#allocation14 + $0x28] sm:$0xff] }
 0x6a0   :  { %v3194_v13 = vsub.f32 1.0, %v3193_v46  ;;  %vm3199_vm3 = vmor %vm3197_vm10, %vm3198_vm9  ;;  %v3234_v55 = vmul.f32 %v3916_v28, %v3233_v30 }
 0x6a2   :  { %v3195_v27 = vmul.f32 %v3918_v31, %v3194_v13  ;;  %v3235_v33 = vadd.f32 %v3916_v28, %v3234_v55 }
 0x6a4   :  { %v3196_v25 = vadd.f32 %v3918_v31, %v3195_v27  ;;  %v3239_v8 = vsel %vm3238_vm8, %v3916_v28, %v3235_v33 }
 0x6a5   :  { %3367 = vmatmul.f32.vlgmr.msra.gmra.mxu1 %v3099_v48  ;;  %3407 = vmatmul.f32.vlgmr.msra.gmra.mxu3 %v3099_v48  ;;  %v3244_v63 = vsel %vm3241_vm11, %v3243_v44, %v3239_v8 }
 0x6a6   :  { %v3200_v38 = vsel %vm3199_vm3, %v3918_v31, %v3196_v25 }
 0x6a7   :  { %v3205_v51 = vsel %vm3202_vm4, %v3204_v49, %v3200_v38 }
 0x6a8   :  { %v3247_v0 = vmul.f32 %v3920_v53, %v3205_v51  ;;  %v8594_v51 = vld [vmem:[%s8634_s9] ss:$0 sm:$0xff] }
 0x6aa   :  { %v3248_v15 = vadd.f32 %v3247_v0, %v3246_v14 }
 0x6ac   :  { %3921 = vtanh.f32 %v3248_v15  ;;  %3475 = vst [vmem:[#allocation19] sm:$0x3] %v3248_v15 }
 0x6b2   :  { %v3922_v11 = vpop.eup %3921 }
 0x6b3   :  { %v3250_v40 = vmul.f32 %v3922_v11, %v3244_v63 }
 0x6b5   :  { %3267 = vmatmul.f32.vlgmr.msra.gmra.mxu0 %v3250_v40  ;;  %3474 = vst [vmem:[#allocation17] sm:$0x3] %v3250_v40  ;;  %3307 = vmatmul.f32.vlgmr.msra.gmra.mxu2 %v3250_v40 }
 0x6b6   :  { %3527 = vmatpush.msra.mxu0 %v3522_v2 }
 0x6b8   :  { %3528 = vmatpush.msra.mxu0 %v3521_v42 }
 0x6ba   :  { %3529 = vmatpush.msra.mxu0 %v3520_v10 }
 0x6bc   :  { %3530 = vmatpush.msra.mxu0 %v3519_v26 }
 0x6bd   :  { %3347 = vmatmul.f32.vlgmr.msrb.gmra.mxu0 %v3250_v40  ;;  %3387 = vmatmul.f32.vlgmr.msrb.gmra.mxu2 %v3250_v40 }
 0x6be   :  { %3531 = vmatpush.msra.mxu0 %v3518_v20 }
 0x6c0   :  { %3532 = vmatpush.msra.mxu0 %v3517_v50 }
 0x6c2   :  { %3533 = vmatpush.msra.mxu0 %v3516_v47 }
 0x6c4   :  { %3534 = vmatpush.msra.mxu0 %v3515_v32 }
 0x6c6   :  { %3535 = vmatpush.msra.mxu0 %v3514_v41 }
 0x6c8   :  { %3536 = vmatpush.msra.mxu0 %v3513_v58 }
 0x6ca   :  { %3537 = vmatpush.msra.mxu0 %v3512_v4 }
 0x6cc   :  { %3538 = vmatpush.msra.mxu0 %v3511_v6 }
 0x6ce   :  { %3539 = vmatpush.msra.mxu0 %v3510_v1 }
 0x6d0   :  { %3540 = vmatpush.msra.mxu0 %v3509_v7 }
 0x6d2   :  { %3541 = vmatpush.msra.mxu0 %v3508_v60 }
 0x6d4   :  { %3542 = vmatpush.msra.mxu0 %v3507_v23 }
 0x6d5   :  { %3543 = vmatmul.f32.vlgmr.msra.gmra.mxu0 %v10250_v39 }
 0x71a   :  { %v3288_v48 = vpop.f32.mrf.mxu1 }
 0x720   :  { %v3328_v22 = vpop.f32.mrf.mxu3 }
 0x722   :  { %v3368_v25 = vpop.f32.mrf.mxu1 }
 0x728   :  { %v3408_v13 = vpop.f32.mrf.mxu3 }
 0x732   :  { %v3268_v19 = vpop.f32.mrf.mxu0 }
 0x733   :  { %v3269_v24 = vadd.f32 %v3268_v19, %v10238_v56 }
 0x735   :  { %v3289_v61 = vadd.f32 %v3288_v48, %v3269_v24 }
 0x737   :  { %v3663_v28 = vmul.f32 -1.442695, %v3289_v61 }
 0x738   :  { %v3308_v31 = vpop.f32.mrf.mxu2 }
 0x739   :  { %3923 = vpow2.f32 %v3663_v28  ;;  %v3309_v43 = vadd.f32 %v3308_v31, %v10239_v37 }
 0x73a   :  { %v3348_v27 = vpop.f32.mrf.mxu0 }
 0x73b   :  { %v3329_v12 = vadd.f32 %v3328_v22, %v3309_v43  ;;  %v3349_v37 = vadd.f32 %v3348_v27, %v10243_v57 }
 0x73d   :  { %v3664_v35 = vmul.f32 -1.442695, %v3329_v12  ;;  %v3369_v38 = vadd.f32 %v3368_v25, %v3349_v37 }
 0x73f   :  { %v3924_v46 = vpop.eup %3923  ;;  %3925 = vpow2.f32 %v3664_v35 }
 0x740   :  { %v3414_v5 = vadd.f32 1.0, %v3924_v46  ;;  %v3388_v34 = vpop.f32.mrf.mxu2 }
 0x741   :  { %v3389_v21 = vadd.f32 %v3388_v34, %v10241_v45 }
 0x742   :  { %3927 = vrcp.f32 %v3414_v5  ;;  %v3426_v14 = vand.u32 2147483648, %v3414_v5  ;;  %vm3420_vm13 = vweird.f32 %v3414_v5  ;;  %v3424_v57 = vand.u32 2147483647, %v3414_v5 }
 0x743   :  { %v3409_v62 = vadd.f32 %v3408_v13, %v3389_v21 }
 0x744   :  { %v3427_v63 = vor.u32 1.1754944e-38, %v3426_v14  ;;  %vm3425_vm1 = vcmp.eq.f32.partialorder %v3424_v57, 8.507059e+37 }
 0x745   :  { %v3926_v56 = vpop.eup %3925  ;;  %v3665_v29 = vmul.f32 -1.442695, %v3409_v62 }
 0x746   :  { %v3433_v59 = vadd.f32 1.0, %v3926_v56 }
 0x747   :  { %3929 = vpow2.f32 %v3665_v29 }
 0x748   :  { %v3928_v54 = vpop.eup %3927  ;;  %3931 = vrcp.f32 %v3433_v59  ;;  %v3445_v15 = vand.u32 2147483648, %v3433_v59  ;;  %v3443_v3 = vand.u32 2147483647, %v3433_v59  ;;  %vm3439_vm0 = vweird.f32 %v3433_v59 }
 0x749   :  { %v3416_v18 = vmul.f32 %v3928_v54, %v3414_v5  ;;  %vm3421_vm12 = vweird.f32 %v3928_v54 }
 0x74a   :  { %vm8596_vm14 = vmor %vm3420_vm13, %vm3421_vm12  ;;  %v3446_v42 = vor.u32 1.1754944e-38, %v3445_v15  ;;  %vm3444_vm10 = vcmp.eq.f32.partialorder %v3443_v3, 8.507059e+37 }
 0x74b   :  { %v3417_v17 = vsub.f32 1.0, %v3416_v18 }
 0x74d   :  { %v3930_v30 = vpop.eup %3929  ;;  %v3418_v49 = vmul.f32 %v3928_v54, %v3417_v17 }
 0x74e   :  { %v3932_v36 = vpop.eup %3931  ;;  %v3453_v45 = vadd.f32 1.0, %v3930_v30 }
 0x74f   :  { %v3435_v53 = vmul.f32 %v3932_v36, %v3433_v59  ;;  %v3419_v55 = vadd.f32 %v3928_v54, %v3418_v49  ;;  %vm3440_vm15 = vweird.f32 %v3932_v36 }
 0x750   :  { %3933 = vrcp.f32 %v3453_v45  ;;  %vm3441_vm9 = vmor %vm3439_vm0, %vm3440_vm15  ;;  %v3465_v7 = vand.u32 2147483648, %v3453_v45  ;;  %vm3459_vm3 = vweird.f32 %v3453_v45  ;;  %v3463_v60 = vand.u32 2147483647, %v3453_v45 }
 0x751   :  { %v3436_v0 = vsub.f32 1.0, %v3435_v53  ;;  %3935 = vtanh.f32 %v3369_v38  ;;  %v3423_v44 = vsel %vm8596_vm14, %v3928_v54, %v3419_v55 }
 0x752   :  { %v3544_v52 = vpop.f32.mrf.mxu0  ;;  %v3428_v10 = vsel %vm3425_vm1, %v3427_v63, %v3423_v44  ;;  %v3466_v39 = vor.u32 1.1754944e-38, %v3465_v7  ;;  %vm3464_vm6 = vcmp.eq.f32.partialorder %v3463_v60, 8.507059e+37 }
 0x753   :  { %v3437_v8 = vmul.f32 %v3932_v36, %v3436_v0  ;;  %v3545_v11 = vadd.f32 %v8594_v51, %v3544_v52 }
 0x755   :  { %v3438_v40 = vadd.f32 %v3932_v36, %v3437_v8  ;;  %3550 = vst [vmem:[#allocation16] sm:$0xff] %v3545_v11 }
 0x756   :  { %v3934_v2 = vpop.eup %3933 }
 0x757   :  { %v3442_v26 = vsel %vm3441_vm9, %v3932_v36, %v3438_v40  ;;  %v3455_v20 = vmul.f32 %v3934_v2, %v3453_v45  ;;  %v3936_v50 = vpop.eup %3935  ;;  %vm3460_vm2 = vweird.f32 %v3934_v2 }
 0x758   :  { %v3447_v47 = vsel %vm3444_vm10, %v3446_v42, %v3442_v26  ;;  %v3470_v41 = vmul.f32 %v3936_v50, %v3428_v10  ;;  %vm3461_vm4 = vmor %vm3459_vm3, %vm3460_vm2 }
 0x759   :  { %v3469_v32 = vmul.f32 %v3447_v47, %v8553_v16  ;;  %v3456_v58 = vsub.f32 1.0, %v3455_v20 }
 0x75b   :  { %v3471_v4 = vadd.f32 %v3470_v41, %v3469_v32  ;;  %v3457_v6 = vmul.f32 %v3934_v2, %v3456_v58 }
 0x75d   :  { %3937 = vtanh.f32 %v3471_v4  ;;  %3479 = vst [vmem:[#allocation19 + $0x2] sm:$0x3] %v3471_v4  ;;  %v3458_v1 = vadd.f32 %v3934_v2, %v3457_v6 }
 0x75f   :  { %v3462_v23 = vsel %vm3461_vm4, %v3934_v2, %v3458_v1 }
 0x760   :  { %v3467_v24 = vsel %vm3464_vm6, %v3466_v39, %v3462_v23 }
 0x763   :  { %v3938_v19 = vpop.eup %3937 }
 0x764   :  { %v3473_v48 = vmul.f32 %v3938_v19, %v3467_v24 }
 0x766   :  { %v3496_v61 = vrot.slane %v3473_v48, 2  ;;  %3477 = vst [vmem:[#allocation17 + $0x2] sm:$0x3] %v3473_v48 }
 0x767   :  { %3577 = dma.vmem_to_hbm [thread:$0]  %s3570_s28, 64, %s3572_s25, [#allocation18], %s4816_s29, %s4816_s29, %s4817_s30  }
 0x768   :  { %v3506_v16 = vsel %vm3502_vm5, %v8569_v9, %v3496_v61  ;;  %3590 = dma.vmem_to_hbm [thread:$0]  %s3583_s15, 64, %s3585_s1, [#allocation18], %s4816_s29, %s4816_s29, %s4817_s30  }
 0x769   :  { %3546 = vmatmul.f32.gmra.mxu0 %v3506_v16 }
 0x7e6   :  { %v3547_v9 = vpop.f32.mrf.mxu0 }
 0x7e7   :  { %v3548_v28 = vadd.f32 %v8594_v51, %v3547_v9 }
 0x7e9   :  { %3551 = vst [vmem:[#allocation16 + $0x8] sm:$0xff] %v3548_v28 }
 0x7ea   :  { %3564 = dma.vmem_to_hbm [thread:$0]  %s3557_s16, 256, %s3559_s19, [#allocation4], %s4822_s26, %s4822_s26, %s4823_s27  }
 0x7eb   :  { %4811 = dma.done.wait [#allocation4], 256  }
 0x7ec   :  { %4812 = vsyncadd [#allocation4], 4294967040 }
 0x7ed   :  { %4813 = dma.done.wait [#allocation18], 128  }
 0x7ee   :  { %4814 = vsyncadd [#allocation18], 4294967168 }
 0x7ef   :  { %3603 = vsyncpa [#allocation3], 1 }
 0x7f0   :  { %3604 = vsyncpa [#allocation6], 1 }
 0x7f1   :  { %3605 = vsyncpa [#allocation9], 1 }
 0x7f2   :  { %3606 = vsyncpa [#allocation12], 1 }
 0x7f3   :  { %3607 = vsyncpa [#allocation15], 1 }
 0x7f4   :  { %3608 = vsyncpa [#allocation4], 1 }
 0x7f5   :  { %3609 = vsyncpa [#allocation18], 1 }

</bundles_post_ra>
